<compile_context>
chip_gen: v7x
topology: tpu7x:2x2x1
jax: 0.10.0
libtpu: 0.0.40
codegen_flags: <defaults>
</compile_context>

<pallas_src>
import functools

import jax
import jax.numpy as jnp
from jax.experimental import pallas as pl
from jax.experimental.pallas import tpu as pltpu


# ----------------------------------------------------------------------------
# In-kernel helpers (traced inside the Pallas kernel body)
# ----------------------------------------------------------------------------
def _pool2x2(x):
    """(H, W, N, C) value -> (H//2, W//2, N, C): max over 2x2 spatial windows."""
    hh, ww = x.shape[0] // 2, x.shape[1] // 2
    x6 = x.reshape(hh, 2, ww, 2, x.shape[2], x.shape[3])
    return jnp.maximum(jnp.maximum(x6[:, 0, :, 0], x6[:, 0, :, 1]),
                       jnp.maximum(x6[:, 1, :, 0], x6[:, 1, :, 1]))


def _store_with_halo(ref, interior):
    """Store `interior` into ref[1:-1, 1:-1] and zero ONLY the 1-pixel halo.

    Runs every grid step (not gated on program_id) so it stays correct when
    the two branch iterations land on different TensorCores (v7x), each with
    its own scratch allocation.
    """
    hh, ww, n, c = interior.shape
    zrow = jnp.zeros((1, ww + 2, n, c), interior.dtype)
    zcol = jnp.zeros((hh, 1, n, c), interior.dtype)
    ref[0:1, :, :, :] = zrow                       # top halo row (incl. corners)
    ref[hh + 1:hh + 2, :, :, :] = zrow             # bottom halo row
    ref[1:hh + 1, 0:1, :, :] = zcol                # left halo column
    ref[1:hh + 1, ww + 1:ww + 2, :, :] = zcol      # right halo column
    ref[1:hh + 1, 1:ww + 1, :, :] = interior       # interior stored exactly once


def _im2col_3x3(ref, hout, wout):
    """K-folded 3x3 im2col read of a haloed, pooled activation scratch.

    ref : VMEM ref (hout+2, wout+2, n, cin) with zero halo.
    Returns (hout*wout*n, 9*cin) f32; K ordered (dy, dx, cin) to match the
    host-side weight packing.  One lane-axis concat -> ONE matmul with
    K = 9*cin instead of nine accumulating K = cin matmuls.
    """
    n, cin = ref.shape[2], ref.shape[3]
    taps = [ref[dy:dy + hout, dx:dx + wout, :, :]
            for dy in range(3) for dx in range(3)]
    cat = jnp.concatenate(taps, axis=-1)           # (hout, wout, n, 9*cin)
    return cat.reshape(hout * wout * n, 9 * cin)   # layout-trivial (n % 8 == 0)


# ----------------------------------------------------------------------------
# Fused per-branch classifier kernel (one grid step == one DigitClassifier)
# ----------------------------------------------------------------------------
def _net1_branch_kernel(a_ref, w1_ref, b1_ref, w2_ref, b2_ref, w3_ref, b3_ref,
                        wf1_ref, bf1_ref, wf2_ref, bf2_ref,
                        out_ref, pool1_ref, pool2_ref):
    f32 = jnp.float32
    n = out_ref.shape[1]
    h1p, w1p = pool1_ref.shape[0] - 2, pool1_ref.shape[1] - 2     # H/2, W/2
    h2p, w2p = pool2_ref.shape[0] - 2, pool2_ref.shape[1] - 2     # H/4, W/4
    c1, c2 = pool1_ref.shape[3], pool2_ref.shape[3]
    h, w = 2 * h1p, 2 * w1p

    # ---- conv1 (single K=9 matmul) + ReLU + maxpool1 -> haloed scratch -----
    act1 = jnp.maximum(
        jnp.dot(a_ref[0], w1_ref[0], preferred_element_type=f32) + b1_ref[0],
        0.0)                                                      # (h*w*n, c1)
    _store_with_halo(pool1_ref, _pool2x2(act1.reshape(h, w, n, c1)))

    # ---- conv2 (single K=9*c1 matmul) + ReLU + maxpool2 -> haloed scratch --
    act2 = jnp.maximum(
        jnp.dot(_im2col_3x3(pool1_ref, h1p, w1p), w2_ref[0],
                preferred_element_type=f32) + b2_ref[0],
        0.0)                                                      # (h1p*w1p*n, c2)
    _store_with_halo(pool2_ref, _pool2x2(act2.reshape(h1p, w1p, n, c2)))

    # ---- conv3 (single K=9*c2 matmul) + ReLU + maxpool3 ---------------------
    c3 = w3_ref.shape[-1]
    act3 = jnp.maximum(
        jnp.dot(_im2col_3x3(pool2_ref, h2p, w2p), w3_ref[0],
                preferred_element_type=f32) + b3_ref[0],
        0.0)                                                      # (h2p*w2p*n, c3)
    p3 = _pool2x2(act3.reshape(h2p, w2p, n, c3))                  # (ph, pw, n, c3)
    ph, pw = p3.shape[0], p3.shape[1]

    # ---- flatten + fc1 (single K = ph*pw*c3 matmul) + ReLU ------------------
    flat = jnp.concatenate([p3[py, px] for py in range(ph) for px in range(pw)],
                           axis=-1)                               # (n, ph*pw*c3)
    hid = jnp.maximum(
        jnp.dot(flat, wf1_ref[0], preferred_element_type=f32) + bf1_ref[0], 0.0)
    # dropout(p) is the identity in eval mode.
    # TODO(synk): training-mode dropout (mask + 1/(1-p) scaling) not implemented.

    # ---- fc2 -----------------------------------------------------------------
    out_ref[0] = (jnp.dot(hid, wf2_ref[0], preferred_element_type=f32)
                  + bf2_ref[0])                                   # (n, 1)


# ----------------------------------------------------------------------------
# Host-side glue: parameter layout prep, conv1 im2col, forward
# ----------------------------------------------------------------------------
def init_digit_classifier_params(key, c1, c2, c3, h, flat_dim):
    """PyTorch-layout parameters for one DigitClassifier."""
    ks = jax.random.split(key, 10)
    s = 0.1
    return {
        "w1": jax.random.normal(ks[0], (c1, 1, 3, 3), jnp.float32) * s,
        "b1": jax.random.normal(ks[1], (c1,), jnp.float32) * s,
        "w2": jax.random.normal(ks[2], (c2, c1, 3, 3), jnp.float32) * s,
        "b2": jax.random.normal(ks[3], (c2,), jnp.float32) * s,
        "w3": jax.random.normal(ks[4], (c3, c2, 3, 3), jnp.float32) * s,
        "b3": jax.random.normal(ks[5], (c3,), jnp.float32) * s,
        "wf1": jax.random.normal(ks[6], (h, flat_dim), jnp.float32) * s,
        "bf1": jax.random.normal(ks[7], (h,), jnp.float32) * s,
        "wf2": jax.random.normal(ks[8], (1, h), jnp.float32) * s,
        "bf2": jax.random.normal(ks[9], (1,), jnp.float32) * s,
    }


def _prepare_params(p, ph, pw):
    """PyTorch layouts -> kernel layouts (all f32; K-folded conv / fc1 weights)."""
    f32 = jnp.float32
    c1 = p["w1"].shape[0]
    c2 = p["w2"].shape[0]
    c3 = p["w3"].shape[0]
    h = p["wf1"].shape[0]
    # Conv weights: (cout, cin, 3, 3) -> (3, 3, cin, cout) -> (9*cin, cout).
    # K index = (3*dy + dx)*cin + cin_idx, matching the in-kernel lane concat.
    w1 = jnp.transpose(p["w1"], (2, 3, 1, 0)).reshape(9, c1).astype(f32)
    w2 = jnp.transpose(p["w2"], (2, 3, 1, 0)).reshape(9 * c1, c2).astype(f32)
    w3 = jnp.transpose(p["w3"], (2, 3, 1, 0)).reshape(9 * c2, c3).astype(f32)
    # torch flattens (N, c3, ph, pw) in (c, y, x) order; kernel K order is
    # (y, x, c) to match the in-kernel lane concat of the pooled positions.
    wf1 = p["wf1"].reshape(h, c3, ph, pw)
    wf1 = jnp.transpose(wf1, (2, 3, 1, 0)).reshape(ph * pw * c3, h).astype(f32)
    return {
        "w1": w1, "b1": p["b1"].reshape(1, c1).astype(f32),
        "w2": w2, "b2": p["b2"].reshape(1, c2).astype(f32),
        "w3": w3, "b3": p["b3"].reshape(1, c3).astype(f32),
        "wf1": wf1, "bf1": p["bf1"].reshape(1, h).astype(f32),
        "wf2": jnp.transpose(p["wf2"]).astype(f32),      # (h, 1)
        "bf2": p["bf2"].reshape(1, 1).astype(f32),
    }


def _conv1_im2col(x):
    """(N, 2, H, W) padded batch -> (2, H*W*N, 9) im2col, rows ordered (y,x,n)."""
    n, _, h, w = x.shape
    xp = jnp.pad(x, ((0, 0), (0, 0), (1, 1), (1, 1)))
    taps = [xp[:, :, dy:dy + h, dx:dx + w] for dy in range(3) for dx in range(3)]
    a = jnp.stack(taps, axis=-1)                  # (n, 2, h, w, 9)
    a = jnp.transpose(a, (1, 2, 3, 0, 4))         # (2, h, w, n, 9)
    return a.reshape(2, h * w * n, 9)


def net1_forward(params1, params2, x, *, weight_sharing=False, training=False):
    """x: (batch, 2, H, W) -> eval: int32 (batch,) ; train: float32 (batch,)."""
    bsz, two, h, w = x.shape
    assert two == 2 and h % 8 == 0 and w % 8 == 0
    # Batch lives on the sublane axis inside the kernel: pad it to a multiple
    # of 8 so every in-kernel (y, x, n)-row merge/split is layout-trivial.
    n = ((bsz + 7) // 8) * 8
    if n != bsz:
        x = jnp.pad(x, ((0, n - bsz), (0, 0), (0, 0), (0, 0)))
    x = x.astype(jnp.float32)

    ph, pw = h // 8, w // 8
    p1 = _prepare_params(params1, ph, pw)
    p2 = p1 if weight_sharing else _prepare_params(params2, ph, pw)
    pk = jax.tree_util.tree_map(lambda u, v: jnp.stack([u, v]), p1, p2)

    # One-time im2col of the raw single-channel inputs (only host-side glue).
    a = _conv1_im2col(x)                          # (2, H*W*N, 9)

    c1 = p1["w1"].shape[1]
    c2 = p1["w2"].shape[1]

    def branch_spec(shape):
        rank = len(shape)
        return pl.BlockSpec((1,) + tuple(shape[1:]),
                            lambda b, _r=rank: (b,) + (0,) * (_r - 1))

    operands = (a, pk["w1"], pk["b1"], pk["w2"], pk["b2"], pk["w3"], pk["b3"],
                pk["wf1"], pk["bf1"], pk["wf2"], pk["bf2"])

    scores = pl.pallas_call(
        _net1_branch_kernel,
        out_shape=jax.ShapeDtypeStruct((2, n, 1), jnp.float32),
        grid_spec=pltpu.PrefetchScalarGridSpec(
            num_scalar_prefetch=0,
            grid=(2,),
            in_specs=[branch_spec(op.shape) for op in operands],
            out_specs=pl.BlockSpec((1, n, 1), lambda b: (b, 0, 0)),
            scratch_shapes=[
                # pooled conv1 activation, zero halo of 1 (post-pool H/2 x W/2)
                pltpu.VMEM((h // 2 + 2, w // 2 + 2, n, c1), jnp.float32),
                # pooled conv2 activation, zero halo of 1 (post-pool H/4 x W/4)
                pltpu.VMEM((h // 4 + 2, w // 4 + 2, n, c2), jnp.float32),
            ]),
        compiler_params=pltpu.CompilerParams(
            dimension_semantics=("parallel",),
            vmem_limit_bytes=20 * 1024 * 1024),
    )(*operands)

    # Explicit indexing (no squeeze) keeps the (batch,) shape even for batch==1.
    diff = scores[1, :bsz, 0] - scores[0, :bsz, 0]      # (batch,) f32
    if training:
        return diff
    return (diff > 0).astype(jnp.int32)   # torch .long(); int32 with x64 disabled


# ----------------------------------------------------------------------------
if __name__ == "__main__":
    # Net1 defaults: c1=32, c2=32, c3=64, h=100; small batch of 16x16 pairs.
    batch, height, width = 8, 16, 16
    c1, c2, c3, hdim = 32, 32, 64, 100
    flat_dim = c3 * (height // 8) * (width // 8)   # 64 * 2 * 2 = 256

    key = jax.random.PRNGKey(0)
    k_x, k_p1, k_p2 = jax.random.split(key, 3)

    x = jax.random.normal(k_x, (batch, 2, height, width), jnp.float32)
    params1 = init_digit_classifier_params(k_p1, c1, c2, c3, hdim, flat_dim)
    params2 = init_digit_classifier_params(k_p2, c1, c2, c3, hdim, flat_dim)

    fwd = jax.jit(functools.partial(net1_forward,
                                    weight_sharing=False, training=False))
    out = jax.block_until_ready(fwd(params1, params2, x))

    assert out.shape == (batch,)
    assert out.dtype == jnp.int32
    print("KERNEL_OK")
</pallas_src>

<mosaic_0001>
module attributes {stable_mosaic.version = 11 : i64} {
  func.func @_net1_branch_kernel(%arg0: i32, %arg1: memref<1x2048x9xf32, #tpu.memory_space<vmem>>, %arg2: memref<1x9x32xf32, #tpu.memory_space<vmem>>, %arg3: memref<1x1x32xf32, #tpu.memory_space<vmem>>, %arg4: memref<1x288x32xf32, #tpu.memory_space<vmem>>, %arg5: memref<1x1x32xf32, #tpu.memory_space<vmem>>, %arg6: memref<1x288x64xf32, #tpu.memory_space<vmem>>, %arg7: memref<1x1x64xf32, #tpu.memory_space<vmem>>, %arg8: memref<1x256x100xf32, #tpu.memory_space<vmem>>, %arg9: memref<1x1x100xf32, #tpu.memory_space<vmem>>, %arg10: memref<1x100x1xf32, #tpu.memory_space<vmem>>, %arg11: memref<1x1x1xf32, #tpu.memory_space<vmem>>, %arg12: memref<1x8x1xf32, #tpu.memory_space<vmem>>, %arg13: memref<10x10x8x32xf32, #tpu.memory_space<vmem>>, %arg14: memref<6x6x8x32xf32, #tpu.memory_space<vmem>>) attributes {dimension_semantics = [#tpu.dimension_semantics<parallel>], iteration_bounds = array<i64: 2>, scalar_prefetch = 0 : i64, scratch_operands = 2 : i64, tpu.core_type = #tpu.core_type<tc>, window_params = [{transform_indices = @transform_0, window_bounds = array<i64: 1, 2048, 9>}, {transform_indices = @transform_1, window_bounds = array<i64: 1, 9, 32>}, {transform_indices = @transform_2, window_bounds = array<i64: 1, 1, 32>}, {transform_indices = @transform_3, window_bounds = array<i64: 1, 288, 32>}, {transform_indices = @transform_4, window_bounds = array<i64: 1, 1, 32>}, {transform_indices = @transform_5, window_bounds = array<i64: 1, 288, 64>}, {transform_indices = @transform_6, window_bounds = array<i64: 1, 1, 64>}, {transform_indices = @transform_7, window_bounds = array<i64: 1, 256, 100>}, {transform_indices = @transform_8, window_bounds = array<i64: 1, 1, 100>}, {transform_indices = @transform_9, window_bounds = array<i64: 1, 100, 1>}, {transform_indices = @transform_10, window_bounds = array<i64: 1, 1, 1>}, {transform_indices = @transform_11, window_bounds = array<i64: 1, 8, 1>}]} {
    %c0 = arith.constant 0 : index
    %c0_0 = arith.constant 0 : index
    %c0_1 = arith.constant 0 : index
    %0 = vector.load %arg1[%c0, %c0_0, %c0_1] : memref<1x2048x9xf32, #tpu.memory_space<vmem>>, vector<1x2048x9xf32>
    %1 = vector.shape_cast %0 : vector<1x2048x9xf32> to vector<2048x9xf32>
    %c0_2 = arith.constant 0 : index
    %c0_3 = arith.constant 0 : index
    %c0_4 = arith.constant 0 : index
    %2 = vector.load %arg2[%c0_2, %c0_3, %c0_4] : memref<1x9x32xf32, #tpu.memory_space<vmem>>, vector<1x9x32xf32>
    %3 = vector.shape_cast %2 : vector<1x9x32xf32> to vector<9x32xf32>
    %cst = arith.constant dense<0.000000e+00> : vector<2048x32xf32>
    %4 = tpu.matmul %1, %3, %cst {dimension_numbers = #tpu.dot_dimension_numbers<[1], [0], [0], [1], [0, 0, 1, 1], [], []>} : vector<2048x9xf32>, vector<9x32xf32>, vector<2048x32xf32> -> vector<2048x32xf32>
    %c0_5 = arith.constant 0 : index
    %c0_6 = arith.constant 0 : index
    %c0_7 = arith.constant 0 : index
    %5 = vector.load %arg3[%c0_5, %c0_6, %c0_7] : memref<1x1x32xf32, #tpu.memory_space<vmem>>, vector<1x1x32xf32>
    %6 = vector.shape_cast %5 : vector<1x1x32xf32> to vector<1x32xf32>
    %7 = vector.broadcast %6 : vector<1x32xf32> to vector<2048x32xf32>
    %8 = arith.addf %4, %7 : vector<2048x32xf32>
    %cst_8 = arith.constant 0.000000e+00 : f32
    %9 = vector.broadcast %cst_8 : f32 to vector<2048x32xf32>
    %10 = arith.maximumf %8, %9 : vector<2048x32xf32>
    %11 = vector.shape_cast %10 : vector<2048x32xf32> to vector<16x16x8x32xf32>
    %12 = vector.shape_cast %11 : vector<16x16x8x32xf32> to vector<8x2x8x2x8x32xf32>
    %13 = vector.extract_strided_slice %12 {offsets = [0, 0, 0, 0, 0, 0], sizes = [8, 1, 8, 1, 8, 32], strides = [1, 1, 1, 1, 1, 1]} : vector<8x2x8x2x8x32xf32> to vector<8x1x8x1x8x32xf32>
    %14 = vector.shape_cast %13 : vector<8x1x8x1x8x32xf32> to vector<8x8x8x32xf32>
    %15 = vector.extract_strided_slice %12 {offsets = [0, 0, 0, 1, 0, 0], sizes = [8, 1, 8, 1, 8, 32], strides = [1, 1, 1, 1, 1, 1]} : vector<8x2x8x2x8x32xf32> to vector<8x1x8x1x8x32xf32>
    %16 = vector.shape_cast %15 : vector<8x1x8x1x8x32xf32> to vector<8x8x8x32xf32>
    %17 = arith.maximumf %14, %16 : vector<8x8x8x32xf32>
    %18 = vector.extract_strided_slice %12 {offsets = [0, 1, 0, 0, 0, 0], sizes = [8, 1, 8, 1, 8, 32], strides = [1, 1, 1, 1, 1, 1]} : vector<8x2x8x2x8x32xf32> to vector<8x1x8x1x8x32xf32>
    %19 = vector.shape_cast %18 : vector<8x1x8x1x8x32xf32> to vector<8x8x8x32xf32>
    %20 = vector.extract_strided_slice %12 {offsets = [0, 1, 0, 1, 0, 0], sizes = [8, 1, 8, 1, 8, 32], strides = [1, 1, 1, 1, 1, 1]} : vector<8x2x8x2x8x32xf32> to vector<8x1x8x1x8x32xf32>
    %21 = vector.shape_cast %20 : vector<8x1x8x1x8x32xf32> to vector<8x8x8x32xf32>
    %22 = arith.maximumf %19, %21 : vector<8x8x8x32xf32>
    %23 = arith.maximumf %17, %22 : vector<8x8x8x32xf32>
    %cst_9 = arith.constant 0.000000e+00 : f32
    %24 = vector.broadcast %cst_9 : f32 to vector<1x10x8x32xf32>
    %cst_10 = arith.constant 0.000000e+00 : f32
    %25 = vector.broadcast %cst_10 : f32 to vector<8x1x8x32xf32>
    %c0_11 = arith.constant 0 : index
    %c0_12 = arith.constant 0 : index
    %c0_13 = arith.constant 0 : index
    %c0_14 = arith.constant 0 : index
    %26 = vector.load %arg13[%c0_11, %c0_12, %c0_13, %c0_14] : memref<10x10x8x32xf32, #tpu.memory_space<vmem>>, vector<1x10x8x32xf32>
    tpu.vector_store %arg13[%c0_11, %c0_12, %c0_13, %c0_14], %24 {strides = array<i32>} : memref<10x10x8x32xf32, #tpu.memory_space<vmem>>, vector<1x10x8x32xf32>,
    %c9 = arith.constant 9 : index
    %c0_15 = arith.constant 0 : index
    %c0_16 = arith.constant 0 : index
    %c0_17 = arith.constant 0 : index
    %27 = vector.load %arg13[%c9, %c0_15, %c0_16, %c0_17] : memref<10x10x8x32xf32, #tpu.memory_space<vmem>>, vector<1x10x8x32xf32>
    tpu.vector_store %arg13[%c9, %c0_15, %c0_16, %c0_17], %24 {strides = array<i32>} : memref<10x10x8x32xf32, #tpu.memory_space<vmem>>, vector<1x10x8x32xf32>,
    %c1 = arith.constant 1 : index
    %c0_18 = arith.constant 0 : index
    %c0_19 = arith.constant 0 : index
    %c0_20 = arith.constant 0 : index
    %28 = vector.load %arg13[%c1, %c0_18, %c0_19, %c0_20] : memref<10x10x8x32xf32, #tpu.memory_space<vmem>>, vector<8x1x8x32xf32>
    tpu.vector_store %arg13[%c1, %c0_18, %c0_19, %c0_20], %25 {strides = array<i32>} : memref<10x10x8x32xf32, #tpu.memory_space<vmem>>, vector<8x1x8x32xf32>,
    %c1_21 = arith.constant 1 : index
    %c9_22 = arith.constant 9 : index
    %c0_23 = arith.constant 0 : index
    %c0_24 = arith.constant 0 : index
    %29 = vector.load %arg13[%c1_21, %c9_22, %c0_23, %c0_24] : memref<10x10x8x32xf32, #tpu.memory_space<vmem>>, vector<8x1x8x32xf32>
    tpu.vector_store %arg13[%c1_21, %c9_22, %c0_23, %c0_24], %25 {strides = array<i32>} : memref<10x10x8x32xf32, #tpu.memory_space<vmem>>, vector<8x1x8x32xf32>,
    %c1_25 = arith.constant 1 : index
    %c1_26 = arith.constant 1 : index
    %c0_27 = arith.constant 0 : index
    %c0_28 = arith.constant 0 : index
    %30 = vector.load %arg13[%c1_25, %c1_26, %c0_27, %c0_28] : memref<10x10x8x32xf32, #tpu.memory_space<vmem>>, vector<8x8x8x32xf32>
    tpu.vector_store %arg13[%c1_25, %c1_26, %c0_27, %c0_28], %23 {strides = array<i32>} : memref<10x10x8x32xf32, #tpu.memory_space<vmem>>, vector<8x8x8x32xf32>,
    %c0_29 = arith.constant 0 : index
    %c0_30 = arith.constant 0 : index
    %c0_31 = arith.constant 0 : index
    %c0_32 = arith.constant 0 : index
    %31 = vector.load %arg13[%c0_29, %c0_30, %c0_31, %c0_32] : memref<10x10x8x32xf32, #tpu.memory_space<vmem>>, vector<8x8x8x32xf32>
    %c0_33 = arith.constant 0 : index
    %c1_34 = arith.constant 1 : index
    %c0_35 = arith.constant 0 : index
    %c0_36 = arith.constant 0 : index
    %32 = vector.load %arg13[%c0_33, %c1_34, %c0_35, %c0_36] : memref<10x10x8x32xf32, #tpu.memory_space<vmem>>, vector<8x8x8x32xf32>
    %c0_37 = arith.constant 0 : index
    %c2 = arith.constant 2 : index
    %c0_38 = arith.constant 0 : index
    %c0_39 = arith.constant 0 : index
    %33 = vector.load %arg13[%c0_37, %c2, %c0_38, %c0_39] : memref<10x10x8x32xf32, #tpu.memory_space<vmem>>, vector<8x8x8x32xf32>
    %c1_40 = arith.constant 1 : index
    %c0_41 = arith.constant 0 : index
    %c0_42 = arith.constant 0 : index
    %c0_43 = arith.constant 0 : index
    %34 = vector.load %arg13[%c1_40, %c0_41, %c0_42, %c0_43] : memref<10x10x8x32xf32, #tpu.memory_space<vmem>>, vector<8x8x8x32xf32>
    %c1_44 = arith.constant 1 : index
    %c1_45 = arith.constant 1 : index
    %c0_46 = arith.constant 0 : index
    %c0_47 = arith.constant 0 : index
    %35 = vector.load %arg13[%c1_44, %c1_45, %c0_46, %c0_47] : memref<10x10x8x32xf32, #tpu.memory_space<vmem>>, vector<8x8x8x32xf32>
    %c1_48 = arith.constant 1 : index
    %c2_49 = arith.constant 2 : index
    %c0_50 = arith.constant 0 : index
    %c0_51 = arith.constant 0 : index
    %36 = vector.load %arg13[%c1_48, %c2_49, %c0_50, %c0_51] : memref<10x10x8x32xf32, #tpu.memory_space<vmem>>, vector<8x8x8x32xf32>
    %c2_52 = arith.constant 2 : index
    %c0_53 = arith.constant 0 : index
    %c0_54 = arith.constant 0 : index
    %c0_55 = arith.constant 0 : index
    %37 = vector.load %arg13[%c2_52, %c0_53, %c0_54, %c0_55] : memref<10x10x8x32xf32, #tpu.memory_space<vmem>>, vector<8x8x8x32xf32>
    %c2_56 = arith.constant 2 : index
    %c1_57 = arith.constant 1 : index
    %c0_58 = arith.constant 0 : index
    %c0_59 = arith.constant 0 : index
    %38 = vector.load %arg13[%c2_56, %c1_57, %c0_58, %c0_59] : memref<10x10x8x32xf32, #tpu.memory_space<vmem>>, vector<8x8x8x32xf32>
    %c2_60 = arith.constant 2 : index
    %c2_61 = arith.constant 2 : index
    %c0_62 = arith.constant 0 : index
    %c0_63 = arith.constant 0 : index
    %39 = vector.load %arg13[%c2_60, %c2_61, %c0_62, %c0_63] : memref<10x10x8x32xf32, #tpu.memory_space<vmem>>, vector<8x8x8x32xf32>
    %40 = tpu.concatenate %31, %32, %33, %34, %35, %36, %37, %38, %39 in 3 : vector<8x8x8x32xf32>, vector<8x8x8x32xf32>, vector<8x8x8x32xf32>, vector<8x8x8x32xf32>, vector<8x8x8x32xf32>, vector<8x8x8x32xf32>, vector<8x8x8x32xf32>, vector<8x8x8x32xf32>, vector<8x8x8x32xf32> -> vector<8x8x8x288xf32>
    %41 = vector.shape_cast %40 : vector<8x8x8x288xf32> to vector<512x288xf32>
    %c0_64 = arith.constant 0 : index
    %c0_65 = arith.constant 0 : index
    %c0_66 = arith.constant 0 : index
    %42 = vector.load %arg4[%c0_64, %c0_65, %c0_66] : memref<1x288x32xf32, #tpu.memory_space<vmem>>, vector<1x288x32xf32>
    %43 = vector.shape_cast %42 : vector<1x288x32xf32> to vector<288x32xf32>
    %cst_67 = arith.constant dense<0.000000e+00> : vector<512x32xf32>
    %44 = tpu.matmul %41, %43, %cst_67 {dimension_numbers = #tpu.dot_dimension_numbers<[1], [0], [0], [1], [0, 0, 1, 1], [], []>} : vector<512x288xf32>, vector<288x32xf32>, vector<512x32xf32> -> vector<512x32xf32>
    %c0_68 = arith.constant 0 : index
    %c0_69 = arith.constant 0 : index
    %c0_70 = arith.constant 0 : index
    %45 = vector.load %arg5[%c0_68, %c0_69, %c0_70] : memref<1x1x32xf32, #tpu.memory_space<vmem>>, vector<1x1x32xf32>
    %46 = vector.shape_cast %45 : vector<1x1x32xf32> to vector<1x32xf32>
    %47 = vector.broadcast %46 : vector<1x32xf32> to vector<512x32xf32>
    %48 = arith.addf %44, %47 : vector<512x32xf32>
    %cst_71 = arith.constant 0.000000e+00 : f32
    %49 = vector.broadcast %cst_71 : f32 to vector<512x32xf32>
    %50 = arith.maximumf %48, %49 : vector<512x32xf32>
    %51 = vector.shape_cast %50 : vector<512x32xf32> to vector<8x8x8x32xf32>
    %52 = vector.shape_cast %51 : vector<8x8x8x32xf32> to vector<4x2x4x2x8x32xf32>
    %53 = vector.extract_strided_slice %52 {offsets = [0, 0, 0, 0, 0, 0], sizes = [4, 1, 4, 1, 8, 32], strides = [1, 1, 1, 1, 1, 1]} : vector<4x2x4x2x8x32xf32> to vector<4x1x4x1x8x32xf32>
    %54 = vector.shape_cast %53 : vector<4x1x4x1x8x32xf32> to vector<4x4x8x32xf32>
    %55 = vector.extract_strided_slice %52 {offsets = [0, 0, 0, 1, 0, 0], sizes = [4, 1, 4, 1, 8, 32], strides = [1, 1, 1, 1, 1, 1]} : vector<4x2x4x2x8x32xf32> to vector<4x1x4x1x8x32xf32>
    %56 = vector.shape_cast %55 : vector<4x1x4x1x8x32xf32> to vector<4x4x8x32xf32>
    %57 = arith.maximumf %54, %56 : vector<4x4x8x32xf32>
    %58 = vector.extract_strided_slice %52 {offsets = [0, 1, 0, 0, 0, 0], sizes = [4, 1, 4, 1, 8, 32], strides = [1, 1, 1, 1, 1, 1]} : vector<4x2x4x2x8x32xf32> to vector<4x1x4x1x8x32xf32>
    %59 = vector.shape_cast %58 : vector<4x1x4x1x8x32xf32> to vector<4x4x8x32xf32>
    %60 = vector.extract_strided_slice %52 {offsets = [0, 1, 0, 1, 0, 0], sizes = [4, 1, 4, 1, 8, 32], strides = [1, 1, 1, 1, 1, 1]} : vector<4x2x4x2x8x32xf32> to vector<4x1x4x1x8x32xf32>
    %61 = vector.shape_cast %60 : vector<4x1x4x1x8x32xf32> to vector<4x4x8x32xf32>
    %62 = arith.maximumf %59, %61 : vector<4x4x8x32xf32>
    %63 = arith.maximumf %57, %62 : vector<4x4x8x32xf32>
    %cst_72 = arith.constant 0.000000e+00 : f32
    %64 = vector.broadcast %cst_72 : f32 to vector<1x6x8x32xf32>
    %cst_73 = arith.constant 0.000000e+00 : f32
    %65 = vector.broadcast %cst_73 : f32 to vector<4x1x8x32xf32>
    %c0_74 = arith.constant 0 : index
    %c0_75 = arith.constant 0 : index
    %c0_76 = arith.constant 0 : index
    %c0_77 = arith.constant 0 : index
    %66 = vector.load %arg14[%c0_74, %c0_75, %c0_76, %c0_77] : memref<6x6x8x32xf32, #tpu.memory_space<vmem>>, vector<1x6x8x32xf32>
    tpu.vector_store %arg14[%c0_74, %c0_75, %c0_76, %c0_77], %64 {strides = array<i32>} : memref<6x6x8x32xf32, #tpu.memory_space<vmem>>, vector<1x6x8x32xf32>,
    %c5 = arith.constant 5 : index
    %c0_78 = arith.constant 0 : index
    %c0_79 = arith.constant 0 : index
    %c0_80 = arith.constant 0 : index
    %67 = vector.load %arg14[%c5, %c0_78, %c0_79, %c0_80] : memref<6x6x8x32xf32, #tpu.memory_space<vmem>>, vector<1x6x8x32xf32>
    tpu.vector_store %arg14[%c5, %c0_78, %c0_79, %c0_80], %64 {strides = array<i32>} : memref<6x6x8x32xf32, #tpu.memory_space<vmem>>, vector<1x6x8x32xf32>,
    %c1_81 = arith.constant 1 : index
    %c0_82 = arith.constant 0 : index
    %c0_83 = arith.constant 0 : index
    %c0_84 = arith.constant 0 : index
    %68 = vector.load %arg14[%c1_81, %c0_82, %c0_83, %c0_84] : memref<6x6x8x32xf32, #tpu.memory_space<vmem>>, vector<4x1x8x32xf32>
    tpu.vector_store %arg14[%c1_81, %c0_82, %c0_83, %c0_84], %65 {strides = array<i32>} : memref<6x6x8x32xf32, #tpu.memory_space<vmem>>, vector<4x1x8x32xf32>,
    %c1_85 = arith.constant 1 : index
    %c5_86 = arith.constant 5 : index
    %c0_87 = arith.constant 0 : index
    %c0_88 = arith.constant 0 : index
    %69 = vector.load %arg14[%c1_85, %c5_86, %c0_87, %c0_88] : memref<6x6x8x32xf32, #tpu.memory_space<vmem>>, vector<4x1x8x32xf32>
    tpu.vector_store %arg14[%c1_85, %c5_86, %c0_87, %c0_88], %65 {strides = array<i32>} : memref<6x6x8x32xf32, #tpu.memory_space<vmem>>, vector<4x1x8x32xf32>,
    %c1_89 = arith.constant 1 : index
    %c1_90 = arith.constant 1 : index
    %c0_91 = arith.constant 0 : index
    %c0_92 = arith.constant 0 : index
    %70 = vector.load %arg14[%c1_89, %c1_90, %c0_91, %c0_92] : memref<6x6x8x32xf32, #tpu.memory_space<vmem>>, vector<4x4x8x32xf32>
    tpu.vector_store %arg14[%c1_89, %c1_90, %c0_91, %c0_92], %63 {strides = array<i32>} : memref<6x6x8x32xf32, #tpu.memory_space<vmem>>, vector<4x4x8x32xf32>,
    %c0_93 = arith.constant 0 : index
    %c0_94 = arith.constant 0 : index
    %c0_95 = arith.constant 0 : index
    %c0_96 = arith.constant 0 : index
    %71 = vector.load %arg14[%c0_93, %c0_94, %c0_95, %c0_96] : memref<6x6x8x32xf32, #tpu.memory_space<vmem>>, vector<4x4x8x32xf32>
    %c0_97 = arith.constant 0 : index
    %c1_98 = arith.constant 1 : index
    %c0_99 = arith.constant 0 : index
    %c0_100 = arith.constant 0 : index
    %72 = vector.load %arg14[%c0_97, %c1_98, %c0_99, %c0_100] : memref<6x6x8x32xf32, #tpu.memory_space<vmem>>, vector<4x4x8x32xf32>
    %c0_101 = arith.constant 0 : index
    %c2_102 = arith.constant 2 : index
    %c0_103 = arith.constant 0 : index
    %c0_104 = arith.constant 0 : index
    %73 = vector.load %arg14[%c0_101, %c2_102, %c0_103, %c0_104] : memref<6x6x8x32xf32, #tpu.memory_space<vmem>>, vector<4x4x8x32xf32>
    %c1_105 = arith.constant 1 : index
    %c0_106 = arith.constant 0 : index
    %c0_107 = arith.constant 0 : index
    %c0_108 = arith.constant 0 : index
    %74 = vector.load %arg14[%c1_105, %c0_106, %c0_107, %c0_108] : memref<6x6x8x32xf32, #tpu.memory_space<vmem>>, vector<4x4x8x32xf32>
    %c1_109 = arith.constant 1 : index
    %c1_110 = arith.constant 1 : index
    %c0_111 = arith.constant 0 : index
    %c0_112 = arith.constant 0 : index
    %75 = vector.load %arg14[%c1_109, %c1_110, %c0_111, %c0_112] : memref<6x6x8x32xf32, #tpu.memory_space<vmem>>, vector<4x4x8x32xf32>
    %c1_113 = arith.constant 1 : index
    %c2_114 = arith.constant 2 : index
    %c0_115 = arith.constant 0 : index
    %c0_116 = arith.constant 0 : index
    %76 = vector.load %arg14[%c1_113, %c2_114, %c0_115, %c0_116] : memref<6x6x8x32xf32, #tpu.memory_space<vmem>>, vector<4x4x8x32xf32>
    %c2_117 = arith.constant 2 : index
    %c0_118 = arith.constant 0 : index
    %c0_119 = arith.constant 0 : index
    %c0_120 = arith.constant 0 : index
    %77 = vector.load %arg14[%c2_117, %c0_118, %c0_119, %c0_120] : memref<6x6x8x32xf32, #tpu.memory_space<vmem>>, vector<4x4x8x32xf32>
    %c2_121 = arith.constant 2 : index
    %c1_122 = arith.constant 1 : index
    %c0_123 = arith.constant 0 : index
    %c0_124 = arith.constant 0 : index
    %78 = vector.load %arg14[%c2_121, %c1_122, %c0_123, %c0_124] : memref<6x6x8x32xf32, #tpu.memory_space<vmem>>, vector<4x4x8x32xf32>
    %c2_125 = arith.constant 2 : index
    %c2_126 = arith.constant 2 : index
    %c0_127 = arith.constant 0 : index
    %c0_128 = arith.constant 0 : index
    %79 = vector.load %arg14[%c2_125, %c2_126, %c0_127, %c0_128] : memref<6x6x8x32xf32, #tpu.memory_space<vmem>>, vector<4x4x8x32xf32>
    %80 = tpu.concatenate %71, %72, %73, %74, %75, %76, %77, %78, %79 in 3 : vector<4x4x8x32xf32>, vector<4x4x8x32xf32>, vector<4x4x8x32xf32>, vector<4x4x8x32xf32>, vector<4x4x8x32xf32>, vector<4x4x8x32xf32>, vector<4x4x8x32xf32>, vector<4x4x8x32xf32>, vector<4x4x8x32xf32> -> vector<4x4x8x288xf32>
    %81 = vector.shape_cast %80 : vector<4x4x8x288xf32> to vector<128x288xf32>
    %c0_129 = arith.constant 0 : index
    %c0_130 = arith.constant 0 : index
    %c0_131 = arith.constant 0 : index
    %82 = vector.load %arg6[%c0_129, %c0_130, %c0_131] : memref<1x288x64xf32, #tpu.memory_space<vmem>>, vector<1x288x64xf32>
    %83 = vector.shape_cast %82 : vector<1x288x64xf32> to vector<288x64xf32>
    %cst_132 = arith.constant dense<0.000000e+00> : vector<128x64xf32>
    %84 = tpu.matmul %81, %83, %cst_132 {dimension_numbers = #tpu.dot_dimension_numbers<[1], [0], [0], [1], [0, 0, 1, 1], [], []>} : vector<128x288xf32>, vector<288x64xf32>, vector<128x64xf32> -> vector<128x64xf32>
    %c0_133 = arith.constant 0 : index
    %c0_134 = arith.constant 0 : index
    %c0_135 = arith.constant 0 : index
    %85 = vector.load %arg7[%c0_133, %c0_134, %c0_135] : memref<1x1x64xf32, #tpu.memory_space<vmem>>, vector<1x1x64xf32>
    %86 = vector.shape_cast %85 : vector<1x1x64xf32> to vector<1x64xf32>
    %87 = vector.broadcast %86 : vector<1x64xf32> to vector<128x64xf32>
    %88 = arith.addf %84, %87 : vector<128x64xf32>
    %cst_136 = arith.constant 0.000000e+00 : f32
    %89 = vector.broadcast %cst_136 : f32 to vector<128x64xf32>
    %90 = arith.maximumf %88, %89 : vector<128x64xf32>
    %91 = vector.shape_cast %90 : vector<128x64xf32> to vector<4x4x8x64xf32>
    %92 = vector.shape_cast %91 : vector<4x4x8x64xf32> to vector<2x2x2x2x8x64xf32>
    %93 = vector.extract_strided_slice %92 {offsets = [0, 0, 0, 0, 0, 0], sizes = [2, 1, 2, 1, 8, 64], strides = [1, 1, 1, 1, 1, 1]} : vector<2x2x2x2x8x64xf32> to vector<2x1x2x1x8x64xf32>
    %94 = vector.shape_cast %93 : vector<2x1x2x1x8x64xf32> to vector<2x2x8x64xf32>
    %95 = vector.extract_strided_slice %92 {offsets = [0, 0, 0, 1, 0, 0], sizes = [2, 1, 2, 1, 8, 64], strides = [1, 1, 1, 1, 1, 1]} : vector<2x2x2x2x8x64xf32> to vector<2x1x2x1x8x64xf32>
    %96 = vector.shape_cast %95 : vector<2x1x2x1x8x64xf32> to vector<2x2x8x64xf32>
    %97 = arith.maximumf %94, %96 : vector<2x2x8x64xf32>
    %98 = vector.extract_strided_slice %92 {offsets = [0, 1, 0, 0, 0, 0], sizes = [2, 1, 2, 1, 8, 64], strides = [1, 1, 1, 1, 1, 1]} : vector<2x2x2x2x8x64xf32> to vector<2x1x2x1x8x64xf32>
    %99 = vector.shape_cast %98 : vector<2x1x2x1x8x64xf32> to vector<2x2x8x64xf32>
    %100 = vector.extract_strided_slice %92 {offsets = [0, 1, 0, 1, 0, 0], sizes = [2, 1, 2, 1, 8, 64], strides = [1, 1, 1, 1, 1, 1]} : vector<2x2x2x2x8x64xf32> to vector<2x1x2x1x8x64xf32>
    %101 = vector.shape_cast %100 : vector<2x1x2x1x8x64xf32> to vector<2x2x8x64xf32>
    %102 = arith.maximumf %99, %101 : vector<2x2x8x64xf32>
    %103 = arith.maximumf %97, %102 : vector<2x2x8x64xf32>
    %104 = vector.extract_strided_slice %103 {offsets = [0, 0, 0, 0], sizes = [1, 1, 8, 64], strides = [1, 1, 1, 1]} : vector<2x2x8x64xf32> to vector<1x1x8x64xf32>
    %105 = vector.shape_cast %104 : vector<1x1x8x64xf32> to vector<8x64xf32>
    %106 = vector.extract_strided_slice %103 {offsets = [0, 1, 0, 0], sizes = [1, 1, 8, 64], strides = [1, 1, 1, 1]} : vector<2x2x8x64xf32> to vector<1x1x8x64xf32>
    %107 = vector.shape_cast %106 : vector<1x1x8x64xf32> to vector<8x64xf32>
    %108 = vector.extract_strided_slice %103 {offsets = [1, 0, 0, 0], sizes = [1, 1, 8, 64], strides = [1, 1, 1, 1]} : vector<2x2x8x64xf32> to vector<1x1x8x64xf32>
    %109 = vector.shape_cast %108 : vector<1x1x8x64xf32> to vector<8x64xf32>
    %110 = vector.extract_strided_slice %103 {offsets = [1, 1, 0, 0], sizes = [1, 1, 8, 64], strides = [1, 1, 1, 1]} : vector<2x2x8x64xf32> to vector<1x1x8x64xf32>
    %111 = vector.shape_cast %110 : vector<1x1x8x64xf32> to vector<8x64xf32>
    %112 = tpu.concatenate %105, %107, %109, %111 in 1 : vector<8x64xf32>, vector<8x64xf32>, vector<8x64xf32>, vector<8x64xf32> -> vector<8x256xf32>
    %c0_137 = arith.constant 0 : index
    %c0_138 = arith.constant 0 : index
    %c0_139 = arith.constant 0 : index
    %113 = vector.load %arg8[%c0_137, %c0_138, %c0_139] : memref<1x256x100xf32, #tpu.memory_space<vmem>>, vector<1x256x100xf32>
    %114 = vector.shape_cast %113 : vector<1x256x100xf32> to vector<256x100xf32>
    %cst_140 = arith.constant dense<0.000000e+00> : vector<8x100xf32>
    %115 = tpu.matmul %112, %114, %cst_140 {dimension_numbers = #tpu.dot_dimension_numbers<[1], [0], [0], [1], [0, 0, 1, 1], [], []>} : vector<8x256xf32>, vector<256x100xf32>, vector<8x100xf32> -> vector<8x100xf32>
    %c0_141 = arith.constant 0 : index
    %c0_142 = arith.constant 0 : index
    %c0_143 = arith.constant 0 : index
    %116 = vector.load %arg9[%c0_141, %c0_142, %c0_143] : memref<1x1x100xf32, #tpu.memory_space<vmem>>, vector<1x1x100xf32>
    %117 = vector.shape_cast %116 : vector<1x1x100xf32> to vector<1x100xf32>
    %118 = vector.broadcast %117 : vector<1x100xf32> to vector<8x100xf32>
    %119 = arith.addf %115, %118 : vector<8x100xf32>
    %cst_144 = arith.constant 0.000000e+00 : f32
    %120 = vector.broadcast %cst_144 : f32 to vector<8x100xf32>
    %121 = arith.maximumf %119, %120 : vector<8x100xf32>
    %c0_145 = arith.constant 0 : index
    %c0_146 = arith.constant 0 : index
    %c0_147 = arith.constant 0 : index
    %122 = vector.load %arg10[%c0_145, %c0_146, %c0_147] : memref<1x100x1xf32, #tpu.memory_space<vmem>>, vector<1x100x1xf32>
    %123 = vector.shape_cast %122 : vector<1x100x1xf32> to vector<100x1xf32>
    %cst_148 = arith.constant dense<0.000000e+00> : vector<8x1xf32>
    %124 = tpu.matmul %121, %123, %cst_148 {dimension_numbers = #tpu.dot_dimension_numbers<[1], [0], [0], [1], [0, 0, 1, 1], [], []>} : vector<8x100xf32>, vector<100x1xf32>, vector<8x1xf32> -> vector<8x1xf32>
    %c0_149 = arith.constant 0 : index
    %c0_150 = arith.constant 0 : index
    %c0_151 = arith.constant 0 : index
    %125 = vector.load %arg11[%c0_149, %c0_150, %c0_151] : memref<1x1x1xf32, #tpu.memory_space<vmem>>, vector<1x1x1xf32>
    %126 = vector.shape_cast %125 : vector<1x1x1xf32> to vector<1x1xf32>
    %127 = vector.broadcast %126 : vector<1x1xf32> to vector<8x1xf32>
    %128 = arith.addf %124, %127 : vector<8x1xf32>
    %c0_152 = arith.constant 0 : index
    %c0_153 = arith.constant 0 : index
    %c0_154 = arith.constant 0 : index
    %129 = vector.load %arg12[%c0_152, %c0_153, %c0_154] : memref<1x8x1xf32, #tpu.memory_space<vmem>>, vector<1x8x1xf32>
    %130 = vector.shape_cast %129 : vector<1x8x1xf32> to vector<8x1xf32>
    %131 = vector.shape_cast %128 : vector<8x1xf32> to vector<1x8x1xf32>
    tpu.vector_store %arg12[%c0_152, %c0_153, %c0_154], %131 {strides = array<i32>} : memref<1x8x1xf32, #tpu.memory_space<vmem>>, vector<1x8x1xf32>,
    return
  }
  func.func @transform_0(%arg0: i32) -> (i32, i32, i32) {
    %c0_i32 = arith.constant 0 : i32
    %c0_i32_0 = arith.constant 0 : i32
    %c0_i32_1 = arith.constant 0 : i32
    return %arg0, %c0_i32, %c0_i32_0 : i32, i32, i32
  }
  func.func @transform_1(%arg0: i32) -> (i32, i32, i32) {
    %c0_i32 = arith.constant 0 : i32
    %c0_i32_0 = arith.constant 0 : i32
    %c0_i32_1 = arith.constant 0 : i32
    return %arg0, %c0_i32, %c0_i32_0 : i32, i32, i32
  }
  func.func @transform_2(%arg0: i32) -> (i32, i32, i32) {
    %c0_i32 = arith.constant 0 : i32
    %c0_i32_0 = arith.constant 0 : i32
    %c0_i32_1 = arith.constant 0 : i32
    return %arg0, %c0_i32, %c0_i32_0 : i32, i32, i32
  }
  func.func @transform_3(%arg0: i32) -> (i32, i32, i32) {
    %c0_i32 = arith.constant 0 : i32
    %c0_i32_0 = arith.constant 0 : i32
    %c0_i32_1 = arith.constant 0 : i32
    return %arg0, %c0_i32, %c0_i32_0 : i32, i32, i32
  }
  func.func @transform_4(%arg0: i32) -> (i32, i32, i32) {
    %c0_i32 = arith.constant 0 : i32
    %c0_i32_0 = arith.constant 0 : i32
    %c0_i32_1 = arith.constant 0 : i32
    return %arg0, %c0_i32, %c0_i32_0 : i32, i32, i32
  }
  func.func @transform_5(%arg0: i32) -> (i32, i32, i32) {
    %c0_i32 = arith.constant 0 : i32
    %c0_i32_0 = arith.constant 0 : i32
    %c0_i32_1 = arith.constant 0 : i32
    return %arg0, %c0_i32, %c0_i32_0 : i32, i32, i32
  }
  func.func @transform_6(%arg0: i32) -> (i32, i32, i32) {
    %c0_i32 = arith.constant 0 : i32
    %c0_i32_0 = arith.constant 0 : i32
    %c0_i32_1 = arith.constant 0 : i32
    return %arg0, %c0_i32, %c0_i32_0 : i32, i32, i32
  }
  func.func @transform_7(%arg0: i32) -> (i32, i32, i32) {
    %c0_i32 = arith.constant 0 : i32
    %c0_i32_0 = arith.constant 0 : i32
    %c0_i32_1 = arith.constant 0 : i32
    return %arg0, %c0_i32, %c0_i32_0 : i32, i32, i32
  }
  func.func @transform_8(%arg0: i32) -> (i32, i32, i32) {
    %c0_i32 = arith.constant 0 : i32
    %c0_i32_0 = arith.constant 0 : i32
    %c0_i32_1 = arith.constant 0 : i32
    return %arg0, %c0_i32, %c0_i32_0 : i32, i32, i32
  }
  func.func @transform_9(%arg0: i32) -> (i32, i32, i32) {
    %c0_i32 = arith.constant 0 : i32
    %c0_i32_0 = arith.constant 0 : i32
    %c0_i32_1 = arith.constant 0 : i32
    return %arg0, %c0_i32, %c0_i32_0 : i32, i32, i32
  }
  func.func @transform_10(%arg0: i32) -> (i32, i32, i32) {
    %c0_i32 = arith.constant 0 : i32
    %c0_i32_0 = arith.constant 0 : i32
    %c0_i32_1 = arith.constant 0 : i32
    return %arg0, %c0_i32, %c0_i32_0 : i32, i32, i32
  }
  func.func @transform_11(%arg0: i32) -> (i32, i32, i32) {
    %c0_i32 = arith.constant 0 : i32
    %c0_i32_0 = arith.constant 0 : i32
    %c0_i32_1 = arith.constant 0 : i32
    return %arg0, %c0_i32, %c0_i32_0 : i32, i32, i32
  }
}

</mosaic_0001>

<bundles_post_ra>
// kernel: net1_forward.1
= control target key start
LH: loop header
LB: loop body
LE: loop exit
PB: predicated region body
PF: predicated region fallthrough
CT: control target
= control target key end

     0   :  { %s11417_s17 = smov 0   ;;  %s15048_s0 = inlined_call_operand.vmem [shape: f32[2,2048,9], index: 0, kind: input, shape index: {}]   ;;  %s15049_s1 = inlined_call_operand.vmem [shape: f32[2,9,32], index: 1, kind: input, shape index: {}]   ;;  %s15050_s2 = inlined_call_operand.vmem [shape: f32[2,1,32], index: 2, kind: input, shape index: {}]   ;;  %s15051_s3 = inlined_call_operand.vmem [shape: f32[2,288,32], index: 3, kind: input, shape index: {}]   ;;  %s15052_s4 = inlined_call_operand.vmem [shape: f32[2,1,32], index: 4, kind: input, shape index: {}]   ;;  %s15053_s5 = inlined_call_operand.vmem [shape: f32[2,288,64], index: 5, kind: input, shape index: {}]   ;;  %s15054_s6 = inlined_call_operand.vmem [shape: f32[2,1,64], index: 6, kind: input, shape index: {}]   ;;  %s15055_s7 = inlined_call_operand.vmem [shape: f32[2,256,100], index: 7, kind: input, shape index: {}]   ;;  %s15056_s8 = inlined_call_operand.vmem [shape: f32[2,1,100], index: 8, kind: input, shape index: {}]   ;;  %s15057_s9 = inlined_call_operand.vmem [shape: f32[2,100,1], index: 9, kind: input, shape index: {}]   ;;  %s15058_s10 = inlined_call_operand.vmem [shape: f32[2,1,1], index: 10, kind: input, shape index: {}]   ;;  %s15059_s11 = inlined_call_operand.vmem [shape: f32[2,8,1], index: 11, kind: output, shape index: {}]  }
   0x1 LB: > { %s8569_s18 = sadd.s32 4294967295, %s11348_s17   ;;  %p8573_p0 = scmp.ge.s32.totalorder %s11348_s17, 1  ;;  %s11348_s17 = sphi %s11417_s17, %s21_s17  }
   0x2   : > { %p427_p1 = scmp.lt.s32.totalorder %s11348_s17, 3 }
   0x4   : > { %p428_p2 = pnand %p8573_p0, %p427_p1 }
   0x6   : > { %431 = sbr.rel (%p428_p2) target bundleno = 2232 (0x8b8), region = 64 }
   0xd   : > { %p506_p3 = scmp.lt.s32.totalorder %s8569_s18, 1  ;;  %vm1589_vm0 = vcmask 1040384   ;;  %vm820_vm1 = vcmask 72704   ;;  %vm11350_vm2 = vmmov 1   ;;  %vm3386_vm4 = vcmask 261120   ;;  %s11352_s27 = smov 32  }
   0xe   : > { %vm9962_vm3 = vmpackc.low %vm1589_vm0, %vm11350_vm2  ;;  %v15060_v24 = vmov 0.0   ;;  %s11353_s28 = smov 64   ;;  %s11354_s29 = smov 96   ;;  %vm5673_vm5 = vcmask 523264   ;;  %vm5738_vm6 = vcmask 785408   ;;  %vm11356_vm7 = vmmov 0  }
   0xf   : > { %s15107_s18 = smov (!%p506_p3, %s8569_s18), 1  ;;  %3395 = vst.msk [vmem:[#allocation2 + $0x40] sm:$0xff] %vm3386_vm4, %v15060_v24  ;;  %3418 = vst.msk [vmem:[#allocation2 + $0x98] sm:$0xff] %vm3386_vm4, %v15060_v24  ;;  %vm8335_vm8 = vcmask 1043456   ;;  %vm8331_vm9 = vcmask 818176   ;;  %vm8409_vm10 = vcmask 7168  }
  0x10   : > { %s8930_s19 = sshll.u32 %s15107_s18, 11  ;;  %s8931_s20 = sshll.u32 %s15107_s18, 4  ;;  %3387 = vst.msk [vmem:[#allocation2] sm:$0xff] %vm3386_vm4, %v15060_v24  ;;  %3388 = vst.msk [vmem:[#allocation2 + $0x8] sm:$0xff] %vm3386_vm4, %v15060_v24 }
  0x11   : > { %s11432_s23 = scalar_lea.vmem %s15048_s0, %s8930_s19  ;;  %s515_s26 = scalar_lea.vmem %s15049_s1, %s8931_s20  ;;  %3389 = vst.msk [vmem:[#allocation2 + $0x10] sm:$0xff] %vm3386_vm4, %v15060_v24  ;;  %3390 = vst.msk [vmem:[#allocation2 + $0x18] sm:$0xff] %vm3386_vm4, %v15060_v24 }
  0x12   : > { %v811_v0 = vld [vmem:[%s515_s26] sm:$0xff]  ;;  %v812_v1 = vld [vmem:[%s515_s26 + $0x8] sm:$0x1]  ;;  %v557_v5 = vld [vmem:[%s11432_s23 + $0x10] sm:$0xff]  ;;  %3391 = vst.msk [vmem:[#allocation2 + $0x20] sm:$0xff] %vm3386_vm4, %v15060_v24  ;;  %s11770_s13 = scalar_lea.vmem %s15050_s2, %s15107_s18  ;;  %s10113_s14 = smul.u32 288, %s15107_s18 }
  0x13   : > { %v555_v2 = vld [vmem:[%s11432_s23] sm:$0xff]  ;;  %v9961_v3 = vpack.c.bf16 %v812_v1, %v811_v0  ;;  %v556_v4 = vld [vmem:[%s11432_s23 + $0x8] sm:$0xff]  ;;  %v558_v6 = vld [vmem:[%s11432_s23 + $0x18] sm:$0xff]  ;;  %3392 = vst.msk [vmem:[#allocation2 + $0x28] sm:$0xff] %vm3386_vm4, %v15060_v24  ;;  %s526_s25 = scalar_lea.vmem %s15052_s4, %s15107_s18  ;;  %s8932_s26 = sshll.u32 %s15107_s18, 8 }
  0x14   : > { %9412 = vmatprep.mubr.msk.f32.mxu0 %vm820_vm1, %v555_v2  ;;  %v559_v7 = vld [vmem:[%s11432_s23 + $0x20] sm:$0xff]  ;;  %v560_v8 = vld [vmem:[%s11432_s23 + $0x28] sm:$0xff]  ;;  %v561_v9 = vld [vmem:[%s11432_s23 + $0x30] sm:$0xff]  ;;  %3393 = vst.msk [vmem:[#allocation2 + $0x30] sm:$0xff] %vm3386_vm4, %v15060_v24  ;;  %s11861_s19 = scalar_lea.vmem %s15051_s3, %s10113_s14  ;;  %s14332_s22 = scalar_lea.vmem %s15053_s5, %s10113_s14 }
  0x15   : > { %9963 = vmatprep.subr.msk.bf16.mxu0 %vm9962_vm3, %v9961_v3  ;;  %v562_v10 = vld [vmem:[%s11432_s23 + $0x38] sm:$0xff]  ;;  %v563_v11 = vld [vmem:[%s11432_s23 + $0x40] sm:$0xff]  ;;  %v564_v12 = vld [vmem:[%s11432_s23 + $0x48] sm:$0xff]  ;;  %3394 = vst.msk [vmem:[#allocation2 + $0x38] sm:$0xff] %vm3386_vm4, %v15060_v24  ;;  %s534_s14 = scalar_lea.vmem %s15054_s6, %s15107_s18  ;;  %s10114_s15 = smul.u32 104, %s15107_s18 }
  0x16   : > { %9966 = vmatpush3.bf16.msk.msra.mxu0 %vm9962_vm3, %v9961_v3  ;;  %v565_v13 = vld [vmem:[%s11432_s23 + $0x50] sm:$0xff]  ;;  %v566_v14 = vld [vmem:[%s11432_s23 + $0x58] sm:$0xff]  ;;  %v567_v15 = vld [vmem:[%s11432_s23 + $0x60] sm:$0xff]  ;;  %3396 = vst.msk [vmem:[#allocation2 + $0x48] sm:$0xff] %vm3386_vm4, %v15060_v24 }
  0x17   : > { %v568_v16 = vld [vmem:[%s11432_s23 + $0x68] sm:$0xff]  ;;  %v569_v17 = vld [vmem:[%s11432_s23 + $0x70] sm:$0xff]  ;;  %v570_v18 = vld [vmem:[%s11432_s23 + $0x78] sm:$0xff]  ;;  %3398 = vst.msk [vmem:[#allocation2 + $0x2d0] sm:$0xff] %vm3386_vm4, %v15060_v24  ;;  %s15009_s20 = scalar_lea.vmem %s15057_s9, %s10114_s15 }
  0x18   : > { %v571_v19 = vld [vmem:[%s11432_s23 + $0x80] sm:$0xff]  ;;  %v572_v20 = vld [vmem:[%s11432_s23 + $0x88] sm:$0xff]  ;;  %v573_v21 = vld [vmem:[%s11432_s23 + $0x90] sm:$0xff]  ;;  %3399 = vst.msk [vmem:[#allocation2 + $0x2d8] sm:$0xff] %vm3386_vm4, %v15060_v24 }
  0x19   : > { %9413 = vmatmul.mubr.msk.f32.vlgmr.msra.gmra.mrb[0].mxu0 %vm820_vm1, %v556_v4  ;;  %v574_v22 = vld [vmem:[%s11432_s23 + $0x98] sm:$0xff]  ;;  %v575_v23 = vld [vmem:[%s11432_s23 + $0xa0] sm:$0xff]  ;;  %3400 = vst.msk [vmem:[#allocation2 + $0x2e0] sm:$0xff] %vm3386_vm4, %v15060_v24  ;;  %3401 = vst.msk [vmem:[#allocation2 + $0x2e8] sm:$0xff] %vm3386_vm4, %v15060_v24 }
  0x1a   : > { %9415 = vmatprep.mubr.msk.f32.mxu0 %vm820_vm1, %v557_v5  ;;  %3402 = vst.msk [vmem:[#allocation2 + $0x2f0] sm:$0xff] %vm3386_vm4, %v15060_v24  ;;  %3403 = vst.msk [vmem:[#allocation2 + $0x2f8] sm:$0xff] %vm3386_vm4, %v15060_v24  ;;  %v576_v25 = vld [vmem:[%s11432_s23 + $0xa8] sm:$0xff]  ;;  %v577_v26 = vld [vmem:[%s11432_s23 + $0xb0] sm:$0xff] }
  0x1b   : > { %3404 = vst.msk [vmem:[#allocation2 + $0x300] sm:$0xff] %vm3386_vm4, %v15060_v24  ;;  %3405 = vst.msk [vmem:[#allocation2 + $0x308] sm:$0xff] %vm3386_vm4, %v15060_v24  ;;  %v578_v27 = vld [vmem:[%s11432_s23 + $0xb8] sm:$0xff]  ;;  %v3563_v28 = vld [vmem:[#allocation2 + $0x40] sm:$0xff] }
  0x1c   : > { %3406 = vst.msk [vmem:[#allocation2 + $0x310] sm:$0xff] %vm3386_vm4, %v15060_v24  ;;  %3407 = vst.msk [vmem:[#allocation2 + $0x318] sm:$0xff] %vm3386_vm4, %v15060_v24  ;;  %v3821_v29 = vld [vmem:[#allocation2 + $0x98] sm:$0xff]  ;;  %v579_v30 = vld [vmem:[%s11432_s23 + $0xc0] sm:$0xff] }
  0x1d   : > { %9416 = vmatmul.mubr.msk.f32.gmra.mrb[2].mxu0 %vm820_vm1, %v558_v6  ;;  %3409 = vst.msk [vmem:[#allocation2 + $0x50] sm:$0xff] %vm3386_vm4, %v15060_v24  ;;  %3410 = vst.msk [vmem:[#allocation2 + $0xa0] sm:$0xff] %vm3386_vm4, %v15060_v24  ;;  %v10135_v31 = vpack.i.bf16 %v3563_v28, %v3821_v29  ;;  %v580_v32 = vld [vmem:[%s11432_s23 + $0xc8] sm:$0xff]  ;;  %v581_v33 = vld [vmem:[%s11432_s23 + $0xd0] sm:$0xff] }
  0x1e   : > { %9418 = vmatprep.mubr.msk.f32.mxu0 %vm820_vm1, %v559_v7  ;;  %3411 = vst.msk [vmem:[#allocation2 + $0xf0] sm:$0xff] %vm3386_vm4, %v15060_v24  ;;  %3412 = vst.msk [vmem:[#allocation2 + $0x140] sm:$0xff] %vm3386_vm4, %v15060_v24  ;;  %v582_v34 = vld [vmem:[%s11432_s23 + $0xd8] sm:$0xff]  ;;  %v583_v35 = vld [vmem:[%s11432_s23 + $0xe0] sm:$0xff] }
  0x1f   : > { %3413 = vst.msk [vmem:[#allocation2 + $0x190] sm:$0xff] %vm3386_vm4, %v15060_v24  ;;  %3414 = vst.msk [vmem:[#allocation2 + $0x1e0] sm:$0xff] %vm3386_vm4, %v15060_v24  ;;  %10136 = vrot.lane.b32.xlu1 %v10135_v31, %s11352_s27  ;;  %v584_v36 = vld [vmem:[%s11432_s23 + $0xe8] sm:$0xff]  ;;  %v585_v37 = vld [vmem:[%s11432_s23 + $0xf0] sm:$0xff] }
  0x20   : > { %3415 = vst.msk [vmem:[#allocation2 + $0x230] sm:$0xff] %vm3386_vm4, %v15060_v24  ;;  %3416 = vst.msk [vmem:[#allocation2 + $0x280] sm:$0xff] %vm3386_vm4, %v15060_v24  ;;  %v586_v38 = vld [vmem:[%s11432_s23 + $0xf8] sm:$0xff]  ;;  %v587_v39 = vld [vmem:[%s11432_s23 + $0x100] sm:$0xff] }
  0x21   : > { %9419 = vmatmul.mubr.msk.f32.gmra.mrb[4].mxu0 %vm820_vm1, %v560_v8  ;;  %3419 = vst.msk [vmem:[#allocation2 + $0xe8] sm:$0xff] %vm3386_vm4, %v15060_v24  ;;  %3420 = vst.msk [vmem:[#allocation2 + $0x138] sm:$0xff] %vm3386_vm4, %v15060_v24  ;;  %v588_v40 = vld [vmem:[%s11432_s23 + $0x108] sm:$0xff]  ;;  %v589_v41 = vld [vmem:[%s11432_s23 + $0x110] sm:$0xff] }
  0x22   : > { %9421 = vmatprep.mubr.msk.f32.mxu0 %vm820_vm1, %v561_v9  ;;  %3421 = vst.msk [vmem:[#allocation2 + $0x188] sm:$0xff] %vm3386_vm4, %v15060_v24  ;;  %3422 = vst.msk [vmem:[#allocation2 + $0x1d8] sm:$0xff] %vm3386_vm4, %v15060_v24  ;;  %v590_v42 = vld [vmem:[%s11432_s23 + $0x118] sm:$0xff]  ;;  %v591_v43 = vld [vmem:[%s11432_s23 + $0x120] sm:$0xff] }
  0x23   : > { %3423 = vst.msk [vmem:[#allocation2 + $0x228] sm:$0xff] %vm3386_vm4, %v15060_v24  ;;  %3424 = vst.msk [vmem:[#allocation2 + $0x278] sm:$0xff] %vm3386_vm4, %v15060_v24  ;;  %v592_v44 = vld [vmem:[%s11432_s23 + $0x128] sm:$0xff]  ;;  %v593_v45 = vld [vmem:[%s11432_s23 + $0x130] sm:$0xff] }
  0x24   : > { %3425 = vst.msk [vmem:[#allocation2 + $0x2c8] sm:$0xff] %vm3386_vm4, %v15060_v24  ;;  %7112 = vst.msk [vmem:[#allocation3] sm:$0xff] %vm3386_vm4, %v15060_v24  ;;  %v594_v46 = vld [vmem:[%s11432_s23 + $0x138] sm:$0xff]  ;;  %v595_v47 = vld [vmem:[%s11432_s23 + $0x140] sm:$0xff] }
  0x25   : > { %9422 = vmatmul.mubr.msk.f32.gmra.mrb[6].mxu0 %vm820_vm1, %v562_v10  ;;  %7113 = vst.msk [vmem:[#allocation3 + $0x8] sm:$0xff] %vm3386_vm4, %v15060_v24  ;;  %7114 = vst.msk [vmem:[#allocation3 + $0x10] sm:$0xff] %vm3386_vm4, %v15060_v24  ;;  %v596_v48 = vld [vmem:[%s11432_s23 + $0x148] sm:$0xff]  ;;  %v597_v49 = vld [vmem:[%s11432_s23 + $0x150] sm:$0xff] }
  0x26   : > { %9424 = vmatprep.mubr.msk.f32.mxu0 %vm820_vm1, %v563_v11  ;;  %7115 = vst.msk [vmem:[#allocation3 + $0x18] sm:$0xff] %vm3386_vm4, %v15060_v24  ;;  %7116 = vst.msk [vmem:[#allocation3 + $0x20] sm:$0xff] %vm3386_vm4, %v15060_v24  ;;  %v598_v50 = vld [vmem:[%s11432_s23 + $0x158] sm:$0xff]  ;;  %v599_v51 = vld [vmem:[%s11432_s23 + $0x160] sm:$0xff] }
  0x27   : > { %7117 = vst.msk [vmem:[#allocation3 + $0x28] sm:$0xff] %vm3386_vm4, %v15060_v24  ;;  %7119 = vst.msk [vmem:[#allocation3 + $0xf0] sm:$0xff] %vm3386_vm4, %v15060_v24  ;;  %v600_v52 = vld [vmem:[%s11432_s23 + $0x168] sm:$0xff]  ;;  %v601_v53 = vld [vmem:[%s11432_s23 + $0x170] sm:$0xff] }
  0x28   : > { %7120 = vst.msk [vmem:[#allocation3 + $0xf8] sm:$0xff] %vm3386_vm4, %v15060_v24  ;;  %7121 = vst.msk [vmem:[#allocation3 + $0x100] sm:$0xff] %vm3386_vm4, %v15060_v24  ;;  %v602_v54 = vld [vmem:[%s11432_s23 + $0x178] sm:$0xff]  ;;  %v603_v55 = vld [vmem:[%s11432_s23 + $0x180] sm:$0xff] }
  0x29   : > { %9425 = vmatmul.mubr.msk.f32.gmra.mrb[8].mxu0 %vm820_vm1, %v564_v12  ;;  %7122 = vst.msk [vmem:[#allocation3 + $0x108] sm:$0xff] %vm3386_vm4, %v15060_v24  ;;  %7123 = vst.msk [vmem:[#allocation3 + $0x110] sm:$0xff] %vm3386_vm4, %v15060_v24  ;;  %v604_v56 = vld [vmem:[%s11432_s23 + $0x188] sm:$0xff]  ;;  %v605_v57 = vld [vmem:[%s11432_s23 + $0x190] sm:$0xff] }
  0x2a   : > { %9427 = vmatprep.mubr.msk.f32.mxu0 %vm820_vm1, %v565_v13  ;;  %7124 = vst.msk [vmem:[#allocation3 + $0x118] sm:$0xff] %vm3386_vm4, %v15060_v24  ;;  %7126 = vst.msk [vmem:[#allocation3 + $0x30] sm:$0xff] %vm3386_vm4, %v15060_v24  ;;  %v606_v58 = vld [vmem:[%s11432_s23 + $0x198] sm:$0xff]  ;;  %v607_v59 = vld [vmem:[%s11432_s23 + $0x1a0] sm:$0xff] }
  0x2b   : > { %7127 = vst.msk [vmem:[#allocation3 + $0x60] sm:$0xff] %vm3386_vm4, %v15060_v24  ;;  %7128 = vst.msk [vmem:[#allocation3 + $0x90] sm:$0xff] %vm3386_vm4, %v15060_v24  ;;  %v608_v60 = vld [vmem:[%s11432_s23 + $0x1a8] sm:$0xff]  ;;  %v609_v61 = vld [vmem:[%s11432_s23 + $0x1b0] sm:$0xff] }
  0x2c   : > { %7129 = vst.msk [vmem:[#allocation3 + $0xc0] sm:$0xff] %vm3386_vm4, %v15060_v24  ;;  %7131 = vst.msk [vmem:[#allocation3 + $0x58] sm:$0xff] %vm3386_vm4, %v15060_v24  ;;  %v610_v62 = vld [vmem:[%s11432_s23 + $0x1b8] sm:$0xff]  ;;  %v611_v63 = vld [vmem:[%s11432_s23 + $0x1c0] sm:$0xff] }
  0x2d   : > { %9428 = vmatmul.mubr.msk.f32.gmra.mrb[10].mxu0 %vm820_vm1, %v566_v14  ;;  %7132 = vst.msk [vmem:[#allocation3 + $0x88] sm:$0xff] %vm3386_vm4, %v15060_v24  ;;  %7133 = vst.msk [vmem:[#allocation3 + $0xb8] sm:$0xff] %vm3386_vm4, %v15060_v24  ;;  %v612_v0 = vld [vmem:[%s11432_s23 + $0x1c8] sm:$0xff]  ;;  %v613_v1 = vld [vmem:[%s11432_s23 + $0x1d0] sm:$0xff] }
  0x2e   : > { %9430 = vmatprep.mubr.msk.f32.mxu0 %vm820_vm1, %v567_v15  ;;  %7134 = vst.msk [vmem:[#allocation3 + $0xe8] sm:$0xff] %vm3386_vm4, %v15060_v24  ;;  %v614_v2 = vld [vmem:[%s11432_s23 + $0x1d8] sm:$0xff]  ;;  %v615_v3 = vld [vmem:[%s11432_s23 + $0x1e0] sm:$0xff]  ;;  %v616_v4 = vld [vmem:[%s11432_s23 + $0x1e8] sm:$0xff] }
  0x2f   : > { %v617_v5 = vld [vmem:[%s11432_s23 + $0x1f0] sm:$0xff]  ;;  %v618_v6 = vld [vmem:[%s11432_s23 + $0x1f8] sm:$0xff]  ;;  %v619_v7 = vld [vmem:[%s11432_s23 + $0x200] sm:$0xff] }
  0x30   : > { %v620_v8 = vld [vmem:[%s11432_s23 + $0x208] sm:$0xff]  ;;  %v621_v9 = vld [vmem:[%s11432_s23 + $0x210] sm:$0xff]  ;;  %v3879_v11 = vld [vmem:[#allocation2 + $0xa0] sm:$0xff] }
  0x31   : > { %9431 = vmatmul.mubr.msk.f32.gmra.mrb[12].mxu0 %vm820_vm1, %v568_v16  ;;  %v11683_v10 = vld [vmem:[#allocation2 + $0x10] sm:$0xff]  ;;  %v622_v12 = vld [vmem:[%s11432_s23 + $0x218] sm:$0xff]  ;;  %v623_v14 = vld [vmem:[%s11432_s23 + $0x220] sm:$0xff] }
  0x32   : > { %9433 = vmatprep.mubr.msk.f32.mxu0 %vm820_vm1, %v569_v17  ;;  %v10130_v13 = vpack.i.bf16 %v11683_v10, %v3879_v11  ;;  %v3741_v15 = vld [vmem:[#allocation2 + $0x280] sm:$0xff]  ;;  %v4000_v16 = vld [vmem:[#allocation2 + $0x2d8] sm:$0xff]  ;;  %v624_v17 = vld [vmem:[%s11432_s23 + $0x228] sm:$0xff] }
  0x33   : > { %v633_v28 = vld [vmem:[%s11432_s23 + $0x270] sm:$0xff]  ;;  %v634_v29 = vld [vmem:[%s11432_s23 + $0x278] sm:$0xff]  ;;  %v636_v31 = vld [vmem:[%s11432_s23 + $0x288] sm:$0xff] }
  0x34   : > { %10131 = vrot.lane.b32.xlu0 %v10130_v13, %s11353_s28 }
  0x35   : > { %9434 = vmatmul.mubr.msk.f32.gmra.mrb[14].mxu0 %vm820_vm1, %v570_v18  ;;  %v10140_v18 = vpack.i.bf16 %v3741_v15, %v4000_v16 }
  0x36   : > { %9436 = vmatprep.mubr.msk.f32.mxu0 %vm820_vm1, %v571_v19  ;;  %v625_v19 = vld [vmem:[%s11432_s23 + $0x230] sm:$0xff] }
  0x38   : > { %10141 = vrot.lane.b32.xlu0 %v10140_v18, %s11354_s29 }
  0x39   : > { %9437 = vmatmul.mubr.msk.f32.gmra.mrb[16].mxu0 %vm820_vm1, %v572_v20  ;;  %v626_v20 = vld [vmem:[%s11432_s23 + $0x238] sm:$0xff] }
  0x3a   : > { %9439 = vmatprep.mubr.msk.f32.mxu0 %vm820_vm1, %v573_v21  ;;  %v627_v21 = vld [vmem:[%s11432_s23 + $0x240] sm:$0xff] }
  0x3d   : > { %9440 = vmatmul.mubr.msk.f32.gmra.mrb[18].mxu0 %vm820_vm1, %v574_v22  ;;  %v628_v22 = vld [vmem:[%s11432_s23 + $0x248] sm:$0xff] }
  0x3e   : > { %9442 = vmatprep.mubr.msk.f32.mxu0 %vm820_vm1, %v575_v23  ;;  %v629_v23 = vld [vmem:[%s11432_s23 + $0x250] sm:$0xff] }
  0x41   : > { %9443 = vmatmul.mubr.msk.f32.gmra.mrb[20].mxu0 %vm820_vm1, %v576_v25  ;;  %v630_v25 = vld [vmem:[%s11432_s23 + $0x258] sm:$0xff] }
  0x42   : > { %9445 = vmatprep.mubr.msk.f32.mxu0 %vm820_vm1, %v577_v26  ;;  %v631_v26 = vld [vmem:[%s11432_s23 + $0x260] sm:$0xff] }
  0x45   : > { %9446 = vmatmul.mubr.msk.f32.gmra.mrb[22].mxu0 %vm820_vm1, %v578_v27  ;;  %v632_v27 = vld [vmem:[%s11432_s23 + $0x268] sm:$0xff] }
  0x46   : > { %9448 = vmatprep.mubr.msk.f32.mxu0 %vm820_vm1, %v579_v30  ;;  %v635_v30 = vld [vmem:[%s11432_s23 + $0x280] sm:$0xff] }
  0x49   : > { %9449 = vmatmul.mubr.msk.f32.gmra.mrb[24].mxu0 %vm820_vm1, %v580_v32  ;;  %v637_v32 = vld [vmem:[%s11432_s23 + $0x290] sm:$0xff] }
  0x4a   : > { %9451 = vmatprep.mubr.msk.f32.mxu0 %vm820_vm1, %v581_v33  ;;  %v638_v33 = vld [vmem:[%s11432_s23 + $0x298] sm:$0xff] }
  0x4d   : > { %9452 = vmatmul.mubr.msk.f32.gmra.mrb[26].mxu0 %vm820_vm1, %v582_v34  ;;  %v639_v34 = vld [vmem:[%s11432_s23 + $0x2a0] sm:$0xff] }
  0x4e   : > { %9454 = vmatprep.mubr.msk.f32.mxu0 %vm820_vm1, %v583_v35  ;;  %v640_v35 = vld [vmem:[%s11432_s23 + $0x2a8] sm:$0xff] }
  0x51   : > { %9455 = vmatmul.mubr.msk.f32.gmra.mrb[28].mxu0 %vm820_vm1, %v584_v36  ;;  %v641_v36 = vld [vmem:[%s11432_s23 + $0x2b0] sm:$0xff] }
  0x52   : > { %9457 = vmatprep.mubr.msk.f32.mxu0 %vm820_vm1, %v585_v37  ;;  %v642_v37 = vld [vmem:[%s11432_s23 + $0x2b8] sm:$0xff] }
  0x55   : > { %9458 = vmatmul.mubr.msk.f32.gmra.mrb[30].mxu0 %vm820_vm1, %v586_v38  ;;  %v643_v38 = vld [vmem:[%s11432_s23 + $0x2c0] sm:$0xff] }
  0x56   : > { %9460 = vmatprep.mubr.msk.f32.mxu0 %vm820_vm1, %v587_v39  ;;  %v644_v39 = vld [vmem:[%s11432_s23 + $0x2c8] sm:$0xff] }
  0x59   : > { %9461 = vmatmul.mubr.msk.f32.gmra.mrb[32].mxu0 %vm820_vm1, %v588_v40  ;;  %v645_v40 = vld [vmem:[%s11432_s23 + $0x2d0] sm:$0xff] }
  0x5a   : > { %9463 = vmatprep.mubr.msk.f32.mxu0 %vm820_vm1, %v589_v41  ;;  %v646_v41 = vld [vmem:[%s11432_s23 + $0x2d8] sm:$0xff] }
  0x5d   : > { %9464 = vmatmul.mubr.msk.f32.gmra.mrb[34].mxu0 %vm820_vm1, %v590_v42  ;;  %v647_v42 = vld [vmem:[%s11432_s23 + $0x2e0] sm:$0xff] }
  0x5e   : > { %9466 = vmatprep.mubr.msk.f32.mxu0 %vm820_vm1, %v591_v43  ;;  %v648_v43 = vld [vmem:[%s11432_s23 + $0x2e8] sm:$0xff] }
  0x61   : > { %9467 = vmatmul.mubr.msk.f32.gmra.mrb[36].mxu0 %vm820_vm1, %v592_v44  ;;  %v649_v44 = vld [vmem:[%s11432_s23 + $0x2f0] sm:$0xff] }
  0x62   : > { %9469 = vmatprep.mubr.msk.f32.mxu0 %vm820_vm1, %v593_v45  ;;  %v650_v45 = vld [vmem:[%s11432_s23 + $0x2f8] sm:$0xff] }
  0x65   : > { %9470 = vmatmul.mubr.msk.f32.gmra.mrb[38].mxu0 %vm820_vm1, %v594_v46  ;;  %v651_v46 = vld [vmem:[%s11432_s23 + $0x300] sm:$0xff] }
  0x66   : > { %9472 = vmatprep.mubr.msk.f32.mxu0 %vm820_vm1, %v595_v47  ;;  %v652_v47 = vld [vmem:[%s11432_s23 + $0x308] sm:$0xff] }
  0x69   : > { %9473 = vmatmul.mubr.msk.f32.gmra.mrb[40].mxu0 %vm820_vm1, %v596_v48  ;;  %v653_v48 = vld [vmem:[%s11432_s23 + $0x310] sm:$0xff] }
  0x6a   : > { %9475 = vmatprep.mubr.msk.f32.mxu0 %vm820_vm1, %v597_v49  ;;  %v654_v49 = vld [vmem:[%s11432_s23 + $0x318] sm:$0xff] }
  0x6d   : > { %9476 = vmatmul.mubr.msk.f32.gmra.mrb[42].mxu0 %vm820_vm1, %v598_v50  ;;  %v655_v50 = vld [vmem:[%s11432_s23 + $0x320] sm:$0xff] }
  0x6e   : > { %9478 = vmatprep.mubr.msk.f32.mxu0 %vm820_vm1, %v599_v51  ;;  %v656_v51 = vld [vmem:[%s11432_s23 + $0x328] sm:$0xff] }
  0x71   : > { %9479 = vmatmul.mubr.msk.f32.gmra.mrb[44].mxu0 %vm820_vm1, %v600_v52  ;;  %v657_v52 = vld [vmem:[%s11432_s23 + $0x330] sm:$0xff] }
  0x72   : > { %9481 = vmatprep.mubr.msk.f32.mxu0 %vm820_vm1, %v601_v53  ;;  %v658_v53 = vld [vmem:[%s11432_s23 + $0x338] sm:$0xff] }
  0x75   : > { %9482 = vmatmul.mubr.msk.f32.gmra.mrb[46].mxu0 %vm820_vm1, %v602_v54  ;;  %v659_v54 = vld [vmem:[%s11432_s23 + $0x340] sm:$0xff] }
  0x76   : > { %9484 = vmatprep.mubr.msk.f32.mxu0 %vm820_vm1, %v603_v55  ;;  %v660_v55 = vld [vmem:[%s11432_s23 + $0x348] sm:$0xff] }
  0x79   : > { %9485 = vmatmul.mubr.msk.f32.gmra.mrb[48].mxu0 %vm820_vm1, %v604_v56  ;;  %v661_v56 = vld [vmem:[%s11432_s23 + $0x350] sm:$0xff] }
  0x7a   : > { %9487 = vmatprep.mubr.msk.f32.mxu0 %vm820_vm1, %v605_v57  ;;  %v11775_v57 = vld [vmem:[%s11770_s13] ss:$0 sm:$0xff] }
  0x7d   : > { %9488 = vmatmul.mubr.msk.f32.gmra.mrb[50].mxu0 %vm820_vm1, %v606_v58  ;;  %v662_v58 = vld [vmem:[%s11432_s23 + $0x358] sm:$0xff] }
  0x7e   : > { %9490 = vmatprep.mubr.msk.f32.mxu0 %vm820_vm1, %v607_v59  ;;  %v663_v59 = vld [vmem:[%s11432_s23 + $0x360] sm:$0xff] }
  0x81   : > { %9491 = vmatmul.mubr.msk.f32.gmra.mrb[52].mxu0 %vm820_vm1, %v608_v60 }
  0x82   : > { %9493 = vmatprep.mubr.msk.f32.mxu0 %vm820_vm1, %v609_v61 }
  0x85   : > { %9494 = vmatmul.mubr.msk.f32.gmra.mrb[54].mxu0 %vm820_vm1, %v610_v62 }
  0x86   : > { %9496 = vmatprep.mubr.msk.f32.mxu0 %vm820_vm1, %v611_v63 }
  0x89   : > { %9497 = vmatmul.mubr.msk.f32.gmra.mrb[56].mxu0 %vm820_vm1, %v612_v0  ;;  %v664_v0 = vld [vmem:[%s11432_s23 + $0x368] sm:$0xff] }
  0x8a   : > { %9499 = vmatprep.mubr.msk.f32.mxu0 %vm820_vm1, %v613_v1 }
  0x8d   : > { %9500 = vmatmul.mubr.msk.f32.gmra.mrb[58].mxu0 %vm820_vm1, %v614_v2  ;;  %v665_v2 = vld [vmem:[%s11432_s23 + $0x370] sm:$0xff] }
  0x8e   : > { %9502 = vmatprep.mubr.msk.f32.mxu0 %vm820_vm1, %v615_v3 }
  0x91   : > { %9503 = vmatmul.mubr.msk.f32.gmra.mrb[60].mxu0 %vm820_vm1, %v616_v4 }
  0x92   : > { %9505 = vmatprep.mubr.msk.f32.mxu0 %vm820_vm1, %v617_v5 }
  0x95   : > { %9506 = vmatmul.mubr.msk.f32.gmra.mrb[62].mxu0 %vm820_vm1, %v618_v6 }
  0x96   : > { %9508 = vmatprep.mubr.msk.f32.mxu0 %vm820_vm1, %v619_v7 }
  0x99   : > { %9509 = vmatmul.mubr.msk.f32.gmra.mrb[64].mxu0 %vm820_vm1, %v620_v8 }
  0x9a   : > { %9511 = vmatprep.mubr.msk.f32.mxu0 %vm820_vm1, %v621_v9  ;;  %v666_v9 = vld [vmem:[%s11432_s23 + $0x378] sm:$0xff] }
  0x9d   : > { %9512 = vmatmul.mubr.msk.f32.gmra.mrb[66].mxu0 %vm820_vm1, %v622_v12  ;;  %v667_v12 = vld [vmem:[%s11432_s23 + $0x380] sm:$0xff] }
  0x9e   : > { %9514 = vmatprep.mubr.msk.f32.mxu0 %vm820_vm1, %v623_v14 }
  0xa1   : > { %9515 = vmatmul.mubr.msk.f32.gmra.mrb[68].mxu0 %vm820_vm1, %v624_v17 }
  0xa2   : > { %9517 = vmatprep.mubr.msk.f32.mxu0 %vm820_vm1, %v625_v19  ;;  %v668_v19 = vld [vmem:[%s11432_s23 + $0x388] sm:$0xff] }
  0xa5   : > { %9518 = vmatmul.mubr.msk.f32.gmra.mrb[70].mxu0 %vm820_vm1, %v626_v20 }
  0xa6   : > { %9520 = vmatprep.mubr.msk.f32.mxu0 %vm820_vm1, %v627_v21  ;;  %v669_v21 = vld [vmem:[%s11432_s23 + $0x390] sm:$0xff] }
  0xa9   : > { %9521 = vmatmul.mubr.msk.f32.gmra.mrb[72].mxu0 %vm820_vm1, %v628_v22 }
  0xaa   : > { %9523 = vmatprep.mubr.msk.f32.mxu0 %vm820_vm1, %v629_v23 }
  0xad   : > { %9524 = vmatmul.mubr.msk.f32.gmra.mrb[74].mxu0 %vm820_vm1, %v630_v25 }
  0xae   : > { %9526 = vmatprep.mubr.msk.f32.mxu0 %vm820_vm1, %v631_v26 }
  0xb1   : > { %9527 = vmatmul.mubr.msk.f32.gmra.mrb[76].mxu0 %vm820_vm1, %v632_v27 }
  0xb2   : > { %9529 = vmatprep.mubr.msk.f32.mxu0 %vm820_vm1, %v633_v28 }
  0xb5   : > { %9530 = vmatmul.mubr.msk.f32.gmra.mrb[78].mxu0 %vm820_vm1, %v634_v29  ;;  %v670_v29 = vld [vmem:[%s11432_s23 + $0x398] sm:$0xff] }
  0xb6   : > { %9532 = vmatprep.mubr.msk.f32.mxu0 %vm820_vm1, %v635_v30 }
  0xb9   : > { %9533 = vmatmul.mubr.msk.f32.gmra.mrb[80].mxu0 %vm820_vm1, %v636_v31  ;;  %v671_v31 = vld [vmem:[%s11432_s23 + $0x3a0] sm:$0xff] }
  0xba   : > { %9535 = vmatprep.mubr.msk.f32.mxu0 %vm820_vm1, %v637_v32 }
  0xbd   : > { %9536 = vmatmul.mubr.msk.f32.gmra.mrb[82].mxu0 %vm820_vm1, %v638_v33 }
  0xbe   : > { %9538 = vmatprep.mubr.msk.f32.mxu0 %vm820_vm1, %v639_v34 }
  0xc1   : > { %9539 = vmatmul.mubr.msk.f32.gmra.mrb[84].mxu0 %vm820_vm1, %v640_v35 }
  0xc2   : > { %9541 = vmatprep.mubr.msk.f32.mxu0 %vm820_vm1, %v641_v36 }
  0xc5   : > { %9542 = vmatmul.mubr.msk.f32.gmra.mrb[86].mxu0 %vm820_vm1, %v642_v37 }
  0xc6   : > { %9544 = vmatprep.mubr.msk.f32.mxu0 %vm820_vm1, %v643_v38  ;;  %v672_v38 = vld [vmem:[%s11432_s23 + $0x3a8] sm:$0xff] }
  0xc9   : > { %9545 = vmatmul.mubr.msk.f32.gmra.mrb[88].mxu0 %vm820_vm1, %v644_v39 }
  0xca   : > { %9547 = vmatprep.mubr.msk.f32.mxu0 %vm820_vm1, %v645_v40  ;;  %v673_v40 = vld [vmem:[%s11432_s23 + $0x3b0] sm:$0xff] }
  0xcd   : > { %9548 = vmatmul.mubr.msk.f32.gmra.mrb[90].mxu0 %vm820_vm1, %v646_v41 }
  0xce   : > { %9550 = vmatprep.mubr.msk.f32.mxu0 %vm820_vm1, %v647_v42 }
  0xd1   : > { %9551 = vmatmul.mubr.msk.f32.gmra.mrb[92].mxu0 %vm820_vm1, %v648_v43 }
  0xd2   : > { %9553 = vmatprep.mubr.msk.f32.mxu0 %vm820_vm1, %v649_v44 }
  0xd5   : > { %9554 = vmatmul.mubr.msk.f32.gmra.mrb[94].mxu0 %vm820_vm1, %v650_v45 }
  0xd6   : > { %9556 = vmatprep.mubr.msk.f32.mxu0 %vm820_vm1, %v651_v46 }
  0xd9   : > { %9557 = vmatmul.mubr.msk.f32.gmra.mrb[96].mxu0 %vm820_vm1, %v652_v47  ;;  %v674_v47 = vld [vmem:[%s11432_s23 + $0x3b8] sm:$0xff] }
  0xda   : > { %9559 = vmatprep.mubr.msk.f32.mxu0 %vm820_vm1, %v653_v48 }
  0xdd   : > { %9560 = vmatmul.mubr.msk.f32.gmra.mrb[98].mxu0 %vm820_vm1, %v654_v49  ;;  %v675_v49 = vld [vmem:[%s11432_s23 + $0x3c0] sm:$0xff] }
  0xde   : > { %9562 = vmatprep.mubr.msk.f32.mxu0 %vm820_vm1, %v655_v50 }
  0xe1   : > { %9563 = vmatmul.mubr.msk.f32.gmra.mrb[100].mxu0 %vm820_vm1, %v656_v51 }
  0xe2   : > { %9565 = vmatprep.mubr.msk.f32.mxu0 %vm820_vm1, %v657_v52 }
  0xe5   : > { %9566 = vmatmul.mubr.msk.f32.gmra.mrb[102].mxu0 %vm820_vm1, %v658_v53 }
  0xe6   : > { %9568 = vmatprep.mubr.msk.f32.mxu0 %vm820_vm1, %v659_v54 }
  0xe9   : > { %9569 = vmatmul.mubr.msk.f32.gmra.mrb[104].mxu0 %vm820_vm1, %v660_v55 }
  0xea   : > { %9571 = vmatprep.mubr.msk.f32.mxu0 %vm820_vm1, %v661_v56  ;;  %v676_v56 = vld [vmem:[%s11432_s23 + $0x3c8] sm:$0xff] }
  0xec   : > { %v9414_v60 = vpop.f32.mrb[0].mxu0 }
  0xed   : > { %v1665_v61 = vadd.f32 %v9414_v60, %v11775_v57  ;;  %v1659_v62 = vpop.f32.mrb[1].mxu0  ;;  %9572 = vmatmul.mubr.msk.f32.gmra.mrb[106].mxu0 %vm820_vm1, %v662_v58 }
  0xee   : > { %v1660_v63 = vadd.f32 %v11775_v57, %v1659_v62  ;;  %9574 = vmatprep.mubr.msk.f32.mxu0 %vm820_vm1, %v663_v59  ;;  %v677_v59 = vld [vmem:[%s11432_s23 + $0x3d0] sm:$0xff] }
  0xef   : > { %v2939_v1 = vmax.f32 %v1665_v61, 0.0 }
  0xf0   : > { %v2938_v3 = vmax.f32 %v1660_v63, 0.0  ;;  %v9417_v4 = vpop.f32.mrb[2].mxu0 }
  0xf1   : > { %v1675_v5 = vadd.f32 %v9417_v4, %v11775_v57  ;;  %v1669_v6 = vpop.f32.mrb[3].mxu0  ;;  %9575 = vmatmul.mubr.msk.f32.gmra.mrb[108].mxu0 %vm820_vm1, %v664_v0  ;;  %v679_v4 = vld [vmem:[%s11432_s23 + $0x3e0] sm:$0xff] }
  0xf2   : > { %v11788_v7 = vmax.f32 %v2938_v3, %v2939_v1  ;;  %v1670_v8 = vadd.f32 %v11775_v57, %v1669_v6  ;;  %9577 = vmatprep.mubr.msk.f32.mxu0 %vm820_vm1, %v665_v2  ;;  %v678_v2 = vld [vmem:[%s11432_s23 + $0x3d8] sm:$0xff] }
  0xf3   : > { %v2941_v11 = vmax.f32 %v1675_v5, 0.0 }
  0xf4   : > { %v2940_v13 = vmax.f32 %v1670_v8, 0.0  ;;  %v9420_v14 = vpop.f32.mrb[4].mxu0 }
  0xf5   : > { %v1685_v15 = vadd.f32 %v9420_v14, %v11775_v57  ;;  %v1679_v16 = vpop.f32.mrb[5].mxu0  ;;  %9578 = vmatmul.mubr.msk.f32.gmra.mrb[110].mxu0 %vm820_vm1, %v666_v9 }
  0xf6   : > { %v11796_v17 = vmax.f32 %v2940_v13, %v2941_v11  ;;  %v1680_v18 = vadd.f32 %v11775_v57, %v1679_v16  ;;  %9580 = vmatprep.mubr.msk.f32.mxu0 %vm820_vm1, %v667_v12  ;;  %v680_v13 = vld [vmem:[%s11432_s23 + $0x3e8] sm:$0xff] }
  0xf7   : > { %v2943_v20 = vmax.f32 %v1685_v15, 0.0  ;;  %v681_v15 = vld [vmem:[%s11432_s23 + $0x3f0] sm:$0xff] }
  0xf8   : > { %v2942_v22 = vmax.f32 %v1680_v18, 0.0  ;;  %v9423_v23 = vpop.f32.mrb[6].mxu0 }
  0xf9   : > { %v1695_v25 = vadd.f32 %v9423_v23, %v11775_v57  ;;  %v1689_v26 = vpop.f32.mrb[7].mxu0  ;;  %9581 = vmatmul.mubr.msk.f32.gmra.mrb[112].mxu0 %vm820_vm1, %v668_v19  ;;  %v682_v23 = vld [vmem:[%s11432_s23 + $0x3f8] sm:$0xff] }
  0xfa   : > { %v11804_v27 = vmax.f32 %v2942_v22, %v2943_v20  ;;  %v1690_v28 = vadd.f32 %v11775_v57, %v1689_v26  ;;  %9583 = vmatprep.mubr.msk.f32.mxu0 %vm820_vm1, %v669_v21  ;;  %v683_v26 = vld [vmem:[%s11432_s23 + $0x400] sm:$0xff] }
  0xfb   : > { %v2945_v30 = vmax.f32 %v1695_v25, 0.0 }
  0xfc   : > { %v2944_v32 = vmax.f32 %v1690_v28, 0.0  ;;  %v9426_v33 = vpop.f32.mrb[8].mxu0 }
  0xfd   : > { %v1705_v34 = vadd.f32 %v9426_v33, %v11775_v57  ;;  %v1699_v35 = vpop.f32.mrb[9].mxu0  ;;  %9584 = vmatmul.mubr.msk.f32.gmra.mrb[114].mxu0 %vm820_vm1, %v670_v29 }
  0xfe   : > { %v11812_v36 = vmax.f32 %v2944_v32, %v2945_v30  ;;  %v1700_v37 = vadd.f32 %v11775_v57, %v1699_v35  ;;  %9586 = vmatprep.mubr.msk.f32.mxu0 %vm820_vm1, %v671_v31  ;;  %v684_v35 = vld [vmem:[%s11432_s23 + $0x408] sm:$0xff] }
  0xff   : > { %v2947_v39 = vmax.f32 %v1705_v34, 0.0 }
 0x100   : > { %v2946_v41 = vmax.f32 %v1700_v37, 0.0  ;;  %v9429_v42 = vpop.f32.mrb[10].mxu0  ;;  %v5995_v37 = vld [vmem:[%s11861_s19] sm:$0xff] }
 0x101   : > { %v1715_v43 = vadd.f32 %v9429_v42, %v11775_v57  ;;  %v1709_v44 = vpop.f32.mrb[11].mxu0  ;;  %9587 = vmatmul.mubr.msk.f32.gmra.mrb[116].mxu0 %vm820_vm1, %v672_v38  ;;  %v5996_v38 = vld [vmem:[%s11861_s19 + $0x8] sm:$0xff] }
 0x102   : > { %v11820_v45 = vmax.f32 %v2946_v41, %v2947_v39  ;;  %v1710_v46 = vadd.f32 %v11775_v57, %v1709_v44  ;;  %9589 = vmatprep.mubr.msk.f32.mxu0 %vm820_vm1, %v673_v40  ;;  %v9968_v40 = vpack.c.bf16 %v5996_v38, %v5995_v37  ;;  %v15062_v44 = vmov 0.0|0.0   ;;  %v692_v38 = vld [vmem:[%s11432_s23 + $0x448] sm:$0xff] }
 0x103   : > { %v2949_v48 = vmax.f32 %v1715_v43, 0.0  ;;  %9967 = vmatprep.subr.bf16.mxu1 %v15062_v44 }
 0x104   : > { %v2948_v50 = vmax.f32 %v1710_v46, 0.0  ;;  %v9432_v51 = vpop.f32.mrb[12].mxu0  ;;  %9969 = vmatpush1.bf16.msra.mxu1 %v9968_v40 }
 0x105   : > { %v1725_v52 = vadd.f32 %v9432_v51, %v11775_v57  ;;  %v1719_v53 = vpop.f32.mrb[13].mxu0  ;;  %9590 = vmatmul.mubr.msk.f32.gmra.mrb[118].mxu0 %vm820_vm1, %v674_v47  ;;  %9970 = vmatprep.subr.bf16.mxu1 %v15062_v44  ;;  %v5998_v51 = vld [vmem:[%s11861_s19 + $0x18] sm:$0xff] }
 0x106   : > { %v11828_v54 = vmax.f32 %v2948_v50, %v2949_v48  ;;  %v1720_v55 = vadd.f32 %v11775_v57, %v1719_v53  ;;  %9592 = vmatprep.mubr.msk.f32.mxu0 %vm820_vm1, %v675_v49  ;;  %v5997_v50 = vld [vmem:[%s11861_s19 + $0x10] sm:$0xff]  ;;  %v687_v53 = vld [vmem:[%s11432_s23 + $0x420] sm:$0xff] }
 0x107   : > { %v2951_v58 = vmax.f32 %v1725_v52, 0.0 }
 0x108   : > { %v2950_v60 = vmax.f32 %v1720_v55, 0.0  ;;  %v9435_v61 = vpop.f32.mrb[14].mxu0  ;;  %v9971_v55 = vpack.c.bf16 %v5998_v51, %v5997_v50 }
 0x109   : > { %v1735_v62 = vadd.f32 %v9435_v61, %v11775_v57  ;;  %v1729_v63 = vpop.f32.mrb[15].mxu0  ;;  %9593 = vmatmul.mubr.msk.f32.gmra.mrb[120].mxu0 %vm820_vm1, %v676_v56 }
 0x10a   : > { %v11836_v0 = vmax.f32 %v2950_v60, %v2951_v58  ;;  %v1730_v1 = vadd.f32 %v11775_v57, %v1729_v63  ;;  %9595 = vmatprep.mubr.msk.f32.mxu0 %vm820_vm1, %v677_v59  ;;  %9972 = vmatpush1.bf16.msra.mxu1 %v9971_v55  ;;  %v6006_v55 = vld [vmem:[%s11861_s19 + $0x58] sm:$0xff] }
 0x10b   : > { %v2953_v3 = vmax.f32 %v1735_v62, 0.0  ;;  %9973 = vmatprep.subr.bf16.mxu1 %v15062_v44 }
 0x10c   : > { %v2952_v5 = vmax.f32 %v1730_v1, 0.0  ;;  %v9438_v6 = vpop.f32.mrb[16].mxu0  ;;  %v688_v1 = vld [vmem:[%s11432_s23 + $0x428] sm:$0xff] }
 0x10d   : > { %v1745_v8 = vadd.f32 %v9438_v6, %v11775_v57  ;;  %v1739_v9 = vpop.f32.mrb[17].mxu0  ;;  %9596 = vmatmul.mubr.msk.f32.gmra.mrb[122].mxu0 %vm820_vm1, %v678_v2  ;;  %v6000_v2 = vld [vmem:[%s11861_s19 + $0x28] sm:$0xff]  ;;  %v3887_v6 = vld [vmem:[#allocation2 + $0xf0] sm:$0xff] }
 0x10e   : > { %v11844_v11 = vmax.f32 %v2952_v5, %v2953_v3  ;;  %v1740_v12 = vadd.f32 %v11775_v57, %v1739_v9  ;;  %9598 = vmatprep.mubr.msk.f32.mxu0 %vm820_vm1, %v679_v4  ;;  %v689_v4 = vld [vmem:[%s11432_s23 + $0x430] sm:$0xff]  ;;  %v3556_v5 = vld [vmem:[#allocation2 + $0x8] sm:$0xff] }
 0x10f   : > { %v2955_v14 = vmax.f32 %v1745_v8, 0.0 }
 0x110   : > { %v2954_v16 = vmax.f32 %v1740_v12, 0.0  ;;  %v9441_v18 = vpop.f32.mrb[18].mxu0 }
 0x111   : > { %v1755_v19 = vadd.f32 %v9441_v18, %v11775_v57  ;;  %v1749_v20 = vpop.f32.mrb[19].mxu0  ;;  %9599 = vmatmul.mubr.msk.f32.gmra.mrb[124].mxu0 %vm820_vm1, %v680_v13 }
 0x112   : > { %v3258_v21 = vmax.f32 %v2954_v16, %v2955_v14  ;;  %v1750_v22 = vadd.f32 %v11775_v57, %v1749_v20  ;;  %9601 = vmatprep.mubr.msk.f32.mxu0 %vm820_vm1, %v681_v15 }
 0x113   : > { %v2957_v25 = vmax.f32 %v1755_v19, 0.0 }
 0x114   : > { %v3322_v28 = vmax.f32 %v11788_v7, %v3258_v21  ;;  %v2956_v29 = vmax.f32 %v1750_v22, 0.0  ;;  %v9444_v30 = vpop.f32.mrb[20].mxu0  ;;  %v685_v7 = vld [vmem:[%s11432_s23 + $0x410] sm:$0xff]  ;;  %v690_v21 = vld [vmem:[%s11432_s23 + $0x438] sm:$0xff] }
 0x115   : > { %v1765_v31 = vadd.f32 %v9444_v30, %v11775_v57  ;;  %v1759_v32 = vpop.f32.mrb[21].mxu0  ;;  %9602 = vmatmul.mubr.msk.f32.gmra.mrb[126].mxu0 %vm820_vm1, %v682_v23  ;;  %v6001_v22 = vld [vmem:[%s11861_s19 + $0x30] sm:$0xff]  ;;  %v6002_v23 = vld [vmem:[%s11861_s19 + $0x38] sm:$0xff] }
 0x116   : > { %3427 = vst.msk [vmem:[#allocation2 + $0x58] sm:$0xff] %vm3386_vm4, %v3322_v28  ;;  %v3259_v33 = vmax.f32 %v2956_v29, %v2957_v25  ;;  %v1760_v34 = vadd.f32 %v11775_v57, %v1759_v32  ;;  %9604 = vmatprep.mubr.msk.f32.mxu0 %vm820_vm1, %v683_v26  ;;  %v691_v26 = vld [vmem:[%s11432_s23 + $0x440] sm:$0xff]  ;;  %v9977_v28 = vpack.c.bf16 %v6002_v23, %v6001_v22 }
 0x117   : > { %v2959_v39 = vmax.f32 %v1765_v31, 0.0 }
 0x118   : > { %v3323_v41 = vmax.f32 %v11796_v17, %v3259_v33  ;;  %v2958_v42 = vmax.f32 %v1760_v34, 0.0  ;;  %v9447_v43 = vpop.f32.mrb[22].mxu0  ;;  %v686_v17 = vld [vmem:[%s11432_s23 + $0x418] sm:$0xff] }
 0x119   : > { %v1775_v46 = vadd.f32 %v9447_v43, %v11775_v57  ;;  %v1769_v47 = vpop.f32.mrb[23].mxu0  ;;  %9605 = vmatmul.mubr.msk.f32.gmra.mrb[128].mxu0 %vm820_vm1, %v684_v35 }
 0x11a   : > { %3428 = vst.msk [vmem:[#allocation2 + $0x60] sm:$0xff] %vm3386_vm4, %v3323_v41  ;;  %v3260_v48 = vmax.f32 %v2958_v42, %v2959_v39  ;;  %v1770_v49 = vadd.f32 %v11775_v57, %v1769_v47  ;;  %9607 = vmatprep.mubr.msk.f32.mxu0 %vm820_vm1, %v685_v7  ;;  %v6003_v39 = vld [vmem:[%s11861_s19 + $0x40] sm:$0xff]  ;;  %v6004_v7 = vld [vmem:[%s11861_s19 + $0x48] sm:$0xff]  ;;  %v693_v41 = vld [vmem:[%s11432_s23 + $0x450] sm:$0xff] }
 0x11b   : > { %v2961_v52 = vmax.f32 %v1775_v46, 0.0  ;;  %v11929_v42 = vld [vmem:[#allocation2 + $0x18] sm:$0xff]  ;;  %v9980_v43 = vpack.c.bf16 %v6004_v7, %v6003_v39 }
 0x11c   : > { %v3324_v56 = vmax.f32 %v11804_v27, %v3260_v48  ;;  %v2960_v58 = vmax.f32 %v1770_v49, 0.0  ;;  %v9450_v59 = vpop.f32.mrb[24].mxu0  ;;  %v5999_v27 = vld [vmem:[%s11861_s19 + $0x20] sm:$0xff] }
 0x11d   : > { %v1785_v60 = vadd.f32 %v9450_v59, %v11775_v57  ;;  %v1779_v61 = vpop.f32.mrb[25].mxu0  ;;  %9608 = vmatmul.mubr.msk.f32.gmra.mrb[130].mxu0 %vm820_vm1, %v686_v17  ;;  %v9974_v8 = vpack.c.bf16 %v6000_v2, %v5999_v27  ;;  %v11947_v59 = vld [vmem:[#allocation2 + $0x20] sm:$0xff] }
 0x11e   : > { %3429 = vst.msk [vmem:[#allocation2 + $0x68] sm:$0xff] %vm3386_vm4, %v3324_v56  ;;  %v3261_v62 = vmax.f32 %v2960_v58, %v2961_v52  ;;  %v1780_v63 = vadd.f32 %v11775_v57, %v1779_v61  ;;  %9610 = vmatprep.mubr.msk.f32.mxu0 %vm820_vm1, %v687_v53  ;;  %v694_v52 = vld [vmem:[%s11432_s23 + $0x458] sm:$0xff]  ;;  %v6005_v53 = vld [vmem:[%s11861_s19 + $0x50] sm:$0xff]  ;;  %v695_v58 = vld [vmem:[%s11432_s23 + $0x460] sm:$0xff] }
 0x11f   : > { %v2963_v3 = vmax.f32 %v1785_v60, 0.0  ;;  %9975 = vmatpush1.bf16.msra.mxu1 %v9974_v8  ;;  %v9983_v60 = vpack.c.bf16 %v6006_v55, %v6005_v53  ;;  %v6008_v8 = vld [vmem:[%s11861_s19 + $0x68] sm:$0xff] }
 0x120   : > { %v3325_v9 = vmax.f32 %v11812_v36, %v3261_v62  ;;  %v2962_v12 = vmax.f32 %v1780_v63, 0.0  ;;  %v9453_v13 = vpop.f32.mrb[26].mxu0  ;;  %9976 = vmatprep.subr.bf16.mxu1 %v15062_v44 }
 0x121   : > { %v1795_v14 = vadd.f32 %v9453_v13, %v11775_v57  ;;  %v1789_v15 = vpop.f32.mrb[27].mxu0  ;;  %9611 = vmatmul.mubr.msk.f32.gmra.mrb[132].mxu0 %vm820_vm1, %v688_v1  ;;  %v11900_v16 = vld [vmem:[#allocation2 + $0x60] sm:$0xff]  ;;  %v11965_v13 = vld [vmem:[#allocation2 + $0x28] sm:$0xff] }
 0x122   : > { %3430 = vst.msk [vmem:[#allocation2 + $0x70] sm:$0xff] %vm3386_vm4, %v3325_v9  ;;  %v3262_v18 = vmax.f32 %v2962_v12, %v2963_v3  ;;  %v1790_v19 = vadd.f32 %v11775_v57, %v1789_v15  ;;  %9613 = vmatprep.mubr.msk.f32.mxu0 %vm820_vm1, %v689_v4  ;;  %v10145_v36 = vpack.i.bf16 %v3556_v5, %v11900_v16  ;;  %v696_v5 = vld [vmem:[%s11432_s23 + $0x468] sm:$0xff]  ;;  %v697_v12 = vld [vmem:[%s11432_s23 + $0x470] sm:$0xff] }
 0x123   : > { %v10150_v20 = vpack.i.bf16 %v11900_v16, %v3887_v6  ;;  %v2965_v25 = vmax.f32 %v1795_v14, 0.0  ;;  %9978 = vmatpush1.bf16.msra.mxu1 %v9977_v28  ;;  %v6007_v6 = vld [vmem:[%s11861_s19 + $0x60] sm:$0xff]  ;;  %v6010_v28 = vld [vmem:[%s11861_s19 + $0x78] sm:$0xff] }
 0x124   : > { %v3326_v29 = vmax.f32 %v11820_v45, %v3262_v18  ;;  %v2964_v30 = vmax.f32 %v1790_v19, 0.0  ;;  %v9456_v31 = vpop.f32.mrb[28].mxu0  ;;  %10146 = vrot.lane.b32.xlu0 %v10145_v36, %s11352_s27  ;;  %9979 = vmatprep.subr.bf16.mxu1 %v15062_v44  ;;  %v9986_v14 = vpack.c.bf16 %v6008_v8, %v6007_v6 }
 0x125   : > { %10151 = vrot.lane.b32.xlu1 %v10150_v20, %s11353_s28  ;;  %v1805_v32 = vadd.f32 %v9456_v31, %v11775_v57  ;;  %v1799_v33 = vpop.f32.mrb[29].mxu0  ;;  %9614 = vmatmul.mubr.msk.f32.gmra.mrb[134].mxu0 %vm820_vm1, %v690_v21  ;;  %v11917_v34 = vld [vmem:[#allocation2 + $0x68] sm:$0xff]  ;;  %v11985_v31 = vld [vmem:[#allocation2 + $0x30] sm:$0xff] }
 0x126   : > { %3431 = vst.msk [vmem:[#allocation2 + $0x78] sm:$0xff] %vm3386_vm4, %v3326_v29  ;;  %v3263_v45 = vmax.f32 %v2964_v30, %v2965_v25  ;;  %v1800_v35 = vadd.f32 %v11775_v57, %v1799_v33  ;;  %9616 = vmatprep.mubr.msk.f32.mxu0 %vm820_vm1, %v691_v26  ;;  %v10155_v37 = vpack.i.bf16 %v11683_v10, %v11917_v34  ;;  %v698_v25 = vld [vmem:[%s11432_s23 + $0x478] sm:$0xff]  ;;  %v6009_v26 = vld [vmem:[%s11861_s19 + $0x70] sm:$0xff]  ;;  %v699_v30 = vld [vmem:[%s11432_s23 + $0x480] sm:$0xff] }
 0x127   : > { %v2967_v40 = vmax.f32 %v1805_v32, 0.0  ;;  %9981 = vmatpush1.bf16.msra.mxu1 %v9980_v43  ;;  %v9989_v32 = vpack.c.bf16 %v6010_v28, %v6009_v26  ;;  %v6011_v43 = vld [vmem:[%s11861_s19 + $0x80] sm:$0xff] }
 0x128   : > { %v3327_v46 = vmax.f32 %v11828_v54, %v3263_v45  ;;  %v2966_v47 = vmax.f32 %v1800_v35, 0.0  ;;  %v9459_v48 = vpop.f32.mrb[30].mxu0  ;;  %9982 = vmatprep.subr.bf16.mxu1 %v15062_v44 }
 0x129   : > { %10156 = vrot.lane.b32.xlu1 %v10155_v37, %s11352_s27  ;;  %v1815_v10 = vadd.f32 %v9459_v48, %v11775_v57  ;;  %v1809_v49 = vpop.f32.mrb[31].mxu0  ;;  %9617 = vmatmul.mubr.msk.f32.gmra.mrb[136].mxu0 %vm820_vm1, %v692_v38  ;;  %v11935_v17 = vld [vmem:[#allocation2 + $0x70] sm:$0xff] }
 0x12a   : > { %3432 = vst.msk [vmem:[#allocation2 + $0x80] sm:$0xff] %vm3386_vm4, %v3327_v46  ;;  %v3264_v50 = vmax.f32 %v2966_v47, %v2967_v40  ;;  %v1810_v54 = vadd.f32 %v11775_v57, %v1809_v49  ;;  %9619 = vmatprep.mubr.msk.f32.mxu0 %vm820_vm1, %v693_v41  ;;  %v10160_v51 = vpack.i.bf16 %v11929_v42, %v11935_v17  ;;  %v700_v41 = vld [vmem:[%s11432_s23 + $0x488] sm:$0xff]  ;;  %v701_v48 = vld [vmem:[%s11432_s23 + $0x490] sm:$0xff] }
 0x12b   : > { %v2969_v56 = vmax.f32 %v1815_v10, 0.0  ;;  %9984 = vmatpush1.bf16.msra.mxu1 %v9983_v60  ;;  %v6012_v46 = vld [vmem:[%s11861_s19 + $0x88] sm:$0xff]  ;;  %v12003_v10 = vld [vmem:[#allocation2 + $0x38] sm:$0xff] }
 0x12c   : > { %v3328_v61 = vmax.f32 %v11836_v0, %v3264_v50  ;;  %v2968_v62 = vmax.f32 %v1810_v54, 0.0  ;;  %v9462_v63 = vpop.f32.mrb[32].mxu0  ;;  %10161 = vrot.lane.b32.xlu0 %v10160_v51, %s11352_s27  ;;  %9985 = vmatprep.subr.bf16.mxu1 %v15062_v44  ;;  %v3829_v49 = vld [vmem:[#allocation2 + $0xe8] sm:$0xff]  ;;  %v9992_v50 = vpack.c.bf16 %v6012_v46, %v6011_v43 }
 0x12d   : > { %v1825_v1 = vadd.f32 %v9462_v63, %v11775_v57  ;;  %v1819_v27 = vpop.f32.mrb[33].mxu0  ;;  %9620 = vmatmul.mubr.msk.f32.gmra.mrb[138].mxu0 %vm820_vm1, %v694_v52  ;;  %v11953_v2 = vld [vmem:[#allocation2 + $0x78] sm:$0xff]  ;;  %v6013_v63 = vld [vmem:[%s11861_s19 + $0x90] sm:$0xff] }
 0x12e   : > { %3433 = vst.msk [vmem:[#allocation2 + $0x88] sm:$0xff] %vm3386_vm4, %v3328_v61  ;;  %v3265_v3 = vmax.f32 %v2968_v62, %v2969_v56  ;;  %v1820_v0 = vadd.f32 %v11775_v57, %v1819_v27  ;;  %9622 = vmatprep.mubr.msk.f32.mxu0 %vm820_vm1, %v695_v58  ;;  %v10165_v4 = vpack.i.bf16 %v11947_v59, %v11953_v2  ;;  %v702_v62 = vld [vmem:[%s11432_s23 + $0x498] sm:$0xff] }
 0x12f   : > { %v2971_v9 = vmax.f32 %v1825_v1, 0.0  ;;  %9987 = vmatpush1.bf16.msra.mxu1 %v9986_v14  ;;  %v6014_v1 = vld [vmem:[%s11861_s19 + $0x98] sm:$0xff]  ;;  %v704_v14 = vld [vmem:[%s11432_s23 + $0x4a8] sm:$0xff] }
 0x130   : > { %v3329_v15 = vmax.f32 %v11844_v11, %v3265_v3  ;;  %v2970_v18 = vmax.f32 %v1820_v0, 0.0  ;;  %v9465_v19 = vpop.f32.mrb[34].mxu0  ;;  %10166 = vrot.lane.b32.xlu1 %v10165_v4, %s11352_s27  ;;  %9988 = vmatprep.subr.bf16.mxu1 %v15062_v44  ;;  %v703_v3 = vld [vmem:[%s11432_s23 + $0x4a0] sm:$0xff]  ;;  %v9995_v0 = vpack.c.bf16 %v6014_v1, %v6013_v63  ;;  %v710_v63 = vld [vmem:[%s11432_s23 + $0x4d8] sm:$0xff]  ;;  %v6021_v1 = vld [vmem:[%s11861_s19 + $0xd0] sm:$0xff] }
 0x131   : > { %v1835_v36 = vadd.f32 %v9465_v19, %v11775_v57  ;;  %v1829_v20 = vpop.f32.mrb[35].mxu0  ;;  %9623 = vmatmul.mubr.msk.f32.gmra.mrb[140].mxu0 %vm820_vm1, %v696_v5  ;;  %v11971_v21 = vld [vmem:[#allocation2 + $0x80] sm:$0xff] }
 0x132   : > { %3434 = vst.msk [vmem:[#allocation2 + $0x90] sm:$0xff] %vm3386_vm4, %v3329_v15  ;;  %v11974_v22 = vmax.f32 %v2970_v18, %v2971_v9  ;;  %v1830_v11 = vadd.f32 %v11775_v57, %v1829_v20  ;;  %9625 = vmatprep.mubr.msk.f32.mxu0 %vm820_vm1, %v697_v12  ;;  %v10170_v23 = vpack.i.bf16 %v11965_v13, %v11971_v21  ;;  %v6015_v15 = vld [vmem:[%s11861_s19 + $0xa0] sm:$0xff]  ;;  %v6016_v18 = vld [vmem:[%s11861_s19 + $0xa8] sm:$0xff] }
 0x133   : > { %v2973_v29 = vmax.f32 %v1835_v36, 0.0  ;;  %9990 = vmatpush1.bf16.msra.mxu1 %v9989_v32  ;;  %v705_v36 = vld [vmem:[%s11432_s23 + $0x4b0] sm:$0xff]  ;;  %v9998_v20 = vpack.c.bf16 %v6016_v18, %v6015_v15  ;;  %v712_v18 = vld [vmem:[%s11432_s23 + $0x4e8] sm:$0xff] }
 0x134   : > { %v2972_v33 = vmax.f32 %v1830_v11, 0.0  ;;  %v9468_v45 = vpop.f32.mrb[36].mxu0  ;;  %10171 = vrot.lane.b32.xlu0 %v10170_v23, %s11352_s27  ;;  %9991 = vmatprep.subr.bf16.mxu1 %v15062_v44  ;;  %v6017_v32 = vld [vmem:[%s11861_s19 + $0xb0] sm:$0xff] }
 0x135   : > { %v1845_v35 = vadd.f32 %v9468_v45, %v11775_v57  ;;  %v1839_v37 = vpop.f32.mrb[37].mxu0  ;;  %9626 = vmatmul.mubr.msk.f32.gmra.mrb[142].mxu0 %vm820_vm1, %v698_v25  ;;  %v11990_v38 = vld [vmem:[#allocation2 + $0x88] sm:$0xff] }
 0x136   : > { %v11992_v39 = vmax.f32 %v2972_v33, %v2973_v29  ;;  %v1840_v7 = vadd.f32 %v11775_v57, %v1839_v37  ;;  %9628 = vmatprep.mubr.msk.f32.mxu0 %vm820_vm1, %v699_v30  ;;  %v10175_v40 = vpack.i.bf16 %v11985_v31, %v11990_v38  ;;  %v706_v30 = vld [vmem:[%s11432_s23 + $0x4b8] sm:$0xff] }
 0x137   : > { %v2975_v47 = vmax.f32 %v1845_v35, 0.0  ;;  %9993 = vmatpush1.bf16.msra.mxu1 %v9992_v50  ;;  %v6018_v33 = vld [vmem:[%s11861_s19 + $0xb8] sm:$0xff]  ;;  %v707_v35 = vld [vmem:[%s11432_s23 + $0x4c0] sm:$0xff]  ;;  %v6020_v50 = vld [vmem:[%s11861_s19 + $0xc8] sm:$0xff] }
 0x138   : > { %v2974_v54 = vmax.f32 %v1840_v7, 0.0  ;;  %v9471_v51 = vpop.f32.mrb[38].mxu0  ;;  %10176 = vrot.lane.b32.xlu1 %v10175_v40, %s11352_s27  ;;  %9994 = vmatprep.subr.bf16.mxu1 %v15062_v44  ;;  %v10001_v37 = vpack.c.bf16 %v6018_v33, %v6017_v32 }
 0x139   : > { %v1855_v52 = vadd.f32 %v9471_v51, %v11775_v57  ;;  %v1849_v53 = vpop.f32.mrb[39].mxu0  ;;  %9629 = vmatmul.mubr.msk.f32.gmra.mrb[144].mxu0 %vm820_vm1, %v700_v41  ;;  %v3820_v55 = vld [vmem:[#allocation2 + $0x90] sm:$0xff] }
 0x13a   : > { %v12008_v56 = vmax.f32 %v2974_v54, %v2975_v47  ;;  %v1850_v58 = vadd.f32 %v11775_v57, %v1849_v53  ;;  %9631 = vmatprep.mubr.msk.f32.mxu0 %vm820_vm1, %v701_v48  ;;  %v10180_v60 = vpack.i.bf16 %v12003_v10, %v3820_v55  ;;  %v10185_v61 = vpack.i.bf16 %v3820_v55, %v3829_v49  ;;  %v708_v48 = vld [vmem:[%s11432_s23 + $0x4c8] sm:$0xff]  ;;  %v6019_v49 = vld [vmem:[%s11861_s19 + $0xc0] sm:$0xff]  ;;  %v709_v51 = vld [vmem:[%s11432_s23 + $0x4d0] sm:$0xff] }
 0x13b   : > { %v2977_v27 = vmax.f32 %v1855_v52, 0.0  ;;  %9996 = vmatpush1.bf16.msra.mxu1 %v9995_v0  ;;  %v10004_v52 = vpack.c.bf16 %v6020_v50, %v6019_v49  ;;  %v711_v0 = vld [vmem:[%s11432_s23 + $0x4e0] sm:$0xff] }
 0x13c   : > { %v2976_v4 = vmax.f32 %v1850_v58, 0.0  ;;  %v9474_v5 = vpop.f32.mrb[40].mxu0  ;;  %10181 = vrot.lane.b32.xlu0 %v10180_v60, %s11352_s27  ;;  %10186 = vrot.lane.b32.xlu1 %v10185_v61, %s11352_s27 }
 0x13d   : > { %v1865_v6 = vadd.f32 %v9474_v5, %v11775_v57  ;;  %v1859_v8 = vpop.f32.mrb[41].mxu0  ;;  %9632 = vmatmul.mubr.msk.f32.gmra.mrb[146].mxu0 %vm820_vm1, %v702_v62  ;;  %9997 = vmatprep.subr.bf16.mxu1 %v15062_v44 }
 0x13e   : > { %v12022_v9 = vmax.f32 %v2976_v4, %v2977_v27  ;;  %v1860_v12 = vadd.f32 %v11775_v57, %v1859_v8  ;;  %9634 = vmatprep.mubr.msk.f32.mxu0 %vm820_vm1, %v703_v3  ;;  %v6022_v27 = vld [vmem:[%s11861_s19 + $0xd8] sm:$0xff] }
 0x13f   : > { %v2979_v19 = vmax.f32 %v1865_v6, 0.0  ;;  %9999 = vmatpush1.bf16.msra.mxu1 %v9998_v20  ;;  %v10007_v4 = vpack.c.bf16 %v6022_v27, %v6021_v1 }
 0x140   : > { %v2978_v11 = vmax.f32 %v1860_v12, 0.0  ;;  %v9477_v23 = vpop.f32.mrb[42].mxu0  ;;  %10000 = vmatprep.subr.bf16.mxu1 %v15062_v44 }
 0x141   : > { %v1875_v25 = vadd.f32 %v9477_v23, %v11775_v57  ;;  %v1869_v26 = vpop.f32.mrb[43].mxu0  ;;  %9635 = vmatmul.mubr.msk.f32.gmra.mrb[148].mxu0 %vm820_vm1, %v704_v14 }
 0x142   : > { %v12033_v28 = vmax.f32 %v2978_v11, %v2979_v19  ;;  %v1870_v29 = vadd.f32 %v11775_v57, %v1869_v26  ;;  %9637 = vmatprep.mubr.msk.f32.mxu0 %vm820_vm1, %v705_v36  ;;  %v6023_v19 = vld [vmem:[%s11861_s19 + $0xe0] sm:$0xff]  ;;  %v6024_v36 = vld [vmem:[%s11861_s19 + $0xe8] sm:$0xff]  ;;  %v713_v11 = vld [vmem:[%s11432_s23 + $0x4f0] sm:$0xff] }
 0x143   : > { %v2981_v45 = vmax.f32 %v1875_v25, 0.0  ;;  %10002 = vmatpush1.bf16.msra.mxu1 %v10001_v37  ;;  %v10010_v23 = vpack.c.bf16 %v6024_v36, %v6023_v19  ;;  %v6026_v37 = vld [vmem:[%s11861_s19 + $0xf8] sm:$0xff] }
 0x144   : > { %v2980_v7 = vmax.f32 %v1870_v29, 0.0  ;;  %v9480_v40 = vpop.f32.mrb[44].mxu0  ;;  %10003 = vmatprep.subr.bf16.mxu1 %v15062_v44 }
 0x145   : > { %v1885_v41 = vadd.f32 %v9480_v40, %v11775_v57  ;;  %v1879_v43 = vpop.f32.mrb[45].mxu0  ;;  %9638 = vmatmul.mubr.msk.f32.gmra.mrb[150].mxu0 %vm820_vm1, %v706_v30  ;;  %v715_v40 = vld [vmem:[%s11432_s23 + $0x500] sm:$0xff] }
 0x146   : > { %v12044_v46 = vmax.f32 %v2980_v7, %v2981_v45  ;;  %v1880_v47 = vadd.f32 %v11775_v57, %v1879_v43  ;;  %9640 = vmatprep.mubr.msk.f32.mxu0 %vm820_vm1, %v707_v35  ;;  %v714_v45 = vld [vmem:[%s11432_s23 + $0x4f8] sm:$0xff]  ;;  %v6025_v35 = vld [vmem:[%s11861_s19 + $0xf0] sm:$0xff] }
 0x147   : > { %v2983_v54 = vmax.f32 %v1885_v41, 0.0  ;;  %10005 = vmatpush1.bf16.msra.mxu1 %v10004_v52  ;;  %v10013_v41 = vpack.c.bf16 %v6026_v37, %v6025_v35  ;;  %v716_v52 = vld [vmem:[%s11432_s23 + $0x508] sm:$0xff] }
 0x148   : > { %v2982_v53 = vmax.f32 %v1880_v47, 0.0  ;;  %v9483_v55 = vpop.f32.mrb[46].mxu0  ;;  %10006 = vmatprep.subr.bf16.mxu1 %v15062_v44 }
 0x149   : > { %v1895_v58 = vadd.f32 %v9483_v55, %v11775_v57  ;;  %v1889_v60 = vpop.f32.mrb[47].mxu0  ;;  %9641 = vmatmul.mubr.msk.f32.gmra.mrb[152].mxu0 %vm820_vm1, %v708_v48 }
 0x14a   : > { %v12055_v61 = vmax.f32 %v2982_v53, %v2983_v54  ;;  %v1890_v62 = vadd.f32 %v11775_v57, %v1889_v60  ;;  %9643 = vmatprep.mubr.msk.f32.mxu0 %vm820_vm1, %v709_v51 }
 0x14b   : > { %v2985_v3 = vmax.f32 %v1895_v58, 0.0  ;;  %10008 = vmatpush1.bf16.msra.mxu1 %v10007_v4  ;;  %v719_v4 = vld [vmem:[%s11432_s23 + $0x520] sm:$0xff] }
 0x14c   : > { %v2984_v5 = vmax.f32 %v1890_v62, 0.0  ;;  %v9486_v6 = vpop.f32.mrb[48].mxu0  ;;  %10009 = vmatprep.subr.bf16.mxu1 %v15062_v44 }
 0x14d   : > { %v1905_v8 = vadd.f32 %v9486_v6, %v11775_v57  ;;  %v1899_v12 = vpop.f32.mrb[49].mxu0  ;;  %9644 = vmatmul.mubr.msk.f32.gmra.mrb[154].mxu0 %vm820_vm1, %v710_v63 }
 0x14e   : > { %v12066_v14 = vmax.f32 %v2984_v5, %v2985_v3  ;;  %v1900_v15 = vadd.f32 %v11775_v57, %v1899_v12  ;;  %9646 = vmatprep.mubr.msk.f32.mxu0 %vm820_vm1, %v711_v0  ;;  %v718_v3 = vld [vmem:[%s11432_s23 + $0x518] sm:$0xff]  ;;  %v3685_v5 = vld [vmem:[#allocation2 + $0x50] sm:$0xff] }
 0x14f   : > { %v2987_v20 = vmax.f32 %v1905_v8, 0.0  ;;  %10011 = vmatpush1.bf16.msra.mxu1 %v10010_v23 }
 0x150   : > { %v2986_v25 = vmax.f32 %v1900_v15, 0.0  ;;  %v9489_v26 = vpop.f32.mrb[50].mxu0  ;;  %10012 = vmatprep.subr.bf16.mxu1 %v15062_v44 }
 0x151   : > { %v1915_v29 = vadd.f32 %v9489_v26, %v11775_v57  ;;  %v1909_v30 = vpop.f32.mrb[51].mxu0  ;;  %9647 = vmatmul.mubr.msk.f32.gmra.mrb[156].mxu0 %vm820_vm1, %v712_v18 }
 0x152   : > { %v3266_v32 = vmax.f32 %v2986_v25, %v2987_v20  ;;  %v1910_v33 = vadd.f32 %v11775_v57, %v1909_v30  ;;  %9649 = vmatprep.mubr.msk.f32.mxu0 %vm820_vm1, %v713_v11  ;;  %v720_v11 = vld [vmem:[%s11432_s23 + $0x528] sm:$0xff]  ;;  %v721_v25 = vld [vmem:[%s11432_s23 + $0x530] sm:$0xff] }
 0x153   : > { %v2989_v7 = vmax.f32 %v1915_v29, 0.0  ;;  %10014 = vmatpush1.bf16.msra.mxu1 %v10013_v41  ;;  %v723_v41 = vld [vmem:[%s11432_s23 + $0x540] sm:$0xff] }
 0x154   : > { %v3330_v43 = vmax.f32 %v11974_v22, %v3266_v32  ;;  %v2988_v47 = vmax.f32 %v1910_v33, 0.0  ;;  %v9492_v48 = vpop.f32.mrb[52].mxu0  ;;  %v717_v22 = vld [vmem:[%s11432_s23 + $0x510] sm:$0xff] }
 0x155   : > { %v1925_v49 = vadd.f32 %v9492_v48, %v11775_v57  ;;  %v1919_v50 = vpop.f32.mrb[53].mxu0  ;;  %9650 = vmatmul.mubr.msk.f32.gmra.mrb[158].mxu0 %vm820_vm1, %v714_v45 }
 0x156   : > { %3435 = vst.msk [vmem:[#allocation2 + $0xa8] sm:$0xff] %vm3386_vm4, %v3330_v43  ;;  %v3267_v54 = vmax.f32 %v2988_v47, %v2989_v7  ;;  %v1920_v51 = vadd.f32 %v11775_v57, %v1919_v50  ;;  %9652 = vmatprep.mubr.msk.f32.mxu0 %vm820_vm1, %v715_v40  ;;  %v722_v7 = vld [vmem:[%s11432_s23 + $0x538] sm:$0xff] }
 0x157   : > { %v2991_v53 = vmax.f32 %v1925_v49, 0.0 }
 0x158   : > { %v3331_v55 = vmax.f32 %v11992_v39, %v3267_v54  ;;  %v2990_v58 = vmax.f32 %v1920_v51, 0.0  ;;  %v9495_v60 = vpop.f32.mrb[54].mxu0 }
 0x159   : > { %v1935_v62 = vadd.f32 %v9495_v60, %v11775_v57  ;;  %v1929_v63 = vpop.f32.mrb[55].mxu0  ;;  %9653 = vmatmul.mubr.msk.f32.gmra.mrb[160].mxu0 %vm820_vm1, %v716_v52  ;;  %v3895_v60 = vld [vmem:[#allocation2 + $0x140] sm:$0xff] }
 0x15a   : > { %3436 = vst.msk [vmem:[#allocation2 + $0xb0] sm:$0xff] %vm3386_vm4, %v3331_v55  ;;  %v3268_v1 = vmax.f32 %v2990_v58, %v2991_v53  ;;  %v1930_v27 = vadd.f32 %v11775_v57, %v1929_v63  ;;  %9655 = vmatprep.mubr.msk.f32.mxu0 %vm820_vm1, %v717_v22  ;;  %v724_v22 = vld [vmem:[%s11432_s23 + $0x548] sm:$0xff]  ;;  %v725_v58 = vld [vmem:[%s11432_s23 + $0x550] sm:$0xff] }
 0x15b   : > { %v2993_v0 = vmax.f32 %v1935_v62, 0.0 }
 0x15c   : > { %v3332_v39 = vmax.f32 %v12008_v56, %v3268_v1  ;;  %v2992_v6 = vmax.f32 %v1930_v27, 0.0  ;;  %v9498_v8 = vpop.f32.mrb[56].mxu0 }
 0x15d   : > { %v1945_v12 = vadd.f32 %v9498_v8, %v11775_v57  ;;  %v1939_v15 = vpop.f32.mrb[57].mxu0  ;;  %9656 = vmatmul.mubr.msk.f32.gmra.mrb[162].mxu0 %vm820_vm1, %v718_v3  ;;  %v12103_v18 = vld [vmem:[#allocation2 + $0xa8] sm:$0xff] }
 0x15e   : > { %3437 = vst.msk [vmem:[#allocation2 + $0xb8] sm:$0xff] %vm3386_vm4, %v3332_v39  ;;  %v3269_v19 = vmax.f32 %v2992_v6, %v2993_v0  ;;  %v1940_v36 = vadd.f32 %v11775_v57, %v1939_v15  ;;  %9658 = vmatprep.mubr.msk.f32.mxu0 %vm820_vm1, %v719_v4  ;;  %v10195_v20 = vpack.i.bf16 %v11929_v42, %v12103_v18  ;;  %v3686_v42 = vld [vmem:[#allocation2 + $0x58] sm:$0xff]  ;;  %v727_v39 = vld [vmem:[%s11432_s23 + $0x560] sm:$0xff] }
 0x15f   : > { %v10190_v56 = vpack.i.bf16 %v3685_v5, %v12103_v18  ;;  %v2995_v23 = vmax.f32 %v1945_v12, 0.0  ;;  %v726_v4 = vld [vmem:[%s11432_s23 + $0x558] sm:$0xff] }
 0x160   : > { %v3333_v26 = vmax.f32 %v12022_v9, %v3269_v19  ;;  %v2994_v29 = vmax.f32 %v1940_v36, 0.0  ;;  %v9501_v30 = vpop.f32.mrb[58].mxu0  ;;  %10196 = vrot.lane.b32.xlu0 %v10195_v20, %s11353_s28 }
 0x161   : > { %10191 = vrot.lane.b32.xlu1 %v10190_v56, %s11354_s29  ;;  %v1955_v32 = vadd.f32 %v9501_v30, %v11775_v57  ;;  %v1949_v33 = vpop.f32.mrb[59].mxu0  ;;  %9659 = vmatmul.mubr.msk.f32.gmra.mrb[164].mxu0 %vm820_vm1, %v720_v11  ;;  %v12118_v45 = vld [vmem:[#allocation2 + $0xb0] sm:$0xff]  ;;  %v728_v56 = vld [vmem:[%s11432_s23 + $0x568] sm:$0xff] }
 0x162   : > { %3438 = vst.msk [vmem:[#allocation2 + $0xc0] sm:$0xff] %vm3386_vm4, %v3333_v26  ;;  %v3270_v35 = vmax.f32 %v2994_v29, %v2995_v23  ;;  %v1950_v9 = vadd.f32 %v11775_v57, %v1949_v33  ;;  %9661 = vmatprep.mubr.msk.f32.mxu0 %vm820_vm1, %v721_v25  ;;  %v10200_v37 = vpack.i.bf16 %v3686_v42, %v12118_v45  ;;  %v729_v23 = vld [vmem:[%s11432_s23 + $0x570] sm:$0xff] }
 0x163   : > { %v2997_v40 = vmax.f32 %v1955_v32, 0.0 }
 0x164   : > { %v3334_v43 = vmax.f32 %v12033_v28, %v3270_v35  ;;  %v2996_v47 = vmax.f32 %v1950_v9, 0.0  ;;  %v9504_v48 = vpop.f32.mrb[60].mxu0  ;;  %10211 = vrot.lane.b32.xlu0 %v10200_v37, %s11352_s27  ;;  %v10205_v28 = vpack.i.bf16 %v11947_v59, %v12118_v45  ;;  %v730_v35 = vld [vmem:[%s11432_s23 + $0x578] sm:$0xff] }
 0x165   : > { %10201 = vrot.lane.b32.xlu1 %v10200_v37, %s11354_s29  ;;  %v1965_v49 = vadd.f32 %v9504_v48, %v11775_v57  ;;  %v1959_v50 = vpop.f32.mrb[61].mxu0  ;;  %9662 = vmatmul.mubr.msk.f32.gmra.mrb[166].mxu0 %vm820_vm1, %v722_v7  ;;  %v12131_v54 = vld [vmem:[#allocation2 + $0xb8] sm:$0xff]  ;;  %v731_v37 = vld [vmem:[%s11432_s23 + $0x580] sm:$0xff] }
 0x166   : > { %3439 = vst.msk [vmem:[#allocation2 + $0xc8] sm:$0xff] %vm3386_vm4, %v3334_v43  ;;  %v3271_v51 = vmax.f32 %v2996_v47, %v2997_v40  ;;  %v1960_v52 = vadd.f32 %v11775_v57, %v1959_v50  ;;  %9664 = vmatprep.mubr.msk.f32.mxu0 %vm820_vm1, %v723_v41  ;;  %v10220_v53 = vpack.i.bf16 %v11900_v16, %v12131_v54  ;;  %v732_v50 = vld [vmem:[%s11432_s23 + $0x588] sm:$0xff] }
 0x167   : > { %v2999_v55 = vmax.f32 %v1965_v49, 0.0  ;;  %v10225_v0 = vpack.i.bf16 %v11965_v13, %v12131_v54 }
 0x168   : > { %v3335_v62 = vmax.f32 %v12044_v46, %v3271_v51  ;;  %v2998_v63 = vmax.f32 %v1960_v52, 0.0  ;;  %v9507_v1 = vpop.f32.mrb[62].mxu0  ;;  %10221 = vrot.lane.b32.xlu0 %v10220_v53, %s11354_s29  ;;  %v10215_v46 = vpack.i.bf16 %v12118_v45, %v3895_v60  ;;  %v733_v52 = vld [vmem:[%s11432_s23 + $0x590] sm:$0xff] }
 0x169   : > { %10206 = vrot.lane.b32.xlu1 %v10205_v28, %s11353_s28  ;;  %v1975_v27 = vadd.f32 %v9507_v1, %v11775_v57  ;;  %v1969_v59 = vpop.f32.mrb[63].mxu0  ;;  %9665 = vmatmul.mubr.msk.f32.gmra.mrb[168].mxu0 %vm820_vm1, %v724_v22  ;;  %v12155_v6 = vld [vmem:[#allocation2 + $0xc0] sm:$0xff] }
 0x16a   : > { %3440 = vst.msk [vmem:[#allocation2 + $0xd0] sm:$0xff] %vm3386_vm4, %v3335_v62  ;;  %v3272_v16 = vmax.f32 %v2998_v63, %v2999_v55  ;;  %v1970_v3 = vadd.f32 %v11775_v57, %v1969_v59  ;;  %9667 = vmatprep.mubr.msk.f32.mxu0 %vm820_vm1, %v725_v58  ;;  %v12161_v57 = vld [vmem:[%s11770_s13] ss:$0 sm:$0xff]  ;;  %v10240_v48 = vpack.i.bf16 %v11985_v31, %v12155_v6  ;;  %v734_v62 = vld [vmem:[%s11432_s23 + $0x598] sm:$0xff] }
 0x16b   : > { %v3001_v5 = vmax.f32 %v1975_v27, 0.0  ;;  %v735_v1 = vld [vmem:[%s11432_s23 + $0x5a0] sm:$0xff] }
 0x16c   : > { %v3336_v8 = vmax.f32 %v12055_v61, %v3272_v16  ;;  %v3000_v12 = vmax.f32 %v1970_v3, 0.0  ;;  %v9510_v15 = vpop.f32.mrb[64].mxu0  ;;  %10226 = vrot.lane.b32.xlu0 %v10225_v0, %s11353_s28  ;;  %v10245_v61 = vpack.i.bf16 %v11917_v34, %v12155_v6 }
 0x16d   : > { %10216 = vrot.lane.b32.xlu1 %v10215_v46, %s11353_s28  ;;  %v1985_v19 = vadd.f32 %v12161_v57, %v9510_v15  ;;  %v1979_v13 = vpop.f32.mrb[65].mxu0  ;;  %9668 = vmatmul.mubr.msk.f32.gmra.mrb[170].mxu0 %vm820_vm1, %v726_v4  ;;  %v12172_v25 = vld [vmem:[#allocation2 + $0xc8] sm:$0xff] }
 0x16e   : > { %3441 = vst.msk [vmem:[#allocation2 + $0xd8] sm:$0xff] %vm3386_vm4, %v3336_v8  ;;  %v3273_v36 = vmax.f32 %v3000_v12, %v3001_v5  ;;  %v1980_v20 = vadd.f32 %v12161_v57, %v1979_v13  ;;  %9670 = vmatprep.mubr.msk.f32.mxu0 %vm820_vm1, %v727_v39  ;;  %v10255_v49 = vpack.i.bf16 %v12003_v10, %v12172_v25  ;;  %v736_v5 = vld [vmem:[%s11432_s23 + $0x5a8] sm:$0xff]  ;;  %v737_v8 = vld [vmem:[%s11432_s23 + $0x5b0] sm:$0xff]  ;;  %v3627_v12 = vld [vmem:[#allocation2 + $0x40] sm:$0xff] }
 0x16f   : > { %v3003_v11 = vmax.f32 %v1985_v19, 0.0  ;;  %v3628_v15 = vld [vmem:[#allocation2 + $0x48] sm:$0xff] }
 0x170   : > { %v3337_v26 = vmax.f32 %v12066_v14, %v3273_v36  ;;  %v3002_v29 = vmax.f32 %v1980_v20, 0.0  ;;  %v9513_v30 = vpop.f32.mrb[66].mxu0  ;;  %10246 = vrot.lane.b32.xlu0 %v10245_v61, %s11352_s27  ;;  %v10250_v14 = vpack.i.bf16 %v11935_v17, %v12172_v25 }
 0x171   : > { %10231 = vrot.lane.b32.xlu1 %v10220_v53, %s11352_s27  ;;  %v1995_v32 = vadd.f32 %v12161_v57, %v9513_v30  ;;  %v1989_v33 = vpop.f32.mrb[67].mxu0  ;;  %9671 = vmatmul.mubr.msk.f32.gmra.mrb[172].mxu0 %vm820_vm1, %v728_v56  ;;  %v12202_v28 = vld [vmem:[#allocation2 + $0xd0] sm:$0xff] }
 0x172   : > { %3442 = vst.msk [vmem:[#allocation2 + $0xe0] sm:$0xff] %vm3386_vm4, %v3337_v26  ;;  %v12180_v34 = vmax.f32 %v3002_v29, %v3003_v11  ;;  %v1990_v42 = vadd.f32 %v12161_v57, %v1989_v33  ;;  %9673 = vmatprep.mubr.msk.f32.mxu0 %vm820_vm1, %v729_v23  ;;  %v10275_v60 = vpack.i.bf16 %v11953_v2, %v12202_v28  ;;  %v738_v23 = vld [vmem:[%s11432_s23 + $0x5b8] sm:$0xff]  ;;  %v739_v29 = vld [vmem:[%s11432_s23 + $0x5c0] sm:$0xff] }
 0x173   : > { %v3005_v9 = vmax.f32 %v1995_v32, 0.0  ;;  %v10270_v56 = vpack.i.bf16 %v3627_v12, %v12202_v28  ;;  %v746_v12 = vld [vmem:[%s11432_s23 + $0x5f8] sm:$0xff] }
 0x174   : > { %v3004_v7 = vmax.f32 %v1990_v42, 0.0  ;;  %v9516_v40 = vpop.f32.mrb[68].mxu0  ;;  %10251 = vrot.lane.b32.xlu0 %v10250_v14, %s11354_s29 }
 0x175   : > { %10236 = vrot.lane.b32.xlu1 %v10245_v61, %s11354_s29  ;;  %v2005_v41 = vadd.f32 %v12161_v57, %v9516_v40  ;;  %v1999_v43 = vpop.f32.mrb[69].mxu0  ;;  %9674 = vmatmul.mubr.msk.f32.gmra.mrb[174].mxu0 %vm820_vm1, %v730_v35  ;;  %v12216_v27 = vld [vmem:[#allocation2 + $0xd8] sm:$0xff] }
 0x176   : > { %v12192_v47 = vmax.f32 %v3004_v7, %v3005_v9  ;;  %v2000_v17 = vadd.f32 %v12161_v57, %v1999_v43  ;;  %9676 = vmatprep.mubr.msk.f32.mxu0 %vm820_vm1, %v731_v37  ;;  %v10280_v4 = vpack.i.bf16 %v11971_v21, %v12216_v27  ;;  %v10285_v11 = vpack.i.bf16 %v3628_v15, %v12216_v27  ;;  %v740_v7 = vld [vmem:[%s11432_s23 + $0x5c8] sm:$0xff] }
 0x177   : > { %v3007_v51 = vmax.f32 %v2005_v41, 0.0  ;;  %v741_v41 = vld [vmem:[%s11432_s23 + $0x5d0] sm:$0xff] }
 0x178   : > { %v3006_v53 = vmax.f32 %v2000_v17, 0.0  ;;  %v9519_v22 = vpop.f32.mrb[70].mxu0  ;;  %10256 = vrot.lane.b32.xlu0 %v10255_v49, %s11353_s28 }
 0x179   : > { %10241 = vrot.lane.b32.xlu1 %v10240_v48, %s11353_s28  ;;  %v2015_v55 = vadd.f32 %v12161_v57, %v9519_v22  ;;  %v2009_v58 = vpop.f32.mrb[71].mxu0  ;;  %9677 = vmatmul.mubr.msk.f32.gmra.mrb[176].mxu0 %vm820_vm1, %v732_v50  ;;  %v3828_v30 = vld [vmem:[#allocation2 + $0xe0] sm:$0xff]  ;;  %v3837_v22 = vld [vmem:[#allocation2 + $0x138] sm:$0xff] }
 0x17a   : > { %v12208_v31 = vmax.f32 %v3006_v53, %v3007_v51  ;;  %v2010_v10 = vadd.f32 %v12161_v57, %v2009_v58  ;;  %9679 = vmatprep.mubr.msk.f32.mxu0 %vm820_vm1, %v733_v52  ;;  %v10300_v37 = vpack.i.bf16 %v11990_v38, %v3828_v30  ;;  %v742_v38 = vld [vmem:[%s11432_s23 + $0x5d8] sm:$0xff]  ;;  %v743_v53 = vld [vmem:[%s11432_s23 + $0x5e0] sm:$0xff] }
 0x17b   : > { %v3009_v63 = vmax.f32 %v2015_v55, 0.0 }
 0x17c   : > { %v3008_v59 = vmax.f32 %v2010_v10, 0.0  ;;  %v9522_v16 = vpop.f32.mrb[72].mxu0  ;;  %10276 = vrot.lane.b32.xlu0 %v10275_v60, %s11352_s27 }
 0x17d   : > { %10261 = vrot.lane.b32.xlu1 %v10250_v14, %s11352_s27  ;;  %v2025_v3 = vadd.f32 %v12161_v57, %v9522_v16  ;;  %v2019_v46 = vpop.f32.mrb[73].mxu0  ;;  %9680 = vmatmul.mubr.msk.f32.gmra.mrb[178].mxu0 %vm820_vm1, %v734_v62 }
 0x17e   : > { %v12222_v0 = vmax.f32 %v3008_v59, %v3009_v63  ;;  %v2020_v2 = vadd.f32 %v12161_v57, %v2019_v46  ;;  %9682 = vmatprep.mubr.msk.f32.mxu0 %vm820_vm1, %v735_v1  ;;  %v10305_v1 = vpack.i.bf16 %v3828_v30, %v3837_v22  ;;  %v744_v59 = vld [vmem:[%s11432_s23 + $0x5e8] sm:$0xff]  ;;  %v749_v30 = vld [vmem:[%s11432_s23 + $0x610] sm:$0xff] }
 0x17f   : > { %v3011_v39 = vmax.f32 %v2025_v3, 0.0  ;;  %v745_v3 = vld [vmem:[%s11432_s23 + $0x5f0] sm:$0xff] }
 0x180   : > { %v3010_v19 = vmax.f32 %v2020_v2, 0.0  ;;  %v9525_v13 = vpop.f32.mrb[74].mxu0  ;;  %10281 = vrot.lane.b32.xlu0 %v10280_v4, %s11354_s29 }
 0x181   : > { %10266 = vrot.lane.b32.xlu1 %v10275_v60, %s11354_s29  ;;  %v2035_v36 = vadd.f32 %v12161_v57, %v9525_v13  ;;  %v2029_v20 = vpop.f32.mrb[75].mxu0  ;;  %9683 = vmatmul.mubr.msk.f32.gmra.mrb[180].mxu0 %vm820_vm1, %v736_v5 }
 0x182   : > { %v12234_v61 = vmax.f32 %v3010_v19, %v3011_v39  ;;  %v2030_v21 = vadd.f32 %v12161_v57, %v2029_v20  ;;  %9685 = vmatprep.mubr.msk.f32.mxu0 %vm820_vm1, %v737_v8  ;;  %v747_v19 = vld [vmem:[%s11432_s23 + $0x600] sm:$0xff] }
 0x183   : > { %v3013_v26 = vmax.f32 %v2035_v36, 0.0 }
 0x184   : > { %v3012_v32 = vmax.f32 %v2030_v21, 0.0  ;;  %v9528_v33 = vpop.f32.mrb[76].mxu0  ;;  %10286 = vrot.lane.b32.xlu0 %v10285_v11, %s11353_s28 }
 0x185   : > { %10271 = vrot.lane.b32.xlu1 %v10270_v56, %s11353_s28  ;;  %v2045_v42 = vadd.f32 %v12161_v57, %v9528_v33  ;;  %v2039_v14 = vpop.f32.mrb[77].mxu0  ;;  %9686 = vmatmul.mubr.msk.f32.gmra.mrb[182].mxu0 %vm820_vm1, %v738_v23 }
 0x186   : > { %v12246_v35 = vmax.f32 %v3012_v32, %v3013_v26  ;;  %v2040_v9 = vadd.f32 %v12161_v57, %v2039_v14  ;;  %9688 = vmatprep.mubr.msk.f32.mxu0 %vm820_vm1, %v739_v29  ;;  %v748_v26 = vld [vmem:[%s11432_s23 + $0x608] sm:$0xff] }
 0x187   : > { %v3015_v40 = vmax.f32 %v2045_v42, 0.0 }
 0x188   : > { %v3014_v43 = vmax.f32 %v2040_v9, 0.0  ;;  %v9531_v17 = vpop.f32.mrb[78].mxu0  ;;  %10301 = vrot.lane.b32.xlu0 %v10300_v37, %s11352_s27 }
 0x189   : > { %10291 = vrot.lane.b32.xlu1 %v10280_v4, %s11352_s27  ;;  %v2055_v48 = vadd.f32 %v12161_v57, %v9531_v17  ;;  %v2049_v49 = vpop.f32.mrb[79].mxu0  ;;  %9689 = vmatmul.mubr.msk.f32.gmra.mrb[184].mxu0 %vm820_vm1, %v740_v7  ;;  %v750_v7 = vld [vmem:[%s11432_s23 + $0x618] sm:$0xff] }
 0x18a   : > { %v12257_v50 = vmax.f32 %v3014_v43, %v3015_v40  ;;  %v2050_v51 = vadd.f32 %v12161_v57, %v2049_v49  ;;  %9691 = vmatprep.mubr.msk.f32.mxu0 %vm820_vm1, %v741_v41  ;;  %v751_v41 = vld [vmem:[%s11432_s23 + $0x620] sm:$0xff] }
 0x18b   : > { %v3017_v52 = vmax.f32 %v2055_v48, 0.0 }
 0x18c   : > { %v3016_v55 = vmax.f32 %v2050_v51, 0.0  ;;  %v9534_v58 = vpop.f32.mrb[80].mxu0 }
 0x18d   : > { %10296 = vrot.lane.b32.xlu1 %v10300_v37, %s11354_s29  ;;  %v2065_v10 = vadd.f32 %v12161_v57, %v9534_v58  ;;  %v2059_v60 = vpop.f32.mrb[81].mxu0  ;;  %9692 = vmatmul.mubr.msk.f32.gmra.mrb[186].mxu0 %vm820_vm1, %v742_v38  ;;  %v753_v58 = vld [vmem:[%s11432_s23 + $0x630] sm:$0xff] }
 0x18e   : > { %v12266_v62 = vmax.f32 %v3016_v55, %v3017_v52  ;;  %v2060_v63 = vadd.f32 %v12161_v57, %v2059_v60  ;;  %9694 = vmatprep.mubr.msk.f32.mxu0 %vm820_vm1, %v743_v53  ;;  %v752_v55 = vld [vmem:[%s11432_s23 + $0x628] sm:$0xff] }
 0x18f   : > { %v3019_v16 = vmax.f32 %v2065_v10, 0.0 }
 0x190   : > { %v3018_v46 = vmax.f32 %v2060_v63, 0.0  ;;  %v9537_v2 = vpop.f32.mrb[82].mxu0 }
 0x191   : > { %10306 = vrot.lane.b32.xlu1 %v10305_v1, %s11352_s27  ;;  %v2075_v4 = vadd.f32 %v12161_v57, %v9537_v2  ;;  %v2069_v5 = vpop.f32.mrb[83].mxu0  ;;  %9695 = vmatmul.mubr.msk.f32.gmra.mrb[188].mxu0 %vm820_vm1, %v744_v59 }
 0x192   : > { %v3274_v39 = vmax.f32 %v3018_v46, %v3019_v16  ;;  %v2070_v8 = vadd.f32 %v12161_v57, %v2069_v5  ;;  %9697 = vmatprep.mubr.msk.f32.mxu0 %vm820_vm1, %v745_v3  ;;  %v12312_v3 = vld [vmem:[#allocation2 + $0x68] sm:$0xff]  ;;  %v754_v5 = vld [vmem:[%s11432_s23 + $0x638] sm:$0xff] }
 0x193   : > { %v3021_v15 = vmax.f32 %v2075_v4, 0.0 }
 0x194   : > { %v3338_v13 = vmax.f32 %v12180_v34, %v3274_v39  ;;  %v3020_v36 = vmax.f32 %v2070_v8, 0.0  ;;  %v9540_v20 = vpop.f32.mrb[84].mxu0  ;;  %v755_v8 = vld [vmem:[%s11432_s23 + $0x640] sm:$0xff] }
 0x195   : > { %v2085_v21 = vadd.f32 %v12161_v57, %v9540_v20  ;;  %v2079_v56 = vpop.f32.mrb[85].mxu0  ;;  %9698 = vmatmul.mubr.msk.f32.gmra.mrb[190].mxu0 %vm820_vm1, %v746_v12 }
 0x196   : > { %3443 = vst.msk [vmem:[#allocation2 + $0xf8] sm:$0xff] %vm3386_vm4, %v3338_v13  ;;  %v3275_v11 = vmax.f32 %v3020_v36, %v3021_v15  ;;  %v2080_v23 = vadd.f32 %v12161_v57, %v2079_v56  ;;  %9700 = vmatprep.mubr.msk.f32.mxu0 %vm820_vm1, %v747_v19  ;;  %v756_v56 = vld [vmem:[%s11432_s23 + $0x648] sm:$0xff] }
 0x197   : > { %v3023_v29 = vmax.f32 %v2085_v21, 0.0 }
 0x198   : > { %v3339_v34 = vmax.f32 %v12192_v47, %v3275_v11  ;;  %v3022_v32 = vmax.f32 %v2080_v23, 0.0  ;;  %v9543_v33 = vpop.f32.mrb[86].mxu0  ;;  %v3693_v47 = vld [vmem:[#allocation2 + $0xa0] sm:$0xff]  ;;  %v757_v23 = vld [vmem:[%s11432_s23 + $0x650] sm:$0xff] }
 0x199   : > { %v2095_v42 = vadd.f32 %v12161_v57, %v9543_v33  ;;  %v2089_v14 = vpop.f32.mrb[87].mxu0  ;;  %9701 = vmatmul.mubr.msk.f32.gmra.mrb[192].mxu0 %vm820_vm1, %v748_v26  ;;  %v3903_v26 = vld [vmem:[#allocation2 + $0x190] sm:$0xff] }
 0x19a   : > { %3444 = vst.msk [vmem:[#allocation2 + $0x100] sm:$0xff] %vm3386_vm4, %v3339_v34  ;;  %v3276_v9 = vmax.f32 %v3022_v32, %v3023_v29  ;;  %v2090_v37 = vadd.f32 %v12161_v57, %v2089_v14  ;;  %9703 = vmatprep.mubr.msk.f32.mxu0 %vm820_vm1, %v749_v30 }
 0x19b   : > { %v3025_v40 = vmax.f32 %v2095_v42, 0.0 }
 0x19c   : > { %v3340_v43 = vmax.f32 %v12208_v31, %v3276_v9  ;;  %v3024_v17 = vmax.f32 %v2090_v37, 0.0  ;;  %v9546_v48 = vpop.f32.mrb[88].mxu0 }
 0x19d   : > { %v2105_v49 = vadd.f32 %v12161_v57, %v9546_v48  ;;  %v2099_v51 = vpop.f32.mrb[89].mxu0  ;;  %9704 = vmatmul.mubr.msk.f32.gmra.mrb[194].mxu0 %vm820_vm1, %v750_v7  ;;  %v12298_v38 = vld [vmem:[#allocation2 + $0xf8] sm:$0xff] }
 0x19e   : > { %3445 = vst.msk [vmem:[#allocation2 + $0x108] sm:$0xff] %vm3386_vm4, %v3340_v43  ;;  %v3277_v52 = vmax.f32 %v3024_v17, %v3025_v40  ;;  %v2100_v53 = vadd.f32 %v12161_v57, %v2099_v51  ;;  %9706 = vmatprep.mubr.msk.f32.mxu0 %vm820_vm1, %v751_v41  ;;  %v10310_v22 = vpack.i.bf16 %v3693_v47, %v12298_v38  ;;  %v758_v7 = vld [vmem:[%s11432_s23 + $0x658] sm:$0xff]  ;;  %v759_v41 = vld [vmem:[%s11432_s23 + $0x660] sm:$0xff] }
 0x19f   : > { %v3027_v31 = vmax.f32 %v2105_v49, 0.0  ;;  %v10315_v4 = vpack.i.bf16 %v12312_v3, %v12298_v38  ;;  %v12357_v51 = vld [vmem:[#allocation2 + $0x78] sm:$0xff] }
 0x1a0   : > { %v3341_v10 = vmax.f32 %v12222_v0, %v3277_v52  ;;  %v3026_v60 = vmax.f32 %v2100_v53, 0.0  ;;  %v9549_v63 = vpop.f32.mrb[90].mxu0  ;;  %10311 = vrot.lane.b32.xlu0 %v10310_v22, %s11354_s29  ;;  %v760_v53 = vld [vmem:[%s11432_s23 + $0x668] sm:$0xff] }
 0x1a1   : > { %v2115_v1 = vadd.f32 %v12161_v57, %v9549_v63  ;;  %v2109_v59 = vpop.f32.mrb[91].mxu0  ;;  %9707 = vmatmul.mubr.msk.f32.gmra.mrb[196].mxu0 %vm820_vm1, %v752_v55  ;;  %v12310_v16 = vld [vmem:[#allocation2 + $0x100] sm:$0xff]  ;;  %v761_v55 = vld [vmem:[%s11432_s23 + $0x670] sm:$0xff] }
 0x1a2   : > { %3446 = vst.msk [vmem:[#allocation2 + $0x110] sm:$0xff] %vm3386_vm4, %v3341_v10  ;;  %v3278_v46 = vmax.f32 %v3026_v60, %v3027_v31  ;;  %v2110_v2 = vadd.f32 %v12161_v57, %v2109_v59  ;;  %9709 = vmatprep.mubr.msk.f32.mxu0 %vm820_vm1, %v753_v58  ;;  %v10320_v0 = vpack.i.bf16 %v12103_v18, %v12310_v16  ;;  %v12328_v18 = vld [vmem:[#allocation2 + $0x70] sm:$0xff] }
 0x1a3   : > { %v3029_v39 = vmax.f32 %v2115_v1, 0.0 }
 0x1a4   : > { %v3342_v12 = vmax.f32 %v12234_v61, %v3278_v46  ;;  %v3028_v15 = vmax.f32 %v2110_v2, 0.0  ;;  %v9552_v19 = vpop.f32.mrb[92].mxu0  ;;  %10321 = vrot.lane.b32.xlu1 %v10320_v0, %s11354_s29  ;;  %10316 = vrot.lane.b32.xlu0 %v10315_v4, %s11353_s28  ;;  %v10325_v61 = vpack.i.bf16 %v12328_v18, %v12310_v16  ;;  %v762_v2 = vld [vmem:[%s11432_s23 + $0x678] sm:$0xff]  ;;  %v763_v4 = vld [vmem:[%s11432_s23 + $0x680] sm:$0xff] }
 0x1a5   : > { %v2125_v13 = vadd.f32 %v12161_v57, %v9552_v19  ;;  %v2119_v36 = vpop.f32.mrb[93].mxu0  ;;  %9710 = vmatmul.mubr.msk.f32.gmra.mrb[198].mxu0 %vm820_vm1, %v754_v5  ;;  %v12337_v29 = vld [vmem:[#allocation2 + $0x108] sm:$0xff]  ;;  %v12388_v19 = vld [vmem:[#allocation2 + $0x80] sm:$0xff] }
 0x1a6   : > { %3447 = vst.msk [vmem:[#allocation2 + $0x118] sm:$0xff] %vm3386_vm4, %v3342_v12  ;;  %v3279_v20 = vmax.f32 %v3028_v15, %v3029_v39  ;;  %v2120_v21 = vadd.f32 %v12161_v57, %v2119_v36  ;;  %9712 = vmatprep.mubr.msk.f32.mxu0 %vm820_vm1, %v755_v8  ;;  %v10340_v37 = vpack.i.bf16 %v12118_v45, %v12337_v29 }
 0x1a7   : > { %v3031_v11 = vmax.f32 %v2125_v13, 0.0  ;;  %v12392_v13 = vpop.permute.xlu0 %10131 }
 0x1a8   : > { %v3343_v30 = vmax.f32 %v12246_v35, %v3279_v20  ;;  %v3030_v34 = vmax.f32 %v2120_v21, 0.0  ;;  %v9555_v32 = vpop.f32.mrb[94].mxu0  ;;  %10326 = vrot.lane.b32.xlu1 %v10325_v61, %s11353_s28  ;;  %10331 = vrot.lane.b32.xlu0 %v10320_v0, %s11352_s27  ;;  %v10335_v35 = vpack.i.bf16 %v12310_v16, %v3903_v26 }
 0x1a9   : > { %v2135_v33 = vadd.f32 %v12161_v57, %v9555_v32  ;;  %v2129_v42 = vpop.f32.mrb[95].mxu0  ;;  %9713 = vmatmul.mubr.msk.f32.gmra.mrb[200].mxu0 %vm820_vm1, %v756_v56  ;;  %v12366_v31 = vld [vmem:[#allocation2 + $0x110] sm:$0xff]  ;;  %v764_v56 = vld [vmem:[%s11432_s23 + $0x688] sm:$0xff] }
 0x1aa   : > { %3448 = vst.msk [vmem:[#allocation2 + $0x120] sm:$0xff] %vm3386_vm4, %v3343_v30  ;;  %v3280_v14 = vmax.f32 %v3030_v34, %v3031_v11  ;;  %v2130_v9 = vadd.f32 %v12161_v57, %v2129_v42  ;;  %9715 = vmatprep.mubr.msk.f32.mxu0 %vm820_vm1, %v757_v23  ;;  %v10360_v21 = vpack.i.bf16 %v12388_v19, %v12366_v31  ;;  %v765_v23 = vld [vmem:[%s11432_s23 + $0x690] sm:$0xff] }
 0x1ab   : > { %v3033_v40 = vmax.f32 %v2135_v33, 0.0  ;;  %v12408_v33 = vld [vmem:[#allocation2 + $0x88] sm:$0xff] }
 0x1ac   : > { %v3344_v47 = vmax.f32 %v12257_v50, %v3280_v14  ;;  %v3032_v43 = vmax.f32 %v2130_v9, 0.0  ;;  %v9558_v17 = vpop.f32.mrb[96].mxu0  ;;  %10336 = vrot.lane.b32.xlu1 %v10335_v35, %s11353_s28  ;;  %10341 = vrot.lane.b32.xlu0 %v10340_v37, %s11354_s29  ;;  %v10345_v50 = vpack.i.bf16 %v12357_v51, %v12337_v29  ;;  %v766_v35 = vld [vmem:[%s11432_s23 + $0x698] sm:$0xff] }
 0x1ad   : > { %v2145_v48 = vadd.f32 %v12161_v57, %v9558_v17  ;;  %v2139_v49 = vpop.f32.mrb[97].mxu0  ;;  %9716 = vmatmul.mubr.msk.f32.gmra.mrb[202].mxu0 %vm820_vm1, %v758_v7  ;;  %v12382_v5 = vld [vmem:[#allocation2 + $0x118] sm:$0xff]  ;;  %v767_v7 = vld [vmem:[%s11432_s23 + $0x6a0] sm:$0xff] }
 0x1ae   : > { %3449 = vst.msk [vmem:[#allocation2 + $0x128] sm:$0xff] %vm3386_vm4, %v3344_v47  ;;  %v3281_v45 = vmax.f32 %v3032_v43, %v3033_v40  ;;  %v2140_v52 = vadd.f32 %v12161_v57, %v2139_v49  ;;  %9718 = vmatprep.mubr.msk.f32.mxu0 %vm820_vm1, %v759_v41  ;;  %v10370_v61 = vpack.i.bf16 %v12155_v6, %v12382_v5  ;;  %v12422_v41 = vpop.permute.xlu0 %10141 }
 0x1af   : > { %v3035_v22 = vmax.f32 %v2145_v48, 0.0  ;;  %v10375_v9 = vpack.i.bf16 %v12408_v33, %v12382_v5 }
 0x1b0   : > { %v3345_v58 = vmax.f32 %v12266_v62, %v3281_v45  ;;  %v3034_v10 = vmax.f32 %v2140_v52, 0.0  ;;  %v9561_v60 = vpop.f32.mrb[98].mxu0  ;;  %10351 = vrot.lane.b32.xlu1 %v10340_v37, %s11352_s27  ;;  %10346 = vrot.lane.b32.xlu0 %v10345_v50, %s11353_s28  ;;  %v10355_v62 = vpack.i.bf16 %v12131_v54, %v12366_v31  ;;  %v12390_v54 = vpop.permute.xlu1 %10136  ;;  %v768_v50 = vld [vmem:[%s11432_s23 + $0x6a8] sm:$0xff] }
 0x1b1   : > { %v2155_v63 = vadd.f32 %v12161_v57, %v9561_v60  ;;  %v2149_v1 = vpop.f32.mrb[99].mxu0  ;;  %9719 = vmatmul.mubr.msk.f32.gmra.mrb[204].mxu0 %vm820_vm1, %v760_v53  ;;  %v12420_v40 = vld [vmem:[#allocation2 + $0x120] sm:$0xff] }
 0x1b2   : > { %3450 = vst.msk [vmem:[#allocation2 + $0x130] sm:$0xff] %vm3386_vm4, %v3345_v58  ;;  %v12374_v59 = vmax.f32 %v3034_v10, %v3035_v22  ;;  %v2150_v46 = vadd.f32 %v12161_v57, %v2149_v1  ;;  %9721 = vmatprep.mubr.msk.f32.mxu0 %vm820_vm1, %v761_v55  ;;  %v10385_v52 = vpack.i.bf16 %v12172_v25, %v12420_v40  ;;  %v769_v22 = vld [vmem:[%s11432_s23 + $0x6b0] sm:$0xff] }
 0x1b3   : > { %v3037_v0 = vmax.f32 %v2155_v63, 0.0  ;;  %v12444_v25 = vld [vmem:[#allocation2 + $0x90] sm:$0xff] }
 0x1b4   : > { %v3036_v39 = vmax.f32 %v2150_v46, 0.0  ;;  %v9564_v8 = vpop.f32.mrb[100].mxu0  ;;  %10356 = vrot.lane.b32.xlu1 %v10355_v62, %s11354_s29  ;;  %10366 = vrot.lane.b32.xlu0 %v10355_v62, %s11352_s27  ;;  %v12410_v42 = vpop.permute.xlu1 %10151 }
 0x1b5   : > { %v2165_v12 = vadd.f32 %v12161_v57, %v9564_v8  ;;  %v2159_v15 = vpop.f32.mrb[101].mxu0  ;;  %9722 = vmatmul.mubr.msk.f32.gmra.mrb[206].mxu0 %vm820_vm1, %v762_v2  ;;  %v12436_v55 = vld [vmem:[#allocation2 + $0x128] sm:$0xff]  ;;  %v12446_v46 = vpop.permute.xlu0 %10146 }
 0x1b6   : > { %v12394_v36 = vmax.f32 %v3036_v39, %v3037_v0  ;;  %v2160_v20 = vadd.f32 %v12161_v57, %v2159_v15  ;;  %9724 = vmatprep.mubr.msk.f32.mxu0 %vm820_vm1, %v763_v4  ;;  %v10390_v0 = vpack.i.bf16 %v12444_v25, %v12420_v40  ;;  %v10400_v4 = vpack.i.bf16 %v12202_v28, %v12436_v55  ;;  %v770_v39 = vld [vmem:[%s11432_s23 + $0x6b8] sm:$0xff] }
 0x1b7   : > { %v3039_v11 = vmax.f32 %v2165_v12, 0.0  ;;  %v771_v12 = vld [vmem:[%s11432_s23 + $0x6c0] sm:$0xff]  ;;  %v3636_v15 = vld [vmem:[#allocation2 + $0x98] sm:$0xff] }
 0x1b8   : > { %v3038_v26 = vmax.f32 %v2160_v20, 0.0  ;;  %v9567_v30 = vpop.f32.mrb[102].mxu0  ;;  %10361 = vrot.lane.b32.xlu1 %v10360_v21, %s11353_s28  ;;  %10371 = vrot.lane.b32.xlu0 %v10370_v61, %s11354_s29  ;;  %v12438_v58 = vpop.permute.xlu1 %10156 }
 0x1b9   : > { %v2175_v34 = vadd.f32 %v12161_v57, %v9567_v30  ;;  %v2169_v32 = vpop.f32.mrb[103].mxu0  ;;  %9725 = vmatmul.mubr.msk.f32.gmra.mrb[208].mxu0 %vm820_vm1, %v764_v56  ;;  %v12464_v28 = vpop.permute.xlu0 %10161  ;;  %v10405_v30 = vpack.i.bf16 %v3636_v15, %v12436_v55 }
 0x1ba   : > { %v12412_v6 = vmax.f32 %v3038_v26, %v3039_v11  ;;  %v2170_v14 = vadd.f32 %v12161_v57, %v2169_v32  ;;  %9727 = vmatprep.mubr.msk.f32.mxu0 %vm820_vm1, %v765_v23 }
 0x1bb   : > { %v3041_v37 = vmax.f32 %v2175_v34, 0.0  ;;  %v772_v34 = vld [vmem:[%s11432_s23 + $0x6c8] sm:$0xff] }
 0x1bc   : > { %v3040_v47 = vmax.f32 %v2170_v14, 0.0  ;;  %v9570_v43 = vpop.f32.mrb[104].mxu0  ;;  %10381 = vrot.lane.b32.xlu1 %v10370_v61, %s11352_s27  ;;  %10376 = vrot.lane.b32.xlu0 %v10375_v9, %s11353_s28  ;;  %v12458_v20 = vpop.permute.xlu1 %10166  ;;  %v773_v14 = vld [vmem:[%s11432_s23 + $0x6d0] sm:$0xff] }
 0x1bd   : > { %v2185_v17 = vadd.f32 %v12161_v57, %v9570_v43  ;;  %v2179_v48 = vpop.f32.mrb[105].mxu0  ;;  %9728 = vmatmul.mubr.msk.f32.gmra.mrb[210].mxu0 %vm820_vm1, %v766_v35  ;;  %v3959_v9 = vld [vmem:[#allocation2 + $0x130] sm:$0xff] }
 0x1be   : > { %v12428_v49 = vmax.f32 %v3040_v47, %v3041_v37  ;;  %v2180_v45 = vadd.f32 %v12161_v57, %v2179_v48  ;;  %9730 = vmatprep.mubr.msk.f32.mxu0 %vm820_vm1, %v767_v7 }
 0x1bf   : > { %v3043_v53 = vmax.f32 %v2185_v17, 0.0  ;;  %v12479_v17 = vpop.permute.xlu0 %10171 }
 0x1c0   : > { %v3042_v10 = vmax.f32 %v2180_v45, 0.0  ;;  %v9573_v60 = vpop.f32.mrb[106].mxu0  ;;  %10386 = vrot.lane.b32.xlu1 %v10385_v52, %s11354_s29  ;;  %10396 = vrot.lane.b32.xlu0 %v10385_v52, %s11352_s27  ;;  %v12473_v35 = vpop.permute.xlu1 %10176  ;;  %v10415_v52 = vpack.i.bf16 %v12216_v27, %v3959_v9  ;;  %v3491_v27 = vld [vmem:[#allocation2] sm:$0xff] }
 0x1c1   : > { %v2195_v63 = vadd.f32 %v12161_v57, %v9573_v60  ;;  %v2189_v1 = vpop.f32.mrb[107].mxu0  ;;  %9731 = vmatmul.mubr.msk.f32.gmra.mrb[212].mxu0 %vm820_vm1, %v768_v50  ;;  %v774_v50 = vld [vmem:[%s11432_s23 + $0x6d8] sm:$0xff]  ;;  %v3845_v60 = vld [vmem:[#allocation2 + $0x188] sm:$0xff] }
 0x1c2   : > { %v12448_v62 = vmax.f32 %v3042_v10, %v3043_v53  ;;  %v2190_v2 = vadd.f32 %v12161_v57, %v2189_v1  ;;  %9733 = vmatprep.mubr.msk.f32.mxu0 %vm820_vm1, %v769_v22  ;;  %v10148_v53 = vunpack.i.l.bf16 %v12446_v46  ;;  %v775_v10 = vld [vmem:[%s11432_s23 + $0x6e0] sm:$0xff] }
 0x1c3   : > { %v3045_v8 = vmax.f32 %v2195_v63, 0.0  ;;  %v10149_v63 = vunpack.i.h.bf16 %v12446_v46 }
 0x1c4   : > { %v3044_v21 = vmax.f32 %v2190_v2, 0.0  ;;  %v9576_v61 = vpop.f32.mrb[108].mxu0  ;;  %10391 = vrot.lane.b32.xlu1 %v10390_v0, %s11353_s28  ;;  %10401 = vrot.lane.b32.xlu0 %v10400_v4, %s11354_s29 }
 0x1c5   : > { %v2205_v56 = vadd.f32 %v12161_v57, %v9576_v61  ;;  %v2199_v11 = vpop.f32.mrb[109].mxu0  ;;  %9734 = vmatmul.mubr.msk.f32.gmra.mrb[214].mxu0 %vm820_vm1, %v770_v39  ;;  %v10133_v39 = vunpack.i.l.bf16 %v12392_v13  ;;  %v776_v61 = vld [vmem:[%s11432_s23 + $0x6e8] sm:$0xff] }
 0x1c6   : > { %v12466_v23 = vmax.f32 %v3044_v21, %v3045_v8  ;;  %v2200_v26 = vadd.f32 %v12161_v57, %v2199_v11  ;;  %9736 = vmatprep.mubr.msk.f32.mxu0 %vm820_vm1, %v771_v12  ;;  %v12495_v8 = vpop.permute.xlu0 %10181  ;;  %v12497_v12 = vpop.permute.xlu1 %10186  ;;  %v10425_v21 = vpack.i.bf16 %v3959_v9, %v3845_v60  ;;  %v10134_v11 = vunpack.i.h.bf16 %v12392_v13 }
 0x1c7   : > { %v3047_v32 = vmax.f32 %v2205_v56, 0.0  ;;  %v12504_v56 = vld [vmem:[#allocation2 + $0x58] sm:$0xff]  ;;  %v10159_v9 = vunpack.i.h.bf16 %v12438_v58 }
 0x1c8   : > { %v3046_v37 = vmax.f32 %v2200_v26, 0.0  ;;  %v9579_v7 = vpop.f32.mrb[110].mxu0  ;;  %10411 = vrot.lane.b32.xlu1 %v10400_v4, %s11352_s27  ;;  %10406 = vrot.lane.b32.xlu0 %v10405_v30, %s11353_s28  ;;  %v777_v30 = vld [vmem:[%s11432_s23 + $0x6f0] sm:$0xff] }
 0x1c9   : > { %v2215_v47 = vadd.f32 %v12161_v57, %v9579_v7  ;;  %v2209_v43 = vpop.f32.mrb[111].mxu0  ;;  %9737 = vmatmul.mubr.msk.f32.gmra.mrb[216].mxu0 %vm820_vm1, %v772_v34  ;;  %v5803_v34 = vsel %vm3386_vm4, %v12504_v56, %v10148_v53  ;;  %v10158_v7 = vunpack.i.l.bf16 %v12438_v58  ;;  %v778_v53 = vld [vmem:[%s11432_s23 + $0x6f8] sm:$0xff] }
 0x1ca   : > { %v12481_v48 = vmax.f32 %v3046_v37, %v3047_v32  ;;  %v2210_v45 = vadd.f32 %v12161_v57, %v2209_v43  ;;  %9739 = vmatprep.mubr.msk.f32.mxu0 %vm820_vm1, %v773_v14  ;;  %v5609_v37 = vsel %vm3386_vm4, %v3491_v27, %v10149_v63 }
 0x1cb   : > { %v3049_v22 = vmax.f32 %v2215_v47, 0.0 }
 0x1cc   : > { %v3048_v1 = vmax.f32 %v2210_v45, 0.0  ;;  %v9582_v2 = vpop.f32.mrb[112].mxu0  ;;  %10416 = vrot.lane.b32.xlu1 %v10415_v52, %s11354_s29  ;;  %10421 = vrot.lane.b32.xlu0 %v10415_v52, %s11352_s27 }
 0x1cd   : > { %v2225_v0 = vadd.f32 %v12161_v57, %v9582_v2  ;;  %v2219_v4 = vpop.f32.mrb[113].mxu0  ;;  %9740 = vmatmul.mubr.msk.f32.gmra.mrb[218].mxu0 %vm820_vm1, %v774_v50  ;;  %v779_v2 = vld [vmem:[%s11432_s23 + $0x700] sm:$0xff] }
 0x1ce   : > { %v12499_v46 = vmax.f32 %v3048_v1, %v3049_v22  ;;  %v2220_v15 = vadd.f32 %v12161_v57, %v2219_v4  ;;  %9742 = vmatprep.mubr.msk.f32.mxu0 %vm820_vm1, %v775_v10  ;;  %v5867_v22 = vsel %vm5673_vm5, %v5803_v34, %v10133_v39  ;;  %v3492_v10 = vld [vmem:[#allocation2 + $0x8] sm:$0xff]  ;;  %v5674_v1 = vsel %vm5673_vm5, %v5609_v37, %v10134_v11 }
 0x1cf   : > { %v3051_v26 = vmax.f32 %v2225_v0, 0.0  ;;  %v10163_v34 = vunpack.i.l.bf16 %v12464_v28 }
 0x1d0   : > { %v3050_v32 = vmax.f32 %v2220_v15, 0.0  ;;  %v9585_v14 = vpop.f32.mrb[114].mxu0  ;;  %10426 = vrot.lane.b32.xlu1 %v10425_v21, %s11352_s27 }
 0x1d1   : > { %v2235_v47 = vadd.f32 %v12161_v57, %v9585_v14  ;;  %v2229_v13 = vpop.f32.mrb[115].mxu0  ;;  %9743 = vmatmul.mubr.msk.f32.gmra.mrb[220].mxu0 %vm820_vm1, %v776_v61  ;;  %v12523_v61 = vld [vmem:[#allocation2 + $0x60] sm:$0xff] }
 0x1d2   : > { %v3282_v43 = vmax.f32 %v3050_v32, %v3051_v26  ;;  %v2230_v45 = vadd.f32 %v12161_v57, %v2229_v13  ;;  %v10197_v52 = vpop.permute.xlu0 %10196  ;;  %9745 = vmatprep.mubr.msk.f32.mxu0 %vm820_vm1, %v777_v30  ;;  %v5804_v11 = vsel %vm3386_vm4, %v12523_v61, %v10158_v7  ;;  %v10164_v7 = vunpack.i.h.bf16 %v12464_v28 }
 0x1d3   : > { %v10192_v50 = vpop.permute.xlu1 %10191  ;;  %v3053_v60 = vmax.f32 %v2235_v47, 0.0  ;;  %v10199_v58 = vunpack.i.h.bf16 %v10197_v52  ;;  %v10198_v27 = vunpack.i.l.bf16 %v10197_v52 }
 0x1d4   : > { %v10194_v63 = vunpack.i.h.bf16 %v10192_v50  ;;  %v3346_v0 = vmax.f32 %v12374_v59, %v3282_v43  ;;  %v3052_v4 = vmax.f32 %v2230_v45, 0.0  ;;  %v10193_v15 = vunpack.i.l.bf16 %v10192_v50  ;;  %v9588_v21 = vpop.f32.mrb[116].mxu0  ;;  %v780_v43 = vld [vmem:[%s11432_s23 + $0x708] sm:$0xff]  ;;  %v781_v50 = vld [vmem:[%s11432_s23 + $0x710] sm:$0xff] }
 0x1d5   : > { %v2245_v26 = vadd.f32 %v12161_v57, %v9588_v21  ;;  %v2239_v30 = vpop.f32.mrb[117].mxu0  ;;  %9746 = vmatmul.mubr.msk.f32.gmra.mrb[222].mxu0 %vm820_vm1, %v778_v53  ;;  %v5610_v59 = vsel %vm3386_vm4, %v3492_v10, %v10159_v9 }
 0x1d6   : > { %v5739_v39 = vsel %vm5738_vm6, %v5674_v1, %v10194_v63  ;;  %3451 = vst.msk [vmem:[#allocation2 + $0x148] sm:$0xff] %vm3386_vm4, %v3346_v0  ;;  %v3283_v32 = vmax.f32 %v3052_v4, %v3053_v60  ;;  %v2240_v14 = vadd.f32 %v12161_v57, %v2239_v30  ;;  %v5931_v37 = vsel %vm5738_vm6, %v5867_v22, %v10193_v15  ;;  %v12535_v13 = vpop.permute.xlu0 %10211  ;;  %v3493_v1 = vld [vmem:[#allocation2 + $0x10] sm:$0xff] }
 0x1d7   : > { %v10202_v47 = vpop.permute.xlu1 %10201  ;;  %9748 = vmatprep.mubr.msk.f32.mxu0 %vm820_vm1, %v779_v2  ;;  %v3055_v45 = vmax.f32 %v2245_v26, 0.0  ;;  %6294 = vmatprep.mubr.f32.mxu1 %v5931_v37  ;;  %v5868_v22 = vsel %vm5673_vm5, %v5804_v11, %v10198_v27  ;;  %v5675_v63 = vsel %vm5673_vm5, %v5610_v59, %v10199_v58  ;;  %v782_v58 = vld [vmem:[%s11432_s23 + $0x718] sm:$0xff]  ;;  %v5805_v26 = vsel %vm3386_vm4, %v12312_v3, %v10163_v34  ;;  %v783_v59 = vld [vmem:[%s11432_s23 + $0x720] sm:$0xff] }
 0x1d8   : > { %v10204_v9 = vunpack.i.h.bf16 %v10202_v47  ;;  %v10203_v52 = vunpack.i.l.bf16 %v10202_v47  ;;  %v3347_v53 = vmax.f32 %v12394_v36, %v3283_v32  ;;  %v3054_v10 = vmax.f32 %v2240_v14, 0.0  ;;  %6295 = vmatmul.mubr.f32.vlgmr.msra.gmra.mrb[0].mxu1 %v5739_v39  ;;  %v9591_v60 = vpop.f32.mrb[118].mxu0  ;;  %v3701_v32 = vld [vmem:[#allocation2 + $0xf0] sm:$0xff] }
 0x1d9   : > { %v2255_v2 = vadd.f32 %v12161_v57, %v9591_v60  ;;  %v2249_v0 = vpop.f32.mrb[119].mxu0  ;;  %9749 = vmatmul.mubr.msk.f32.gmra.mrb[224].mxu0 %vm820_vm1, %v780_v43  ;;  %v5611_v14 = vsel %vm3386_vm4, %v3493_v1, %v10164_v7  ;;  %v784_v1 = vld [vmem:[%s11432_s23 + $0x728] sm:$0xff] }
 0x1da   : > { %v5932_v28 = vsel %vm5738_vm6, %v5868_v22, %v10203_v52  ;;  %v5740_v4 = vsel %vm5738_vm6, %v5675_v63, %v10204_v9  ;;  %3452 = vst.msk [vmem:[#allocation2 + $0x150] sm:$0xff] %vm3386_vm4, %v3347_v53  ;;  %v3284_v36 = vmax.f32 %v3054_v10, %v3055_v45  ;;  %v2250_v15 = vadd.f32 %v12161_v57, %v2249_v0  ;;  %v10222_v27 = vpop.permute.xlu0 %10221  ;;  %v785_v0 = vld [vmem:[%s11432_s23 + $0x730] sm:$0xff] }
 0x1db   : > { %v10207_v21 = vpop.permute.xlu1 %10206  ;;  %6299 = vmatprep.mubr.f32.mxu1 %v5932_v28  ;;  %9751 = vmatprep.mubr.msk.f32.mxu0 %vm820_vm1, %v781_v50  ;;  %v3057_v30 = vmax.f32 %v2255_v2, 0.0  ;;  %v10224_v43 = vunpack.i.h.bf16 %v10222_v27  ;;  %v10223_v45 = vunpack.i.l.bf16 %v10222_v27  ;;  %v10169_v28 = vunpack.i.h.bf16 %v12458_v20 }
 0x1dc   : > { %v10209_v39 = vunpack.i.h.bf16 %v10207_v21  ;;  %v10208_v11 = vunpack.i.l.bf16 %v10207_v21  ;;  %v3348_v37 = vmax.f32 %v12412_v6, %v3284_v36  ;;  %v3056_v47 = vmax.f32 %v2250_v15, 0.0  ;;  %6300 = vmatmul.mubr.f32.gmra.mrb[2].mxu1 %v5740_v4  ;;  %v9594_v9 = vpop.f32.mrb[120].mxu0 }
 0x1dd   : > { %v2265_v52 = vadd.f32 %v12161_v57, %v9594_v9  ;;  %v2259_v50 = vpop.f32.mrb[121].mxu0  ;;  %9752 = vmatmul.mubr.msk.f32.gmra.mrb[226].mxu0 %vm820_vm1, %v782_v58  ;;  %v12560_v34 = vld [vmem:[#allocation2 + $0x148] sm:$0xff]  ;;  %v10168_v21 = vunpack.i.l.bf16 %v12458_v20  ;;  %v10174_v27 = vunpack.i.h.bf16 %v12479_v17  ;;  %v10173_v58 = vunpack.i.l.bf16 %v12479_v17  ;;  %v787_v9 = vld [vmem:[%s11432_s23 + $0x740] sm:$0xff] }
 0x1de   : > { %v5869_v3 = vsel %vm5673_vm5, %v5805_v26, %v10208_v11  ;;  %v5676_v7 = vsel %vm5673_vm5, %v5611_v14, %v10209_v39  ;;  %3453 = vst.msk [vmem:[#allocation2 + $0x158] sm:$0xff] %vm3386_vm4, %v3348_v37  ;;  %v3285_v6 = vmax.f32 %v3056_v47, %v3057_v30  ;;  %v2260_v53 = vadd.f32 %v12161_v57, %v2259_v50  ;;  %v12567_v60 = vpop.permute.xlu0 %10226  ;;  %v12582_v26 = vld [vmem:[%s11770_s13] ss:$0 sm:$0xff]  ;;  %v12588_v11 = vld [vmem:[#allocation2 + $0xb8] sm:$0xff] }
 0x1df   : > { %v12565_v10 = vpop.permute.xlu1 %10216  ;;  %v5933_v22 = vsel %vm5738_vm6, %v5869_v3, %v10223_v45  ;;  %9754 = vmatprep.mubr.msk.f32.mxu0 %vm820_vm1, %v783_v59  ;;  %v10430_v63 = vpack.i.bf16 %v3701_v32, %v12560_v34  ;;  %v3059_v2 = vmax.f32 %v2265_v52, 0.0  ;;  %v5741_v15 = vsel %vm5738_vm6, %v5676_v7, %v10224_v43  ;;  %v786_v47 = vld [vmem:[%s11432_s23 + $0x738] sm:$0xff]  ;;  %v3495_v52 = vld [vmem:[#allocation2 + $0x20] sm:$0xff] }
 0x1e0   : > { %6304 = vmatprep.mubr.f32.mxu1 %v5933_v22  ;;  %v3349_v4 = vmax.f32 %v12428_v49, %v3285_v6  ;;  %v3058_v57 = vmax.f32 %v2260_v53, 0.0  ;;  %v9597_v36 = vpop.f32.mrb[122].mxu0  ;;  %v10435_v37 = vpack.i.bf16 %v12588_v11, %v12560_v34  ;;  %v3494_v43 = vld [vmem:[#allocation2 + $0x18] sm:$0xff]  ;;  %v10229_v3 = vunpack.i.h.bf16 %v12567_v60 }
 0x1e1   : > { %10431 = vrot.lane.b32.xlu0 %v10430_v63, %s11354_s29  ;;  %v2275_v30 = vadd.f32 %v12582_v26, %v9597_v36  ;;  %6305 = vmatmul.mubr.f32.gmra.mrb[4].mxu1 %v5741_v15  ;;  %v2269_v49 = vpop.f32.mrb[123].mxu0  ;;  %v12586_v39 = vld [vmem:[#allocation2 + $0x150] sm:$0xff]  ;;  %v10228_v7 = vunpack.i.l.bf16 %v12567_v60  ;;  %v12610_v63 = vld [vmem:[#allocation2 + $0xc0] sm:$0xff]  ;;  %v5807_v60 = vsel %vm3386_vm4, %v12357_v51, %v10173_v58 }
 0x1e2   : > { %9755 = vmatmul.mubr.msk.f32.gmra.mrb[228].mxu0 %vm820_vm1, %v784_v1  ;;  %3454 = vst.msk [vmem:[#allocation2 + $0x160] sm:$0xff] %vm3386_vm4, %v3349_v4  ;;  %v3286_v20 = vmax.f32 %v3058_v57, %v3059_v2  ;;  %v2270_v59 = vadd.f32 %v12582_v26, %v2269_v49  ;;  %v12594_v32 = vpop.permute.xlu0 %10246  ;;  %v10440_v14 = vpack.i.bf16 %v12298_v38, %v12586_v39  ;;  %v3911_v15 = vld [vmem:[#allocation2 + $0x1e0] sm:$0xff]  ;;  %v789_v49 = vld [vmem:[%s11432_s23 + $0x750] sm:$0xff] }
 0x1e3   : > { %v12592_v17 = vpop.permute.xlu1 %10231  ;;  %9757 = vmatprep.mubr.msk.f32.mxu0 %vm820_vm1, %v785_v0  ;;  %v3061_v45 = vmax.f32 %v2275_v30, 0.0  ;;  %v5612_v1 = vsel %vm3386_vm4, %v3494_v43, %v10169_v28  ;;  %v10445_v36 = vpack.i.bf16 %v12610_v63, %v12586_v39  ;;  %v5613_v28 = vsel %vm3386_vm4, %v3495_v52, %v10174_v27 }
 0x1e4   : > { %v3350_v50 = vmax.f32 %v12448_v62, %v3286_v20  ;;  %v3060_v6 = vmax.f32 %v2270_v59, 0.0  ;;  %v9600_v53 = vpop.f32.mrb[124].mxu0  ;;  %10441 = vrot.lane.b32.xlu1 %v10440_v14, %s11354_s29  ;;  %v5806_v62 = vsel %vm3386_vm4, %v12328_v18, %v10168_v21  ;;  %v788_v18 = vld [vmem:[%s11432_s23 + $0x748] sm:$0xff]  ;;  %v10179_v21 = vunpack.i.h.bf16 %v12473_v35 }
 0x1e5   : > { %10436 = vrot.lane.b32.xlu0 %v10435_v37, %s11353_s28  ;;  %v2285_v38 = vadd.f32 %v12582_v26, %v9600_v53  ;;  %v2279_v22 = vpop.f32.mrb[125].mxu0  ;;  %v12628_v20 = vld [vmem:[#allocation2 + $0x158] sm:$0xff]  ;;  %v5870_v43 = vsel %vm5673_vm5, %v5806_v62, %v10228_v7  ;;  %v5677_v27 = vsel %vm5673_vm5, %v5612_v1, %v10229_v3  ;;  %v3581_v62 = vld [vmem:[#allocation2 + $0x100] sm:$0xff] }
 0x1e6   : > { %9758 = vmatmul.mubr.msk.f32.gmra.mrb[230].mxu0 %vm820_vm1, %v786_v47  ;;  %3455 = vst.msk [vmem:[#allocation2 + $0x168] sm:$0xff] %vm3386_vm4, %v3350_v50  ;;  %v3287_v2 = vmax.f32 %v3060_v6, %v3061_v45  ;;  %v2280_v0 = vadd.f32 %v12582_v26, %v2279_v22  ;;  %v12619_v57 = vpop.permute.xlu0 %10251  ;;  %v10455_v50 = vpack.i.bf16 %v12586_v39, %v3911_v15  ;;  %v10178_v6 = vunpack.i.l.bf16 %v12473_v35  ;;  %v790_v22 = vld [vmem:[%s11432_s23 + $0x758] sm:$0xff] }
 0x1e7   : > { %v10237_v4 = vpop.permute.xlu1 %10236  ;;  %9760 = vmatprep.mubr.msk.f32.mxu0 %vm820_vm1, %v787_v9  ;;  %v3063_v51 = vmax.f32 %v2285_v38, 0.0  ;;  %v10460_v38 = vpack.i.bf16 %v12310_v16, %v12628_v20  ;;  %v10254_v15 = vunpack.i.h.bf16 %v12619_v57  ;;  %v12656_v16 = vld [vmem:[#allocation2 + $0xc8] sm:$0xff] }
 0x1e8   : > { %v10239_v58 = vunpack.i.h.bf16 %v10237_v4  ;;  %v10238_v30 = vunpack.i.l.bf16 %v10237_v4  ;;  %v3351_v59 = vmax.f32 %v12466_v23, %v3287_v2  ;;  %v3062_v37 = vmax.f32 %v2280_v0, 0.0  ;;  %v9603_v47 = vpop.f32.mrb[126].mxu0  ;;  %10446 = vrot.lane.b32.xlu1 %v10445_v36, %s11353_s28  ;;  %v791_v4 = vld [vmem:[%s11432_s23 + $0x760] sm:$0xff] }
 0x1e9   : > { %10451 = vrot.lane.b32.xlu0 %v10440_v14, %s11352_s27  ;;  %v2295_v45 = vadd.f32 %v12582_v26, %v9603_v47  ;;  %v2289_v9 = vpop.f32.mrb[127].mxu0  ;;  %v10470_v36 = vpack.i.bf16 %v3581_v62, %v12628_v20 }
 0x1ea   : > { %9761 = vmatmul.mubr.msk.f32.gmra.mrb[232].mxu0 %vm820_vm1, %v788_v18  ;;  %v5934_v52 = vsel %vm5738_vm6, %v5870_v43, %v10238_v30  ;;  %v5742_v23 = vsel %vm5738_vm6, %v5677_v27, %v10239_v58  ;;  %3456 = vst.msk [vmem:[#allocation2 + $0x170] sm:$0xff] %vm3386_vm4, %v3351_v59  ;;  %v3288_v14 = vmax.f32 %v3062_v37, %v3063_v51  ;;  %v12643_v53 = vpop.permute.xlu0 %10256  ;;  %v10253_v51 = vunpack.i.l.bf16 %v12619_v57 }
 0x1eb   : > { %v2290_v3 = vadd.f32 %v12582_v26, %v2289_v9  ;;  %v10242_v7 = vpop.permute.xlu1 %10241  ;;  %6309 = vmatprep.mubr.f32.mxu1 %v5934_v52  ;;  %9763 = vmatprep.mubr.msk.f32.mxu0 %vm820_vm1, %v789_v49  ;;  %v3065_v1 = vmax.f32 %v2295_v45, 0.0  ;;  %v10465_v57 = vpack.i.bf16 %v12656_v16, %v12628_v20  ;;  %v792_v52 = vld [vmem:[%s11432_s23 + $0x768] sm:$0xff] }
 0x1ec   : > { %v10244_v2 = vunpack.i.h.bf16 %v10242_v7  ;;  %v10243_v0 = vunpack.i.l.bf16 %v10242_v7  ;;  %6310 = vmatmul.mubr.f32.gmra.mrb[6].mxu1 %v5742_v23  ;;  %v3352_v18 = vmax.f32 %v12481_v48, %v3288_v14  ;;  %v9606_v30 = vpop.f32.mrb[128].mxu0  ;;  %10456 = vrot.lane.b32.xlu1 %v10455_v50, %s11353_s28  ;;  %v793_v50 = vld [vmem:[%s11432_s23 + $0x770] sm:$0xff]  ;;  %v3496_v14 = vld [vmem:[#allocation2 + $0x28] sm:$0xff]  ;;  %v10259_v7 = vunpack.i.h.bf16 %v12643_v53 }
 0x1ed   : > { %v3064_v58 = vmax.f32 %v2290_v3, 0.0  ;;  %10461 = vrot.lane.b32.xlu0 %v10460_v38, %s11354_s29  ;;  %v2305_v49 = vadd.f32 %v12582_v26, %v9606_v30  ;;  %v2299_v59 = vpop.f32.mrb[129].mxu0  ;;  %v10258_v38 = vunpack.i.l.bf16 %v12643_v53 }
 0x1ee   : > { %9764 = vmatmul.mubr.msk.f32.gmra.mrb[234].mxu0 %vm820_vm1, %v790_v22  ;;  %v5871_v48 = vsel %vm5673_vm5, %v5807_v60, %v10243_v0  ;;  %v5678_v37 = vsel %vm5673_vm5, %v5613_v28, %v10244_v2  ;;  %3457 = vst.msk [vmem:[#allocation2 + $0x178] sm:$0xff] %vm3386_vm4, %v3352_v18  ;;  %v2300_v43 = vadd.f32 %v12582_v26, %v2299_v59  ;;  %v12668_v45 = vpop.permute.xlu0 %10276  ;;  %v12675_v28 = vld [vmem:[#allocation2 + $0x160] sm:$0xff]  ;;  %v794_v18 = vld [vmem:[%s11432_s23 + $0x778] sm:$0xff]  ;;  %v12699_v59 = vld [vmem:[#allocation2 + $0x168] sm:$0xff] }
 0x1ef   : > { %v3289_v47 = vmax.f32 %v3064_v58, %v3065_v1  ;;  %v12666_v27 = vpop.permute.xlu1 %10261  ;;  %v5935_v9 = vsel %vm5738_vm6, %v5871_v48, %v10253_v51  ;;  %9766 = vmatprep.mubr.msk.f32.mxu0 %vm820_vm1, %v791_v4  ;;  %v5743_v60 = vsel %vm5738_vm6, %v5678_v37, %v10254_v15  ;;  %v3067_v23 = vmax.f32 %v2305_v49, 0.0  ;;  %v795_v49 = vld [vmem:[%s11432_s23 + $0x780] sm:$0xff] }
 0x1f0   : > { %6314 = vmatprep.mubr.f32.mxu1 %v5935_v9  ;;  %v3066_v22 = vmax.f32 %v2300_v43, 0.0  ;;  %v9609_v62 = vpop.f32.mrb[130].mxu0  ;;  %10471 = vrot.lane.b32.xlu1 %v10470_v36, %s11352_s27  ;;  %v10475_v36 = vpack.i.bf16 %v12337_v29, %v12675_v28  ;;  %v5614_v15 = vsel %vm3386_vm4, %v3496_v14, %v10179_v21  ;;  %v10183_v51 = vunpack.i.l.bf16 %v12495_v8  ;;  %v12706_v21 = vld [vmem:[#allocation2 + $0xd0] sm:$0xff] }
 0x1f1   : > { %v3353_v3 = vmax.f32 %v12499_v46, %v3289_v47  ;;  %10466 = vrot.lane.b32.xlu0 %v10465_v57, %s11353_s28  ;;  %v2315_v1 = vadd.f32 %v12582_v26, %v9609_v62  ;;  %6315 = vmatmul.mubr.f32.gmra.mrb[8].mxu1 %v5743_v60  ;;  %v2309_v2 = vpop.f32.mrb[131].mxu0  ;;  %v5808_v46 = vsel %vm3386_vm4, %v12388_v19, %v10178_v6  ;;  %v10184_v48 = vunpack.i.h.bf16 %v12495_v8 }
 0x1f2   : > { %9767 = vmatmul.mubr.msk.f32.gmra.mrb[236].mxu0 %vm820_vm1, %v792_v52  ;;  %v12687_v53 = vmax.f32 %v3066_v22, %v3067_v23  ;;  %v2310_v0 = vadd.f32 %v12582_v26, %v2309_v2  ;;  %v10282_v30 = vpop.permute.xlu0 %10281  ;;  %v5872_v29 = vsel %vm5673_vm5, %v5808_v46, %v10258_v38  ;;  %v5679_v35 = vsel %vm5673_vm5, %v5614_v15, %v10259_v7  ;;  %v3497_v52 = vld [vmem:[#allocation2 + $0x30] sm:$0xff]  ;;  %v796_v38 = vld [vmem:[%s11432_s23 + $0x788] sm:$0xff]  ;;  %v12727_v15 = vld [vmem:[#allocation2 + $0xd8] sm:$0xff] }
 0x1f3   : > { %3458 = vst.msk [vmem:[#allocation2 + $0x180] sm:$0xff] %vm3386_vm4, %v3353_v3  ;;  %v10267_v4 = vpop.permute.xlu1 %10266  ;;  %9769 = vmatprep.mubr.msk.f32.mxu0 %vm820_vm1, %v793_v50  ;;  %v3069_v19 = vmax.f32 %v2315_v1, 0.0  ;;  %v10480_v60 = vpack.i.bf16 %v12706_v21, %v12675_v28  ;;  %v10139_v23 = vunpack.i.h.bf16 %v12390_v54  ;;  %v10490_v7 = vpack.i.bf16 %v12366_v31, %v12699_v59  ;;  %v797_v46 = vld [vmem:[%s11432_s23 + $0x790] sm:$0xff] }
 0x1f4   : > { %v10269_v6 = vunpack.i.h.bf16 %v10267_v4  ;;  %v10268_v58 = vunpack.i.l.bf16 %v10267_v4  ;;  %v3068_v57 = vmax.f32 %v2310_v0, 0.0  ;;  %v9612_v37 = vpop.f32.mrb[132].mxu0  ;;  %10476 = vrot.lane.b32.xlu1 %v10475_v36, %s11354_s29  ;;  %v5809_v2 = vsel %vm3386_vm4, %v12408_v33, %v10183_v51 }
 0x1f5   : > { %10486 = vrot.lane.b32.xlu0 %v10475_v36, %s11352_s27  ;;  %v2325_v47 = vadd.f32 %v12582_v26, %v9612_v37  ;;  %v2319_v43 = vpop.f32.mrb[133].mxu0  ;;  %v10284_v0 = vunpack.i.h.bf16 %v10282_v30  ;;  %v10283_v4 = vunpack.i.l.bf16 %v10282_v30  ;;  %v5615_v31 = vsel %vm3386_vm4, %v3497_v52, %v10184_v48 }
 0x1f6   : > { %9770 = vmatmul.mubr.msk.f32.gmra.mrb[238].mxu0 %vm820_vm1, %v794_v18  ;;  %v5936_v8 = vsel %vm5738_vm6, %v5872_v29, %v10268_v58  ;;  %v5744_v9 = vsel %vm5738_vm6, %v5679_v35, %v10269_v6  ;;  %v12715_v50 = vmax.f32 %v3068_v57, %v3069_v19  ;;  %v2320_v14 = vadd.f32 %v12582_v26, %v2319_v43  ;;  %v10287_v19 = vpop.permute.xlu0 %10286  ;;  %v798_v35 = vld [vmem:[%s11432_s23 + $0x798] sm:$0xff] }
 0x1f7   : > { %v10272_v3 = vpop.permute.xlu1 %10271  ;;  %6319 = vmatprep.mubr.f32.mxu1 %v5936_v8  ;;  %9772 = vmatprep.mubr.msk.f32.mxu0 %vm820_vm1, %v795_v49  ;;  %v3071_v22 = vmax.f32 %v2325_v47, 0.0  ;;  %v10495_v51 = vpack.i.bf16 %v12727_v15, %v12699_v59  ;;  %v3498_v47 = vld [vmem:[#allocation2 + $0x38] sm:$0xff]  ;;  %v10138_v43 = vunpack.i.l.bf16 %v12390_v54  ;;  %v10289_v52 = vunpack.i.h.bf16 %v10287_v19 }
 0x1f8   : > { %v10274_v62 = vunpack.i.h.bf16 %v10272_v3  ;;  %v10273_v1 = vunpack.i.l.bf16 %v10272_v3  ;;  %6320 = vmatmul.mubr.f32.gmra.mrb[10].mxu1 %v5744_v9  ;;  %v3070_v36 = vmax.f32 %v2320_v14, 0.0  ;;  %v9615_v18 = vpop.f32.mrb[134].mxu0  ;;  %10481 = vrot.lane.b32.xlu1 %v10480_v60, %s11353_s28  ;;  %v799_v9 = vld [vmem:[%s11432_s23 + $0x7a0] sm:$0xff]  ;;  %v12747_v60 = vld [vmem:[#allocation2 + $0x170] sm:$0xff]  ;;  %v10288_v14 = vunpack.i.l.bf16 %v10287_v19 }
 0x1f9   : > { %10491 = vrot.lane.b32.xlu0 %v10490_v7, %s11354_s29  ;;  %v2335_v6 = vadd.f32 %v12582_v26, %v9615_v18  ;;  %v2329_v58 = vpop.f32.mrb[135].mxu0  ;;  %v5616_v54 = vsel %vm3386_vm4, %v3498_v47, %v10139_v23  ;;  %v801_v19 = vld [vmem:[%s11432_s23 + $0x7b0] sm:$0xff] }
 0x1fa   : > { %9773 = vmatmul.mubr.msk.f32.gmra.mrb[240].mxu0 %vm820_vm1, %v796_v38  ;;  %v5873_v33 = vsel %vm5673_vm5, %v5809_v2, %v10273_v1  ;;  %v5680_v30 = vsel %vm5673_vm5, %v5615_v31, %v10274_v62  ;;  %v12736_v49 = vmax.f32 %v3070_v36, %v3071_v22  ;;  %v2330_v57 = vadd.f32 %v12582_v26, %v2329_v58 }
 0x1fb   : > { %v12739_v37 = vpop.permute.xlu1 %10291  ;;  %v5937_v48 = vsel %vm5738_vm6, %v5873_v33, %v10283_v4  ;;  %9775 = vmatprep.mubr.msk.f32.mxu0 %vm820_vm1, %v797_v46  ;;  %v5745_v29 = vsel %vm5738_vm6, %v5680_v30, %v10284_v0  ;;  %v3073_v8 = vmax.f32 %v2335_v6, 0.0  ;;  %v800_v0 = vld [vmem:[%s11432_s23 + $0x7a8] sm:$0xff]  ;;  %v5810_v31 = vsel %vm3386_vm4, %v12444_v25, %v10138_v43  ;;  %v12764_v6 = vld [vmem:[#allocation2 + $0x178] sm:$0xff] }
 0x1fc   : > { %6324 = vmatprep.mubr.f32.mxu1 %v5937_v48  ;;  %v3072_v3 = vmax.f32 %v2330_v57, 0.0  ;;  %v9618_v38 = vpop.f32.mrb[136].mxu0  ;;  %10501 = vrot.lane.b32.xlu1 %v10490_v7, %s11352_s27  ;;  %v10505_v7 = vpack.i.bf16 %v12382_v5, %v12747_v60  ;;  %v5874_v33 = vsel %vm5673_vm5, %v5810_v31, %v10288_v14  ;;  %v5681_v5 = vsel %vm5673_vm5, %v5616_v54, %v10289_v52  ;;  %v803_v52 = vld [vmem:[%s11432_s23 + $0x7c0] sm:$0xff]  ;;  %v3644_v14 = vld [vmem:[#allocation2 + $0xe8] sm:$0xff] }
 0x1fd   : > { %10496 = vrot.lane.b32.xlu0 %v10495_v51, %s11353_s28  ;;  %v2345_v22 = vadd.f32 %v12582_v26, %v9618_v38  ;;  %6325 = vmatmul.mubr.f32.gmra.mrb[12].mxu1 %v5745_v29  ;;  %v2339_v62 = vpop.f32.mrb[137].mxu0  ;;  %v12770_v51 = vld [vmem:[#allocation2 + $0xe0] sm:$0xff]  ;;  %v10520_v43 = vpack.i.bf16 %v12420_v40, %v12764_v6 }
 0x1fe   : > { %9776 = vmatmul.mubr.msk.f32.gmra.mrb[242].mxu0 %vm820_vm1, %v798_v35  ;;  %v12754_v1 = vmax.f32 %v3072_v3, %v3073_v8  ;;  %v2340_v2 = vadd.f32 %v12582_v26, %v2339_v62  ;;  %v10510_v29 = vpack.i.bf16 %v12770_v51, %v12747_v60  ;;  %v802_v8 = vld [vmem:[%s11432_s23 + $0x7b8] sm:$0xff] }
 0x1ff   : > { %v10297_v46 = vpop.permute.xlu1 %10296  ;;  %9778 = vmatprep.mubr.msk.f32.mxu0 %vm820_vm1, %v799_v9  ;;  %v3075_v4 = vmax.f32 %v2345_v22, 0.0 }
 0x200   : > { %v10299_v36 = vunpack.i.h.bf16 %v10297_v46  ;;  %v10298_v18 = vunpack.i.l.bf16 %v10297_v46  ;;  %v3074_v23 = vmax.f32 %v2340_v2, 0.0  ;;  %v9621_v58 = vpop.f32.mrb[138].mxu0  ;;  %10506 = vrot.lane.b32.xlu1 %v10505_v7, %s11354_s29  ;;  %v10525_v2 = vpack.i.bf16 %v3644_v14, %v12764_v6  ;;  %v804_v46 = vld [vmem:[%s11432_s23 + $0x7c8] sm:$0xff] }
 0x201   : > { %10516 = vrot.lane.b32.xlu0 %v10505_v7, %s11352_s27  ;;  %v2355_v30 = vadd.f32 %v12582_v26, %v9621_v58  ;;  %v2349_v25 = vpop.f32.mrb[139].mxu0 }
 0x202   : > { %9779 = vmatmul.mubr.msk.f32.gmra.mrb[244].mxu0 %vm820_vm1, %v800_v0  ;;  %v5938_v57 = vsel %vm5738_vm6, %v5874_v33, %v10298_v18  ;;  %v5746_v48 = vsel %vm5738_vm6, %v5681_v5, %v10299_v36  ;;  %v12778_v35 = vmax.f32 %v3074_v23, %v3075_v4  ;;  %v2350_v47 = vadd.f32 %v12582_v26, %v2349_v25  ;;  %v805_v0 = vld [vmem:[%s11432_s23 + $0x7d0] sm:$0xff]  ;;  %v3967_v4 = vld [vmem:[#allocation2 + $0x180] sm:$0xff]  ;;  %v806_v5 = vld [vmem:[%s11432_s23 + $0x7d8] sm:$0xff] }
 0x203   : > { %6329 = vmatprep.mubr.f32.mxu1 %v5938_v57  ;;  %9781 = vmatprep.mubr.msk.f32.mxu0 %vm820_vm1, %v801_v19  ;;  %v3077_v9 = vmax.f32 %v2355_v30, 0.0  ;;  %v10535_v33 = vpack.i.bf16 %v12436_v55, %v3967_v4  ;;  %v807_v25 = vld [vmem:[%s11432_s23 + $0x7e0] sm:$0xff]  ;;  %v3853_v57 = vld [vmem:[#allocation2 + $0x1d8] sm:$0xff]  ;;  %v12814_v55 = vpop.permute.xlu0 %10301 }
 0x204   : > { %6330 = vmatmul.mubr.f32.gmra.mrb[14].mxu1 %v5746_v48  ;;  %v3076_v3 = vmax.f32 %v2350_v47, 0.0  ;;  %v9624_v38 = vpop.f32.mrb[140].mxu0  ;;  %10511 = vrot.lane.b32.xlu1 %v10510_v29, %s11353_s28  ;;  %v10214_v47 = vunpack.i.h.bf16 %v12535_v13 }
 0x205   : > { %10521 = vrot.lane.b32.xlu0 %v10520_v43, %s11354_s29  ;;  %v2365_v22 = vadd.f32 %v12582_v26, %v9624_v38  ;;  %v2359_v62 = vpop.f32.mrb[141].mxu0  ;;  %v808_v38 = vld [vmem:[%s11432_s23 + $0x7e8] sm:$0xff] }
 0x206   : > { %9782 = vmatmul.mubr.msk.f32.gmra.mrb[246].mxu0 %vm820_vm1, %v802_v8  ;;  %v12790_v54 = vmax.f32 %v3076_v3, %v3077_v9  ;;  %v2360_v40 = vadd.f32 %v12582_v26, %v2359_v62  ;;  %v10545_v3 = vpack.i.bf16 %v3967_v4, %v3853_v57 }
 0x207   : > { %9784 = vmatprep.mubr.msk.f32.mxu0 %vm820_vm1, %v803_v52  ;;  %v3079_v7 = vmax.f32 %v2365_v22, 0.0  ;;  %v3499_v22 = vld [vmem:[#allocation2 + $0x50] sm:$0xff] }
 0x208   : > { %v3078_v36 = vmax.f32 %v2360_v40, 0.0  ;;  %v9627_v18 = vpop.f32.mrb[142].mxu0  ;;  %10531 = vrot.lane.b32.xlu1 %v10520_v43, %s11352_s27  ;;  %v10213_v43 = vunpack.i.l.bf16 %v12535_v13  ;;  %v809_v40 = vld [vmem:[%s11432_s23 + $0x7f0] sm:$0xff]  ;;  %v5617_v4 = vsel %vm3386_vm4, %v3499_v22, %v10214_v47 }
 0x209   : > { %10526 = vrot.lane.b32.xlu0 %v10525_v2, %s11353_s28  ;;  %v2375_v31 = vadd.f32 %v12582_v26, %v9627_v18  ;;  %v2369_v19 = vpop.f32.mrb[143].mxu0  ;;  %v10154_v18 = vunpack.i.h.bf16 %v12410_v42 }
 0x20a   : > { %9785 = vmatmul.mubr.msk.f32.gmra.mrb[248].mxu0 %vm820_vm1, %v804_v46  ;;  %v12801_v23 = vmax.f32 %v3078_v36, %v3079_v7  ;;  %v2370_v58 = vadd.f32 %v12582_v26, %v2369_v19  ;;  %v12823_v46 = vld [vmem:[#allocation2 + $0xa8] sm:$0xff]  ;;  %v12832_v19 = vpop.permute.xlu1 %10306 }
 0x20b   : > { %9787 = vmatprep.mubr.msk.f32.mxu0 %vm820_vm1, %v805_v0  ;;  %v3081_v30 = vmax.f32 %v2375_v31, 0.0  ;;  %v5811_v36 = vsel %vm3386_vm4, %v12823_v46, %v10213_v43  ;;  %v10153_v31 = vunpack.i.l.bf16 %v12410_v42 }
 0x20c   : > { %v3080_v48 = vmax.f32 %v2370_v58, 0.0  ;;  %v9630_v29 = vpop.f32.mrb[144].mxu0  ;;  %10536 = vrot.lane.b32.xlu1 %v10535_v33, %s11354_s29 }
 0x20d   : > { %10541 = vrot.lane.b32.xlu0 %v10535_v33, %s11352_s27  ;;  %v2385_v8 = vadd.f32 %v12582_v26, %v9630_v29  ;;  %v2379_v9 = vpop.f32.mrb[145].mxu0  ;;  %v5875_v42 = vsel %vm5673_vm5, %v5811_v36, %v10153_v31 }
 0x20e   : > { %9788 = vmatmul.mubr.msk.f32.gmra.mrb[250].mxu0 %vm820_vm1, %v806_v5  ;;  %v12816_v52 = vmax.f32 %v3080_v48, %v3081_v30  ;;  %v2380_v14 = vadd.f32 %v12582_v26, %v2379_v9  ;;  %v810_v30 = vld [vmem:[%s11432_s23 + $0x7f8] sm:$0xff]  ;;  %v5682_v9 = vsel %vm5673_vm5, %v5617_v4, %v10154_v18 }
 0x20f   : > { %9790 = vmatprep.mubr.msk.f32.mxu0 %vm820_vm1, %v807_v25  ;;  %v3083_v62 = vmax.f32 %v2385_v8, 0.0  ;;  %v10234_v25 = vunpack.i.h.bf16 %v12592_v17 }
 0x210   : > { %v3082_v2 = vmax.f32 %v2380_v14, 0.0  ;;  %v9633_v13 = vpop.f32.mrb[146].mxu0  ;;  %10546 = vrot.lane.b32.xlu1 %v10545_v3, %s11352_s27  ;;  %v10233_v14 = vunpack.i.l.bf16 %v12592_v17 }
 0x211   : > { %v2395_v7 = vadd.f32 %v12582_v26, %v9633_v13  ;;  %v2389_v0 = vpop.f32.mrb[147].mxu0  ;;  %v5618_v36 = vsel %vm3386_vm4, %v12504_v56, %v10234_v25 }
 0x212   : > { %9791 = vmatmul.mubr.msk.f32.gmra.mrb[252].mxu0 %vm820_vm1, %v808_v38  ;;  %v3290_v58 = vmax.f32 %v3082_v2, %v3083_v62  ;;  %v2390_v33 = vadd.f32 %v12582_v26, %v2389_v0  ;;  %v10312_v5 = vpop.permute.xlu0 %10311 }
 0x213   : > { %9793 = vmatprep.mubr.msk.f32.mxu0 %vm820_vm1, %v809_v40  ;;  %v3085_v57 = vmax.f32 %v2395_v7, 0.0  ;;  %v10314_v48 = vunpack.i.h.bf16 %v10312_v5  ;;  %v10313_v29 = vunpack.i.l.bf16 %v10312_v5  ;;  %v12851_v5 = vld [vmem:[#allocation2 + $0xb0] sm:$0xff] }
 0x214   : > { %v3354_v47 = vmax.f32 %v12687_v53, %v3290_v58  ;;  %v3084_v43 = vmax.f32 %v2390_v33, 0.0  ;;  %v9636_v8 = vpop.f32.mrb[148].mxu0 }
 0x215   : > { %v2405_v3 = vadd.f32 %v12582_v26, %v9636_v8  ;;  %v2399_v38 = vpop.f32.mrb[149].mxu0  ;;  %v5939_v22 = vsel %vm5738_vm6, %v5875_v42, %v10313_v29  ;;  %v5747_v62 = vsel %vm5738_vm6, %v5682_v9, %v10314_v48  ;;  %v5812_v48 = vsel %vm3386_vm4, %v12851_v5, %v10233_v14  ;;  %v3709_v14 = vld [vmem:[#allocation2 + $0x140] sm:$0xff] }
 0x216   : > { %9794 = vmatmul.mubr.msk.f32.gmra.mrb[254].mxu0 %vm820_vm1, %v810_v30  ;;  %3459 = vst.msk [vmem:[#allocation2 + $0x198] sm:$0xff] %vm3386_vm4, %v3354_v47  ;;  %v3291_v53 = vmax.f32 %v3084_v43, %v3085_v57  ;;  %v2400_v40 = vadd.f32 %v12582_v26, %v2399_v38  ;;  %v10322_v2 = vpop.permute.xlu1 %10321  ;;  %v10317_v13 = vpop.permute.xlu0 %10316  ;;  %6334 = vmatprep.mubr.f32.mxu1 %v5939_v22  ;;  %v10249_v8 = vunpack.i.h.bf16 %v12594_v32  ;;  %v10248_v42 = vunpack.i.l.bf16 %v12594_v32 }
 0x217   : > { %v3087_v7 = vmax.f32 %v2405_v3, 0.0  ;;  %v10324_v0 = vunpack.i.h.bf16 %v10322_v2  ;;  %v10319_v17 = vunpack.i.h.bf16 %v10317_v13  ;;  %6335 = vmatmul.mubr.f32.gmra.mrb[16].mxu1 %v5747_v62  ;;  %v10323_v31 = vunpack.i.l.bf16 %v10322_v2 }
 0x218   : > { %v3355_v4 = vmax.f32 %v12715_v50, %v3291_v53  ;;  %v3086_v18 = vmax.f32 %v2400_v40, 0.0  ;;  %v10318_v58 = vunpack.i.l.bf16 %v10317_v13  ;;  %v9639_v33 = vpop.f32.mrb[150].mxu0 }
 0x219   : > { %v2415_v30 = vadd.f32 %v12582_v26, %v9639_v33  ;;  %v2409_v57 = vpop.f32.mrb[151].mxu0  ;;  %v5683_v29 = vsel %vm5673_vm5, %v5618_v36, %v10319_v17  ;;  %v5619_v33 = vsel %vm3386_vm4, %v12523_v61, %v10249_v8 }
 0x21a   : > { %3460 = vst.msk [vmem:[#allocation2 + $0x1a0] sm:$0xff] %vm3386_vm4, %v3355_v4  ;;  %v3292_v47 = vmax.f32 %v3086_v18, %v3087_v7  ;;  %v2410_v56 = vadd.f32 %v12582_v26, %v2409_v57  ;;  %v10327_v50 = vpop.permute.xlu1 %10326  ;;  %v12859_v25 = vpop.permute.xlu0 %10331  ;;  %v5876_v43 = vsel %vm5673_vm5, %v5812_v48, %v10318_v58  ;;  %v5748_v3 = vsel %vm5738_vm6, %v5683_v29, %v10324_v0 }
 0x21b   : > { %v3089_v9 = vmax.f32 %v2415_v30, 0.0  ;;  %v10329_v62 = vunpack.i.h.bf16 %v10327_v50  ;;  %v5940_v53 = vsel %vm5738_vm6, %v5876_v43, %v10323_v31  ;;  %v10328_v2 = vunpack.i.l.bf16 %v10327_v50 }
 0x21c   : > { %v3356_v38 = vmax.f32 %v12736_v49, %v3292_v47  ;;  %v3088_v22 = vmax.f32 %v2410_v56, 0.0  ;;  %v9642_v40 = vpop.f32.mrb[152].mxu0  ;;  %6339 = vmatprep.mubr.f32.mxu1 %v5940_v53  ;;  %v5813_v58 = vsel %vm3386_vm4, %v12588_v11, %v10248_v42  ;;  %v10263_v56 = vunpack.i.l.bf16 %v12666_v27 }
 0x21d   : > { %v2425_v13 = vadd.f32 %v12582_v26, %v9642_v40  ;;  %v2419_v7 = vpop.f32.mrb[153].mxu0  ;;  %v12868_v17 = vld [vmem:[#allocation2 + $0x198] sm:$0xff]  ;;  %6340 = vmatmul.mubr.f32.gmra.mrb[18].mxu1 %v5748_v3  ;;  %v5684_v47 = vsel %vm5673_vm5, %v5619_v33, %v10329_v62  ;;  %v10264_v62 = vunpack.i.h.bf16 %v12666_v27 }
 0x21e   : > { %3461 = vst.msk [vmem:[#allocation2 + $0x1a8] sm:$0xff] %vm3386_vm4, %v3356_v38  ;;  %v3293_v32 = vmax.f32 %v3088_v22, %v3089_v9  ;;  %v2420_v0 = vadd.f32 %v12582_v26, %v2419_v7  ;;  %v12872_v36 = vpop.permute.xlu1 %10336  ;;  %v10342_v49 = vpop.permute.xlu0 %10341  ;;  %v10550_v4 = vpack.i.bf16 %v3709_v14, %v12868_v17  ;;  %v5877_v9 = vsel %vm5673_vm5, %v5813_v58, %v10328_v2  ;;  %v12895_v22 = vld [vmem:[#allocation2 + $0x108] sm:$0xff] }
 0x21f   : > { %v3091_v18 = vmax.f32 %v2425_v13, 0.0  ;;  %v10344_v31 = vunpack.i.h.bf16 %v10342_v49  ;;  %v10343_v48 = vunpack.i.l.bf16 %v10342_v49  ;;  %v10555_v40 = vpack.i.bf16 %v12895_v22, %v12868_v17 }
 0x220   : > { %v3357_v30 = vmax.f32 %v12754_v1, %v3293_v32  ;;  %v3090_v57 = vmax.f32 %v2420_v0, 0.0  ;;  %v9645_v29 = vpop.f32.mrb[154].mxu0  ;;  %10551 = vrot.lane.b32.xlu0 %v10550_v4, %s11354_s29  ;;  %v10278_v49 = vunpack.i.l.bf16 %v12668_v45 }
 0x221   : > { %v2435_v50 = vadd.f32 %v12582_v26, %v9645_v29  ;;  %v2429_v43 = vpop.f32.mrb[155].mxu0  ;;  %v5749_v11 = vsel %vm5738_vm6, %v5684_v47, %v10344_v31  ;;  %v12886_v42 = vld [vmem:[#allocation2 + $0x1a0] sm:$0xff]  ;;  %v5941_v14 = vsel %vm5738_vm6, %v5877_v9, %v10343_v48 }
 0x222   : > { %3462 = vst.msk [vmem:[#allocation2 + $0x1b0] sm:$0xff] %vm3386_vm4, %v3357_v30  ;;  %v3294_v61 = vmax.f32 %v3090_v57, %v3091_v18  ;;  %v2430_v1 = vadd.f32 %v12582_v26, %v2429_v43  ;;  %v12890_v8 = vpop.permute.xlu1 %10351  ;;  %v10347_v3 = vpop.permute.xlu0 %10346  ;;  %v10560_v38 = vpack.i.bf16 %v12560_v34, %v12886_v42  ;;  %6344 = vmatprep.mubr.f32.mxu1 %v5941_v14  ;;  %v10279_v34 = vunpack.i.h.bf16 %v12668_v45  ;;  %v12906_v18 = vld [vmem:[#allocation2 + $0x110] sm:$0xff]  ;;  %v3502_v57 = vld [vmem:[#allocation2 + $0x68] sm:$0xff] }
 0x223   : > { %v3093_v53 = vmax.f32 %v2435_v50, 0.0  ;;  %v10349_v7 = vunpack.i.h.bf16 %v10347_v3  ;;  %v10348_v32 = vunpack.i.l.bf16 %v10347_v3  ;;  %6345 = vmatmul.mubr.f32.gmra.mrb[20].mxu1 %v5749_v11  ;;  %v10565_v30 = vpack.i.bf16 %v12906_v18, %v12886_v42  ;;  %v3919_v43 = vld [vmem:[#allocation2 + $0x230] sm:$0xff] }
 0x224   : > { %v3358_v2 = vmax.f32 %v12778_v35, %v3294_v61  ;;  %v3092_v13 = vmax.f32 %v2430_v1, 0.0  ;;  %v9648_v0 = vpop.f32.mrb[156].mxu0  ;;  %10561 = vrot.lane.b32.xlu1 %v10560_v38, %s11354_s29  ;;  %10556 = vrot.lane.b32.xlu0 %v10555_v40, %s11353_s28  ;;  %v5814_v45 = vsel %vm3386_vm4, %v12610_v63, %v10263_v56  ;;  %v5620_v50 = vsel %vm3386_vm4, %v3502_v57, %v10264_v62 }
 0x225   : > { %v2445_v27 = vadd.f32 %v12582_v26, %v9648_v0  ;;  %v2439_v4 = vpop.f32.mrb[157].mxu0  ;;  %v12917_v9 = vld [vmem:[#allocation2 + $0x1a8] sm:$0xff]  ;;  %v5878_v3 = vsel %vm5673_vm5, %v5814_v45, %v10348_v32  ;;  %v5685_v14 = vsel %vm5673_vm5, %v5620_v50, %v10349_v7  ;;  %v10575_v7 = vpack.i.bf16 %v12886_v42, %v3919_v43 }
 0x226   : > { %3463 = vst.msk [vmem:[#allocation2 + $0x1b8] sm:$0xff] %vm3386_vm4, %v3358_v2  ;;  %v3295_v35 = vmax.f32 %v3092_v13, %v3093_v53  ;;  %v2440_v31 = vadd.f32 %v12582_v26, %v2439_v4  ;;  %v10357_v58 = vpop.permute.xlu1 %10356  ;;  %v12910_v33 = vpop.permute.xlu0 %10366  ;;  %v10293_v57 = vunpack.i.l.bf16 %v12739_v37 }
 0x227   : > { %v3095_v48 = vmax.f32 %v2445_v27, 0.0  ;;  %v10359_v29 = vunpack.i.h.bf16 %v10357_v58  ;;  %v10358_v47 = vunpack.i.l.bf16 %v10357_v58 }
 0x228   : > { %v3359_v11 = vmax.f32 %v12790_v54, %v3295_v35  ;;  %v3094_v61 = vmax.f32 %v2440_v31, 0.0  ;;  %v9651_v1 = vpop.f32.mrb[158].mxu0  ;;  %10566 = vrot.lane.b32.xlu1 %v10565_v30, %s11353_s28  ;;  %10571 = vrot.lane.b32.xlu0 %v10560_v38, %s11352_s27  ;;  %v5815_v54 = vsel %vm3386_vm4, %v12656_v16, %v10278_v49  ;;  %v10580_v38 = vpack.i.bf16 %v12586_v39, %v12917_v9  ;;  %v3503_v31 = vld [vmem:[#allocation2 + $0x70] sm:$0xff] }
 0x229   : > { %v2455_v63 = vadd.f32 %v12582_v26, %v9651_v1  ;;  %v2449_v56 = vpop.f32.mrb[159].mxu0  ;;  %v5942_v62 = vsel %vm5738_vm6, %v5878_v3, %v10358_v47  ;;  %v5750_v53 = vsel %vm5738_vm6, %v5685_v14, %v10359_v29  ;;  %v5621_v45 = vsel %vm3386_vm4, %v3503_v31, %v10279_v34 }
 0x22a   : > { %3464 = vst.msk [vmem:[#allocation2 + $0x1c0] sm:$0xff] %vm3386_vm4, %v3359_v11  ;;  %v3296_v40 = vmax.f32 %v3094_v61, %v3095_v48  ;;  %v2450_v2 = vadd.f32 %v12582_v26, %v2449_v56  ;;  %v10362_v13 = vpop.permute.xlu1 %10361  ;;  %v10372_v32 = vpop.permute.xlu0 %10371  ;;  %6349 = vmatprep.mubr.f32.mxu1 %v5942_v62  ;;  %v12947_v61 = vld [vmem:[#allocation2 + $0x118] sm:$0xff]  ;;  %v10294_v3 = vunpack.i.h.bf16 %v12739_v37  ;;  %v12953_v56 = vld [vmem:[#allocation2 + $0x1b0] sm:$0xff] }
 0x22b   : > { %v3097_v0 = vmax.f32 %v2455_v63, 0.0  ;;  %v10364_v27 = vunpack.i.h.bf16 %v10362_v13  ;;  %v10363_v4 = vunpack.i.l.bf16 %v10362_v13  ;;  %v10374_v35 = vunpack.i.h.bf16 %v10372_v32  ;;  %6350 = vmatmul.mubr.f32.gmra.mrb[22].mxu1 %v5750_v53 }
 0x22c   : > { %v3360_v16 = vmax.f32 %v12801_v23, %v3296_v40  ;;  %v3096_v49 = vmax.f32 %v2450_v2, 0.0  ;;  %v10373_v58 = vunpack.i.l.bf16 %v10372_v32  ;;  %v9654_v30 = vpop.f32.mrb[160].mxu0  ;;  %10576 = vrot.lane.b32.xlu1 %v10575_v7, %s11353_s28  ;;  %10581 = vrot.lane.b32.xlu0 %v10580_v38, %s11354_s29  ;;  %v10585_v63 = vpack.i.bf16 %v12947_v61, %v12917_v9 }
 0x22d   : > { %v2465_v48 = vadd.f32 %v12582_v26, %v9654_v30  ;;  %v2459_v39 = vpop.f32.mrb[161].mxu0  ;;  %v5879_v29 = vsel %vm5673_vm5, %v5815_v54, %v10363_v4  ;;  %v5686_v47 = vsel %vm5673_vm5, %v5621_v45, %v10364_v27  ;;  %v10303_v13 = vunpack.i.l.bf16 %v12814_v55  ;;  %v12971_v30 = vld [vmem:[#allocation2 + $0x1b8] sm:$0xff] }
 0x22e   : > { %3465 = vst.msk [vmem:[#allocation2 + $0x1c8] sm:$0xff] %vm3386_vm4, %v3360_v16  ;;  %v3297_v23 = vmax.f32 %v3096_v49, %v3097_v0  ;;  %v2460_v50 = vadd.f32 %v12582_v26, %v2459_v39  ;;  %v12944_v43 = vpop.permute.xlu1 %10381  ;;  %v10377_v11 = vpop.permute.xlu0 %10376  ;;  %v5943_v34 = vsel %vm5738_vm6, %v5879_v29, %v10373_v58  ;;  %v5751_v1 = vsel %vm5738_vm6, %v5686_v47, %v10374_v35  ;;  %v3504_v35 = vld [vmem:[#allocation2 + $0x78] sm:$0xff] }
 0x22f   : > { %v3099_v14 = vmax.f32 %v2465_v48, 0.0  ;;  %6354 = vmatprep.mubr.f32.mxu1 %v5943_v34  ;;  %v10379_v54 = vunpack.i.h.bf16 %v10377_v11  ;;  %v10378_v40 = vunpack.i.l.bf16 %v10377_v11  ;;  %v5816_v4 = vsel %vm3386_vm4, %v12706_v21, %v10293_v57  ;;  %v6027_v11 = vld [vmem:[%s11861_s19 + $0x100] sm:$0xff]  ;;  %v6028_v34 = vld [vmem:[%s11861_s19 + $0x108] sm:$0xff] }
 0x230   : > { %v3361_v62 = vmax.f32 %v12816_v52, %v3297_v23  ;;  %v3098_v53 = vmax.f32 %v2460_v50, 0.0  ;;  %v9657_v2 = vpop.f32.mrb[162].mxu0  ;;  %10591 = vrot.lane.b32.xlu1 %v10580_v38, %s11352_s27  ;;  %6355 = vmatmul.mubr.f32.gmra.mrb[24].mxu1 %v5751_v1  ;;  %v10595_v38 = vpack.i.bf16 %v12628_v20, %v12953_v56  ;;  %v5622_v58 = vsel %vm3386_vm4, %v3504_v35, %v10294_v3  ;;  %v12981_v50 = vld [vmem:[#allocation2 + $0x120] sm:$0xff] }
 0x231   : > { %v2475_v37 = vadd.f32 %v12582_v26, %v9657_v2  ;;  %10586 = vrot.lane.b32.xlu0 %v10585_v63, %s11353_s28  ;;  %v2469_v32 = vpop.f32.mrb[163].mxu0  ;;  %v10304_v45 = vunpack.i.h.bf16 %v12814_v55  ;;  %v5880_v20 = vsel %vm5673_vm5, %v5816_v4, %v10378_v40  ;;  %v5687_v21 = vsel %vm5673_vm5, %v5622_v58, %v10379_v54  ;;  %v12990_v3 = vld [vmem:[%s11770_s13] ss:$0 sm:$0xff] }
 0x232   : > { %3466 = vst.msk [vmem:[#allocation2 + $0x1d0] sm:$0xff] %vm3386_vm4, %v3361_v62  ;;  %v12961_v7 = vmax.f32 %v3098_v53, %v3099_v14  ;;  %v2470_v52 = vadd.f32 %v12582_v26, %v2469_v32  ;;  %v10387_v0 = vpop.permute.xlu1 %10386  ;;  %v12964_v27 = vpop.permute.xlu0 %10396  ;;  %v5817_v55 = vsel %vm3386_vm4, %v12727_v15, %v10303_v13  ;;  %v10600_v62 = vpack.i.bf16 %v12981_v50, %v12953_v56  ;;  %v3505_v13 = vld [vmem:[#allocation2 + $0x80] sm:$0xff] }
 0x233   : > { %v3101_v31 = vmax.f32 %v2475_v37, 0.0  ;;  %v10389_v16 = vunpack.i.h.bf16 %v10387_v0  ;;  %v10388_v49 = vunpack.i.l.bf16 %v10387_v0  ;;  %v10610_v53 = vpack.i.bf16 %v12675_v28, %v12971_v30 }
 0x234   : > { %v3100_v48 = vmax.f32 %v2470_v52, 0.0  ;;  %v9660_v39 = vpop.f32.mrb[164].mxu0  ;;  %10596 = vrot.lane.b32.xlu1 %v10595_v38, %s11354_s29  ;;  %v5623_v0 = vsel %vm3386_vm4, %v3505_v13, %v10304_v45  ;;  %v10189_v4 = vunpack.i.h.bf16 %v12497_v12 }
 0x235   : > { %v2485_v57 = vadd.f32 %v12582_v26, %v9660_v39  ;;  %10606 = vrot.lane.b32.xlu0 %v10595_v38, %s11352_s27  ;;  %v2479_v29 = vpop.f32.mrb[165].mxu0  ;;  %v5944_v47 = vsel %vm5738_vm6, %v5880_v20, %v10388_v49  ;;  %v5752_v23 = vsel %vm5738_vm6, %v5687_v21, %v10389_v16  ;;  %v10015_v38 = vpack.c.bf16 %v6028_v34, %v6027_v11  ;;  %v13010_v20 = vld [vmem:[#allocation2 + $0x128] sm:$0xff] }
 0x236   : > { %v12987_v1 = vmax.f32 %v3100_v48, %v3101_v31  ;;  %v2480_v26 = vadd.f32 %v12990_v3, %v2479_v29  ;;  %v10392_v14 = vpop.permute.xlu1 %10391  ;;  %v10402_v63 = vpop.permute.xlu0 %10401  ;;  %6359 = vmatprep.mubr.f32.mxu1 %v5944_v47  ;;  %v10615_v47 = vpack.i.bf16 %v13010_v20, %v12971_v30 }
 0x237   : > { %v3103_v54 = vmax.f32 %v2485_v57, 0.0  ;;  %v10394_v40 = vunpack.i.h.bf16 %v10392_v14  ;;  %v10393_v15 = vunpack.i.l.bf16 %v10392_v14  ;;  %v10404_v2 = vunpack.i.h.bf16 %v10402_v63  ;;  %6360 = vmatmul.mubr.f32.gmra.mrb[26].mxu1 %v5752_v23  ;;  %10016 = vmatprep.subr.bf16.mxu1 %v10015_v38  ;;  %v13016_v23 = vld [vmem:[#allocation2 + $0x1c0] sm:$0xff] }
 0x238   : > { %v3102_v37 = vmax.f32 %v2480_v26, 0.0  ;;  %v10403_v32 = vunpack.i.l.bf16 %v10402_v63  ;;  %v9663_v52 = vpop.f32.mrb[166].mxu0  ;;  %10601 = vrot.lane.b32.xlu1 %v10600_v62, %s11353_s28  ;;  %v10188_v57 = vunpack.i.l.bf16 %v12497_v12  ;;  %10018 = vmatpush3.bf16.msra.mxu1 %v10015_v38  ;;  %v3506_v63 = vld [vmem:[#allocation2 + $0x88] sm:$0xff] }
 0x239   : > { %v2495_v35 = vadd.f32 %v12990_v3, %v9663_v52  ;;  %10611 = vrot.lane.b32.xlu0 %v10610_v53, %s11354_s29  ;;  %v2489_v28 = vpop.f32.mrb[167].mxu0  ;;  %v5881_v31 = vsel %vm5673_vm5, %v5817_v55, %v10393_v15  ;;  %v5688_v16 = vsel %vm5673_vm5, %v5623_v0, %v10394_v40  ;;  %v10625_v15 = vpack.i.bf16 %v12699_v59, %v13016_v23 }
 0x23a   : > { %v13004_v49 = vmax.f32 %v3102_v37, %v3103_v54  ;;  %v2490_v58 = vadd.f32 %v12990_v3, %v2489_v28  ;;  %v13007_v48 = vpop.permute.xlu1 %10411  ;;  %v10407_v39 = vpop.permute.xlu0 %10406  ;;  %v5945_v45 = vsel %vm5738_vm6, %v5881_v31, %v10403_v32  ;;  %v5753_v21 = vsel %vm5738_vm6, %v5688_v16, %v10404_v2  ;;  %v13032_v28 = vld [vmem:[#allocation2 + $0x1c8] sm:$0xff] }
 0x23b   : > { %v3105_v29 = vmax.f32 %v2495_v35, 0.0  ;;  %6364 = vmatprep.mubr.f32.mxu1 %v5945_v45  ;;  %v10409_v11 = vunpack.i.h.bf16 %v10407_v39  ;;  %v10408_v34 = vunpack.i.l.bf16 %v10407_v39  ;;  %v5624_v2 = vsel %vm3386_vm4, %v3506_v63, %v10189_v4 }
 0x23c   : > { %v3104_v55 = vmax.f32 %v2490_v58, 0.0  ;;  %v9666_v26 = vpop.f32.mrb[168].mxu0  ;;  %10621 = vrot.lane.b32.xlu1 %v10610_v53, %s11352_s27  ;;  %6365 = vmatmul.mubr.f32.gmra.mrb[28].mxu1 %v5753_v21  ;;  %v5818_v32 = vsel %vm3386_vm4, %v12770_v51, %v10188_v57  ;;  %v13038_v51 = vld [vmem:[#allocation2 + $0x130] sm:$0xff]  ;;  %v10640_v57 = vpack.i.bf16 %v12747_v60, %v13032_v28 }
 0x23d   : > { %v2505_v14 = vadd.f32 %v12990_v3, %v9666_v26  ;;  %10616 = vrot.lane.b32.xlu0 %v10615_v47, %s11353_s28  ;;  %v2499_v12 = vpop.f32.mrb[169].mxu0  ;;  %v5882_v38 = vsel %vm5673_vm5, %v5818_v32, %v10408_v34  ;;  %v5689_v35 = vsel %vm5673_vm5, %v5624_v2, %v10409_v11  ;;  %v10630_v45 = vpack.i.bf16 %v13038_v51, %v13016_v23 }
 0x23e   : > { %v13021_v62 = vmax.f32 %v3104_v55, %v3105_v29  ;;  %v2500_v54 = vadd.f32 %v12990_v3, %v2499_v12  ;;  %v10417_v40 = vpop.permute.xlu1 %10416  ;;  %v3652_v55 = vld [vmem:[#allocation2 + $0x138] sm:$0xff] }
 0x23f   : > { %v3107_v13 = vmax.f32 %v2505_v14, 0.0  ;;  %v10419_v37 = vunpack.i.h.bf16 %v10417_v40  ;;  %v10418_v53 = vunpack.i.l.bf16 %v10417_v40  ;;  %v10645_v63 = vpack.i.bf16 %v3652_v55, %v13032_v28  ;;  %v13072_v55 = vld [vmem:[#allocation2 + $0xf8] sm:$0xff] }
 0x240   : > { %v3106_v52 = vmax.f32 %v2500_v54, 0.0  ;;  %v9669_v0 = vpop.f32.mrb[170].mxu0  ;;  %10626 = vrot.lane.b32.xlu1 %v10625_v15, %s11354_s29  ;;  %v3975_v54 = vld [vmem:[#allocation2 + $0x1d0] sm:$0xff] }
 0x241   : > { %v2515_v59 = vadd.f32 %v12990_v3, %v9669_v0  ;;  %10636 = vrot.lane.b32.xlu0 %v10625_v15, %s11352_s27  ;;  %v2509_v4 = vpop.f32.mrb[171].mxu0  ;;  %v5946_v31 = vsel %vm5738_vm6, %v5882_v38, %v10418_v53  ;;  %v5754_v16 = vsel %vm5738_vm6, %v5689_v35, %v10419_v37  ;;  %v10655_v53 = vpack.i.bf16 %v12764_v6, %v3975_v54 }
 0x242   : > { %v13040_v58 = vmax.f32 %v3106_v52, %v3107_v13  ;;  %v2510_v39 = vadd.f32 %v12990_v3, %v2509_v4  ;;  %6369 = vmatprep.mubr.f32.mxu1 %v5946_v31  ;;  %v3861_v52 = vld [vmem:[#allocation2 + $0x228] sm:$0xff]  ;;  %v10334_v35 = vunpack.i.h.bf16 %v12859_v25 }
 0x243   : > { %v3109_v21 = vmax.f32 %v2515_v59, 0.0  ;;  %6370 = vmatmul.mubr.f32.gmra.mrb[30].mxu1 %v5754_v16  ;;  %v10333_v59 = vunpack.i.l.bf16 %v12859_v25  ;;  %v13066_v16 = vpop.permute.xlu0 %10421 }
 0x244   : > { %v3108_v29 = vmax.f32 %v2510_v39, 0.0  ;;  %v9672_v47 = vpop.f32.mrb[172].mxu0  ;;  %10631 = vrot.lane.b32.xlu1 %v10630_v45, %s11353_s28  ;;  %v10665_v45 = vpack.i.bf16 %v3975_v54, %v3861_v52  ;;  %v13080_v54 = vpop.permute.xlu1 %10426 }
 0x245   : > { %v2525_v11 = vadd.f32 %v12990_v3, %v9672_v47  ;;  %10641 = vrot.lane.b32.xlu0 %v10640_v57, %s11354_s29  ;;  %v2519_v34 = vpop.f32.mrb[173].mxu0 }
 0x246   : > { %v13050_v26 = vmax.f32 %v3108_v29, %v3109_v21  ;;  %v2520_v14 = vadd.f32 %v12990_v3, %v2519_v34  ;;  %v3507_v21 = vld [vmem:[#allocation2 + $0xa0] sm:$0xff]  ;;  %v5819_v34 = vsel %vm3386_vm4, %v13072_v55, %v10333_v59 }
 0x247   : > { %v3111_v12 = vmax.f32 %v2525_v11, 0.0 }
 0x248   : > { %v3110_v40 = vmax.f32 %v2520_v14, 0.0  ;;  %v9675_v60 = vpop.f32.mrb[174].mxu0  ;;  %10651 = vrot.lane.b32.xlu1 %v10640_v57, %s11352_s27  ;;  %v5625_v14 = vsel %vm3386_vm4, %v3507_v21, %v10334_v35 }
 0x249   : > { %v2535_v15 = vadd.f32 %v12990_v3, %v9675_v60  ;;  %10646 = vrot.lane.b32.xlu0 %v10645_v63, %s11353_s28  ;;  %v2529_v2 = vpop.f32.mrb[175].mxu0  ;;  %v10218_v63 = vunpack.i.l.bf16 %v12565_v10 }
 0x24a   : > { %v13057_v13 = vmax.f32 %v3110_v40, %v3111_v12  ;;  %v2530_v37 = vadd.f32 %v12990_v3, %v2529_v2  ;;  %v10219_v12 = vunpack.i.h.bf16 %v12565_v10  ;;  %v10354_v2 = vunpack.i.h.bf16 %v12890_v8 }
 0x24b   : > { %v3113_v32 = vmax.f32 %v2535_v15, 0.0  ;;  %v5883_v35 = vsel %vm5673_vm5, %v5819_v34, %v10218_v63  ;;  %v10353_v10 = vunpack.i.l.bf16 %v12890_v8 }
 0x24c   : > { %v3112_v0 = vmax.f32 %v2530_v37, 0.0  ;;  %v9678_v38 = vpop.f32.mrb[176].mxu0  ;;  %10656 = vrot.lane.b32.xlu1 %v10655_v53, %s11354_s29  ;;  %v5690_v59 = vsel %vm5673_vm5, %v5625_v14, %v10219_v12  ;;  %v5626_v8 = vsel %vm3386_vm4, %v12823_v46, %v10354_v2 }
 0x24d   : > { %v2545_v4 = vadd.f32 %v12990_v3, %v9678_v38  ;;  %10661 = vrot.lane.b32.xlu0 %v10655_v53, %s11352_s27  ;;  %v2539_v31 = vpop.f32.mrb[177].mxu0 }
 0x24e   : > { %v13068_v39 = vmax.f32 %v3112_v0, %v3113_v32  ;;  %v2540_v6 = vadd.f32 %v12990_v3, %v2539_v31 }
 0x24f   : > { %v3115_v57 = vmax.f32 %v2545_v4, 0.0 }
 0x250   : > { %v3114_v29 = vmax.f32 %v2540_v6, 0.0  ;;  %v9681_v47 = vpop.f32.mrb[178].mxu0  ;;  %10666 = vrot.lane.b32.xlu1 %v10665_v45, %s11352_s27 }
 0x251   : > { %v2555_v25 = vadd.f32 %v12990_v3, %v9681_v47  ;;  %v2549_v11 = vpop.f32.mrb[179].mxu0 }
 0x252   : > { %v3298_v40 = vmax.f32 %v3114_v29, %v3115_v57  ;;  %v2550_v60 = vadd.f32 %v12990_v3, %v2549_v11 }
 0x253   : > { %v10432_v15 = vpop.permute.xlu0 %10431  ;;  %v3117_v37 = vmax.f32 %v2555_v25, 0.0 }
 0x254   : > { %v10434_v53 = vunpack.i.h.bf16 %v10432_v15  ;;  %v10433_v32 = vunpack.i.l.bf16 %v10432_v15  ;;  %v3362_v52 = vmax.f32 %v12961_v7, %v3298_v40  ;;  %v3116_v0 = vmax.f32 %v2550_v60, 0.0  ;;  %v9684_v38 = vpop.f32.mrb[180].mxu0  ;;  %v13096_v60 = vld [vmem:[#allocation2 + $0x100] sm:$0xff] }
 0x255   : > { %v2565_v4 = vadd.f32 %v12990_v3, %v9684_v38  ;;  %v2559_v31 = vpop.f32.mrb[181].mxu0 }
 0x256   : > { %v5947_v6 = vsel %vm5738_vm6, %v5883_v35, %v10433_v32  ;;  %v5755_v45 = vsel %vm5738_vm6, %v5690_v59, %v10434_v53  ;;  %3467 = vst.msk [vmem:[#allocation2 + $0x1e8] sm:$0xff] %vm3386_vm4, %v3362_v52  ;;  %v3299_v21 = vmax.f32 %v3116_v0, %v3117_v37  ;;  %v2560_v7 = vadd.f32 %v12990_v3, %v2559_v31  ;;  %v10442_v57 = vpop.permute.xlu1 %10441 }
 0x257   : > { %v10437_v29 = vpop.permute.xlu0 %10436  ;;  %6374 = vmatprep.mubr.f32.mxu1 %v5947_v6  ;;  %v3119_v47 = vmax.f32 %v2565_v4, 0.0  ;;  %v10444_v25 = vunpack.i.h.bf16 %v10442_v57  ;;  %v10443_v12 = vunpack.i.l.bf16 %v10442_v57  ;;  %v5820_v53 = vsel %vm3386_vm4, %v13096_v60, %v10353_v10  ;;  %v3717_v10 = vld [vmem:[#allocation2 + $0x190] sm:$0xff] }
 0x258   : > { %v10439_v11 = vunpack.i.h.bf16 %v10437_v29  ;;  %6375 = vmatmul.mubr.f32.gmra.mrb[32].mxu1 %v5755_v45  ;;  %v3363_v34 = vmax.f32 %v12987_v1, %v3299_v21  ;;  %v3118_v14 = vmax.f32 %v2560_v7, 0.0  ;;  %v10438_v63 = vunpack.i.l.bf16 %v10437_v29  ;;  %v9687_v40 = vpop.f32.mrb[182].mxu0 }
 0x259   : > { %v2575_v15 = vadd.f32 %v12990_v3, %v9687_v40  ;;  %v2569_v37 = vpop.f32.mrb[183].mxu0  ;;  %v10368_v52 = vunpack.i.l.bf16 %v12910_v33  ;;  %v10369_v35 = vunpack.i.h.bf16 %v12910_v33 }
 0x25a   : > { %v5691_v32 = vsel %vm5673_vm5, %v5626_v8, %v10439_v11  ;;  %3468 = vst.msk [vmem:[#allocation2 + $0x1f0] sm:$0xff] %vm3386_vm4, %v3363_v34  ;;  %v3300_v46 = vmax.f32 %v3118_v14, %v3119_v47  ;;  %v2570_v1 = vadd.f32 %v12990_v3, %v2569_v37  ;;  %v10447_v2 = vpop.permute.xlu1 %10446  ;;  %v5884_v38 = vsel %vm5673_vm5, %v5820_v53, %v10438_v63 }
 0x25b   : > { %v13105_v0 = vpop.permute.xlu0 %10451  ;;  %v3121_v59 = vmax.f32 %v2575_v15, 0.0  ;;  %v5756_v4 = vsel %vm5738_vm6, %v5691_v32, %v10444_v25  ;;  %v10449_v45 = vunpack.i.h.bf16 %v10447_v2  ;;  %v5948_v21 = vsel %vm5738_vm6, %v5884_v38, %v10443_v12 }
 0x25c   : > { %v3364_v31 = vmax.f32 %v13004_v49, %v3300_v46  ;;  %v3120_v6 = vmax.f32 %v2570_v1, 0.0  ;;  %v9690_v7 = vpop.f32.mrb[184].mxu0  ;;  %v10448_v57 = vunpack.i.l.bf16 %v10447_v2  ;;  %6379 = vmatprep.mubr.f32.mxu1 %v5948_v21  ;;  %v5821_v14 = vsel %vm3386_vm4, %v12895_v22, %v10368_v52 }
 0x25d   : > { %v2585_v29 = vadd.f32 %v12990_v3, %v9690_v7  ;;  %v2579_v47 = vpop.f32.mrb[185].mxu0  ;;  %v13113_v11 = vld [vmem:[#allocation2 + $0x1e8] sm:$0xff]  ;;  %6380 = vmatmul.mubr.f32.gmra.mrb[34].mxu1 %v5756_v4  ;;  %v10384_v12 = vunpack.i.h.bf16 %v12944_v43  ;;  %v5627_v15 = vsel %vm3386_vm4, %v12851_v5, %v10369_v35  ;;  %v10383_v2 = vunpack.i.l.bf16 %v12944_v43 }
 0x25e   : > { %3469 = vst.msk [vmem:[#allocation2 + $0x1f8] sm:$0xff] %vm3386_vm4, %v3364_v31  ;;  %v3301_v33 = vmax.f32 %v3120_v6, %v3121_v59  ;;  %v2580_v25 = vadd.f32 %v12990_v3, %v2579_v47  ;;  %v13117_v8 = vpop.permute.xlu1 %10456  ;;  %v10670_v34 = vpack.i.bf16 %v3717_v10, %v13113_v11  ;;  %v5692_v1 = vsel %vm5673_vm5, %v5627_v15, %v10449_v45  ;;  %v13141_v6 = vld [vmem:[#allocation2 + $0x158] sm:$0xff] }
 0x25f   : > { %v10462_v49 = vpop.permute.xlu0 %10461  ;;  %v3123_v63 = vmax.f32 %v2585_v29, 0.0  ;;  %v5885_v38 = vsel %vm5673_vm5, %v5821_v14, %v10448_v57  ;;  %v10399_v45 = vunpack.i.h.bf16 %v12964_v27  ;;  %v10675_v7 = vpack.i.bf16 %v13141_v6, %v13113_v11  ;;  %v13151_v14 = vld [vmem:[#allocation2 + $0x160] sm:$0xff] }
 0x260   : > { %v10464_v40 = vunpack.i.h.bf16 %v10462_v49  ;;  %v3365_v37 = vmax.f32 %v13021_v62, %v3301_v33  ;;  %v3122_v53 = vmax.f32 %v2580_v25, 0.0  ;;  %v10463_v32 = vunpack.i.l.bf16 %v10462_v49  ;;  %v9693_v46 = vpop.f32.mrb[186].mxu0  ;;  %10671 = vrot.lane.b32.xlu0 %v10670_v34, %s11354_s29 }
 0x261   : > { %v2595_v22 = vadd.f32 %v12990_v3, %v9693_v46  ;;  %v2589_v52 = vpop.f32.mrb[187].mxu0  ;;  %v13132_v4 = vld [vmem:[#allocation2 + $0x1f0] sm:$0xff]  ;;  %v3511_v46 = vld [vmem:[#allocation2 + $0xc0] sm:$0xff] }
 0x262   : > { %v5757_v59 = vsel %vm5738_vm6, %v5692_v1, %v10464_v40  ;;  %3470 = vst.msk [vmem:[#allocation2 + $0x200] sm:$0xff] %vm3386_vm4, %v3365_v37  ;;  %v3302_v5 = vmax.f32 %v3122_v53, %v3123_v63  ;;  %v2590_v62 = vadd.f32 %v12990_v3, %v2589_v52  ;;  %v13136_v35 = vpop.permute.xlu1 %10471  ;;  %v5949_v31 = vsel %vm5738_vm6, %v5885_v38, %v10463_v32  ;;  %v3927_v38 = vld [vmem:[#allocation2 + $0x280] sm:$0xff] }
 0x263   : > { %v10467_v10 = vpop.permute.xlu0 %10466  ;;  %v10680_v43 = vpack.i.bf16 %v12868_v17, %v13132_v4  ;;  %v3125_v21 = vmax.f32 %v2595_v22, 0.0  ;;  %6384 = vmatprep.mubr.f32.mxu1 %v5949_v31  ;;  %v10398_v17 = vunpack.i.l.bf16 %v12964_v27  ;;  %v5822_v63 = vsel %vm3386_vm4, %v12906_v18, %v10383_v2 }
 0x264   : > { %v3366_v57 = vmax.f32 %v13040_v58, %v3302_v5  ;;  %v3124_v29 = vmax.f32 %v2590_v62, 0.0  ;;  %v10469_v47 = vunpack.i.h.bf16 %v10467_v10  ;;  %v10468_v33 = vunpack.i.l.bf16 %v10467_v10  ;;  %6385 = vmatmul.mubr.f32.gmra.mrb[36].mxu1 %v5757_v59  ;;  %v9696_v25 = vpop.f32.mrb[188].mxu0  ;;  %10676 = vrot.lane.b32.xlu0 %v10675_v7, %s11353_s28  ;;  %v3510_v58 = vld [vmem:[#allocation2 + $0xb8] sm:$0xff] }
 0x265   : > { %10681 = vrot.lane.b32.xlu1 %v10680_v43, %s11354_s29  ;;  %v2605_v49 = vadd.f32 %v12990_v3, %v9696_v25  ;;  %v2599_v34 = vpop.f32.mrb[189].mxu0  ;;  %v10685_v27 = vpack.i.bf16 %v13151_v14, %v13132_v4  ;;  %v5628_v32 = vsel %vm3386_vm4, %v3510_v58, %v10384_v12  ;;  %v13162_v18 = vld [vmem:[#allocation2 + $0x1f8] sm:$0xff]  ;;  %v5629_v2 = vsel %vm3386_vm4, %v3511_v46, %v10399_v45 }
 0x266   : > { %3471 = vst.msk [vmem:[#allocation2 + $0x208] sm:$0xff] %vm3386_vm4, %v3366_v57  ;;  %v3303_v40 = vmax.f32 %v3124_v29, %v3125_v21  ;;  %v2600_v15 = vadd.f32 %v12990_v3, %v2599_v34  ;;  %v10477_v37 = vpop.permute.xlu1 %10476  ;;  %v5886_v10 = vsel %vm5673_vm5, %v5822_v63, %v10468_v33  ;;  %v5693_v31 = vsel %vm5673_vm5, %v5628_v32, %v10469_v47 }
 0x267   : > { %v13157_v53 = vpop.permute.xlu0 %10486  ;;  %v3127_v1 = vmax.f32 %v2605_v49, 0.0  ;;  %v10479_v22 = vunpack.i.h.bf16 %v10477_v37  ;;  %v10478_v52 = vunpack.i.l.bf16 %v10477_v37  ;;  %v10695_v47 = vpack.i.bf16 %v13132_v4, %v3927_v38 }
 0x268   : > { %v3367_v59 = vmax.f32 %v13050_v26, %v3303_v40  ;;  %v3126_v5 = vmax.f32 %v2600_v15, 0.0  ;;  %v9699_v62 = vpop.f32.mrb[190].mxu0  ;;  %10691 = vrot.lane.b32.xlu0 %v10680_v43, %s11352_s27  ;;  %v5823_v26 = vsel %vm3386_vm4, %v12947_v61, %v10398_v17  ;;  %v10700_v43 = vpack.i.bf16 %v12886_v42, %v13162_v18 }
 0x269   : > { %10686 = vrot.lane.b32.xlu1 %v10685_v27, %s11353_s28  ;;  %v2615_v12 = vadd.f32 %v12990_v3, %v9699_v62  ;;  %v2609_v21 = vpop.f32.mrb[191].mxu0  ;;  %v5950_v7 = vsel %vm5738_vm6, %v5886_v10, %v10478_v52  ;;  %v5758_v57 = vsel %vm5738_vm6, %v5693_v31, %v10479_v22  ;;  %v10414_v61 = vunpack.i.h.bf16 %v13007_v48 }
 0x26a   : > { %3472 = vst.msk [vmem:[#allocation2 + $0x210] sm:$0xff] %vm3386_vm4, %v3367_v59  ;;  %v3304_v45 = vmax.f32 %v3126_v5, %v3127_v1  ;;  %v2610_v29 = vadd.f32 %v12990_v3, %v2609_v21  ;;  %v10482_v33 = vpop.permute.xlu1 %10481  ;;  %6389 = vmatprep.mubr.f32.mxu1 %v5950_v7  ;;  %v10413_v27 = vunpack.i.l.bf16 %v13007_v48  ;;  %v13193_v48 = vld [vmem:[#allocation2 + $0x168] sm:$0xff] }
 0x26b   : > { %v10492_v25 = vpop.permute.xlu0 %10491  ;;  %v3129_v49 = vmax.f32 %v2615_v12, 0.0  ;;  %v10484_v34 = vunpack.i.h.bf16 %v10482_v33  ;;  %v10483_v63 = vunpack.i.l.bf16 %v10482_v33  ;;  %6390 = vmatmul.mubr.f32.gmra.mrb[38].mxu1 %v5758_v57  ;;  %v10705_v10 = vpack.i.bf16 %v13193_v48, %v13162_v18  ;;  %v3512_v33 = vld [vmem:[#allocation2 + $0xc8] sm:$0xff] }
 0x26c   : > { %v10494_v58 = vunpack.i.h.bf16 %v10492_v25  ;;  %v3368_v17 = vmax.f32 %v13057_v13, %v3304_v45  ;;  %v3128_v40 = vmax.f32 %v2610_v29, 0.0  ;;  %v10493_v15 = vunpack.i.l.bf16 %v10492_v25  ;;  %v9702_v37 = vpop.f32.mrb[192].mxu0  ;;  %10701 = vrot.lane.b32.xlu0 %v10700_v43, %s11354_s29 }
 0x26d   : > { %10696 = vrot.lane.b32.xlu1 %v10695_v47, %s11353_s28  ;;  %v2625_v32 = vadd.f32 %v12990_v3, %v9702_v37  ;;  %v2619_v42 = vpop.f32.mrb[193].mxu0  ;;  %v5887_v46 = vsel %vm5673_vm5, %v5823_v26, %v10483_v63  ;;  %v5694_v1 = vsel %vm5673_vm5, %v5629_v2, %v10484_v34  ;;  %v13198_v2 = vld [vmem:[#allocation2 + $0x200] sm:$0xff]  ;;  %v5824_v29 = vsel %vm3386_vm4, %v12981_v50, %v10413_v27 }
 0x26e   : > { %3473 = vst.msk [vmem:[#allocation2 + $0x218] sm:$0xff] %vm3386_vm4, %v3368_v17  ;;  %v3305_v22 = vmax.f32 %v3128_v40, %v3129_v49  ;;  %v2620_v13 = vadd.f32 %v12990_v3, %v2619_v42  ;;  %v13190_v52 = vpop.permute.xlu1 %10501  ;;  %v5951_v59 = vsel %vm5738_vm6, %v5887_v46, %v10493_v15  ;;  %v5759_v5 = vsel %vm5738_vm6, %v5694_v1, %v10494_v58  ;;  %v13216_v40 = vld [vmem:[#allocation2 + $0x208] sm:$0xff] }
 0x26f   : > { %v10497_v38 = vpop.permute.xlu0 %10496  ;;  %v3131_v62 = vmax.f32 %v2625_v32, 0.0  ;;  %6394 = vmatprep.mubr.f32.mxu1 %v5951_v59  ;;  %v5630_v34 = vsel %vm3386_vm4, %v3512_v33, %v10414_v61  ;;  %v10424_v63 = vunpack.i.h.bf16 %v13066_v16  ;;  %v10423_v15 = vunpack.i.l.bf16 %v13066_v16 }
 0x270   : > { %v3369_v31 = vmax.f32 %v13068_v39, %v3305_v22  ;;  %v3130_v12 = vmax.f32 %v2620_v13, 0.0  ;;  %v10499_v21 = vunpack.i.h.bf16 %v10497_v38  ;;  %v10498_v7 = vunpack.i.l.bf16 %v10497_v38  ;;  %v9705_v57 = vpop.f32.mrb[194].mxu0  ;;  %6395 = vmatmul.mubr.f32.gmra.mrb[40].mxu1 %v5759_v5  ;;  %10706 = vrot.lane.b32.xlu0 %v10705_v10, %s11353_s28  ;;  %v13226_v22 = vld [vmem:[#allocation2 + $0x170] sm:$0xff] }
 0x271   : > { %10711 = vrot.lane.b32.xlu1 %v10700_v43, %s11352_s27  ;;  %v2635_v26 = vadd.f32 %v12990_v3, %v9705_v57  ;;  %v2629_v45 = vpop.f32.mrb[195].mxu0  ;;  %v10715_v43 = vpack.i.bf16 %v12917_v9, %v13198_v2  ;;  %v10720_v5 = vpack.i.bf16 %v13226_v22, %v13198_v2 }
 0x272   : > { %3474 = vst.msk [vmem:[#allocation2 + $0x220] sm:$0xff] %vm3386_vm4, %v3369_v31  ;;  %v13207_v25 = vmax.f32 %v3130_v12, %v3131_v62  ;;  %v2630_v39 = vadd.f32 %v12990_v3, %v2629_v45  ;;  %v10507_v47 = vpop.permute.xlu1 %10506  ;;  %v5888_v32 = vsel %vm5673_vm5, %v5824_v29, %v10498_v7  ;;  %v5695_v42 = vsel %vm5673_vm5, %v5630_v34, %v10499_v21  ;;  %v3513_v7 = vld [vmem:[#allocation2 + $0xd0] sm:$0xff] }
 0x273   : > { %v13210_v49 = vpop.permute.xlu0 %10516  ;;  %v3133_v58 = vmax.f32 %v2635_v26, 0.0  ;;  %v10509_v17 = vunpack.i.h.bf16 %v10507_v47  ;;  %v10508_v50 = vunpack.i.l.bf16 %v10507_v47  ;;  %v10730_v62 = vpack.i.bf16 %v12953_v56, %v13216_v40 }
 0x274   : > { %v3132_v37 = vmax.f32 %v2630_v39, 0.0  ;;  %v9708_v27 = vpop.f32.mrb[196].mxu0  ;;  %10726 = vrot.lane.b32.xlu0 %v10715_v43, %s11352_s27  ;;  %v5825_v29 = vsel %vm3386_vm4, %v13010_v20, %v10423_v15  ;;  %v5631_v33 = vsel %vm3386_vm4, %v3513_v7, %v10424_v63  ;;  %v10308_v39 = vunpack.i.l.bf16 %v12832_v19  ;;  %v13250_v15 = vld [vmem:[#allocation2 + $0x178] sm:$0xff] }
 0x275   : > { %10716 = vrot.lane.b32.xlu1 %v10715_v43, %s11354_s29  ;;  %v2645_v9 = vadd.f32 %v12990_v3, %v9708_v27  ;;  %v2639_v61 = vpop.f32.mrb[197].mxu0  ;;  %v5952_v46 = vsel %vm5738_vm6, %v5888_v32, %v10508_v50  ;;  %v5760_v1 = vsel %vm5738_vm6, %v5695_v42, %v10509_v17  ;;  %v10309_v27 = vunpack.i.h.bf16 %v12832_v19 }
 0x276   : > { %v13228_v16 = vmax.f32 %v3132_v37, %v3133_v58  ;;  %v2640_v13 = vadd.f32 %v12990_v3, %v2639_v61  ;;  %v10512_v38 = vpop.permute.xlu1 %10511  ;;  %6399 = vmatprep.mubr.f32.mxu1 %v5952_v46  ;;  %v10735_v42 = vpack.i.bf16 %v13250_v15, %v13216_v40 }
 0x277   : > { %v10522_v59 = vpop.permute.xlu0 %10521  ;;  %v3135_v10 = vmax.f32 %v2645_v9, 0.0  ;;  %v10514_v31 = vunpack.i.h.bf16 %v10512_v38  ;;  %v10513_v12 = vunpack.i.l.bf16 %v10512_v38  ;;  %6400 = vmatmul.mubr.f32.gmra.mrb[42].mxu1 %v5760_v1  ;;  %v13256_v9 = vld [vmem:[#allocation2 + $0x210] sm:$0xff] }
 0x278   : > { %v10524_v21 = vunpack.i.h.bf16 %v10522_v59  ;;  %v3134_v57 = vmax.f32 %v2640_v13, 0.0  ;;  %v10523_v26 = vunpack.i.l.bf16 %v10522_v59  ;;  %v9711_v45 = vpop.f32.mrb[198].mxu0  ;;  %10731 = vrot.lane.b32.xlu0 %v10730_v62, %s11354_s29 }
 0x279   : > { %10721 = vrot.lane.b32.xlu1 %v10720_v5, %s11353_s28  ;;  %v2655_v56 = vadd.f32 %v12990_v3, %v9711_v45  ;;  %v2649_v47 = vpop.f32.mrb[199].mxu0  ;;  %v5889_v43 = vsel %vm5673_vm5, %v5825_v29, %v10513_v12  ;;  %v5696_v34 = vsel %vm5673_vm5, %v5631_v33, %v10514_v31  ;;  %v10745_v31 = vpack.i.bf16 %v12971_v30, %v13256_v9 }
 0x27a   : > { %v13244_v58 = vmax.f32 %v3134_v57, %v3135_v10  ;;  %v2650_v17 = vadd.f32 %v12990_v3, %v2649_v47  ;;  %v13247_v50 = vpop.permute.xlu1 %10531  ;;  %v5953_v63 = vsel %vm5738_vm6, %v5889_v43, %v10523_v26  ;;  %v5761_v37 = vsel %vm5738_vm6, %v5696_v34, %v10524_v21  ;;  %v3514_v21 = vld [vmem:[#allocation2 + $0xd8] sm:$0xff]  ;;  %v13278_v34 = vld [vmem:[#allocation2 + $0x180] sm:$0xff] }
 0x27b   : > { %v10527_v20 = vpop.permute.xlu0 %10526  ;;  %v3137_v32 = vmax.f32 %v2655_v56, 0.0  ;;  %6404 = vmatprep.mubr.f32.mxu1 %v5953_v63  ;;  %v5826_v12 = vsel %vm3386_vm4, %v13038_v51, %v10308_v39  ;;  %v5632_v26 = vsel %vm3386_vm4, %v3514_v21, %v10309_v27  ;;  %v13272_v47 = vld [vmem:[#allocation2 + $0x218] sm:$0xff]  ;;  %v10750_v63 = vpack.i.bf16 %v13278_v34, %v13256_v9 }
 0x27c   : > { %v3136_v61 = vmax.f32 %v2650_v17, 0.0  ;;  %v10529_v46 = vunpack.i.h.bf16 %v10527_v20  ;;  %v10528_v1 = vunpack.i.l.bf16 %v10527_v20  ;;  %v9714_v13 = vpop.f32.mrb[200].mxu0  ;;  %6405 = vmatmul.mubr.f32.gmra.mrb[44].mxu1 %v5761_v37  ;;  %10736 = vrot.lane.b32.xlu0 %v10735_v42, %s11353_s28  ;;  %v10760_v27 = vpack.i.bf16 %v13016_v23, %v13272_v47 }
 0x27d   : > { %10741 = vrot.lane.b32.xlu1 %v10730_v62, %s11352_s27  ;;  %v2665_v38 = vadd.f32 %v12990_v3, %v9714_v13  ;;  %v2659_v59 = vpop.f32.mrb[201].mxu0 }
 0x27e   : > { %v13261_v19 = vmax.f32 %v3136_v61, %v3137_v32  ;;  %v2660_v5 = vadd.f32 %v12990_v3, %v2659_v59  ;;  %v10537_v10 = vpop.permute.xlu1 %10536  ;;  %v5890_v33 = vsel %vm5673_vm5, %v5826_v12, %v10528_v1  ;;  %v5697_v56 = vsel %vm5673_vm5, %v5632_v26, %v10529_v46  ;;  %v3660_v61 = vld [vmem:[#allocation2 + $0x188] sm:$0xff] }
 0x27f   : > { %v3139_v7 = vmax.f32 %v2665_v38, 0.0  ;;  %v10539_v62 = vunpack.i.h.bf16 %v10537_v10  ;;  %v10538_v57 = vunpack.i.l.bf16 %v10537_v10  ;;  %v3983_v10 = vld [vmem:[#allocation2 + $0x220] sm:$0xff] }
 0x280   : > { %v3138_v45 = vmax.f32 %v2660_v5, 0.0  ;;  %v9717_v29 = vpop.f32.mrb[202].mxu0  ;;  %10756 = vrot.lane.b32.xlu0 %v10745_v31, %s11352_s27  ;;  %v10765_v5 = vpack.i.bf16 %v3660_v61, %v13272_v47  ;;  %v13312_v61 = vld [vmem:[#allocation2 + $0x148] sm:$0xff] }
 0x281   : > { %10746 = vrot.lane.b32.xlu1 %v10745_v31, %s11354_s29  ;;  %v2675_v30 = vadd.f32 %v12990_v3, %v9717_v29  ;;  %v2669_v51 = vpop.f32.mrb[203].mxu0  ;;  %v5954_v39 = vsel %vm5738_vm6, %v5890_v33, %v10538_v57  ;;  %v5762_v43 = vsel %vm5738_vm6, %v5697_v56, %v10539_v62  ;;  %v10775_v57 = vpack.i.bf16 %v13032_v28, %v3983_v10 }
 0x282   : > { %v13280_v17 = vmax.f32 %v3138_v45, %v3139_v7  ;;  %v2670_v20 = vadd.f32 %v12990_v3, %v2669_v51  ;;  %6409 = vmatprep.mubr.f32.mxu1 %v5954_v39  ;;  %v3869_v45 = vld [vmem:[#allocation2 + $0x278] sm:$0xff]  ;;  %v10454_v56 = vunpack.i.h.bf16 %v13105_v0 }
 0x283   : > { %v3141_v37 = vmax.f32 %v2675_v30, 0.0  ;;  %6410 = vmatmul.mubr.f32.gmra.mrb[46].mxu1 %v5762_v43  ;;  %v10453_v30 = vunpack.i.l.bf16 %v13105_v0  ;;  %v13306_v43 = vpop.permute.xlu0 %10541 }
 0x284   : > { %v3140_v32 = vmax.f32 %v2670_v20, 0.0  ;;  %v9720_v42 = vpop.f32.mrb[204].mxu0  ;;  %10761 = vrot.lane.b32.xlu0 %v10760_v27, %s11354_s29 }
 0x285   : > { %10751 = vrot.lane.b32.xlu1 %v10750_v63, %s11353_s28  ;;  %v2685_v46 = vadd.f32 %v12990_v3, %v9720_v42  ;;  %v2679_v1 = vpop.f32.mrb[205].mxu0  ;;  %v10785_v63 = vpack.i.bf16 %v3983_v10, %v3869_v45  ;;  %v13320_v10 = vpop.permute.xlu1 %10546 }
 0x286   : > { %v13290_v13 = vmax.f32 %v3140_v32, %v3141_v37  ;;  %v2680_v38 = vadd.f32 %v12990_v3, %v2679_v1  ;;  %v3515_v37 = vld [vmem:[#allocation2 + $0xf0] sm:$0xff]  ;;  %v5827_v1 = vsel %vm3386_vm4, %v13312_v61, %v10453_v30 }
 0x287   : > { %v3143_v59 = vmax.f32 %v2685_v46, 0.0 }
 0x288   : > { %v3142_v31 = vmax.f32 %v2680_v38, 0.0  ;;  %v9723_v23 = vpop.f32.mrb[206].mxu0  ;;  %10766 = vrot.lane.b32.xlu0 %v10765_v5, %s11353_s28  ;;  %v5633_v38 = vsel %vm3386_vm4, %v3515_v37, %v10454_v56  ;;  %v10338_v5 = vunpack.i.l.bf16 %v12872_v36 }
 0x289   : > { %10771 = vrot.lane.b32.xlu1 %v10760_v27, %s11352_s27  ;;  %v2695_v12 = vadd.f32 %v12990_v3, %v9723_v23  ;;  %v2689_v21 = vpop.f32.mrb[207].mxu0 }
 0x28a   : > { %v13297_v7 = vmax.f32 %v3142_v31, %v3143_v59  ;;  %v2690_v62 = vadd.f32 %v12990_v3, %v2689_v21  ;;  %v10339_v59 = vunpack.i.h.bf16 %v12872_v36  ;;  %v10473_v21 = vunpack.i.l.bf16 %v13136_v35 }
 0x28b   : > { %v3145_v26 = vmax.f32 %v2695_v12, 0.0  ;;  %v5891_v56 = vsel %vm5673_vm5, %v5827_v1, %v10338_v5  ;;  %v10474_v36 = vunpack.i.h.bf16 %v13136_v35 }
 0x28c   : > { %v3144_v29 = vmax.f32 %v2690_v62, 0.0  ;;  %v9726_v33 = vpop.f32.mrb[208].mxu0  ;;  %10781 = vrot.lane.b32.xlu0 %v10775_v57, %s11352_s27  ;;  %v5698_v30 = vsel %vm5673_vm5, %v5633_v38, %v10339_v59 }
 0x28d   : > { %10776 = vrot.lane.b32.xlu1 %v10775_v57, %s11354_s29  ;;  %v2705_v51 = vadd.f32 %v12990_v3, %v9726_v33  ;;  %v2699_v39 = vpop.f32.mrb[209].mxu0 }
 0x28e   : > { %v13308_v20 = vmax.f32 %v3144_v29, %v3145_v26  ;;  %v2700_v28 = vadd.f32 %v12990_v3, %v2699_v39 }
 0x28f   : > { %v3147_v27 = vmax.f32 %v2705_v51, 0.0 }
 0x290   : > { %v3146_v32 = vmax.f32 %v2700_v28, 0.0  ;;  %v9729_v42 = vpop.f32.mrb[210].mxu0 }
 0x291   : > { %10786 = vrot.lane.b32.xlu1 %v10785_v63, %s11352_s27  ;;  %v2715_v0 = vadd.f32 %v12990_v3, %v9729_v42  ;;  %v2709_v46 = vpop.f32.mrb[211].mxu0  ;;  %v10488_v42 = vunpack.i.l.bf16 %v13157_v53 }
 0x292   : > { %v3306_v31 = vmax.f32 %v3146_v32, %v3147_v27  ;;  %v2710_v23 = vadd.f32 %v12990_v3, %v2709_v46  ;;  %v10552_v12 = vpop.permute.xlu0 %10551  ;;  %v13333_v32 = vld [vmem:[#allocation2 + $0x150] sm:$0xff] }
 0x293   : > { %v3149_v62 = vmax.f32 %v2715_v0, 0.0  ;;  %v10554_v57 = vunpack.i.h.bf16 %v10552_v12  ;;  %v10553_v26 = vunpack.i.l.bf16 %v10552_v12  ;;  %v5828_v1 = vsel %vm3386_vm4, %v13333_v32, %v10473_v21 }
 0x294   : > { %v3370_v45 = vmax.f32 %v13207_v25, %v3306_v31  ;;  %v3148_v29 = vmax.f32 %v2710_v23, 0.0  ;;  %v9732_v33 = vpop.f32.mrb[212].mxu0  ;;  %v10489_v12 = vunpack.i.h.bf16 %v13157_v53 }
 0x295   : > { %v2725_v51 = vadd.f32 %v12990_v3, %v9732_v33  ;;  %v2719_v39 = vpop.f32.mrb[213].mxu0  ;;  %v5955_v28 = vsel %vm5738_vm6, %v5891_v56, %v10553_v26  ;;  %v5763_v63 = vsel %vm5738_vm6, %v5698_v30, %v10554_v57 }
 0x296   : > { %3475 = vst.msk [vmem:[#allocation2 + $0x238] sm:$0xff] %vm3386_vm4, %v3370_v45  ;;  %v3307_v37 = vmax.f32 %v3148_v29, %v3149_v62  ;;  %v2720_v25 = vadd.f32 %v12990_v3, %v2719_v39  ;;  %v10562_v27 = vpop.permute.xlu1 %10561  ;;  %6414 = vmatprep.mubr.f32.mxu1 %v5955_v28  ;;  %v10557_v46 = vpop.permute.xlu0 %10556  ;;  %v5634_v45 = vsel %vm3386_vm4, %v13072_v55, %v10474_v36  ;;  %v3725_v28 = vld [vmem:[#allocation2 + $0x1e0] sm:$0xff] }
 0x297   : > { %v3151_v0 = vmax.f32 %v2725_v51, 0.0  ;;  %v10563_v35 = vunpack.i.l.bf16 %v10562_v27  ;;  %6415 = vmatmul.mubr.f32.gmra.mrb[48].mxu1 %v5763_v63  ;;  %v10559_v5 = vunpack.i.h.bf16 %v10557_v46  ;;  %v10558_v31 = vunpack.i.l.bf16 %v10557_v46 }
 0x298   : > { %v3371_v38 = vmax.f32 %v13228_v16, %v3307_v37  ;;  %v3150_v59 = vmax.f32 %v2720_v25, 0.0  ;;  %v9735_v23 = vpop.f32.mrb[214].mxu0  ;;  %v10564_v62 = vunpack.i.h.bf16 %v10562_v27  ;;  %v5829_v37 = vsel %vm3386_vm4, %v13141_v6, %v10488_v42 }
 0x299   : > { %v2735_v57 = vadd.f32 %v12990_v3, %v9735_v23  ;;  %v2729_v26 = vpop.f32.mrb[215].mxu0  ;;  %v5892_v16 = vsel %vm5673_vm5, %v5828_v1, %v10558_v31  ;;  %v5699_v56 = vsel %vm5673_vm5, %v5634_v45, %v10559_v5  ;;  %v10503_v5 = vunpack.i.l.bf16 %v13190_v52 }
 0x29a   : > { %3476 = vst.msk [vmem:[#allocation2 + $0x240] sm:$0xff] %vm3386_vm4, %v3371_v38  ;;  %v3308_v29 = vmax.f32 %v3150_v59, %v3151_v0  ;;  %v2730_v21 = vadd.f32 %v12990_v3, %v2729_v26  ;;  %v10567_v33 = vpop.permute.xlu1 %10566  ;;  %v13347_v53 = vpop.permute.xlu0 %10571  ;;  %v5956_v39 = vsel %vm5738_vm6, %v5892_v16, %v10563_v35  ;;  %v5764_v0 = vsel %vm5738_vm6, %v5699_v56, %v10564_v62  ;;  %v13362_v59 = vld [vmem:[%s11770_s13] ss:$0 sm:$0xff]  ;;  %v6030_v16 = vld [vmem:[%s11861_s19 + $0x118] sm:$0xff]  ;;  %s14393_s13 = scalar_lea.vmem %s15055_s7, %s8932_s26  ;;  %s8583_s26 = sshll.u32 %s15107_s18, 3 }
 0x29b   : > { %v3153_v30 = vmax.f32 %v2735_v57, 0.0  ;;  %v10568_v51 = vunpack.i.l.bf16 %v10567_v33  ;;  %6419 = vmatprep.mubr.f32.mxu1 %v5956_v39  ;;  %v10569_v25 = vunpack.i.h.bf16 %v10567_v33  ;;  %v5635_v35 = vsel %vm3386_vm4, %v13096_v60, %v10489_v12  ;;  %v6029_v33 = vld [vmem:[%s11861_s19 + $0x110] sm:$0xff] }
 0x29c   : > { %v3372_v55 = vmax.f32 %v13244_v58, %v3308_v29  ;;  %v3152_v36 = vmax.f32 %v2730_v21, 0.0  ;;  %v9738_v63 = vpop.f32.mrb[216].mxu0  ;;  %v10504_v38 = vunpack.i.h.bf16 %v13190_v52  ;;  %6420 = vmatmul.mubr.f32.gmra.mrb[50].mxu1 %v5764_v0  ;;  %v10519_v60 = vunpack.i.h.bf16 %v13210_v49  ;;  %v13373_v21 = vld [vmem:[#allocation2 + $0x1a8] sm:$0xff] }
 0x29d   : > { %v2745_v27 = vadd.f32 %v12990_v3, %v9738_v63  ;;  %v2739_v46 = vpop.f32.mrb[217].mxu0  ;;  %v13355_v1 = vld [vmem:[#allocation2 + $0x238] sm:$0xff]  ;;  %v5893_v12 = vsel %vm5673_vm5, %v5829_v37, %v10568_v51  ;;  %v10019_v51 = vpack.c.bf16 %v6030_v16, %v6029_v33 }
 0x29e   : > { %3477 = vst.msk [vmem:[#allocation2 + $0x248] sm:$0xff] %vm3386_vm4, %v3372_v55  ;;  %v3309_v58 = vmax.f32 %v3152_v36, %v3153_v30  ;;  %v2740_v6 = vadd.f32 %v13362_v59, %v2739_v46  ;;  %v13365_v3 = vpop.permute.xlu1 %10576  ;;  %v10790_v42 = vpack.i.bf16 %v3725_v28, %v13355_v1  ;;  %v10582_v23 = vpop.permute.xlu0 %10581  ;;  %v5700_v30 = vsel %vm5673_vm5, %v5635_v35, %v10569_v25 }
 0x29f   : > { %v3155_v31 = vmax.f32 %v2745_v27, 0.0  ;;  %v10584_v26 = vunpack.i.h.bf16 %v10582_v23  ;;  %v10583_v45 = vunpack.i.l.bf16 %v10582_v23  ;;  %10020 = vmatprep.subr.bf16.mxu1 %v10019_v51 }
 0x2a0   : > { %v3373_v62 = vmax.f32 %v13261_v19, %v3309_v58  ;;  %v3154_v57 = vmax.f32 %v2740_v6, 0.0  ;;  %v9741_v29 = vpop.f32.mrb[218].mxu0  ;;  %10791 = vrot.lane.b32.xlu0 %v10790_v42, %s11354_s29  ;;  %v10795_v19 = vpack.i.bf16 %v13373_v21, %v13355_v1  ;;  %10022 = vmatpush3.bf16.msra.mxu1 %v10019_v51  ;;  %v3935_v51 = vld [vmem:[#allocation2 + $0x2d0] sm:$0xff] }
 0x2a1   : > { %v2755_v52 = vadd.f32 %v13362_v59, %v9741_v29  ;;  %v2749_v56 = vpop.f32.mrb[219].mxu0  ;;  %v13379_v39 = vld [vmem:[#allocation2 + $0x240] sm:$0xff]  ;;  %v5957_v63 = vsel %vm5738_vm6, %v5893_v12, %v10583_v45  ;;  %v5765_v37 = vsel %vm5738_vm6, %v5700_v30, %v10584_v26  ;;  %v13400_v29 = vld [vmem:[#allocation2 + $0x1b0] sm:$0xff] }
 0x2a2   : > { %3478 = vst.msk [vmem:[#allocation2 + $0x250] sm:$0xff] %vm3386_vm4, %v3373_v62  ;;  %v3310_v28 = vmax.f32 %v3154_v57, %v3155_v31  ;;  %v2750_v55 = vadd.f32 %v13362_v59, %v2749_v56  ;;  %v13385_v36 = vpop.permute.xlu1 %10591  ;;  %6424 = vmatprep.mubr.f32.mxu1 %v5957_v63  ;;  %v10800_v25 = vpack.i.bf16 %v13113_v11, %v13379_v39  ;;  %v10518_v31 = vunpack.i.l.bf16 %v13210_v49  ;;  %v3518_v62 = vld [vmem:[#allocation2 + $0x108] sm:$0xff]  ;;  %v3519_v57 = vld [vmem:[#allocation2 + $0x110] sm:$0xff] }
 0x2a3   : > { %v3157_v27 = vmax.f32 %v2755_v52, 0.0  ;;  %v10587_v0 = vpop.permute.xlu0 %10586  ;;  %6425 = vmatmul.mubr.f32.gmra.mrb[52].mxu1 %v5765_v37  ;;  %v5830_v11 = vsel %vm3386_vm4, %v13151_v14, %v10503_v5  ;;  %v5636_v49 = vsel %vm3386_vm4, %v3518_v62, %v10504_v38  ;;  %v5637_v33 = vsel %vm3386_vm4, %v3519_v57, %v10519_v60 }
 0x2a4   : > { %v3374_v46 = vmax.f32 %v13280_v17, %v3310_v28  ;;  %v3156_v35 = vmax.f32 %v2750_v55, 0.0  ;;  %v10589_v58 = vunpack.i.h.bf16 %v10587_v0  ;;  %v10588_v6 = vunpack.i.l.bf16 %v10587_v0  ;;  %v9744_v42 = vpop.f32.mrb[220].mxu0  ;;  %10796 = vrot.lane.b32.xlu0 %v10795_v19, %s11353_s28  ;;  %10801 = vrot.lane.b32.xlu1 %v10800_v25, %s11354_s29 }
 0x2a5   : > { %v2765_v23 = vadd.f32 %v13362_v59, %v9744_v42  ;;  %v2759_v12 = vpop.f32.mrb[221].mxu0  ;;  %v10805_v14 = vpack.i.bf16 %v13400_v29, %v13379_v39  ;;  %v13408_v5 = vld [vmem:[#allocation2 + $0x248] sm:$0xff]  ;;  %v10594_v44 = vunpack.i.h.bf16 %v13385_v36 }
 0x2a6   : > { %3479 = vst.msk [vmem:[#allocation2 + $0x258] sm:$0xff] %vm3386_vm4, %v3374_v46  ;;  %v3311_v17 = vmax.f32 %v3156_v35, %v3157_v27  ;;  %v2760_v26 = vadd.f32 %v13362_v59, %v2759_v12  ;;  %v10597_v45 = vpop.permute.xlu1 %10596  ;;  %v5894_v38 = vsel %vm5673_vm5, %v5830_v11, %v10588_v6  ;;  %v5701_v60 = vsel %vm5673_vm5, %v5636_v49, %v10589_v58 }
 0x2a7   : > { %v3159_v16 = vmax.f32 %v2765_v23, 0.0  ;;  %v10599_v52 = vunpack.i.h.bf16 %v10597_v45  ;;  %v10598_v56 = vunpack.i.l.bf16 %v10597_v45  ;;  %v13404_v30 = vpop.permute.xlu0 %10606  ;;  %v10534_v46 = vunpack.i.h.bf16 %v13247_v50 }
 0x2a8   : > { %v3375_v19 = vmax.f32 %v13290_v13, %v3311_v17  ;;  %v3158_v28 = vmax.f32 %v2760_v26, 0.0  ;;  %v9747_v55 = vpop.f32.mrb[222].mxu0  ;;  %10811 = vrot.lane.b32.xlu0 %v10800_v25, %s11352_s27  ;;  %10806 = vrot.lane.b32.xlu1 %v10805_v14, %s11353_s28  ;;  %v5831_v13 = vsel %vm3386_vm4, %v13193_v48, %v10518_v31  ;;  %v10820_v6 = vpack.i.bf16 %v13132_v4, %v13408_v5  ;;  %v13434_v14 = vld [vmem:[#allocation2 + $0x1b8] sm:$0xff] }
 0x2a9   : > { %v2775_v63 = vadd.f32 %v13362_v59, %v9747_v55  ;;  %v2769_v37 = vpop.f32.mrb[223].mxu0  ;;  %v5958_v27 = vsel %vm5738_vm6, %v5894_v38, %v10598_v56  ;;  %v5766_v0 = vsel %vm5738_vm6, %v5701_v60, %v10599_v52  ;;  %v10815_v48 = vpack.i.bf16 %v13379_v39, %v3935_v51 }
 0x2aa   : > { %3480 = vst.msk [vmem:[#allocation2 + $0x260] sm:$0xff] %vm3386_vm4, %v3375_v19  ;;  %v3312_v25 = vmax.f32 %v3158_v28, %v3159_v16  ;;  %v2770_v35 = vadd.f32 %v13362_v59, %v2769_v37  ;;  %v10602_v58 = vpop.permute.xlu1 %10601  ;;  %6429 = vmatprep.mubr.f32.mxu1 %v5958_v27  ;;  %v10533_v31 = vunpack.i.l.bf16 %v13247_v50  ;;  %v10825_v55 = vpack.i.bf16 %v13434_v14, %v13408_v5  ;;  %v3936_v27 = vld [vmem:[#allocation2 + $0x2d8] sm:$0xff] }
 0x2ab   : > { %v3161_v42 = vmax.f32 %v2775_v63, 0.0  ;;  %v13425_v23 = vpop.f32.mrb[0].mxu1  ;;  %v10604_v12 = vunpack.i.h.bf16 %v10602_v58  ;;  %v10603_v11 = vunpack.i.l.bf16 %v10602_v58  ;;  %v10612_v62 = vpop.permute.xlu0 %10611  ;;  %6430 = vmatmul.mubr.f32.gmra.mrb[54].mxu1 %v5766_v0  ;;  %v13449_v58 = vld [vmem:[#allocation2 + $0x250] sm:$0xff] }
 0x2ac   : > { %v3376_v57 = vmax.f32 %v13297_v7, %v3312_v25  ;;  %v3160_v17 = vmax.f32 %v2770_v35, 0.0  ;;  %v10614_v26 = vunpack.i.h.bf16 %v10612_v62  ;;  %v6298_v45 = vpop.f32.mrb[1].mxu1  ;;  %v9750_v49 = vpop.f32.mrb[224].mxu0  ;;  %10821 = vrot.lane.b32.xlu0 %v10820_v6, %s11354_s29  ;;  %v10613_v4 = vunpack.i.l.bf16 %v10612_v62  ;;  %10816 = vrot.lane.b32.xlu1 %v10815_v48, %s11353_s28 }
 0x2ad   : > { %v2785_v16 = vadd.f32 %v13362_v59, %v9750_v49  ;;  %v2779_v52 = vpop.f32.mrb[225].mxu0  ;;  %v5895_v56 = vsel %vm5673_vm5, %v5831_v13, %v10603_v11  ;;  %v5702_v50 = vsel %vm5673_vm5, %v5637_v33, %v10604_v12  ;;  %v10835_v49 = vpack.i.bf16 %v13408_v5, %v3936_v27 }
 0x2ae   : > { %3481 = vst.msk [vmem:[#allocation2 + $0x268] sm:$0xff] %vm3386_vm4, %v3376_v57  ;;  %v3313_v7 = vmax.f32 %v3160_v17, %v3161_v42  ;;  %v2780_v19 = vadd.f32 %v13362_v59, %v2779_v52  ;;  %v13439_v28 = vpop.permute.xlu1 %10621  ;;  %v5767_v38 = vsel %vm5738_vm6, %v5702_v50, %v10614_v26  ;;  %v5959_v37 = vsel %vm5738_vm6, %v5895_v56, %v10613_v4  ;;  %v3520_v42 = vld [vmem:[#allocation2 + $0x118] sm:$0xff] }
 0x2af   : > { %v3163_v60 = vmax.f32 %v2785_v16, 0.0  ;;  %v13444_v51 = vpop.f32.mrb[2].mxu1  ;;  %v10617_v63 = vpop.permute.xlu0 %10616  ;;  %6434 = vmatprep.mubr.f32.mxu1 %v5959_v37  ;;  %v5638_v48 = vsel %vm3386_vm4, %v3520_v42, %v10534_v46  ;;  %v10544_v57 = vunpack.i.h.bf16 %v13306_v43  ;;  %v10543_v46 = vunpack.i.l.bf16 %v13306_v43  ;;  %v3521_v37 = vld [vmem:[#allocation2 + $0x120] sm:$0xff] }
 0x2b0   : > { %v3377_v33 = vmax.f32 %v13308_v20, %v3313_v7  ;;  %v3162_v0 = vmax.f32 %v2780_v19, 0.0  ;;  %v10619_v13 = vunpack.i.h.bf16 %v10617_v63  ;;  %v6303_v25 = vpop.f32.mrb[3].mxu1  ;;  %v9753_v35 = vpop.f32.mrb[226].mxu0  ;;  %10826 = vrot.lane.b32.xlu0 %v10825_v55, %s11353_s28  ;;  %v10618_v12 = vunpack.i.l.bf16 %v10617_v63  ;;  %10831 = vrot.lane.b32.xlu1 %v10820_v6, %s11352_s27 }
 0x2b1   : > { %v2795_v11 = vadd.f32 %v13362_v59, %v9753_v35  ;;  %6435 = vmatmul.mubr.f32.gmra.mrb[56].mxu1 %v5767_v38  ;;  %v2789_v62 = vpop.f32.mrb[227].mxu0  ;;  %v5832_v20 = vsel %vm3386_vm4, %v13226_v22, %v10533_v31  ;;  %v10840_v22 = vpack.i.bf16 %v13162_v18, %v13449_v58  ;;  %v10429_v55 = vunpack.i.h.bf16 %v13080_v54  ;;  %v13481_v25 = vld [vmem:[#allocation2 + $0x1c0] sm:$0xff]  ;;  %v13483_v35 = vld [vmem:[#allocation2 + $0x258] sm:$0xff] }
 0x2b2   : > { %3482 = vst.msk [vmem:[#allocation2 + $0x270] sm:$0xff] %vm3386_vm4, %v3377_v33  ;;  %v13458_v17 = vmax.f32 %v3162_v0, %v3163_v60  ;;  %v2790_v26 = vadd.f32 %v13362_v59, %v2789_v62  ;;  %v10627_v45 = vpop.permute.xlu1 %10626  ;;  %v5896_v7 = vsel %vm5673_vm5, %v5832_v20, %v10618_v12  ;;  %v5703_v19 = vsel %vm5673_vm5, %v5638_v48, %v10619_v13 }
 0x2b3   : > { %v3165_v4 = vmax.f32 %v2795_v11, 0.0  ;;  %v10629_v6 = vunpack.i.h.bf16 %v10627_v45  ;;  %v10628_v16 = vunpack.i.l.bf16 %v10627_v45  ;;  %v13462_v52 = vpop.permute.xlu0 %10636  ;;  %v10428_v27 = vunpack.i.l.bf16 %v13080_v54 }
 0x2b4   : > { %v3164_v31 = vmax.f32 %v2790_v26, 0.0  ;;  %v13467_v56 = vpop.f32.mrb[4].mxu1  ;;  %10836 = vrot.lane.b32.xlu0 %v10835_v49, %s11353_s28  ;;  %10841 = vrot.lane.b32.xlu1 %v10840_v22, %s11354_s29  ;;  %v5639_v42 = vsel %vm3386_vm4, %v3521_v37, %v10544_v57  ;;  %v10845_v54 = vpack.i.bf16 %v13481_v25, %v13449_v58 }
 0x2b5   : > { %v9756_v50 = vpop.f32.mrb[228].mxu0  ;;  %v6308_v60 = vpop.f32.mrb[5].mxu1  ;;  %v5960_v43 = vsel %vm5738_vm6, %v5896_v7, %v10628_v16  ;;  %v5768_v63 = vsel %vm5738_vm6, %v5703_v19, %v10629_v6 }
 0x2b6   : > { %v2805_v38 = vadd.f32 %v13362_v59, %v9756_v50  ;;  %v2799_v18 = vpop.f32.mrb[229].mxu0  ;;  %v13478_v33 = vmax.f32 %v3164_v31, %v3165_v4  ;;  %v10632_v13 = vpop.permute.xlu1 %10631  ;;  %6439 = vmatprep.mubr.f32.mxu1 %v5960_v43  ;;  %v5833_v4 = vsel %vm3386_vm4, %v13250_v15, %v10543_v46  ;;  %v10865_v31 = vpack.i.bf16 %v13198_v2, %v13483_v35  ;;  %v13505_v2 = vld [vmem:[#allocation2 + $0x260] sm:$0xff] }
 0x2b7   : > { %v2800_v0 = vadd.f32 %v13362_v59, %v2799_v18  ;;  %v10634_v11 = vunpack.i.h.bf16 %v10632_v13  ;;  %v10633_v62 = vunpack.i.l.bf16 %v10632_v13  ;;  %v10642_v20 = vpop.permute.xlu0 %10641  ;;  %6440 = vmatmul.mubr.f32.gmra.mrb[58].mxu1 %v5768_v63 }
 0x2b8   : > { %v3167_v12 = vmax.f32 %v2805_v38, 0.0  ;;  %v10644_v26 = vunpack.i.h.bf16 %v10642_v20  ;;  %v10643_v45 = vunpack.i.l.bf16 %v10642_v20  ;;  %10851 = vrot.lane.b32.xlu0 %v10840_v22, %s11352_s27  ;;  %10846 = vrot.lane.b32.xlu1 %v10845_v54, %s11353_s28 }
 0x2b9   : > { %v3166_v48 = vmax.f32 %v2800_v0, 0.0  ;;  %v9759_v49 = vpop.f32.mrb[230].mxu0  ;;  %v5897_v16 = vsel %vm5673_vm5, %v5833_v4, %v10633_v62  ;;  %v5704_v50 = vsel %vm5673_vm5, %v5639_v42, %v10634_v11  ;;  %v13509_v42 = vld [vmem:[#allocation2 + $0x1c8] sm:$0xff] }
 0x2ba   : > { %v2815_v6 = vadd.f32 %v13362_v59, %v9759_v49  ;;  %v2809_v57 = vpop.f32.mrb[231].mxu0  ;;  %v13500_v22 = vpop.permute.xlu1 %10651  ;;  %v5961_v15 = vsel %vm5738_vm6, %v5897_v16, %v10643_v45  ;;  %v5769_v46 = vsel %vm5738_vm6, %v5704_v50, %v10644_v26  ;;  %v3522_v11 = vld [vmem:[#allocation2 + $0x128] sm:$0xff]  ;;  %v10860_v26 = vpack.i.bf16 %v13509_v42, %v13483_v35 }
 0x2bb   : > { %v13497_v7 = vmax.f32 %v3166_v48, %v3167_v12  ;;  %v2810_v19 = vadd.f32 %v13362_v59, %v2809_v57  ;;  %v10647_v60 = vpop.permute.xlu0 %10646  ;;  %6444 = vmatprep.mubr.f32.mxu1 %v5961_v15  ;;  %v5834_v12 = vsel %vm3386_vm4, %v13278_v34, %v10428_v27  ;;  %v5640_v45 = vsel %vm3386_vm4, %v3522_v11, %v10429_v55 }
 0x2bc   : > { %v3169_v38 = vmax.f32 %v2815_v6, 0.0  ;;  %v10649_v43 = vunpack.i.h.bf16 %v10647_v60  ;;  %v10648_v63 = vunpack.i.l.bf16 %v10647_v60  ;;  %10856 = vrot.lane.b32.xlu0 %v10865_v31, %s11354_s29  ;;  %6445 = vmatmul.mubr.f32.gmra.mrb[60].mxu1 %v5769_v46  ;;  %v10870_v34 = vpack.i.bf16 %v13216_v40, %v13505_v2  ;;  %v13533_v60 = vld [vmem:[#allocation2 + $0x1d0] sm:$0xff] }
 0x2bd   : > { %v3168_v18 = vmax.f32 %v2810_v19, 0.0  ;;  %v9762_v37 = vpop.f32.mrb[232].mxu0  ;;  %10866 = vrot.lane.b32.xlu1 %v10865_v31, %s11352_s27 }
 0x2be   : > { %v2825_v0 = vadd.f32 %v13362_v59, %v9762_v37  ;;  %v2819_v13 = vpop.f32.mrb[233].mxu0  ;;  %v10657_v54 = vpop.permute.xlu1 %10656  ;;  %v5898_v31 = vsel %vm5673_vm5, %v5834_v12, %v10648_v63  ;;  %v5705_v50 = vsel %vm5673_vm5, %v5640_v45, %v10649_v43  ;;  %v10875_v43 = vpack.i.bf16 %v13533_v60, %v13505_v2  ;;  %v13537_v63 = vld [vmem:[#allocation2 + $0x268] sm:$0xff] }
 0x2bf   : > { %v13513_v62 = vmax.f32 %v3168_v18, %v3169_v38  ;;  %v2820_v20 = vadd.f32 %v13362_v59, %v2819_v13  ;;  %v13516_v48 = vpop.f32.mrb[6].mxu1  ;;  %v10659_v4 = vunpack.i.h.bf16 %v10657_v54  ;;  %v10658_v6 = vunpack.i.l.bf16 %v10657_v54 }
 0x2c0   : > { %v3171_v49 = vmax.f32 %v2825_v0, 0.0  ;;  %v6313_v57 = vpop.f32.mrb[7].mxu1  ;;  %10861 = vrot.lane.b32.xlu0 %v10860_v26, %s11353_s28  ;;  %v10895_v45 = vpack.i.bf16 %v13256_v9, %v13537_v63 }
 0x2c1   : > { %v3170_v27 = vmax.f32 %v2820_v20, 0.0  ;;  %v9765_v16 = vpop.f32.mrb[234].mxu0  ;;  %10871 = vrot.lane.b32.xlu1 %v10870_v34, %s11354_s29  ;;  %v5962_v15 = vsel %vm5738_vm6, %v5898_v31, %v10658_v6  ;;  %v5770_v46 = vsel %vm5738_vm6, %v5705_v50, %v10659_v4  ;;  %v3668_v4 = vld [vmem:[#allocation2 + $0x1d8] sm:$0xff] }
 0x2c2   : > { %v2835_v19 = vadd.f32 %v13362_v59, %v9765_v16  ;;  %v2829_v55 = vpop.f32.mrb[235].mxu0  ;;  %6449 = vmatprep.mubr.f32.mxu1 %v5962_v15  ;;  %v10890_v9 = vpack.i.bf16 %v3668_v4, %v13537_v63 }
 0x2c3   : > { %v13530_v38 = vmax.f32 %v3170_v27, %v3171_v49  ;;  %v2830_v40 = vadd.f32 %v13362_v59, %v2829_v55  ;;  %6450 = vmatmul.mubr.f32.gmra.mrb[62].mxu1 %v5770_v46 }
 0x2c4   : > { %v3173_v18 = vmax.f32 %v2835_v19, 0.0  ;;  %v13539_v0 = vpop.f32.mrb[8].mxu1  ;;  %10881 = vrot.lane.b32.xlu0 %v10870_v34, %s11352_s27  ;;  %v13550_v34 = vld [vmem:[#allocation2 + $0x270] sm:$0xff] }
 0x2c5   : > { %v3172_v37 = vmax.f32 %v2830_v40, 0.0  ;;  %v9768_v13 = vpop.f32.mrb[236].mxu0  ;;  %10876 = vrot.lane.b32.xlu1 %v10875_v43, %s11353_s28  ;;  %v6318_v11 = vpop.f32.mrb[9].mxu1  ;;  %v10900_v46 = vpack.i.bf16 %v13272_v47, %v13550_v34  ;;  %v10573_v40 = vunpack.i.l.bf16 %v13347_v53  ;;  %v3523_v47 = vld [vmem:[#allocation2 + $0x140] sm:$0xff] }
 0x2c6   : > { %v2845_v12 = vadd.f32 %v13362_v59, %v9768_v13  ;;  %v2839_v20 = vpop.f32.mrb[237].mxu0  ;;  %v13567_v11 = vpop.permute.xlu0 %10661 }
 0x2c7   : > { %v13544_v54 = vmax.f32 %v3172_v37, %v3173_v18  ;;  %v2840_v26 = vadd.f32 %v13362_v59, %v2839_v20  ;;  %v10574_v37 = vunpack.i.h.bf16 %v13347_v53 }
 0x2c8   : > { %v3175_v49 = vmax.f32 %v2845_v12, 0.0  ;;  %10886 = vrot.lane.b32.xlu0 %v10895_v45, %s11354_s29 }
 0x2c9   : > { %v3174_v6 = vmax.f32 %v2840_v26, 0.0  ;;  %v9771_v57 = vpop.f32.mrb[238].mxu0  ;;  %10896 = vrot.lane.b32.xlu1 %v10895_v45, %s11352_s27 }
 0x2ca   : > { %v2855_v27 = vadd.f32 %v13362_v59, %v9771_v57  ;;  %v2849_v16 = vpop.f32.mrb[239].mxu0 }
 0x2cb   : > { %v13554_v31 = vmax.f32 %v3174_v6, %v3175_v49  ;;  %v2850_v50 = vadd.f32 %v13362_v59, %v2849_v16  ;;  %v13557_v19 = vpop.f32.mrb[10].mxu1  ;;  %v13572_v49 = vld [vmem:[#allocation2 + $0x198] sm:$0xff] }
 0x2cc   : > { %v3177_v55 = vmax.f32 %v2855_v27, 0.0  ;;  %v6323_v15 = vpop.f32.mrb[11].mxu1  ;;  %10891 = vrot.lane.b32.xlu0 %v10890_v9, %s11353_s28  ;;  %v5835_v53 = vsel %vm3386_vm4, %v13572_v49, %v10573_v40  ;;  %v10458_v27 = vunpack.i.l.bf16 %v13117_v8 }
 0x2cd   : > { %v3176_v18 = vmax.f32 %v2850_v50, 0.0  ;;  %v9774_v43 = vpop.f32.mrb[240].mxu0  ;;  %10901 = vrot.lane.b32.xlu1 %v10900_v46, %s11354_s29  ;;  %v10459_v15 = vunpack.i.h.bf16 %v13117_v8  ;;  %v10593_v8 = vunpack.i.l.bf16 %v13385_v36 }
 0x2ce   : > { %v2865_v13 = vadd.f32 %v13362_v59, %v9774_v43  ;;  %v2859_v12 = vpop.f32.mrb[241].mxu0  ;;  %v5899_v40 = vsel %vm5673_vm5, %v5835_v53, %v10458_v27 }
 0x2cf   : > { %v13569_v20 = vmax.f32 %v3176_v18, %v3177_v55  ;;  %v2860_v26 = vadd.f32 %v13362_v59, %v2859_v12  ;;  %v5641_v55 = vsel %vm3386_vm4, %v3523_v47, %v10574_v37  ;;  %v13583_v18 = vpop.permute.xlu1 %10666 }
 0x2d0   : > { %v3179_v45 = vmax.f32 %v2865_v13, 0.0  ;;  %v13574_v6 = vpop.f32.mrb[12].mxu1  ;;  %10906 = vrot.lane.b32.xlu0 %v10900_v46, %s11352_s27  ;;  %v5706_v37 = vsel %vm5673_vm5, %v5641_v55, %v10459_v15 }
 0x2d1   : > { %v3178_v4 = vmax.f32 %v2860_v26, 0.0  ;;  %15064 = vst [vmem:[#allocation4_spill] sm:$0xff] %v13574_v6  ;;  %v9777_v57 = vpop.f32.mrb[242].mxu0  ;;  %v6328_v50 = vpop.f32.mrb[13].mxu1 }
 0x2d2   : > { %v2875_v16 = vadd.f32 %v13362_v59, %v9777_v57  ;;  %v2869_v9 = vpop.f32.mrb[243].mxu0  ;;  %v10672_v12 = vpop.permute.xlu0 %10671 }
 0x2d3   : > { %v3314_v43 = vmax.f32 %v3178_v4, %v3179_v45  ;;  %v2870_v13 = vadd.f32 %v13362_v59, %v2869_v9  ;;  %v10674_v26 = vunpack.i.h.bf16 %v10672_v12  ;;  %v10673_v24 = vunpack.i.l.bf16 %v10672_v12 }
 0x2d4   : > { %v3181_v46 = vmax.f32 %v2875_v16, 0.0 }
 0x2d5   : > { %v3378_v57 = vmax.f32 %v13458_v17, %v3314_v43  ;;  %v3180_v50 = vmax.f32 %v2870_v13, 0.0  ;;  %v9780_v6 = vpop.f32.mrb[244].mxu0  ;;  %v5963_v4 = vsel %vm5738_vm6, %v5899_v40, %v10673_v24  ;;  %v5771_v16 = vsel %vm5738_vm6, %v5706_v37, %v10674_v26  ;;  %v13599_v40 = vld [vmem:[#allocation2 + $0x1a0] sm:$0xff] }
 0x2d6   : > { %v2885_v47 = vadd.f32 %v13362_v59, %v9780_v6  ;;  %v2879_v45 = vpop.f32.mrb[245].mxu0  ;;  %6454 = vmatprep.mubr.f32.mxu1 %v5963_v4  ;;  %v10677_v15 = vpop.permute.xlu0 %10676  ;;  %v5836_v37 = vsel %vm3386_vm4, %v13599_v40, %v10593_v8 }
 0x2d7   : > { %3483 = vst.msk [vmem:[#allocation2 + $0x288] sm:$0xff] %vm3386_vm4, %v3378_v57  ;;  %v3315_v53 = vmax.f32 %v3180_v50, %v3181_v46  ;;  %v2880_v27 = vadd.f32 %v13362_v59, %v2879_v45  ;;  %v10682_v9 = vpop.permute.xlu1 %10681  ;;  %v13596_v17 = vpop.f32.mrb[14].mxu1  ;;  %6455 = vmatmul.mubr.f32.gmra.mrb[64].mxu1 %v5771_v16  ;;  %v10679_v24 = vunpack.i.h.bf16 %v10677_v15  ;;  %v10678_v12 = vunpack.i.l.bf16 %v10677_v15 }
 0x2d8   : > { %v3183_v43 = vmax.f32 %v2885_v47, 0.0  ;;  %v10683_v55 = vunpack.i.l.bf16 %v10682_v9  ;;  %v6333_v36 = vpop.f32.mrb[15].mxu1  ;;  %v10684_v46 = vunpack.i.h.bf16 %v10682_v9  ;;  %v5642_v47 = vsel %vm3386_vm4, %v13312_v61, %v10594_v44  ;;  %v3733_v44 = vld [vmem:[#allocation2 + $0x230] sm:$0xff] }
 0x2d9   : > { %v3379_v6 = vmax.f32 %v13478_v33, %v3315_v53  ;;  %v3182_v13 = vmax.f32 %v2880_v27, 0.0  ;;  %v9783_v26 = vpop.f32.mrb[246].mxu0  ;;  %v5900_v16 = vsel %vm5673_vm5, %v5836_v37, %v10678_v12  ;;  %v5707_v53 = vsel %vm5673_vm5, %v5642_v47, %v10679_v24  ;;  %v13619_v37 = vld [vmem:[#allocation2 + $0x2e0] sm:$0xff] }
 0x2da   : > { %v2895_v57 = vadd.f32 %v13362_v59, %v9783_v26  ;;  %v2889_v50 = vpop.f32.mrb[247].mxu0  ;;  %v10609_v27 = vunpack.i.h.bf16 %v13404_v30  ;;  %v10608_v9 = vunpack.i.l.bf16 %v13404_v30  ;;  %v13612_v36 = vpop.permute.xlu0 %10691  ;;  %v5964_v8 = vsel %vm5738_vm6, %v5900_v16, %v10683_v55 }
 0x2db   : > { %3484 = vst.msk [vmem:[#allocation2 + $0x290] sm:$0xff] %vm3386_vm4, %v3379_v6  ;;  %v3316_v45 = vmax.f32 %v3182_v13, %v3183_v43  ;;  %v2890_v33 = vadd.f32 %v13362_v59, %v2889_v50  ;;  %v10687_v4 = vpop.permute.xlu1 %10686  ;;  %v10624_v61 = vunpack.i.h.bf16 %v13439_v28  ;;  %6459 = vmatprep.mubr.f32.mxu1 %v5964_v8  ;;  %v5772_v50 = vsel %vm5738_vm6, %v5707_v53, %v10684_v46 }
 0x2dc   : > { %v3185_v15 = vmax.f32 %v2895_v57, 0.0  ;;  %v10689_v12 = vunpack.i.h.bf16 %v10687_v4  ;;  %v10688_v26 = vunpack.i.l.bf16 %v10687_v4  ;;  %6460 = vmatmul.mubr.f32.gmra.mrb[66].mxu1 %v5772_v50  ;;  %v10623_v4 = vunpack.i.l.bf16 %v13439_v28 }
 0x2dd   : > { %v3380_v43 = vmax.f32 %v13497_v7, %v3316_v45  ;;  %v3184_v6 = vmax.f32 %v2890_v33, 0.0  ;;  %v9786_v13 = vpop.f32.mrb[248].mxu0  ;;  %v5837_v46 = vsel %vm3386_vm4, %v13373_v21, %v10608_v9  ;;  %v5643_v53 = vsel %vm3386_vm4, %v13333_v32, %v10609_v27 }
 0x2de   : > { %v2905_v24 = vadd.f32 %v13362_v59, %v9786_v13  ;;  %v2899_v30 = vpop.f32.mrb[249].mxu0  ;;  %v3742_v57 = vld [vmem:[#allocation2 + $0x288] sm:$0xff]  ;;  %v10702_v8 = vpop.permute.xlu0 %10701  ;;  %v5901_v21 = vsel %vm5673_vm5, %v5837_v46, %v10688_v26  ;;  %v5708_v9 = vsel %vm5673_vm5, %v5643_v53, %v10689_v12 }
 0x2df   : > { %3485 = vst.msk [vmem:[#allocation2 + $0x298] sm:$0xff] %vm3386_vm4, %v3380_v43  ;;  %v3317_v55 = vmax.f32 %v3184_v6, %v3185_v15  ;;  %v2900_v47 = vadd.f32 %v13362_v59, %v2899_v30  ;;  %v13623_v7 = vpop.permute.xlu1 %10696  ;;  %v10920_v45 = vpack.i.bf16 %v3742_v57, %v13619_v37  ;;  %v10910_v33 = vpack.i.bf16 %v3733_v44, %v3742_v57  ;;  %v13634_v44 = vld [vmem:[#allocation2 + $0x1f8] sm:$0xff] }
 0x2e0   : > { %v3187_v16 = vmax.f32 %v2905_v24, 0.0  ;;  %v10704_v6 = vunpack.i.h.bf16 %v10702_v8  ;;  %v10703_v13 = vunpack.i.l.bf16 %v10702_v8 }
 0x2e1   : > { %v3381_v15 = vmax.f32 %v13513_v62, %v3317_v55  ;;  %v3186_v43 = vmax.f32 %v2900_v47, 0.0  ;;  %v9789_v50 = vpop.f32.mrb[250].mxu0  ;;  %10921 = vrot.lane.b32.xlu1 %v10920_v45, %s11354_s29  ;;  %10911 = vrot.lane.b32.xlu0 %v10910_v33, %s11354_s29  ;;  %v10915_v62 = vpack.i.bf16 %v13634_v44, %v3742_v57 }
 0x2e2   : > { %v2915_v24 = vadd.f32 %v13362_v59, %v9789_v50  ;;  %v2909_v30 = vpop.f32.mrb[251].mxu0  ;;  %v13639_v32 = vld [vmem:[#allocation2 + $0x290] sm:$0xff]  ;;  %v5965_v45 = vsel %vm5738_vm6, %v5901_v21, %v10703_v13  ;;  %v5773_v33 = vsel %vm5738_vm6, %v5708_v9, %v10704_v6  ;;  %v10707_v50 = vpop.permute.xlu0 %10706  ;;  %v13658_v21 = vld [vmem:[#allocation2 + $0x200] sm:$0xff]  ;;  %v5838_v9 = vsel %vm3386_vm4, %v13400_v29, %v10623_v4 }
 0x2e3   : > { %3486 = vst.msk [vmem:[#allocation2 + $0x2a0] sm:$0xff] %vm3386_vm4, %v3381_v15  ;;  %v3318_v27 = vmax.f32 %v3186_v43, %v3187_v16  ;;  %v2910_v55 = vadd.f32 %v13362_v59, %v2909_v30  ;;  %v13644_v47 = vpop.permute.xlu1 %10711  ;;  %6464 = vmatprep.mubr.f32.mxu1 %v5965_v45  ;;  %v10925_v12 = vpack.i.bf16 %v13355_v1, %v13639_v32  ;;  %v10709_v46 = vunpack.i.h.bf16 %v10707_v50 }
 0x2e4   : > { %v3189_v8 = vmax.f32 %v2915_v24, 0.0  ;;  %v10708_v53 = vunpack.i.l.bf16 %v10707_v50  ;;  %6465 = vmatmul.mubr.f32.gmra.mrb[68].mxu1 %v5773_v33  ;;  %v10639_v15 = vunpack.i.h.bf16 %v13462_v52  ;;  %v10638_v43 = vunpack.i.l.bf16 %v13462_v52  ;;  %v3526_v24 = vld [vmem:[#allocation2 + $0x158] sm:$0xff] }
 0x2e5   : > { %v3382_v26 = vmax.f32 %v13530_v38, %v3318_v27  ;;  %v3188_v57 = vmax.f32 %v2910_v55, 0.0  ;;  %v9792_v16 = vpop.f32.mrb[252].mxu0  ;;  %10916 = vrot.lane.b32.xlu0 %v10915_v62, %s11353_s28  ;;  %10926 = vrot.lane.b32.xlu1 %v10925_v12, %s11354_s29  ;;  %v5644_v52 = vsel %vm3386_vm4, %v3526_v24, %v10624_v61  ;;  %v10930_v33 = vpack.i.bf16 %v13658_v21, %v13639_v32 }
 0x2e6   : > { %v2925_v6 = vadd.f32 %v13362_v59, %v9792_v16  ;;  %v2919_v13 = vpop.f32.mrb[253].mxu0  ;;  %v13665_v45 = vpop.permute.xlu0 %10726  ;;  %v5902_v29 = vsel %vm5673_vm5, %v5838_v9, %v10708_v53  ;;  %v5709_v28 = vsel %vm5673_vm5, %v5644_v52, %v10709_v46  ;;  %v5839_v53 = vsel %vm3386_vm4, %v13434_v14, %v10638_v43 }
 0x2e7   : > { %3487 = vst.msk [vmem:[#allocation2 + $0x2a8] sm:$0xff] %vm3386_vm4, %v3382_v26  ;;  %v3319_v1 = vmax.f32 %v3188_v57, %v3189_v8  ;;  %v2920_v38 = vadd.f32 %v13362_v59, %v2919_v13  ;;  %v10717_v30 = vpop.permute.xlu1 %10716  ;;  %v13669_v8 = vld [vmem:[#allocation2 + $0x298] sm:$0xff]  ;;  %v10653_v14 = vunpack.i.l.bf16 %v13500_v22 }
 0x2e8   : > { %v3191_v62 = vmax.f32 %v2925_v6, 0.0  ;;  %v10719_v27 = vunpack.i.h.bf16 %v10717_v30  ;;  %v10718_v55 = vunpack.i.l.bf16 %v10717_v30  ;;  %v10950_v46 = vpack.i.bf16 %v13379_v39, %v13669_v8 }
 0x2e9   : > { %v3383_v50 = vmax.f32 %v13544_v54, %v3319_v1  ;;  %v3190_v26 = vmax.f32 %v2920_v38, 0.0  ;;  %v9795_v57 = vpop.f32.mrb[254].mxu0  ;;  %10936 = vrot.lane.b32.xlu0 %v10925_v12, %s11352_s27  ;;  %10931 = vrot.lane.b32.xlu1 %v10930_v33, %s11353_s28  ;;  %v3527_v1 = vld [vmem:[#allocation2 + $0x160] sm:$0xff] }
 0x2ea   : > { %v2935_v61 = vadd.f32 %v13362_v59, %v9795_v57  ;;  %v2929_v4 = vpop.f32.mrb[255].mxu0  ;;  %v5966_v16 = vsel %vm5738_vm6, %v5902_v29, %v10718_v55  ;;  %v5774_v6 = vsel %vm5738_vm6, %v5709_v28, %v10719_v27  ;;  %v13681_v12 = vpop.f32.mrb[16].mxu1  ;;  %v13690_v39 = vld [vmem:[#allocation2 + $0x2a0] sm:$0xff] }
 0x2eb   : > { %3488 = vst.msk [vmem:[#allocation2 + $0x2b0] sm:$0xff] %vm3386_vm4, %v3383_v50  ;;  %v3320_v54 = vmax.f32 %v3190_v26, %v3191_v62  ;;  %v2930_v13 = vadd.f32 %v13362_v59, %v2929_v4  ;;  %v10722_v24 = vpop.permute.xlu1 %10721  ;;  %6469 = vmatprep.mubr.f32.mxu1 %v5966_v16  ;;  %v10732_v52 = vpop.permute.xlu0 %10731  ;;  %v5645_v62 = vsel %vm3386_vm4, %v3527_v1, %v10639_v15  ;;  %v13695_v26 = vld [vmem:[#allocation2 + $0x208] sm:$0xff]  ;;  %v10654_v4 = vunpack.i.h.bf16 %v13500_v22  ;;  %v13714_v1 = vld [vmem:[#allocation2 + $0x210] sm:$0xff] }
 0x2ec   : > { %v3193_v38 = vmax.f32 %v2935_v61, 0.0  ;;  %v10724_v30 = vunpack.i.h.bf16 %v10722_v24  ;;  %v10723_v9 = vunpack.i.l.bf16 %v10722_v24  ;;  %v6338_v27 = vpop.f32.mrb[17].mxu1  ;;  %6470 = vmatmul.mubr.f32.gmra.mrb[70].mxu1 %v5774_v6  ;;  %v10734_v33 = vunpack.i.h.bf16 %v10732_v52 }
 0x2ed   : > { %v3384_v59 = vmax.f32 %v13554_v31, %v3320_v54  ;;  %v3192_v55 = vmax.f32 %v2930_v13, 0.0  ;;  %v10733_v50 = vunpack.i.l.bf16 %v10732_v52  ;;  %10941 = vrot.lane.b32.xlu0 %v10950_v46, %s11354_s29  ;;  %10951 = vrot.lane.b32.xlu1 %v10950_v46, %s11352_s27  ;;  %v10945_v28 = vpack.i.bf16 %v13695_v26, %v13669_v8 }
 0x2ee   : > { %v5903_v43 = vsel %vm5673_vm5, %v5839_v53, %v10723_v9  ;;  %v5710_v57 = vsel %vm5673_vm5, %v5645_v62, %v10724_v30  ;;  %v10955_v6 = vpack.i.bf16 %v13408_v5, %v13690_v39  ;;  %v5840_v5 = vsel %vm3386_vm4, %v13481_v25, %v10653_v14  ;;  %v13723_v62 = vld [vmem:[#allocation2 + $0x2a8] sm:$0xff] }
 0x2ef   : > { %3489 = vst.msk [vmem:[#allocation2 + $0x2b8] sm:$0xff] %vm3386_vm4, %v3384_v59  ;;  %v3321_v31 = vmax.f32 %v3192_v55, %v3193_v38  ;;  %v13699_v15 = vpop.permute.xlu1 %10741  ;;  %v5967_v29 = vsel %vm5738_vm6, %v5903_v43, %v10733_v50  ;;  %v5775_v61 = vsel %vm5738_vm6, %v5710_v57, %v10734_v33  ;;  %v10737_v16 = vpop.permute.xlu0 %10736  ;;  %v3528_v38 = vld [vmem:[#allocation2 + $0x168] sm:$0xff]  ;;  %v10960_v52 = vpack.i.bf16 %v13714_v1, %v13690_v39 }
 0x2f0   : > { %6474 = vmatprep.mubr.f32.mxu1 %v5967_v29  ;;  %v10739_v13 = vunpack.i.h.bf16 %v10737_v16  ;;  %v10738_v24 = vunpack.i.l.bf16 %v10737_v16  ;;  %v13710_v46 = vpop.f32.mrb[18].mxu1  ;;  %v5646_v27 = vsel %vm3386_vm4, %v3528_v38, %v10654_v4  ;;  %v10664_v59 = vunpack.i.h.bf16 %v13567_v11  ;;  %v3529_v16 = vld [vmem:[#allocation2 + $0x170] sm:$0xff] }
 0x2f1   : > { %v3385_v54 = vmax.f32 %v13569_v20, %v3321_v31  ;;  %10946 = vrot.lane.b32.xlu0 %v10945_v28, %s11353_s28  ;;  %6475 = vmatmul.mubr.f32.gmra.mrb[72].mxu1 %v5775_v61  ;;  %v6343_v53 = vpop.f32.mrb[19].mxu1  ;;  %v10663_v55 = vunpack.i.l.bf16 %v13567_v11  ;;  %v10970_v31 = vpack.i.bf16 %v13449_v58, %v13723_v62 }
 0x2f2   : > { %10956 = vrot.lane.b32.xlu1 %v10955_v6, %s11354_s29  ;;  %v5904_v25 = vsel %vm5673_vm5, %v5840_v5, %v10738_v24  ;;  %v5711_v33 = vsel %vm5673_vm5, %v5646_v27, %v10739_v13  ;;  %v13730_v50 = vld [vmem:[#allocation2 + $0x2b0] sm:$0xff]  ;;  %v5647_v53 = vsel %vm3386_vm4, %v3529_v16, %v10664_v59  ;;  %v13750_v5 = vld [vmem:[#allocation2 + $0x218] sm:$0xff]  ;;  %v13757_v27 = vld [vmem:[#allocation2 + $0x220] sm:$0xff] }
 0x2f3   : > { %3490 = vst.msk [vmem:[#allocation2 + $0x2c0] sm:$0xff] %vm3386_vm4, %v3385_v54  ;;  %v10747_v22 = vpop.permute.xlu1 %10746  ;;  %v13718_v9 = vpop.permute.xlu0 %10756  ;;  %v13741_v4 = vpack.i.bf16 %v13483_v35, %v13730_v50  ;;  %v5841_v24 = vsel %vm3386_vm4, %v13509_v42, %v10663_v55  ;;  %v10975_v42 = vpack.i.bf16 %v13750_v5, %v13723_v62  ;;  %v10549_v55 = vunpack.i.h.bf16 %v13320_v10  ;;  %v3530_v16 = vld [vmem:[#allocation2 + $0x178] sm:$0xff] }
 0x2f4   : > { %v10749_v20 = vunpack.i.h.bf16 %v10747_v22  ;;  %v10748_v30 = vunpack.i.l.bf16 %v10747_v22 }
 0x2f5   : > { %10966 = vrot.lane.b32.xlu0 %v10955_v6, %s11352_s27 }
 0x2f6   : > { %10961 = vrot.lane.b32.xlu1 %v10960_v52, %s11353_s28  ;;  %v5968_v14 = vsel %vm5738_vm6, %v5904_v25, %v10748_v30  ;;  %v5776_v43 = vsel %vm5738_vm6, %v5711_v33, %v10749_v20  ;;  %v13737_v61 = vpop.f32.mrb[20].mxu1  ;;  %v10548_v20 = vunpack.i.l.bf16 %v13320_v10  ;;  %v10985_v33 = vpack.i.bf16 %v13757_v27, %v13730_v50 }
 0x2f7   : > { %v10752_v57 = vpop.permute.xlu1 %10751  ;;  %6479 = vmatprep.mubr.f32.mxu1 %v5968_v14  ;;  %v10762_v28 = vpop.permute.xlu0 %10761  ;;  %v13765_v14 = vld [vmem:[#allocation2 + $0x2b8] sm:$0xff] }
 0x2f8   : > { %v10754_v11 = vunpack.i.h.bf16 %v10752_v57  ;;  %v10753_v29 = vunpack.i.l.bf16 %v10752_v57  ;;  %6480 = vmatmul.mubr.f32.gmra.mrb[74].mxu1 %v5776_v43  ;;  %v10764_v6 = vunpack.i.h.bf16 %v10762_v28  ;;  %v10763_v54 = vunpack.i.l.bf16 %v10762_v28  ;;  %v6348_v13 = vpop.f32.mrb[21].mxu1 }
 0x2f9   : > { %10971 = vrot.lane.b32.xlu0 %v10970_v31, %s11354_s29  ;;  %v10995_v10 = vpack.i.bf16 %v13505_v2, %v13765_v14  ;;  %v5842_v28 = vsel %vm3386_vm4, %v13533_v60, %v10548_v20 }
 0x2fa   : > { %10981 = vrot.lane.b32.xlu1 %v13741_v4, %s11354_s29  ;;  %v5905_v22 = vsel %vm5673_vm5, %v5841_v24, %v10753_v29  ;;  %v5712_v38 = vsel %vm5673_vm5, %v5647_v53, %v10754_v11  ;;  %v10990_v24 = vpack.i.bf16 %v13449_v58, %v13619_v37  ;;  %v5648_v53 = vsel %vm3386_vm4, %v3530_v16, %v10549_v55 }
 0x2fb   : > { %v13754_v30 = vpop.permute.xlu1 %10771  ;;  %v5969_v52 = vsel %vm5738_vm6, %v5905_v22, %v10763_v54  ;;  %v5777_v59 = vsel %vm5738_vm6, %v5712_v38, %v10764_v6  ;;  %v10767_v25 = vpop.permute.xlu0 %10766  ;;  %v3676_v22 = vld [vmem:[#allocation2 + $0x228] sm:$0xff] }
 0x2fc   : > { %6484 = vmatprep.mubr.f32.mxu1 %v5969_v52  ;;  %v10769_v43 = vunpack.i.h.bf16 %v10767_v25  ;;  %v10768_v57 = vunpack.i.l.bf16 %v10767_v25  ;;  %v4002_v25 = vld [vmem:[#allocation2 + $0x2e8] sm:$0xff] }
 0x2fd   : > { %10976 = vrot.lane.b32.xlu0 %v10975_v42, %s11353_s28  ;;  %6485 = vmatmul.mubr.f32.gmra.mrb[76].mxu1 %v5777_v59  ;;  %v3999_v42 = vld [vmem:[#allocation2 + $0x2c0] sm:$0xff]  ;;  %v11000_v59 = vpack.i.bf16 %v3676_v22, %v13765_v14 }
 0x2fe   : > { %10986 = vrot.lane.b32.xlu1 %v10985_v33, %s11353_s28  ;;  %v13769_v29 = vpop.f32.mrb[22].mxu1  ;;  %v5906_v38 = vsel %vm5673_vm5, %v5842_v28, %v10768_v57  ;;  %v5713_v52 = vsel %vm5673_vm5, %v5648_v53, %v10769_v43  ;;  %v13788_v37 = vpack.i.bf16 %v13537_v63, %v3999_v42  ;;  %v11005_v33 = vpack.i.bf16 %v13639_v32, %v4002_v25  ;;  %v4003_v57 = vld [vmem:[#allocation2 + $0x2f0] sm:$0xff]  ;;  %v4004_v53 = vld [vmem:[#allocation2 + $0x2f8] sm:$0xff] }
 0x2ff   : > { %v10777_v11 = vpop.permute.xlu1 %10776  ;;  %v6353_v13 = vpop.f32.mrb[23].mxu1  ;;  %v11025_v16 = vpack.i.bf16 %v13669_v8, %v4003_v57  ;;  %v13811_v8 = vld [vmem:[#allocation2 + $0x1e8] sm:$0xff] }
 0x300   : > { %v10779_v6 = vunpack.i.h.bf16 %v10777_v11  ;;  %v10778_v54 = vunpack.i.l.bf16 %v10777_v11  ;;  %v11020_v11 = vpack.i.bf16 %v13483_v35, %v4002_v25  ;;  %v13804_v32 = vpop.permute.xlu0 %10781  ;;  %v3531_v13 = vld [vmem:[#allocation2 + $0x190] sm:$0xff] }
 0x301   : > { %10996 = vrot.lane.b32.xlu0 %v10995_v10, %s11354_s29 }
 0x302   : > { %10991 = vrot.lane.b32.xlu1 %v10990_v24, %s11353_s28  ;;  %v5970_v60 = vsel %vm5738_vm6, %v5906_v38, %v10778_v54  ;;  %v5778_v20 = vsel %vm5738_vm6, %v5713_v52, %v10779_v6  ;;  %v10694_v6 = vunpack.i.h.bf16 %v13612_v36  ;;  %v10693_v54 = vunpack.i.l.bf16 %v13612_v36 }
 0x303   : > { %6489 = vmatprep.mubr.f32.mxu1 %v5970_v60  ;;  %v13785_v58 = vpop.f32.mrb[24].mxu1  ;;  %v11035_v24 = vpack.i.bf16 %v13505_v2, %v4003_v57  ;;  %v10579_v38 = vunpack.i.h.bf16 %v13365_v3  ;;  %v10578_v52 = vunpack.i.l.bf16 %v13365_v3  ;;  %v11040_v2 = vpack.i.bf16 %v13690_v39, %v4004_v53  ;;  %v13820_v60 = vpop.permute.xlu1 %10786 }
 0x304   : > { %6490 = vmatmul.mubr.f32.gmra.mrb[78].mxu1 %v5778_v20  ;;  %v6358_v55 = vpop.f32.mrb[25].mxu1  ;;  %v5843_v36 = vsel %vm3386_vm4, %v13811_v8, %v10693_v54  ;;  %v5649_v22 = vsel %vm3386_vm4, %v3531_v13, %v10694_v6 }
 0x305   : > { %11001 = vrot.lane.b32.xlu0 %v11000_v59, %s11353_s28  ;;  %v10714_v59 = vunpack.i.h.bf16 %v13644_v47  ;;  %v10713_v55 = vunpack.i.l.bf16 %v13644_v47  ;;  %v5907_v25 = vsel %vm5673_vm5, %v5843_v36, %v10578_v52 }
 0x306   : > { %11011 = vrot.lane.b32.xlu1 %v13788_v37, %s11354_s29 }
 0x309   : > { %11006 = vrot.lane.b32.xlu0 %v11005_v33, %s11354_s29  ;;  %v5714_v33 = vsel %vm5673_vm5, %v5649_v22, %v10579_v38  ;;  %v5650_v38 = vsel %vm3386_vm4, %v13572_v49, %v10714_v59  ;;  %v3877_v59 = vld [vmem:[#allocation2 + $0x2c8] sm:$0xff] }
 0x30a   : > { %11016 = vrot.lane.b32.xlu1 %v10970_v31, %s11352_s27  ;;  %v13796_v43 = vpop.f32.mrb[26].mxu1 }
 0x30b   : > { %v6363_v28 = vpop.f32.mrb[27].mxu1 }
 0x30c   : > { %v4005_v28 = vld [vmem:[#allocation2 + $0x300] sm:$0xff] }
 0x30d   : > { %11021 = vrot.lane.b32.xlu0 %v11020_v11, %s11353_s28  ;;  %v11060_v49 = vpack.i.bf16 %v13550_v34, %v4005_v28 }
 0x30e   : > { %11026 = vrot.lane.b32.xlu1 %v11025_v16, %s11354_s29  ;;  %v11050_v16 = vpack.i.bf16 %v13537_v63, %v4004_v53 }
 0x30f   : > { %v13806_v31 = vpop.f32.mrb[28].mxu1 }
 0x310   : > { %v6368_v35 = vpop.f32.mrb[29].mxu1 }
 0x311   : > { %11031 = vrot.lane.b32.xlu0 %v13741_v4, %s11352_s27  ;;  %v13834_v35 = vld [vmem:[#allocation2 + $0x1f0] sm:$0xff] }
 0x312   : > { %11036 = vrot.lane.b32.xlu1 %v11035_v24, %s11353_s28  ;;  %v10792_v42 = vpop.permute.xlu0 %10791  ;;  %v11055_v24 = vpack.i.bf16 %v13723_v62, %v4005_v28  ;;  %v5844_v22 = vsel %vm3386_vm4, %v13834_v35, %v10713_v55  ;;  %v4006_v55 = vld [vmem:[#allocation2 + $0x308] sm:$0xff] }
 0x313   : > { %v10794_v4 = vunpack.i.h.bf16 %v10792_v42  ;;  %v10793_v20 = vunpack.i.l.bf16 %v10792_v42 }
 0x315   : > { %11041 = vrot.lane.b32.xlu0 %v11040_v2, %s11354_s29  ;;  %v5971_v3 = vsel %vm5738_vm6, %v5907_v25, %v10793_v20  ;;  %v5779_v39 = vsel %vm5738_vm6, %v5714_v33, %v10794_v4  ;;  %v10729_v2 = vunpack.i.h.bf16 %v13665_v45  ;;  %v10728_v4 = vunpack.i.l.bf16 %v13665_v45 }
 0x316   : > { %11046 = vrot.lane.b32.xlu1 %v10995_v10, %s11352_s27  ;;  %v10797_v57 = vpop.permute.xlu0 %10796  ;;  %v13830_v11 = vpop.f32.mrb[30].mxu1  ;;  %6494 = vmatprep.mubr.f32.mxu1 %v5971_v3  ;;  %v3684_v3 = vld [vmem:[#allocation2 + $0x278] sm:$0xff]  ;;  %v11070_v45 = vpack.i.bf16 %v13730_v50, %v4006_v55 }
 0x317   : > { %v10802_v47 = vpop.permute.xlu1 %10801  ;;  %v10799_v6 = vunpack.i.h.bf16 %v10797_v57  ;;  %v10798_v54 = vunpack.i.l.bf16 %v10797_v57  ;;  %v6373_v13 = vpop.f32.mrb[31].mxu1  ;;  %6495 = vmatmul.mubr.f32.gmra.mrb[80].mxu1 %v5779_v39  ;;  %v11075_v57 = vpack.i.bf16 %v13550_v34, %v3877_v59  ;;  %v11080_v34 = vpack.i.bf16 %v3684_v3, %v4006_v55 }
 0x318   : > { %v10804_v10 = vunpack.i.h.bf16 %v10802_v47  ;;  %v10803_v36 = vunpack.i.l.bf16 %v10802_v47 }
 0x319   : > { %11051 = vrot.lane.b32.xlu0 %v11050_v16, %s11353_s28  ;;  %v5908_v63 = vsel %vm5673_vm5, %v5844_v22, %v10798_v54  ;;  %v5715_v53 = vsel %vm5673_vm5, %v5650_v38, %v10799_v6  ;;  %v5845_v6 = vsel %vm3386_vm4, %v13634_v44, %v10728_v4  ;;  %v5651_v54 = vsel %vm3386_vm4, %v13599_v40, %v10729_v2  ;;  %v13877_v2 = vld [vmem:[#allocation2 + $0x1a8] sm:$0xff] }
 0x31a   : > { %11056 = vrot.lane.b32.xlu1 %v11055_v24, %s11354_s29  ;;  %v13844_v52 = vpop.permute.xlu0 %10811  ;;  %v5972_v62 = vsel %vm5738_vm6, %v5908_v63, %v10803_v36  ;;  %v5780_v42 = vsel %vm5738_vm6, %v5715_v53, %v10804_v10  ;;  %v4007_v24 = vld [vmem:[#allocation2 + $0x310] sm:$0xff]  ;;  %v10744_v22 = vunpack.i.h.bf16 %v13699_v15  ;;  %v10743_v38 = vunpack.i.l.bf16 %v13699_v15 }
 0x31b   : > { %v10807_v20 = vpop.permute.xlu1 %10806  ;;  %6499 = vmatprep.mubr.f32.mxu1 %v5972_v62  ;;  %v11085_v40 = vpack.i.bf16 %v13765_v14, %v4007_v24 }
 0x31c   : > { %v10809_v25 = vunpack.i.h.bf16 %v10807_v20  ;;  %v10808_v33 = vunpack.i.l.bf16 %v10807_v20  ;;  %6500 = vmatmul.mubr.f32.gmra.mrb[82].mxu1 %v5780_v42  ;;  %v5846_v14 = vsel %vm3386_vm4, %v13658_v21, %v10743_v38 }
 0x31d   : > { %11066 = vrot.lane.b32.xlu0 %v13788_v37, %s11352_s27 }
 0x31e   : > { %11061 = vrot.lane.b32.xlu1 %v11060_v49, %s11353_s28  ;;  %v10822_v39 = vpop.permute.xlu0 %10821  ;;  %v5909_v37 = vsel %vm5673_vm5, %v5845_v6, %v10808_v33  ;;  %v5716_v13 = vsel %vm5673_vm5, %v5651_v54, %v10809_v25  ;;  %v5652_v49 = vsel %vm3386_vm4, %v13877_v2, %v10744_v22  ;;  %v13893_v54 = vld [vmem:[#allocation2 + $0x1b0] sm:$0xff] }
 0x31f   : > { %v13856_v16 = vpop.permute.xlu1 %10816  ;;  %v10824_v47 = vunpack.i.h.bf16 %v10822_v39  ;;  %v10823_v28 = vunpack.i.l.bf16 %v10822_v39  ;;  %v10759_v39 = vunpack.i.h.bf16 %v13718_v9 }
 0x321   : > { %11071 = vrot.lane.b32.xlu0 %v11070_v45, %s11354_s29  ;;  %v5973_v50 = vsel %vm5738_vm6, %v5909_v37, %v10823_v28  ;;  %v5781_v10 = vsel %vm5738_vm6, %v5716_v13, %v10824_v47 }
 0x322   : > { %11076 = vrot.lane.b32.xlu1 %v11075_v57, %s11352_s27  ;;  %v10827_v36 = vpop.permute.xlu0 %10826  ;;  %6504 = vmatprep.mubr.f32.mxu1 %v5973_v50  ;;  %v10758_v57 = vunpack.i.l.bf16 %v13718_v9  ;;  %v5653_v50 = vsel %vm3386_vm4, %v13893_v54, %v10759_v39  ;;  %v10774_v9 = vunpack.i.h.bf16 %v13754_v30 }
 0x323   : > { %v13868_v44 = vpop.permute.xlu1 %10831  ;;  %6505 = vmatmul.mubr.f32.gmra.mrb[84].mxu1 %v5781_v10  ;;  %v10829_v63 = vunpack.i.h.bf16 %v10827_v36  ;;  %v10828_v53 = vunpack.i.l.bf16 %v10827_v36  ;;  %v10773_v10 = vunpack.i.l.bf16 %v13754_v30 }
 0x325   : > { %11081 = vrot.lane.b32.xlu0 %v11080_v34, %s11353_s28  ;;  %v5910_v15 = vsel %vm5673_vm5, %v5846_v14, %v10828_v53  ;;  %v5717_v59 = vsel %vm5673_vm5, %v5652_v49, %v10829_v63  ;;  %v5847_v34 = vsel %vm3386_vm4, %v13695_v26, %v10758_v57  ;;  %v13909_v49 = vld [vmem:[#allocation2 + $0x1b8] sm:$0xff] }
 0x326   : > { %11086 = vrot.lane.b32.xlu1 %v11085_v40, %s11354_s29  ;;  %v13875_v62 = vpop.permute.xlu0 %10836 }
 0x327   : > { %v10842_v42 = vpop.permute.xlu1 %10841 }
 0x328   : > { %v10844_v4 = vunpack.i.h.bf16 %v10842_v42  ;;  %v10843_v20 = vunpack.i.l.bf16 %v10842_v42 }
 0x32a   : > { %v13885_v55 = vpop.permute.xlu0 %10851  ;;  %v5974_v33 = vsel %vm5738_vm6, %v5910_v15, %v10843_v20  ;;  %v5782_v3 = vsel %vm5738_vm6, %v5717_v59, %v10844_v4  ;;  %v5848_v59 = vsel %vm3386_vm4, %v13714_v1, %v10773_v10  ;;  %v13925_v10 = vld [vmem:[#allocation2 + $0x1c0] sm:$0xff] }
 0x32b   : > { %v13887_v25 = vpop.f32.mrb[32].mxu1  ;;  %v10847_v21 = vpop.permute.xlu1 %10846  ;;  %6509 = vmatprep.mubr.f32.mxu1 %v5974_v33  ;;  %v5654_v33 = vsel %vm3386_vm4, %v13909_v49, %v10774_v9 }
 0x32c   : > { %15065 = vst [vmem:[#allocation5_spill] sm:$0xff] %v13887_v25  ;;  %v6378_v45 = vpop.f32.mrb[33].mxu1  ;;  %v10849_v47 = vunpack.i.h.bf16 %v10847_v21  ;;  %v10848_v28 = vunpack.i.l.bf16 %v10847_v21  ;;  %6510 = vmatmul.mubr.f32.gmra.mrb[86].mxu1 %v5782_v3 }
 0x32e   : > { %v10857_v6 = vpop.permute.xlu0 %10856  ;;  %v5911_v36 = vsel %vm5673_vm5, %v5847_v34, %v10848_v28  ;;  %v5718_v40 = vsel %vm5673_vm5, %v5653_v50, %v10849_v47  ;;  %v10784_v47 = vunpack.i.h.bf16 %v13804_v32  ;;  %v10783_v28 = vunpack.i.l.bf16 %v13804_v32 }
 0x32f   : > { %v13895_v37 = vpop.permute.xlu1 %10866  ;;  %v10859_v13 = vunpack.i.h.bf16 %v10857_v6  ;;  %v10858_v24 = vunpack.i.l.bf16 %v10857_v6 }
 0x330   : > { %v13905_v22 = vpop.f32.mrb[34].mxu1  ;;  %v5655_v32 = vsel %vm3386_vm4, %v13925_v10, %v10784_v47 }
 0x331   : > { %v5975_v38 = vsel %vm5738_vm6, %v5911_v36, %v10858_v24  ;;  %v5783_v63 = vsel %vm5738_vm6, %v5718_v40, %v10859_v13  ;;  %v6383_v53 = vpop.f32.mrb[35].mxu1 }
 0x332   : > { %v10862_v42 = vpop.permute.xlu0 %10861  ;;  %6514 = vmatprep.mubr.f32.mxu1 %v5975_v38  ;;  %v10669_v53 = vunpack.i.h.bf16 %v13583_v18 }
 0x333   : > { %v10872_v4 = vpop.permute.xlu1 %10871  ;;  %v10864_v20 = vunpack.i.h.bf16 %v10862_v42  ;;  %v10863_v14 = vunpack.i.l.bf16 %v10862_v42  ;;  %6515 = vmatmul.mubr.f32.gmra.mrb[88].mxu1 %v5783_v63  ;;  %v5849_v63 = vsel %vm3386_vm4, %v13750_v5, %v10783_v28  ;;  %v10668_v42 = vunpack.i.l.bf16 %v13583_v18 }
 0x334   : > { %v10874_v30 = vunpack.i.h.bf16 %v10872_v4  ;;  %v10873_v15 = vunpack.i.l.bf16 %v10872_v4 }
 0x335   : > { %v5912_v3 = vsel %vm5673_vm5, %v5848_v59, %v10863_v14  ;;  %v5719_v39 = vsel %vm5673_vm5, %v5654_v33, %v10864_v20  ;;  %v5850_v28 = vsel %vm3386_vm4, %v13757_v27, %v10668_v42  ;;  %v10814_v27 = vunpack.i.h.bf16 %v13844_v52 }
 0x336   : > { %v13917_v57 = vpop.permute.xlu0 %10881  ;;  %v5976_v21 = vsel %vm5738_vm6, %v5912_v3, %v10873_v15  ;;  %v5784_v45 = vsel %vm5738_vm6, %v5719_v39, %v10874_v30 }
 0x337   : > { %v10877_v6 = vpop.permute.xlu1 %10876  ;;  %v13923_v13 = vpop.f32.mrb[36].mxu1  ;;  %6519 = vmatprep.mubr.f32.mxu1 %v5976_v21 }
 0x338   : > { %15066 = vst [vmem:[#allocation6_spill] sm:$0xff] %v13923_v13  ;;  %v10879_v24 = vunpack.i.h.bf16 %v10877_v6  ;;  %v10878_v34 = vunpack.i.l.bf16 %v10877_v6  ;;  %v6388_v50 = vpop.f32.mrb[37].mxu1  ;;  %6520 = vmatmul.mubr.f32.gmra.mrb[90].mxu1 %v5784_v45  ;;  %v13941_v45 = vld [vmem:[#allocation2 + $0x1c8] sm:$0xff] }
 0x339   : > { %v5656_v6 = vsel %vm3386_vm4, %v13941_v45, %v10669_v53  ;;  %v10813_v53 = vunpack.i.l.bf16 %v13844_v52 }
 0x33a   : > { %v10887_v9 = vpop.permute.xlu0 %10886  ;;  %v5913_v4 = vsel %vm5673_vm5, %v5849_v63, %v10878_v34  ;;  %v5720_v20 = vsel %vm5673_vm5, %v5655_v32, %v10879_v24 }
 0x33b   : > { %v13927_v36 = vpop.permute.xlu1 %10896  ;;  %v10889_v40 = vunpack.i.h.bf16 %v10887_v9  ;;  %v10888_v38 = vunpack.i.l.bf16 %v10887_v9 }
 0x33d   : > { %v5977_v14 = vsel %vm5738_vm6, %v5913_v4, %v10888_v38  ;;  %v5785_v30 = vsel %vm5738_vm6, %v5720_v20, %v10889_v40  ;;  %v3539_v4 = vld [vmem:[#allocation2 + $0x1e0] sm:$0xff] }
 0x33e   : > { %v10892_v15 = vpop.permute.xlu0 %10891  ;;  %v13939_v59 = vpop.f32.mrb[38].mxu1  ;;  %6524 = vmatprep.mubr.f32.mxu1 %v5977_v14 }
 0x33f   : > { %15067 = vst [vmem:[#allocation7_spill] sm:$0xff] %v13939_v59  ;;  %v10902_v33 = vpop.permute.xlu1 %10901  ;;  %v10894_v3 = vunpack.i.h.bf16 %v10892_v15  ;;  %v10893_v39 = vunpack.i.l.bf16 %v10892_v15  ;;  %v6393_v21 = vpop.f32.mrb[39].mxu1  ;;  %6525 = vmatmul.mubr.f32.gmra.mrb[92].mxu1 %v5785_v30  ;;  %v13961_v30 = vld [vmem:[#allocation2 + $0x238] sm:$0xff] }
 0x340   : > { %v10904_v18 = vunpack.i.h.bf16 %v10902_v33  ;;  %v10903_v47 = vunpack.i.l.bf16 %v10902_v33  ;;  %v5851_v15 = vsel %vm3386_vm4, %v13961_v30, %v10813_v53  ;;  %v5657_v33 = vsel %vm3386_vm4, %v3539_v4, %v10814_v27 }
 0x341   : > { %v5914_v24 = vsel %vm5673_vm5, %v5850_v28, %v10893_v39  ;;  %v5721_v34 = vsel %vm5673_vm5, %v5656_v6, %v10894_v3  ;;  %v10699_v3 = vunpack.i.h.bf16 %v13623_v7  ;;  %v10698_v39 = vunpack.i.l.bf16 %v13623_v7 }
 0x342   : > { %v5978_v50 = vsel %vm5738_vm6, %v5914_v24, %v10903_v47  ;;  %v5786_v9 = vsel %vm5738_vm6, %v5721_v34, %v10904_v18  ;;  %v13957_v42 = vpop.permute.xlu0 %10906  ;;  %v10834_v28 = vunpack.i.h.bf16 %v13868_v44  ;;  %v10833_v6 = vunpack.i.l.bf16 %v13868_v44 }
 0x343   : > { %v13951_v40 = vpop.f32.mrb[40].mxu1  ;;  %6529 = vmatprep.mubr.f32.mxu1 %v5978_v50  ;;  %v5915_v24 = vsel %vm5673_vm5, %v5851_v15, %v10698_v39  ;;  %v5722_v34 = vsel %vm5673_vm5, %v5657_v33, %v10699_v3 }
 0x344   : > { %15068 = vst [vmem:[#allocation8_spill] sm:$0xff] %v13951_v40  ;;  %v6398_v38 = vpop.f32.mrb[41].mxu1  ;;  %6530 = vmatmul.mubr.f32.gmra.mrb[94].mxu1 %v5786_v9  ;;  %v5658_v33 = vsel %vm3386_vm4, %v13811_v8, %v10834_v28  ;;  %v13992_v28 = vld [vmem:[#allocation2 + $0x248] sm:$0xff] }
 0x34a   : > { %v13953_v63 = vpop.f32.mrb[42].mxu1 }
 0x34b   : > { %15069 = vst [vmem:[#allocation9_spill] sm:$0xff] %v13953_v63  ;;  %v6403_v32 = vpop.f32.mrb[43].mxu1 }
 0x34f   : > { %v13959_v20 = vpop.f32.mrb[44].mxu1 }
 0x350   : > { %15070 = vst [vmem:[#allocation10_spill] sm:$0xff] %v13959_v20  ;;  %v6408_v14 = vpop.f32.mrb[45].mxu1 }
 0x351   : > { %v13978_v14 = vld [vmem:[#allocation2 + $0x240] sm:$0xff] }
 0x352   : > { %v5852_v15 = vsel %vm3386_vm4, %v13978_v14, %v10833_v6 }
 0x353   : > { %v13968_v21 = vpop.permute.xlu1 %10921  ;;  %v10912_v52 = vpop.permute.xlu0 %10911 }
 0x354   : > { %v10914_v18 = vunpack.i.h.bf16 %v10912_v52  ;;  %v10913_v47 = vunpack.i.l.bf16 %v10912_v52 }
 0x356   : > { %v5979_v50 = vsel %vm5738_vm6, %v5915_v24, %v10913_v47  ;;  %v5787_v9 = vsel %vm5738_vm6, %v5722_v34, %v10914_v18  ;;  %v13976_v32 = vpop.f32.mrb[46].mxu1  ;;  %v10854_v34 = vunpack.i.h.bf16 %v13885_v55 }
 0x357   : > { %v10917_v38 = vpop.permute.xlu0 %10916  ;;  %15071 = vst [vmem:[#allocation11_spill] sm:$0xff] %v13976_v32  ;;  %6534 = vmatprep.mubr.f32.mxu1 %v5979_v50  ;;  %v10927_v7 = vpop.permute.xlu1 %10926  ;;  %v10853_v50 = vunpack.i.l.bf16 %v13885_v55  ;;  %v10869_v55 = vunpack.i.h.bf16 %v13895_v37  ;;  %v14038_v32 = vld [vmem:[#allocation2 + $0x260] sm:$0xff] }
 0x358   : > { %v10919_v27 = vunpack.i.h.bf16 %v10917_v38  ;;  %v10918_v53 = vunpack.i.l.bf16 %v10917_v38  ;;  %v6413_v4 = vpop.f32.mrb[47].mxu1  ;;  %6535 = vmatmul.mubr.f32.gmra.mrb[96].mxu1 %v5787_v9  ;;  %v10929_v44 = vunpack.i.h.bf16 %v10927_v7  ;;  %v10928_v52 = vunpack.i.l.bf16 %v10927_v7 }
 0x359   : > { %v5853_v4 = vsel %vm3386_vm4, %v13992_v28, %v10853_v50 }
 0x35a   : > { %v5916_v3 = vsel %vm5673_vm5, %v5852_v15, %v10918_v53  ;;  %v5723_v39 = vsel %vm5673_vm5, %v5658_v33, %v10919_v27 }
 0x35b   : > { %v13986_v18 = vpop.permute.xlu0 %10936  ;;  %v5980_v47 = vsel %vm5738_vm6, %v5916_v3, %v10928_v52  ;;  %v5788_v24 = vsel %vm5738_vm6, %v5723_v39, %v10929_v44  ;;  %v10932_v9 = vpop.permute.xlu1 %10931  ;;  %v5659_v44 = vsel %vm3386_vm4, %v13834_v35, %v10854_v34  ;;  %v10868_v52 = vunpack.i.l.bf16 %v13895_v37  ;;  %v14008_v35 = vld [vmem:[#allocation2 + $0x1f8] sm:$0xff] }
 0x35c   : > { %6539 = vmatprep.mubr.f32.mxu1 %v5980_v47  ;;  %v10934_v6 = vunpack.i.h.bf16 %v10932_v9  ;;  %v10933_v38 = vunpack.i.l.bf16 %v10932_v9 }
 0x35d   : > { %6540 = vmatmul.mubr.f32.gmra.mrb[98].mxu1 %v5788_v24 }
 0x35e   : > { %v5917_v15 = vsel %vm5673_vm5, %v5853_v4, %v10933_v38  ;;  %v5724_v33 = vsel %vm5673_vm5, %v5659_v44, %v10934_v6  ;;  %v5660_v6 = vsel %vm3386_vm4, %v14008_v35, %v10869_v55  ;;  %v10883_v4 = vunpack.i.l.bf16 %v13917_v57  ;;  %v14022_v55 = vld [vmem:[#allocation2 + $0x258] sm:$0xff] }
 0x35f   : > { %v10942_v8 = vpop.permute.xlu0 %10941  ;;  %v13994_v7 = vpop.permute.xlu1 %10951 }
 0x360   : > { %v10944_v27 = vunpack.i.h.bf16 %v10942_v8  ;;  %v10943_v53 = vunpack.i.l.bf16 %v10942_v8  ;;  %v14006_v8 = vld [vmem:[#allocation2 + $0x250] sm:$0xff] }
 0x361   : > { %v5854_v38 = vsel %vm3386_vm4, %v14006_v8, %v10868_v52 }
 0x362   : > { %v5981_v3 = vsel %vm5738_vm6, %v5917_v15, %v10943_v53  ;;  %v5789_v39 = vsel %vm5738_vm6, %v5724_v33, %v10944_v27 }
 0x363   : > { %v10947_v47 = vpop.permute.xlu0 %10946  ;;  %6544 = vmatprep.mubr.f32.mxu1 %v5981_v3  ;;  %v10884_v3 = vunpack.i.h.bf16 %v13917_v57 }
 0x364   : > { %v10957_v24 = vpop.permute.xlu1 %10956  ;;  %v10949_v9 = vunpack.i.h.bf16 %v10947_v47  ;;  %v10948_v50 = vunpack.i.l.bf16 %v10947_v47  ;;  %6545 = vmatmul.mubr.f32.gmra.mrb[100].mxu1 %v5789_v39 }
 0x365   : > { %v10959_v34 = vunpack.i.h.bf16 %v10957_v24  ;;  %v10958_v37 = vunpack.i.l.bf16 %v10957_v24 }
 0x366   : > { %v5918_v27 = vsel %vm5673_vm5, %v5854_v38, %v10948_v50  ;;  %v5725_v53 = vsel %vm5673_vm5, %v5660_v6, %v10949_v9  ;;  %v5855_v9 = vsel %vm3386_vm4, %v14022_v55, %v10883_v4  ;;  %v14028_v38 = vld [vmem:[#allocation2 + $0x200] sm:$0xff] }
 0x367   : > { %v14017_v44 = vpop.permute.xlu0 %10966  ;;  %v5982_v15 = vsel %vm5738_vm6, %v5918_v27, %v10958_v37  ;;  %v5790_v33 = vsel %vm5738_vm6, %v5725_v53, %v10959_v34  ;;  %v10898_v37 = vunpack.i.l.bf16 %v13927_v36  ;;  %v5661_v53 = vsel %vm3386_vm4, %v14028_v38, %v10884_v3 }
 0x368   : > { %v10962_v39 = vpop.permute.xlu1 %10961  ;;  %6549 = vmatprep.mubr.f32.mxu1 %v5982_v15  ;;  %v10899_v15 = vunpack.i.h.bf16 %v13927_v36 }
 0x369   : > { %v10964_v52 = vunpack.i.h.bf16 %v10962_v39  ;;  %v10963_v47 = vunpack.i.l.bf16 %v10962_v39  ;;  %6550 = vmatmul.mubr.f32.gmra.mrb[102].mxu1 %v5790_v33  ;;  %v5856_v36 = vsel %vm3386_vm4, %v14038_v32, %v10898_v37 }
 0x36a   : > { %v14024_v50 = vpop.f32.mrb[48].mxu1 }
 0x36b   : > { %v10972_v24 = vpop.permute.xlu0 %10971  ;;  %15072 = vst [vmem:[#allocation12_spill] sm:$0xff] %v14024_v50  ;;  %v6418_v27 = vpop.f32.mrb[49].mxu1  ;;  %v5919_v33 = vsel %vm5673_vm5, %v5855_v9, %v10963_v47  ;;  %v5726_v39 = vsel %vm5673_vm5, %v5661_v53, %v10964_v52  ;;  %v5662_v9 = vsel %vm3386_vm4, %v13695_v26, %v10899_v15  ;;  %v14054_v26 = vld [vmem:[#allocation2 + $0x268] sm:$0xff] }
 0x36c   : > { %v10982_v34 = vpop.permute.xlu1 %10981  ;;  %v10974_v6 = vunpack.i.h.bf16 %v10972_v24  ;;  %v10973_v57 = vunpack.i.l.bf16 %v10972_v24  ;;  %v10908_v24 = vunpack.i.l.bf16 %v13957_v42 }
 0x36d   : > { %v10984_v3 = vunpack.i.h.bf16 %v10982_v34  ;;  %v10983_v47 = vunpack.i.l.bf16 %v10982_v34 }
 0x36e   : > { %v5983_v50 = vsel %vm5738_vm6, %v5919_v33, %v10973_v57  ;;  %v5791_v4 = vsel %vm5738_vm6, %v5726_v39, %v10974_v6  ;;  %v10788_v6 = vunpack.i.l.bf16 %v13820_v60  ;;  %v10938_v33 = vunpack.i.l.bf16 %v13986_v18 }
 0x36f   : > { %v10977_v20 = vpop.permute.xlu0 %10976  ;;  %6554 = vmatprep.mubr.f32.mxu1 %v5983_v50  ;;  %v10909_v50 = vunpack.i.h.bf16 %v13957_v42  ;;  %v14047_v57 = vpop.f32.mrb[50].mxu1 }
 0x370   : > { %v10987_v27 = vpop.permute.xlu1 %10986  ;;  %v10979_v40 = vunpack.i.h.bf16 %v10977_v20  ;;  %v10978_v63 = vunpack.i.l.bf16 %v10977_v20  ;;  %6555 = vmatmul.mubr.f32.gmra.mrb[104].mxu1 %v5791_v4  ;;  %15073 = vst [vmem:[#allocation13_spill] sm:$0xff] %v14047_v57  ;;  %v6423_v37 = vpop.f32.mrb[51].mxu1 }
 0x371   : > { %v10988_v52 = vunpack.i.l.bf16 %v10987_v27  ;;  %v10989_v39 = vunpack.i.h.bf16 %v10987_v27  ;;  %v10939_v27 = vunpack.i.h.bf16 %v13986_v18  ;;  %v3547_v37 = vld [vmem:[#allocation2 + $0x230] sm:$0xff] }
 0x372   : > { %v5920_v53 = vsel %vm5673_vm5, %v5856_v36, %v10978_v63  ;;  %v5727_v20 = vsel %vm5673_vm5, %v5662_v9, %v10979_v40  ;;  %v5857_v63 = vsel %vm3386_vm4, %v14054_v26, %v10908_v24  ;;  %v10789_v40 = vunpack.i.h.bf16 %v13820_v60 }
 0x373   : > { %v10997_v4 = vpop.permute.xlu0 %10996  ;;  %v5984_v34 = vsel %vm5738_vm6, %v5920_v53, %v10983_v47  ;;  %v5792_v13 = vsel %vm5738_vm6, %v5727_v20, %v10984_v3  ;;  %v5921_v36 = vsel %vm5673_vm5, %v5857_v63, %v10988_v52  ;;  %v10143_v47 = vunpack.i.l.bf16 %v12422_v41  ;;  %v14067_v53 = vld [vmem:[#allocation2 + $0x270] sm:$0xff]  ;;  %v3805_v20 = vld [vmem:[#allocation2 + $0x288] sm:$0xff] }
 0x374   : > { %v14056_v15 = vpop.permute.xlu1 %10991  ;;  %v10999_v42 = vunpack.i.h.bf16 %v10997_v4  ;;  %v10998_v59 = vunpack.i.l.bf16 %v10997_v4  ;;  %6559 = vmatprep.mubr.f32.mxu1 %v5984_v34  ;;  %v5663_v9 = vsel %vm3386_vm4, %v13714_v1, %v10909_v50  ;;  %v10953_v24 = vunpack.i.l.bf16 %v13994_v7 }
 0x375   : > { %6560 = vmatmul.mubr.f32.gmra.mrb[106].mxu1 %v5792_v13  ;;  %v5728_v60 = vsel %vm5673_vm5, %v5663_v9, %v10989_v39  ;;  %v5858_v13 = vsel %vm3386_vm4, %v14067_v53, %v10788_v6  ;;  %v5859_v18 = vsel %vm3386_vm4, %v3805_v20, %v10938_v33  ;;  %v5664_v39 = vsel %vm3386_vm4, %v13750_v5, %v10789_v40 }
 0x376   : > { %v5985_v3 = vsel %vm5738_vm6, %v5921_v36, %v10998_v59  ;;  %v10818_v59 = vunpack.i.l.bf16 %v13856_v16  ;;  %v14075_v50 = vpop.f32.mrb[52].mxu1  ;;  %v5793_v63 = vsel %vm5738_vm6, %v5728_v60, %v10999_v42  ;;  %v5665_v6 = vsel %vm3386_vm4, %v3547_v37, %v10939_v27 }
 0x377   : > { %v11002_v4 = vpop.permute.xlu0 %11001  ;;  %6564 = vmatprep.mubr.f32.mxu1 %v5985_v3  ;;  %v6428_v25 = vpop.f32.mrb[53].mxu1  ;;  %v10954_v33 = vunpack.i.h.bf16 %v13994_v7  ;;  %v10819_v42 = vunpack.i.h.bf16 %v13856_v16  ;;  %v10838_v7 = vunpack.i.l.bf16 %v13875_v62 }
 0x378   : > { %v11012_v52 = vpop.permute.xlu1 %11011  ;;  %v11004_v34 = vunpack.i.h.bf16 %v11002_v4  ;;  %v11003_v1 = vunpack.i.l.bf16 %v11002_v4  ;;  %v5923_v20 = vsel %vm5673_vm5, %v5859_v18, %v10818_v59  ;;  %v14085_v4 = vld [vmem:[#allocation2 + $0x290] sm:$0xff]  ;;  %v10839_v18 = vunpack.i.h.bf16 %v13875_v62 }
 0x379   : > { %v11014_v36 = vunpack.i.h.bf16 %v11012_v52  ;;  %v11013_v57 = vunpack.i.l.bf16 %v11012_v52  ;;  %6565 = vmatmul.mubr.f32.gmra.mrb[108].mxu1 %v5793_v63  ;;  %v5860_v5 = vsel %vm3386_vm4, %v14085_v4, %v10953_v24  ;;  %v5987_v27 = vsel %vm5738_vm6, %v5923_v20, %v10143_v47  ;;  %v14110_v20 = vld [vmem:[#allocation2 + $0x298] sm:$0xff] }
 0x37a   : > { %v5922_v3 = vsel %vm5673_vm5, %v5858_v13, %v11003_v1  ;;  %v5729_v9 = vsel %vm5673_vm5, %v5664_v39, %v11004_v34  ;;  %v5730_v37 = vsel %vm5673_vm5, %v5665_v6, %v10819_v42  ;;  %v10144_v13 = vunpack.i.h.bf16 %v12422_v41 }
 0x37b   : > { %v11007_v60 = vpop.permute.xlu0 %11006  ;;  %v5986_v25 = vsel %vm5738_vm6, %v5922_v3, %v11013_v57  ;;  %v5794_v52 = vsel %vm5738_vm6, %v5729_v9, %v11014_v36  ;;  %v5924_v16 = vsel %vm5673_vm5, %v5860_v5, %v10838_v7  ;;  %v5666_v57 = vsel %vm3386_vm4, %v13961_v30, %v10954_v33 }
 0x37c   : > { %v11017_v40 = vpop.permute.xlu1 %11016  ;;  %6569 = vmatprep.mubr.f32.mxu1 %v5986_v25  ;;  %v10923_v24 = vunpack.i.l.bf16 %v13968_v21  ;;  %v10968_v59 = vunpack.i.l.bf16 %v14017_v44  ;;  %v10993_v47 = vunpack.i.l.bf16 %v14056_v15  ;;  %v5795_v41 = vsel %vm5738_vm6, %v5730_v37, %v10144_v13 }
 0x37d   : > { %6570 = vmatmul.mubr.f32.gmra.mrb[110].mxu1 %v5794_v52  ;;  %v11018_v39 = vunpack.i.l.bf16 %v11017_v40  ;;  %v11008_v6 = vunpack.i.l.bf16 %v11007_v60  ;;  %v5731_v62 = vsel %vm5673_vm5, %v5666_v57, %v10839_v18  ;;  %v10924_v33 = vunpack.i.h.bf16 %v13968_v21 }
 0x37e   : > { %6574 = vmatprep.mubr.f32.mxu1 %v5987_v27  ;;  %v14102_v1 = vpop.f32.mrb[54].mxu1  ;;  %v5988_v30 = vsel %vm5738_vm6, %v5924_v16, %v10923_v24  ;;  %v10969_v3 = vunpack.i.h.bf16 %v14017_v44  ;;  %v10994_v42 = vunpack.i.h.bf16 %v14056_v15  ;;  %v11019_v25 = vunpack.i.h.bf16 %v11017_v40  ;;  %v14117_v16 = vld [vmem:[#allocation2 + $0x2a0] sm:$0xff] }
 0x37f   : > { %v11022_v34 = vpop.permute.xlu0 %11021  ;;  %v6433_v36 = vpop.f32.mrb[55].mxu1  ;;  %v5861_v5 = vsel %vm3386_vm4, %v14110_v20, %v10968_v59  ;;  %v11009_v7 = vunpack.i.h.bf16 %v11007_v60  ;;  %v5796_v13 = vsel %vm5738_vm6, %v5731_v62, %v10924_v33  ;;  %v5862_v40 = vsel %vm3386_vm4, %v14117_v16, %v11018_v39 }
 0x380   : > { %v11027_v63 = vpop.permute.xlu1 %11026  ;;  %v11023_v9 = vunpack.i.l.bf16 %v11022_v34  ;;  %v11024_v27 = vunpack.i.h.bf16 %v11022_v34  ;;  %v5925_v21 = vsel %vm5673_vm5, %v5861_v5, %v10993_v47  ;;  %v5667_v60 = vsel %vm3386_vm4, %v13978_v14, %v10969_v3  ;;  %v14132_v5 = vld [vmem:[#allocation2 + $0x2a8] sm:$0xff] }
 0x381   : > { %6575 = vmatmul.mubr.f32.gmra.mrb[112].mxu1 %v5795_v41  ;;  %v11028_v44 = vunpack.i.l.bf16 %v11027_v63  ;;  %v5989_v15 = vsel %vm5738_vm6, %v5925_v21, %v11008_v6  ;;  %v5732_v36 = vsel %vm5673_vm5, %v5667_v60, %v10994_v42  ;;  %v5668_v41 = vsel %vm3386_vm4, %v13992_v28, %v11019_v25 }
 0x382   : > { %6579 = vmatprep.mubr.f32.mxu1 %v5988_v30  ;;  %v5926_v59 = vsel %vm5673_vm5, %v5862_v40, %v11023_v9  ;;  %v11029_v30 = vunpack.i.h.bf16 %v11027_v63  ;;  %v5797_v33 = vsel %vm5738_vm6, %v5732_v36, %v11009_v7  ;;  %v5733_v39 = vsel %vm5673_vm5, %v5668_v41, %v11024_v27 }
 0x383   : > { %v11032_v52 = vpop.permute.xlu0 %11031  ;;  %v5990_v9 = vsel %vm5738_vm6, %v5926_v59, %v11028_v44  ;;  %v14143_v59 = vld [vmem:[#allocation2 + $0x2b0] sm:$0xff] }
 0x384   : > { %v11037_v37 = vpop.permute.xlu1 %11036  ;;  %v11033_v57 = vunpack.i.l.bf16 %v11032_v52  ;;  %v14119_v18 = vpop.f32.mrb[56].mxu1  ;;  %v11034_v34 = vunpack.i.h.bf16 %v11032_v52  ;;  %v5798_v60 = vsel %vm5738_vm6, %v5733_v39, %v11029_v30 }
 0x385   : > { %6580 = vmatmul.mubr.f32.gmra.mrb[114].mxu1 %v5796_v13  ;;  %v6438_v24 = vpop.f32.mrb[57].mxu1  ;;  %v11038_v62 = vunpack.i.l.bf16 %v11037_v37  ;;  %v11039_v52 = vunpack.i.h.bf16 %v11037_v37 }
 0x386   : > { %6584 = vmatprep.mubr.f32.mxu1 %v5989_v15  ;;  %v5863_v42 = vsel %vm3386_vm4, %v14132_v5, %v11033_v57  ;;  %v5669_v7 = vsel %vm3386_vm4, %v14006_v8, %v11034_v34 }
 0x387   : > { %v11042_v47 = vpop.permute.xlu0 %11041  ;;  %v5927_v44 = vsel %vm5673_vm5, %v5863_v42, %v11038_v62  ;;  %v5734_v34 = vsel %vm5673_vm5, %v5669_v7, %v11039_v52  ;;  %v14157_v7 = vld [vmem:[#allocation2 + $0x2b8] sm:$0xff] }
 0x388   : > { %v11047_v6 = vpop.permute.xlu1 %11046  ;;  %v11043_v3 = vunpack.i.l.bf16 %v11042_v47  ;;  %v11044_v25 = vunpack.i.h.bf16 %v11042_v47 }
 0x389   : > { %v11048_v13 = vunpack.i.l.bf16 %v11047_v6  ;;  %6585 = vmatmul.mubr.f32.gmra.mrb[116].mxu1 %v5797_v33  ;;  %v11049_v27 = vunpack.i.h.bf16 %v11047_v6 }
 0x38a   : > { %6589 = vmatprep.mubr.f32.mxu1 %v5990_v9  ;;  %v14137_v21 = vpop.f32.mrb[58].mxu1  ;;  %v5991_v47 = vsel %vm5738_vm6, %v5927_v44, %v11043_v3  ;;  %v5799_v30 = vsel %vm5738_vm6, %v5734_v34, %v11044_v25 }
 0x38b   : > { %v11052_v63 = vpop.permute.xlu0 %11051  ;;  %v6443_v24 = vpop.f32.mrb[59].mxu1  ;;  %v5864_v36 = vsel %vm3386_vm4, %v14143_v59, %v11048_v13  ;;  %v5670_v3 = vsel %vm3386_vm4, %v14022_v55, %v11049_v27 }
 0x38c   : > { %v11057_v15 = vpop.permute.xlu1 %11056  ;;  %v11053_v40 = vunpack.i.l.bf16 %v11052_v63  ;;  %v11054_v37 = vunpack.i.h.bf16 %v11052_v63 }
 0x38d   : > { %v11058_v57 = vunpack.i.l.bf16 %v11057_v15  ;;  %6590 = vmatmul.mubr.f32.gmra.mrb[118].mxu1 %v5798_v60  ;;  %v11059_v33 = vunpack.i.h.bf16 %v11057_v15 }
 0x38e   : > { %6594 = vmatprep.mubr.f32.mxu1 %v5991_v47  ;;  %v5928_v41 = vsel %vm5673_vm5, %v5864_v36, %v11053_v40  ;;  %v5735_v52 = vsel %vm5673_vm5, %v5670_v3, %v11054_v37 }
 0x38f   : > { %v11067_v6 = vpop.permute.xlu0 %11066  ;;  %v14151_v42 = vpop.f32.mrb[60].mxu1  ;;  %v5992_v13 = vsel %vm5738_vm6, %v5928_v41, %v11058_v57  ;;  %v5800_v27 = vsel %vm5738_vm6, %v5735_v52, %v11059_v33 }
 0x390   : > { %v11062_v62 = vpop.permute.xlu1 %11061  ;;  %v11069_v39 = vunpack.i.h.bf16 %v11067_v6  ;;  %v11068_v9 = vunpack.i.l.bf16 %v11067_v6  ;;  %v6448_v24 = vpop.f32.mrb[61].mxu1 }
 0x391   : > { %v11063_v63 = vunpack.i.l.bf16 %v11062_v62  ;;  %6595 = vmatmul.mubr.f32.gmra.mrb[120].mxu1 %v5799_v30  ;;  %v11064_v15 = vunpack.i.h.bf16 %v11062_v62 }
 0x392   : > { %6599 = vmatprep.mubr.f32.mxu1 %v5992_v13  ;;  %v5865_v25 = vsel %vm3386_vm4, %v14157_v7, %v11068_v9  ;;  %v5671_v36 = vsel %vm3386_vm4, %v14038_v32, %v11069_v39  ;;  %v14170_v39 = vld [vmem:[#allocation2 + $0x2c0] sm:$0xff] }
 0x393   : > { %v11072_v40 = vpop.permute.xlu0 %11071  ;;  %v5929_v37 = vsel %vm5673_vm5, %v5865_v25, %v11063_v63  ;;  %v5736_v62 = vsel %vm5673_vm5, %v5671_v36, %v11064_v15  ;;  %v14180_v36 = vld [vmem:[#allocation3 + $0x10] sm:$0xff] }
 0x394   : > { %v11077_v60 = vpop.permute.xlu1 %11076  ;;  %v11074_v44 = vunpack.i.h.bf16 %v11072_v40  ;;  %v11073_v47 = vunpack.i.l.bf16 %v11072_v40 }
 0x395   : > { %v11079_v34 = vunpack.i.h.bf16 %v11077_v60  ;;  %v11078_v57 = vunpack.i.l.bf16 %v11077_v60  ;;  %6600 = vmatmul.mubr.f32.gmra.mrb[122].mxu1 %v5800_v27 }
 0x396   : > { %v5993_v41 = vsel %vm5738_vm6, %v5929_v37, %v11073_v47  ;;  %v14166_v30 = vpop.f32.mrb[62].mxu1  ;;  %v5801_v13 = vsel %vm5738_vm6, %v5736_v62, %v11074_v44  ;;  %v4009_v44 = vld [vmem:[#allocation2 + $0xb0] sm:$0xff]  ;;  %v7252_v37 = vld [vmem:[#allocation3 + $0x60] sm:$0xff] }
 0x397   : > { %v11082_v6 = vpop.permute.xlu0 %11081  ;;  %6604 = vmatprep.mubr.f32.mxu1 %v5993_v41  ;;  %v6453_v33 = vpop.f32.mrb[63].mxu1  ;;  %v5866_v63 = vsel %vm3386_vm4, %v14170_v39, %v11078_v57  ;;  %v5672_v25 = vsel %vm3386_vm4, %v14054_v26, %v11079_v34  ;;  %v11090_v57 = vpack.i.bf16 %v14180_v36, %v7252_v37  ;;  %v4010_v41 = vld [vmem:[#allocation2 + $0xb8] sm:$0xff]  ;;  %v4011_v34 = vld [vmem:[#allocation2 + $0xc0] sm:$0xff]  ;;  %v4013_v62 = vld [vmem:[#allocation2 + $0xd0] sm:$0xff] }
 0x398   : > { %v11087_v9 = vpop.permute.xlu1 %11086  ;;  %v11084_v3 = vunpack.i.h.bf16 %v11082_v6  ;;  %v11083_v24 = vunpack.i.l.bf16 %v11082_v6  ;;  %v4012_v6 = vld [vmem:[#allocation2 + $0xc8] sm:$0xff]  ;;  %v4021_v37 = vld [vmem:[#allocation2 + $0x120] sm:$0xff] }
 0x399   : > { %v11089_v52 = vunpack.i.h.bf16 %v11087_v9  ;;  %v11088_v40 = vunpack.i.l.bf16 %v11087_v9  ;;  %6605 = vmatmul.mubr.f32.gmra.mrb[124].mxu1 %v5801_v13  ;;  %11091 = vrot.lane.b32.xlu1 %v11090_v57, %s11353_s28  ;;  %v4014_v9 = vld [vmem:[#allocation2 + $0xd8] sm:$0xff] }
 0x39a   : > { %v5930_v60 = vsel %vm5673_vm5, %v5866_v63, %v11083_v24  ;;  %v5737_v15 = vsel %vm5673_vm5, %v5672_v25, %v11084_v3  ;;  %v4015_v3 = vld [vmem:[#allocation2 + $0xe0] sm:$0xff]  ;;  %v4016_v24 = vld [vmem:[#allocation2 + $0xe8] sm:$0xff] }
 0x39b   : > { %v5994_v47 = vsel %vm5738_vm6, %v5930_v60, %v11088_v40  ;;  %v5802_v27 = vsel %vm5738_vm6, %v5737_v15, %v11089_v52  ;;  %v14193_v52 = vld [vmem:[#allocation3 + $0x20] sm:$0xff]  ;;  %v7238_v40 = vld [vmem:[#allocation3 + $0x58] sm:$0xff]  ;;  %v4018_v60 = vld [vmem:[#allocation2 + $0x108] sm:$0xff] }
 0x39c   : > { %6609 = vmatprep.mubr.f32.mxu1 %v5994_v47  ;;  %v4017_v63 = vld [vmem:[#allocation2 + $0x100] sm:$0xff]  ;;  %v11095_v25 = vpack.i.bf16 %v14193_v52, %v7238_v40  ;;  %v4019_v15 = vld [vmem:[#allocation2 + $0x110] sm:$0xff] }
 0x39d   : > { %6610 = vmatmul.mubr.f32.gmra.mrb[126].mxu1 %v5802_v27  ;;  %v4027_v40 = vld [vmem:[#allocation2 + $0x160] sm:$0xff] }
 0x39e   : > { %9804 = vmatprep.mubr.msk.f32.mxu1 %vm3386_vm4, %v4009_v44  ;;  %11096 = vrot.lane.b32.xlu1 %v11095_v25, %s11352_s27  ;;  %v4020_v44 = vld [vmem:[#allocation2 + $0x118] sm:$0xff]  ;;  %v4028_v25 = vld [vmem:[#allocation2 + $0x168] sm:$0xff] }
 0x3a1   : > { %9805 = vmatmul.mubr.msk.f32.vlgmr.msra.gmra.mrb[128].mxu1 %vm3386_vm4, %v4010_v41  ;;  %v4022_v41 = vld [vmem:[#allocation2 + $0x128] sm:$0xff] }
 0x3a2   : > { %9807 = vmatprep.mubr.msk.f32.mxu1 %vm3386_vm4, %v4011_v34 }
 0x3a5   : > { %9808 = vmatmul.mubr.msk.f32.gmra.mrb[130].mxu1 %vm3386_vm4, %v4012_v6  ;;  %v4023_v6 = vld [vmem:[#allocation2 + $0x130] sm:$0xff] }
 0x3a6   : > { %9810 = vmatprep.mubr.msk.f32.mxu1 %vm3386_vm4, %v4013_v62  ;;  %v4024_v62 = vld [vmem:[#allocation2 + $0x138] sm:$0xff] }
 0x3a9   : > { %9811 = vmatmul.mubr.msk.f32.gmra.mrb[132].mxu1 %vm3386_vm4, %v4014_v9  ;;  %v4025_v9 = vld [vmem:[#allocation2 + $0x150] sm:$0xff] }
 0x3aa   : > { %9813 = vmatprep.mubr.msk.f32.mxu1 %vm3386_vm4, %v4015_v3  ;;  %v14191_v33 = vpop.f32.mrb[64].mxu1 }
 0x3ab   : > { %v6458_v13 = vpop.f32.mrb[65].mxu1 }
 0x3ac   : > { %v4026_v13 = vld [vmem:[#allocation2 + $0x158] sm:$0xff] }
 0x3ad   : > { %9814 = vmatmul.mubr.msk.f32.gmra.mrb[134].mxu1 %vm3386_vm4, %v4016_v24 }
 0x3ae   : > { %9816 = vmatprep.mubr.msk.f32.mxu1 %vm3386_vm4, %v4017_v63 }
 0x3af   : > { %v14200_v47 = vpop.f32.mrb[66].mxu1 }
 0x3b0   : > { %v6463_v27 = vpop.f32.mrb[67].mxu1 }
 0x3b1   : > { %9817 = vmatmul.mubr.msk.f32.gmra.mrb[136].mxu1 %vm3386_vm4, %v4018_v60  ;;  %v4030_v27 = vld [vmem:[#allocation2 + $0x178] sm:$0xff] }
 0x3b2   : > { %9819 = vmatprep.mubr.msk.f32.mxu1 %vm3386_vm4, %v4019_v15  ;;  %v4029_v15 = vld [vmem:[#allocation2 + $0x170] sm:$0xff] }
 0x3b5   : > { %9820 = vmatmul.mubr.msk.f32.gmra.mrb[138].mxu1 %vm3386_vm4, %v4020_v44  ;;  %v4031_v44 = vld [vmem:[#allocation2 + $0x180] sm:$0xff] }
 0x3b6   : > { %9822 = vmatprep.mubr.msk.f32.mxu1 %vm3386_vm4, %v4021_v37  ;;  %v4032_v37 = vld [vmem:[#allocation2 + $0x188] sm:$0xff] }
 0x3b7   : > { %v14205_v57 = vpop.f32.mrb[68].mxu1 }
 0x3b8   : > { %v6468_v34 = vpop.f32.mrb[69].mxu1 }
 0x3b9   : > { %9823 = vmatmul.mubr.msk.f32.gmra.mrb[140].mxu1 %vm3386_vm4, %v4022_v41 }
 0x3ba   : > { %9825 = vmatprep.mubr.msk.f32.mxu1 %vm3386_vm4, %v4023_v6  ;;  %v4033_v6 = vld [vmem:[#allocation2 + $0x1a0] sm:$0xff] }
 0x3bd   : > { %9826 = vmatmul.mubr.msk.f32.gmra.mrb[142].mxu1 %vm3386_vm4, %v4024_v62 }
 0x3be   : > { %9828 = vmatprep.mubr.msk.f32.mxu1 %vm3386_vm4, %v4025_v9 }
 0x3bf   : > { %v14211_v3 = vpop.f32.mrb[70].mxu1 }
 0x3c0   : > { %v6473_v24 = vpop.f32.mrb[71].mxu1 }
 0x3c1   : > { %9829 = vmatmul.mubr.msk.f32.gmra.mrb[144].mxu1 %vm3386_vm4, %v4026_v13 }
 0x3c2   : > { %9831 = vmatprep.mubr.msk.f32.mxu1 %vm3386_vm4, %v4027_v40  ;;  %v4039_v40 = vld [vmem:[#allocation2 + $0x1d0] sm:$0xff] }
 0x3c4   : > { %v14215_v63 = vpop.f32.mrb[72].mxu1 }
 0x3c5   : > { %v6478_v60 = vpop.f32.mrb[73].mxu1  ;;  %9832 = vmatmul.mubr.msk.f32.gmra.mrb[146].mxu1 %vm3386_vm4, %v4028_v25  ;;  %v4040_v25 = vld [vmem:[#allocation2 + $0x1d8] sm:$0xff] }
 0x3c6   : > { %9834 = vmatprep.mubr.msk.f32.mxu1 %vm3386_vm4, %v4029_v15  ;;  %v4048_v60 = vld [vmem:[#allocation2 + $0x228] sm:$0xff] }
 0x3c9   : > { %9835 = vmatmul.mubr.msk.f32.gmra.mrb[148].mxu1 %vm3386_vm4, %v4030_v27 }
 0x3ca   : > { %9837 = vmatprep.mubr.msk.f32.mxu1 %vm3386_vm4, %v4031_v44 }
 0x3cb   : > { %v14221_v41 = vpop.f32.mrb[74].mxu1 }
 0x3cc   : > { %v6483_v34 = vpop.f32.mrb[75].mxu1 }
 0x3cd   : > { %9838 = vmatmul.mubr.msk.f32.gmra.mrb[150].mxu1 %vm3386_vm4, %v4032_v37  ;;  %v4069_v34 = vld [vmem:[#allocation2 + $0x300] sm:$0xff] }
 0x3ce   : > { %9840 = vmatprep.mubr.msk.f32.mxu1 %vm3386_vm4, %v4033_v6  ;;  %v4070_v6 = vld [vmem:[#allocation2 + $0x308] sm:$0xff] }
 0x3d0   : > { %v14225_v62 = vpop.f32.mrb[76].mxu1 }
 0x3d1   : > { %v6488_v9 = vpop.f32.mrb[77].mxu1  ;;  %9841 = vmatmul.mubr.msk.f32.gmra.mrb[152].mxu1 %vm3386_vm4, %v13877_v2  ;;  %v4041_v2 = vld [vmem:[#allocation2 + $0x1f0] sm:$0xff] }
 0x3d2   : > { %9843 = vmatprep.mubr.msk.f32.mxu1 %vm3386_vm4, %v13893_v54  ;;  %v4044_v54 = vld [vmem:[#allocation2 + $0x208] sm:$0xff]  ;;  %v4071_v9 = vld [vmem:[#allocation2 + $0x310] sm:$0xff] }
 0x3d5   : > { %9844 = vmatmul.mubr.msk.f32.gmra.mrb[154].mxu1 %vm3386_vm4, %v13909_v49  ;;  %v4045_v49 = vld [vmem:[#allocation2 + $0x210] sm:$0xff] }
 0x3d6   : > { %9846 = vmatprep.mubr.msk.f32.mxu1 %vm3386_vm4, %v13925_v10  ;;  %v4046_v10 = vld [vmem:[#allocation2 + $0x218] sm:$0xff] }
 0x3d7   : > { %v14235_v24 = vpop.f32.mrb[78].mxu1 }
 0x3d8   : > { %v6493_v13 = vpop.f32.mrb[79].mxu1 }
 0x3d9   : > { %9847 = vmatmul.mubr.msk.f32.gmra.mrb[156].mxu1 %vm3386_vm4, %v13941_v45  ;;  %v4047_v45 = vld [vmem:[#allocation2 + $0x220] sm:$0xff] }
 0x3da   : > { %9849 = vmatprep.mubr.msk.f32.mxu1 %vm3386_vm4, %v4039_v40 }
 0x3dd   : > { %9850 = vmatmul.mubr.msk.f32.gmra.mrb[158].mxu1 %vm3386_vm4, %v4040_v25  ;;  %v4072_v25 = vld [vmem:[#allocation2 + $0x318] sm:$0xff] }
 0x3de   : > { %9852 = vmatprep.mubr.msk.f32.mxu1 %vm3386_vm4, %v4041_v2  ;;  %v14304_v2 = vld [vmem:[#allocation3 + $0xc0] sm:$0xff] }
 0x3e1   : > { %9853 = vmatmul.mubr.msk.f32.gmra.mrb[160].mxu1 %vm3386_vm4, %v14008_v35 }
 0x3e2   : > { %9855 = vmatprep.mubr.msk.f32.mxu1 %vm3386_vm4, %v14028_v38 }
 0x3e5   : > { %9856 = vmatmul.mubr.msk.f32.gmra.mrb[162].mxu1 %vm3386_vm4, %v4044_v54  ;;  %v7281_v54 = vld [vmem:[#allocation3 + $0xf8] sm:$0xff] }
 0x3e6   : > { %9858 = vmatprep.mubr.msk.f32.mxu1 %vm3386_vm4, %v4045_v49  ;;  %v11100_v49 = vpack.i.bf16 %v14304_v2, %v7281_v54  ;;  %v7799_v54 = vld [vmem:[%s14332_s22 + $0x88] sm:$0xff] }
 0x3e8   : > { %11101 = vrot.lane.b32.xlu0 %v11100_v49, %s11354_s29  ;;  %v7782_v49 = vld [vmem:[%s14332_s22] sm:$0xff] }
 0x3e9   : > { %9859 = vmatmul.mubr.msk.f32.gmra.mrb[164].mxu1 %vm3386_vm4, %v4046_v10 }
 0x3ea   : > { %9861 = vmatprep.mubr.msk.f32.mxu1 %vm3386_vm4, %v4047_v45  ;;  %v14250_v15 = vpop.f32.mrb[80].mxu1 }
 0x3eb   : > { %v6498_v27 = vpop.f32.mrb[81].mxu1 }
 0x3ed   : > { %9862 = vmatmul.mubr.msk.f32.gmra.mrb[166].mxu1 %vm3386_vm4, %v4048_v60 }
 0x3ee   : > { %9864 = vmatprep.mubr.msk.f32.mxu1 %vm3386_vm4, %v13978_v14  ;;  %v4056_v14 = vld [vmem:[#allocation2 + $0x278] sm:$0xff] }
 0x3ef   : > { %v14255_v35 = vpop.f32.mrb[82].mxu1 }
 0x3f0   : > { %v6503_v38 = vpop.f32.mrb[83].mxu1 }
 0x3f1   : > { %9865 = vmatmul.mubr.msk.f32.gmra.mrb[168].mxu1 %vm3386_vm4, %v13992_v28 }
 0x3f2   : > { %9867 = vmatprep.mubr.msk.f32.mxu1 %vm3386_vm4, %v14006_v8 }
 0x3f5   : > { %9868 = vmatmul.mubr.msk.f32.gmra.mrb[170].mxu1 %vm3386_vm4, %v14022_v55 }
 0x3f6   : > { %9870 = vmatprep.mubr.msk.f32.mxu1 %vm3386_vm4, %v14038_v32  ;;  %v14265_v44 = vpop.f32.mrb[84].mxu1 }
 0x3f7   : > { %v6508_v37 = vpop.f32.mrb[85].mxu1 }
 0x3f9   : > { %9871 = vmatmul.mubr.msk.f32.gmra.mrb[172].mxu1 %vm3386_vm4, %v14054_v26  ;;  %v4064_v26 = vld [vmem:[#allocation2 + $0x2c8] sm:$0xff] }
 0x3fa   : > { %9873 = vmatprep.mubr.msk.f32.mxu1 %vm3386_vm4, %v14067_v53  ;;  %v4065_v53 = vld [vmem:[#allocation2 + $0x2e0] sm:$0xff] }
 0x3fd   : > { %9874 = vmatmul.mubr.msk.f32.gmra.mrb[174].mxu1 %vm3386_vm4, %v4056_v14 }
 0x3fe   : > { %9876 = vmatprep.mubr.msk.f32.mxu1 %vm3386_vm4, %v14085_v4 }
 0x3ff   : > { %v14274_v28 = vpop.f32.mrb[86].mxu1 }
 0x400   : > { %v6513_v8 = vpop.f32.mrb[87].mxu1 }
 0x401   : > { %9877 = vmatmul.mubr.msk.f32.gmra.mrb[176].mxu1 %vm3386_vm4, %v14110_v20 }
 0x402   : > { %9879 = vmatprep.mubr.msk.f32.mxu1 %vm3386_vm4, %v14117_v16  ;;  %v4066_v16 = vld [vmem:[#allocation2 + $0x2e8] sm:$0xff] }
 0x405   : > { %9880 = vmatmul.mubr.msk.f32.gmra.mrb[178].mxu1 %vm3386_vm4, %v14132_v5  ;;  %v4067_v5 = vld [vmem:[#allocation2 + $0x2f0] sm:$0xff] }
 0x406   : > { %9882 = vmatprep.mubr.msk.f32.mxu1 %vm3386_vm4, %v14143_v59  ;;  %v14284_v32 = vpop.f32.mrb[88].mxu1  ;;  %v4068_v59 = vld [vmem:[#allocation2 + $0x2f8] sm:$0xff] }
 0x407   : > { %v6518_v55 = vpop.f32.mrb[89].mxu1 }
 0x409   : > { %9883 = vmatmul.mubr.msk.f32.gmra.mrb[180].mxu1 %vm3386_vm4, %v14157_v7 }
 0x40a   : > { %9885 = vmatprep.mubr.msk.f32.mxu1 %vm3386_vm4, %v14170_v39 }
 0x40b   : > { %v14290_v4 = vpop.f32.mrb[90].mxu1 }
 0x40c   : > { %v6523_v20 = vpop.f32.mrb[91].mxu1 }
 0x40d   : > { %9886 = vmatmul.mubr.msk.f32.gmra.mrb[182].mxu1 %vm3386_vm4, %v4064_v26 }
 0x40e   : > { %9888 = vmatprep.mubr.msk.f32.mxu1 %vm3386_vm4, %v4065_v53 }
 0x411   : > { %9889 = vmatmul.mubr.msk.f32.gmra.mrb[184].mxu1 %vm3386_vm4, %v4066_v16 }
 0x412   : > { %9891 = vmatprep.mubr.msk.f32.mxu1 %vm3386_vm4, %v4067_v5  ;;  %v14296_v7 = vpop.f32.mrb[92].mxu1 }
 0x413   : > { %v6528_v39 = vpop.f32.mrb[93].mxu1 }
 0x415   : > { %9892 = vmatmul.mubr.msk.f32.gmra.mrb[186].mxu1 %vm3386_vm4, %v4068_v59 }
 0x416   : > { %9894 = vmatprep.mubr.msk.f32.mxu1 %vm3386_vm4, %v4069_v34 }
 0x417   : > { %v14300_v13 = vpop.f32.mrb[94].mxu1 }
 0x418   : > { %v6533_v40 = vpop.f32.mrb[95].mxu1 }
 0x419   : > { %9895 = vmatmul.mubr.msk.f32.gmra.mrb[188].mxu1 %vm3386_vm4, %v4070_v6 }
 0x41a   : > { %9897 = vmatprep.mubr.msk.f32.mxu1 %vm3386_vm4, %v4071_v9 }
 0x41d   : > { %9898 = vmatmul.mubr.msk.f32.gmra.mrb[190].mxu1 %vm3386_vm4, %v4072_v25  ;;  %v7798_v25 = vld [vmem:[%s14332_s22 + $0x80] sm:$0xff] }
 0x42b   : > { %v14309_v10 = vpop.f32.mrb[96].mxu1 }
 0x42c   : > { %v6538_v45 = vpop.f32.mrb[97].mxu1 }
 0x42d   : > { %v10023_v45 = vpack.c.bf16 %v7799_v54, %v7798_v25 }
 0x42f   : > { %10024 = vmatprep.subr.bf16.mxu1 %v10023_v45 }
 0x430   : > { %v14311_v60 = vpop.f32.mrb[98].mxu1 }
 0x431   : > { %v6543_v27 = vpop.f32.mrb[99].mxu1 }
 0x432   : > { %v7783_v27 = vld [vmem:[%s14332_s22 + $0x8] sm:$0xff] }
 0x437   : > { %v14313_v38 = vpop.f32.mrb[100].mxu1 }
 0x438   : > { %v6548_v37 = vpop.f32.mrb[101].mxu1 }
 0x43c   : > { %v14315_v14 = vpop.f32.mrb[102].mxu1 }
 0x43d   : > { %v6553_v8 = vpop.f32.mrb[103].mxu1 }
 0x43e   : > { %v10025_v8 = vpack.c.bf16 %v7783_v27, %v7782_v49 }
 0x440   : > { %10026 = vmatpush3.bf16.msra.mxu1 %v10025_v8  ;;  %v14360_v8 = vld [vmem:[%s526_s25] ss:$0 sm:$0xff]  ;;  %s550_s25 = scalar_lea.vmem %s15058_s10, %s15107_s18 }
 0x443   : > { %v14317_v55 = vpop.f32.mrb[104].mxu1 }
 0x444   : > { %v6558_v26 = vpop.f32.mrb[105].mxu1 }
 0x448   : > { %v14319_v53 = vpop.f32.mrb[106].mxu1 }
 0x449   : > { %v6563_v20 = vpop.f32.mrb[107].mxu1 }
 0x44c   : > { %v14321_v16 = vpop.f32.mrb[108].mxu1 }
 0x44d   : > { %15074 = vst [vmem:[#allocation14_spill] sm:$0xff] %v14321_v16  ;;  %v6568_v5 = vpop.f32.mrb[109].mxu1  ;;  %v7784_v16 = vld [vmem:[%s14332_s22 + $0x10] sm:$0xff] }
 0x450   : > { %v14323_v59 = vpop.f32.mrb[110].mxu1 }
 0x451   : > { %15075 = vst [vmem:[#allocation15_spill] sm:$0xff] %v14323_v59  ;;  %v6573_v34 = vpop.f32.mrb[111].mxu1  ;;  %v7785_v59 = vld [vmem:[%s14332_s22 + $0x18] sm:$0xff] }
 0x452   : > { %v10029_v54 = vpack.c.bf16 %v7785_v59, %v7784_v16  ;;  %v6297_v16 = vadd.f32 %v14360_v8, %v13425_v23 }
 0x454   : > { %v14325_v39 = vpop.f32.mrb[112].mxu1 }
 0x455   : > { %15076 = vst [vmem:[#allocation16_spill] sm:$0xff] %v14325_v39  ;;  %v6578_v6 = vpop.f32.mrb[113].mxu1  ;;  %v7801_v39 = vld [vmem:[%s14332_s22 + $0x98] sm:$0xff] }
 0x458   : > { %v14334_v9 = vpop.f32.mrb[114].mxu1 }
 0x459   : > { %15077 = vst [vmem:[#allocation17_spill] sm:$0xff] %v14334_v9  ;;  %v6583_v40 = vpop.f32.mrb[115].mxu1 }
 0x45a   : > { %v7800_v40 = vld [vmem:[%s14332_s22 + $0x90] sm:$0xff] }
 0x45b   : > { %v10027_v9 = vpack.c.bf16 %v7801_v39, %v7800_v40 }
 0x45c   : > { %v14340_v37 = vpop.f32.mrb[116].mxu1 }
 0x45d   : > { %15078 = vst [vmem:[#allocation18_spill] sm:$0xff] %v14340_v37  ;;  %v6588_v26 = vpop.f32.mrb[117].mxu1  ;;  %10028 = vmatprep.subr.bf16.mxu1 %v10027_v9 }
 0x45e   : > { %10030 = vmatpush3.bf16.msra.mxu1 %v10029_v54  ;;  %v6302_v26 = vadd.f32 %v14360_v8, %v13444_v51  ;;  %v6307_v54 = vadd.f32 %v14360_v8, %v13467_v56  ;;  %v6317_v56 = vadd.f32 %v14360_v8, %v13539_v0  ;;  %v15084_v0 = vld [vmem:[#allocation4_spill] sm:$0xff] }
 0x460   : > { %v14342_v20 = vpop.f32.mrb[118].mxu1 }
 0x461   : > { %15079 = vst [vmem:[#allocation19_spill] sm:$0xff] %v14342_v20  ;;  %v6593_v5 = vpop.f32.mrb[119].mxu1  ;;  %v8202_v20 = vld [vmem:[%s14393_s13 + $0x8] sm:$0xff] }
 0x464   : > { %v14344_v34 = vpop.f32.mrb[120].mxu1 }
 0x465   : > { %15080 = vst [vmem:[#allocation20_spill] sm:$0xff] %v14344_v34  ;;  %v6598_v6 = vpop.f32.mrb[121].mxu1  ;;  %v7802_v34 = vld [vmem:[%s14332_s22 + $0xa0] sm:$0xff] }
 0x466   : > { %v6312_v6 = vadd.f32 %v14360_v8, %v13516_v48 }
 0x468   : > { %v14350_v25 = vpop.f32.mrb[122].mxu1 }
 0x469   : > { %15081 = vst [vmem:[#allocation21_spill] sm:$0xff] %v14350_v25  ;;  %v6603_v37 = vpop.f32.mrb[123].mxu1  ;;  %v7804_v25 = vld [vmem:[%s14332_s22 + $0xb0] sm:$0xff] }
 0x46c   : > { %v14352_v49 = vpop.f32.mrb[124].mxu1 }
 0x46d   : > { %15082 = vst [vmem:[#allocation22_spill] sm:$0xff] %v14352_v49  ;;  %v6608_v45 = vpop.f32.mrb[125].mxu1 }
 0x470   : > { %v14358_v27 = vpop.f32.mrb[126].mxu1 }
 0x471   : > { %15083 = vst [vmem:[#allocation23_spill] sm:$0xff] %v14358_v27  ;;  %v6613_v39 = vpop.f32.mrb[127].mxu1 }
 0x474   : > { %v9806_v59 = vpop.f32.mrb[128].mxu1 }
 0x475   : > { %v6687_v9 = vadd.f32 %v9806_v59, %v6302_v26  ;;  %v6681_v37 = vpop.f32.mrb[129].mxu1  ;;  %v7803_v26 = vld [vmem:[%s14332_s22 + $0xa8] sm:$0xff]  ;;  %v7786_v59 = vld [vmem:[%s14332_s22 + $0x20] sm:$0xff] }
 0x476   : > { %v6682_v5 = vadd.f32 %v6681_v37, %v6297_v16  ;;  %v6322_v16 = vadd.f32 %v14360_v8, %v13557_v19  ;;  %v10031_v48 = vpack.c.bf16 %v7803_v26, %v7802_v34  ;;  %v6332_v34 = vadd.f32 %v14360_v8, %v13596_v17 }
 0x477   : > { %v7001_v40 = vmax.f32 %v6687_v9, 0.0  ;;  %v7787_v9 = vld [vmem:[%s14332_s22 + $0x28] sm:$0xff] }
 0x478   : > { %v7000_v45 = vmax.f32 %v6682_v5, 0.0  ;;  %v9809_v39 = vpop.f32.mrb[130].mxu1  ;;  %10032 = vmatprep.subr.bf16.mxu1 %v10031_v48 }
 0x479   : > { %v6697_v51 = vadd.f32 %v9809_v39, %v6312_v6  ;;  %v6691_v49 = vpop.f32.mrb[131].mxu1 }
 0x47a   : > { %v14370_v27 = vmax.f32 %v7000_v45, %v7001_v40  ;;  %v6692_v23 = vadd.f32 %v6691_v49, %v6307_v54  ;;  %v10033_v40 = vpack.c.bf16 %v7787_v9, %v7786_v59  ;;  %v7805_v59 = vld [vmem:[%s14332_s22 + $0xb8] sm:$0xff] }
 0x47b   : > { %v7003_v37 = vmax.f32 %v6697_v51, 0.0  ;;  %v6327_v51 = vadd.f32 %v14360_v8, %v15084_v0  ;;  %v10035_v17 = vpack.c.bf16 %v7805_v59, %v7804_v25  ;;  %v7789_v9 = vld [vmem:[%s14332_s22 + $0x38] sm:$0xff]  ;;  %v8201_v25 = vld [vmem:[%s14393_s13] sm:$0xff] }
 0x47c   : > { %v7002_v5 = vmax.f32 %v6692_v23, 0.0  ;;  %v9812_v6 = vpop.f32.mrb[132].mxu1  ;;  %10034 = vmatpush3.bf16.msra.mxu1 %v10033_v40  ;;  %v6342_v40 = vadd.f32 %v14360_v8, %v13710_v46  ;;  %v6352_v46 = vadd.f32 %v14360_v8, %v13769_v29 }
 0x47d   : > { %v6707_v45 = vadd.f32 %v9812_v6, %v6322_v16  ;;  %v6701_v49 = vpop.f32.mrb[133].mxu1  ;;  %v7788_v16 = vld [vmem:[%s14332_s22 + $0x30] sm:$0xff]  ;;  %10036 = vmatprep.subr.bf16.mxu1 %v10035_v17 }
 0x47e   : > { %v14381_v54 = vmax.f32 %v7002_v5, %v7003_v37  ;;  %v6702_v19 = vadd.f32 %v6701_v49, %v6317_v56  ;;  %v10037_v6 = vpack.c.bf16 %v7789_v9, %v7788_v16  ;;  %v6337_v49 = vadd.f32 %v14360_v8, %v13681_v12 }
 0x47f   : > { %v7005_v39 = vmax.f32 %v6707_v45, 0.0  ;;  %v6347_v12 = vadd.f32 %v14360_v8, %v13737_v61 }
 0x480   : > { %v7004_v23 = vmax.f32 %v6702_v19, 0.0  ;;  %v9815_v26 = vpop.f32.mrb[134].mxu1  ;;  %10038 = vmatpush3.bf16.msra.mxu1 %v10037_v6 }
 0x481   : > { %v6717_v37 = vadd.f32 %v9815_v26, %v6332_v34  ;;  %v6711_v48 = vpop.f32.mrb[135].mxu1  ;;  %v8217_v34 = vld [vmem:[%s14393_s13 + $0x80] sm:$0xff]  ;;  %v8218_v26 = vld [vmem:[%s14393_s13 + $0x88] sm:$0xff] }
 0x482   : > { %v14396_v56 = vmax.f32 %v7004_v23, %v7005_v39  ;;  %v6712_v5 = vadd.f32 %v6711_v48, %v6327_v51  ;;  %v10063_v23 = vpack.c.bf16 %v8218_v26, %v8217_v34  ;;  %v10065_v48 = vpack.c.bf16 %v8202_v20, %v8201_v25 }
 0x483   : > { %v7007_v45 = vmax.f32 %v6717_v37, 0.0  ;;  %v6357_v20 = vadd.f32 %v14360_v8, %v13785_v58  ;;  %v6367_v58 = vadd.f32 %v14360_v8, %v13806_v31 }
 0x484   : > { %v7006_v19 = vmax.f32 %v6712_v5, 0.0  ;;  %v9818_v0 = vpop.f32.mrb[136].mxu1  ;;  %10064 = vmatprep.subr.bf16.mxu0 %v10063_v23 }
 0x485   : > { %v6727_v59 = vadd.f32 %v9818_v0, %v6342_v40  ;;  %v6721_v39 = vpop.f32.mrb[137].mxu1  ;;  %10066 = vmatpush3.bf16.msra.mxu0 %v10065_v48 }
 0x486   : > { %v14406_v51 = vmax.f32 %v7006_v19, %v7007_v45  ;;  %v6722_v16 = vadd.f32 %v6721_v39, %v6337_v49  ;;  %v6362_v45 = vadd.f32 %v14360_v8, %v13796_v43  ;;  %v6372_v43 = vadd.f32 %v14360_v8, %v13830_v11  ;;  %v7806_v11 = vld [vmem:[%s14332_s22 + $0xc0] sm:$0xff] }
 0x487   : > { %v7009_v37 = vmax.f32 %v6727_v59, 0.0 }
 0x488   : > { %v7008_v17 = vmax.f32 %v6722_v16, 0.0  ;;  %v9821_v9 = vpop.f32.mrb[138].mxu1 }
 0x489   : > { %v6737_v5 = vadd.f32 %v9821_v9, %v6352_v46  ;;  %v6731_v6 = vpop.f32.mrb[139].mxu1 }
 0x48a   : > { %v7080_v40 = vmax.f32 %v7008_v17, %v7009_v37  ;;  %v6732_v0 = vadd.f32 %v6731_v6, %v6347_v12  ;;  %v6382_v17 = vadd.f32 %v14360_v8, %v13905_v22  ;;  %v7790_v6 = vld [vmem:[%s14332_s22 + $0x40] sm:$0xff] }
 0x48b   : > { %v7011_v49 = vmax.f32 %v6737_v5, 0.0  ;;  %v7807_v5 = vld [vmem:[%s14332_s22 + $0xc8] sm:$0xff] }
 0x48c   : > { %v7096_v29 = vmax.f32 %v14370_v27, %v7080_v40  ;;  %v7010_v19 = vmax.f32 %v6732_v0, 0.0  ;;  %v9824_v34 = vpop.f32.mrb[140].mxu1  ;;  %v15085_v40 = vld [vmem:[#allocation5_spill] sm:$0xff] }
 0x48d   : > { %v6747_v26 = vadd.f32 %v9824_v34, %v6362_v45  ;;  %v6741_v61 = vpop.f32.mrb[141].mxu1  ;;  %v6377_v31 = vadd.f32 %v14360_v8, %v15085_v40 }
 0x48e   : > { %7136 = vst.msk [vmem:[#allocation3 + $0x38] sm:$0xff] %vm3386_vm4, %v7096_v29  ;;  %v7081_v25 = vmax.f32 %v7010_v19, %v7011_v49  ;;  %v6742_v59 = vadd.f32 %v6741_v61, %v6357_v20  ;;  %v10039_v49 = vpack.c.bf16 %v7807_v5, %v7806_v11  ;;  %v7791_v20 = vld [vmem:[%s14332_s22 + $0x48] sm:$0xff]  ;;  %v15086_v61 = vld [vmem:[#allocation7_spill] sm:$0xff] }
 0x48f   : > { %v7013_v39 = vmax.f32 %v6747_v26, 0.0  ;;  %v10041_v34 = vpack.c.bf16 %v7791_v20, %v7790_v6  ;;  %v7793_v5 = vld [vmem:[%s14332_s22 + $0x58] sm:$0xff]  ;;  %v7810_v6 = vld [vmem:[%s14332_s22 + $0xe0] sm:$0xff]  ;;  %v15088_v20 = vld [vmem:[#allocation9_spill] sm:$0xff] }
 0x490   : > { %v7097_v27 = vmax.f32 %v14381_v54, %v7081_v25  ;;  %v7012_v23 = vmax.f32 %v6742_v59, 0.0  ;;  %v9827_v16 = vpop.f32.mrb[142].mxu1  ;;  %10040 = vmatprep.subr.bf16.mxu1 %v10039_v49  ;;  %v6392_v25 = vadd.f32 %v14360_v8, %v15086_v61  ;;  %v14436_v59 = vld [vmem:[#allocation3 + $0x8] sm:$0xff] }
 0x491   : > { %v6757_v48 = vadd.f32 %v9827_v16, %v6372_v43  ;;  %v6751_v46 = vpop.f32.mrb[143].mxu1  ;;  %v14438_v43 = vld [vmem:[#allocation3 + $0x90] sm:$0xff]  ;;  %10042 = vmatpush3.bf16.msra.mxu1 %v10041_v34  ;;  %v7795_v49 = vld [vmem:[%s14332_s22 + $0x68] sm:$0xff] }
 0x492   : > { %7137 = vst.msk [vmem:[#allocation3 + $0x40] sm:$0xff] %vm3386_vm4, %v7097_v27  ;;  %v7082_v37 = vmax.f32 %v7012_v23, %v7013_v39  ;;  %v6752_v12 = vadd.f32 %v6751_v46, %v6367_v58  ;;  %v15087_v39 = vld [vmem:[#allocation6_spill] sm:$0xff]  ;;  %v7809_v46 = vld [vmem:[%s14332_s22 + $0xd8] sm:$0xff] }
 0x493   : > { %v7015_v9 = vmax.f32 %v6757_v48, 0.0  ;;  %v6387_v58 = vadd.f32 %v14360_v8, %v15087_v39  ;;  %v7808_v48 = vld [vmem:[%s14332_s22 + $0xd0] sm:$0xff] }
 0x494   : > { %v7098_v54 = vmax.f32 %v14396_v56, %v7082_v37  ;;  %v7014_v0 = vmax.f32 %v6752_v12, 0.0  ;;  %v9830_v45 = vpop.f32.mrb[144].mxu1  ;;  %v7792_v37 = vld [vmem:[%s14332_s22 + $0x50] sm:$0xff]  ;;  %v10043_v11 = vpack.c.bf16 %v7809_v46, %v7808_v48 }
 0x495   : > { %v6767_v29 = vadd.f32 %v9830_v45, %v6382_v17  ;;  %v6761_v19 = vpop.f32.mrb[145].mxu1  ;;  %v7794_v45 = vld [vmem:[%s14332_s22 + $0x60] sm:$0xff]  ;;  %v10045_v34 = vpack.c.bf16 %v7793_v5, %v7792_v37  ;;  %v15090_v37 = vld [vmem:[#allocation11_spill] sm:$0xff]  ;;  %v14476_v5 = vld [vmem:[#allocation3 + $0x88] sm:$0xff] }
 0x496   : > { %7138 = vst.msk [vmem:[#allocation3 + $0x48] sm:$0xff] %vm3386_vm4, %v7098_v54  ;;  %v7083_v22 = vmax.f32 %v7014_v0, %v7015_v9  ;;  %v6762_v26 = vadd.f32 %v6761_v19, %v6377_v31  ;;  %v7811_v0 = vld [vmem:[%s14332_s22 + $0xe8] sm:$0xff]  ;;  %10044 = vmatprep.subr.bf16.mxu1 %v10043_v11  ;;  %v14474_v11 = vld [vmem:[#allocation3 + $0x18] sm:$0xff] }
 0x497   : > { %v7017_v56 = vmax.f32 %v6767_v29, 0.0  ;;  %v6402_v29 = vadd.f32 %v14360_v8, %v15088_v20  ;;  %10046 = vmatpush3.bf16.msra.mxu1 %v10045_v34  ;;  %v15092_v34 = vld [vmem:[#allocation13_spill] sm:$0xff] }
 0x498   : > { %v7099_v27 = vmax.f32 %v14406_v51, %v7083_v22  ;;  %v7016_v23 = vmax.f32 %v6762_v26, 0.0  ;;  %v9833_v16 = vpop.f32.mrb[146].mxu1  ;;  %v10047_v22 = vpack.c.bf16 %v7811_v0, %v7810_v6  ;;  %v15089_v26 = vld [vmem:[#allocation8_spill] sm:$0xff]  ;;  %v15091_v6 = vld [vmem:[#allocation10_spill] sm:$0xff] }
 0x499   : > { %v6777_v12 = vadd.f32 %v9833_v16, %v6392_v25  ;;  %v6771_v17 = vpop.f32.mrb[147].mxu1  ;;  %v14446_v9 = vld [vmem:[#allocation3 + $0x40] sm:$0xff]  ;;  %v6397_v61 = vadd.f32 %v14360_v8, %v15089_v26 }
 0x49a   : > { %7139 = vst.msk [vmem:[#allocation3 + $0x50] sm:$0xff] %vm3386_vm4, %v7099_v27  ;;  %v14451_v40 = vmax.f32 %v7016_v23, %v7017_v56  ;;  %v6772_v51 = vadd.f32 %v6771_v17, %v6387_v58  ;;  %v11105_v31 = vpack.i.bf16 %v14436_v59, %v14446_v9  ;;  %v11110_v54 = vpack.i.bf16 %v14446_v9, %v14438_v43 }
 0x49b   : > { %v7019_v19 = vmax.f32 %v6777_v12, 0.0  ;;  %v10049_v23 = vpack.c.bf16 %v7795_v49, %v7794_v45  ;;  %10048 = vmatprep.subr.bf16.mxu1 %v10047_v22  ;;  %v6412_v12 = vadd.f32 %v14360_v8, %v15090_v37  ;;  %v6422_v22 = vadd.f32 %v14360_v8, %v15092_v34  ;;  %v7813_v34 = vld [vmem:[%s14332_s22 + $0xf8] sm:$0xff] }
 0x49c   : > { %v7018_v25 = vmax.f32 %v6772_v51, 0.0  ;;  %v9836_v56 = vpop.f32.mrb[148].mxu1  ;;  %11106 = vrot.lane.b32.xlu0 %v11105_v31, %s11352_s27  ;;  %11111 = vrot.lane.b32.xlu1 %v11110_v54, %s11353_s28  ;;  %v6407_v51 = vadd.f32 %v14360_v8, %v15091_v6  ;;  %v6432_v37 = vadd.f32 %v14360_v8, %v14102_v1  ;;  %v6437_v1 = vadd.f32 %v14360_v8, %v14119_v18 }
 0x49d   : > { %v6787_v39 = vadd.f32 %v9836_v56, %v6402_v29  ;;  %v6781_v58 = vpop.f32.mrb[149].mxu1  ;;  %v14466_v27 = vld [vmem:[#allocation3 + $0x48] sm:$0xff]  ;;  %10050 = vmatpush3.bf16.msra.mxu1 %v10049_v23  ;;  %v6447_v18 = vadd.f32 %v14360_v8, %v14151_v42 }
 0x49e   : > { %v14468_v16 = vmax.f32 %v7018_v25, %v7019_v19  ;;  %v6782_v48 = vadd.f32 %v6781_v58, %v6397_v61  ;;  %v11115_v46 = vpack.i.bf16 %v14180_v36, %v14466_v27  ;;  %v15093_v61 = vld [vmem:[#allocation12_spill] sm:$0xff] }
 0x49f   : > { %v7021_v17 = vmax.f32 %v6787_v39, 0.0  ;;  %v6417_v25 = vadd.f32 %v14360_v8, %v15093_v61 }
 0x4a0   : > { %v7020_v31 = vmax.f32 %v6782_v48, 0.0  ;;  %v9839_v54 = vpop.f32.mrb[150].mxu1  ;;  %11116 = vrot.lane.b32.xlu1 %v11115_v46, %s11352_s27 }
 0x4a1   : > { %v6797_v0 = vadd.f32 %v9839_v54, %v6412_v12  ;;  %v6791_v45 = vpop.f32.mrb[151].mxu1  ;;  %v14481_v49 = vld [vmem:[#allocation3 + $0x50] sm:$0xff] }
 0x4a2   : > { %v14483_v36 = vmax.f32 %v7020_v31, %v7021_v17  ;;  %v6792_v20 = vadd.f32 %v6791_v45, %v6407_v51  ;;  %v11120_v29 = vpack.i.bf16 %v14474_v11, %v14481_v49  ;;  %v11125_v19 = vpack.i.bf16 %v14481_v49, %v14476_v5 }
 0x4a3   : > { %v7023_v26 = vmax.f32 %v6797_v0, 0.0  ;;  %v6427_v17 = vadd.f32 %v14360_v8, %v14075_v50 }
 0x4a4   : > { %v7022_v56 = vmax.f32 %v6792_v20, 0.0  ;;  %v9842_v39 = vpop.f32.mrb[152].mxu1  ;;  %11121 = vrot.lane.b32.xlu0 %v11120_v29, %s11352_s27  ;;  %11126 = vrot.lane.b32.xlu1 %v11125_v19, %s11352_s27  ;;  %v6442_v20 = vadd.f32 %v14360_v8, %v14137_v21  ;;  %v7812_v19 = vld [vmem:[%s14332_s22 + $0xf0] sm:$0xff] }
 0x4a5   : > { %v6807_v58 = vadd.f32 %v9842_v39, %v6422_v22  ;;  %v6801_v23 = vpop.f32.mrb[153].mxu1  ;;  %v7796_v22 = vld [vmem:[%s14332_s22 + $0x70] sm:$0xff] }
 0x4a6   : > { %v14495_v48 = vmax.f32 %v7022_v56, %v7023_v26  ;;  %v6802_v46 = vadd.f32 %v6801_v23, %v6417_v25  ;;  %v10051_v25 = vpack.c.bf16 %v7813_v34, %v7812_v19  ;;  %v7797_v56 = vld [vmem:[%s14332_s22 + $0x78] sm:$0xff] }
 0x4a7   : > { %v7025_v12 = vmax.f32 %v6807_v58, 0.0  ;;  %v10053_v23 = vpack.c.bf16 %v7797_v56, %v7796_v22 }
 0x4a8   : > { %v7024_v6 = vmax.f32 %v6802_v46, 0.0  ;;  %v9845_v51 = vpop.f32.mrb[154].mxu1  ;;  %10052 = vmatprep.subr.bf16.mxu1 %v10051_v25 }
 0x4a9   : > { %v6817_v31 = vadd.f32 %v9845_v51, %v6432_v37  ;;  %v6811_v54 = vpop.f32.mrb[155].mxu1  ;;  %v6452_v37 = vadd.f32 %v14360_v8, %v14166_v30  ;;  %10054 = vmatpush3.bf16.msra.mxu1 %v10053_v23  ;;  %v14519_v30 = vld [vmem:[#allocation3 + $0x30] sm:$0xff] }
 0x4aa   : > { %v7084_v0 = vmax.f32 %v7024_v6, %v7025_v12  ;;  %v6812_v45 = vadd.f32 %v6811_v54, %v6427_v17 }
 0x4ab   : > { %v7027_v29 = vmax.f32 %v6817_v31, 0.0 }
 0x4ac   : > { %v7100_v26 = vmax.f32 %v14451_v40, %v7084_v0  ;;  %v7026_v50 = vmax.f32 %v6812_v45, 0.0  ;;  %v9848_v61 = vpop.f32.mrb[156].mxu1  ;;  %v6462_v45 = vadd.f32 %v14360_v8, %v14200_v47 }
 0x4ad   : > { %v6827_v39 = vadd.f32 %v9848_v61, %v6442_v20  ;;  %v6821_v58 = vpop.f32.mrb[157].mxu1  ;;  %v6472_v61 = vadd.f32 %v14360_v8, %v14211_v3 }
 0x4ae   : > { %7140 = vst.msk [vmem:[#allocation3 + $0x68] sm:$0xff] %vm3386_vm4, %v7100_v26  ;;  %v7085_v46 = vmax.f32 %v7026_v50, %v7027_v29  ;;  %v6822_v21 = vadd.f32 %v6821_v58, %v6437_v1  ;;  %v6457_v29 = vadd.f32 %v14360_v8, %v14191_v33  ;;  %v6467_v33 = vadd.f32 %v14360_v8, %v14205_v57 }
 0x4af   : > { %v7029_v12 = vmax.f32 %v6827_v39, 0.0 }
 0x4b0   : > { %v7101_v40 = vmax.f32 %v14468_v16, %v7085_v46  ;;  %v7028_v17 = vmax.f32 %v6822_v21, 0.0  ;;  %v9851_v6 = vpop.f32.mrb[158].mxu1  ;;  %v14535_v46 = vld [vmem:[#allocation3 + $0x38] sm:$0xff] }
 0x4b1   : > { %v6837_v51 = vadd.f32 %v9851_v6, %v6452_v37  ;;  %v6831_v31 = vpop.f32.mrb[159].mxu1 }
 0x4b2   : > { %7141 = vst.msk [vmem:[#allocation3 + $0x70] sm:$0xff] %vm3386_vm4, %v7101_v40  ;;  %v7086_v54 = vmax.f32 %v7028_v17, %v7029_v12  ;;  %v6832_v0 = vadd.f32 %v6831_v31, %v6447_v18  ;;  %v6482_v12 = vadd.f32 %v14360_v8, %v14221_v41  ;;  %v6477_v40 = vadd.f32 %v14360_v8, %v14215_v63 }
 0x4b3   : > { %v7031_v20 = vmax.f32 %v6837_v51, 0.0  ;;  %v6492_v41 = vadd.f32 %v14360_v8, %v14235_v24 }
 0x4b4   : > { %v7102_v42 = vmax.f32 %v14483_v36, %v7086_v54  ;;  %v7030_v16 = vmax.f32 %v6832_v0, 0.0  ;;  %v9854_v19 = vpop.f32.mrb[160].mxu1 }
 0x4b5   : > { %v6847_v34 = vadd.f32 %v9854_v19, %v6462_v45  ;;  %v6841_v22 = vpop.f32.mrb[161].mxu1  ;;  %v14524_v1 = vld [vmem:[#allocation3 + $0x68] sm:$0xff] }
 0x4b6   : > { %7142 = vst.msk [vmem:[#allocation3 + $0x78] sm:$0xff] %vm3386_vm4, %v7102_v42  ;;  %v7087_v26 = vmax.f32 %v7030_v16, %v7031_v20  ;;  %v6842_v50 = vadd.f32 %v6841_v22, %v6457_v29  ;;  %v11130_v47 = vpack.i.bf16 %v14519_v30, %v14524_v1  ;;  %v11135_v57 = vpack.i.bf16 %v14474_v11, %v14524_v1 }
 0x4b7   : > { %v7033_v25 = vmax.f32 %v6847_v34, 0.0  ;;  %v6487_v29 = vadd.f32 %v14360_v8, %v14225_v62  ;;  %v7189_v62 = vld [vmem:[#allocation3 + $0x28] sm:$0xff] }
 0x4b8   : > { %v7103_v36 = vmax.f32 %v14495_v48, %v7087_v26  ;;  %v7032_v56 = vmax.f32 %v6842_v50, 0.0  ;;  %v9857_v39 = vpop.f32.mrb[162].mxu1  ;;  %11131 = vrot.lane.b32.xlu0 %v11130_v47, %s11354_s29  ;;  %v6502_v50 = vadd.f32 %v14360_v8, %v14255_v35 }
 0x4b9   : > { %v6857_v58 = vadd.f32 %v9857_v39, %v6472_v61  ;;  %v6851_v23 = vpop.f32.mrb[163].mxu1  ;;  %v14537_v21 = vld [vmem:[#allocation3 + $0x70] sm:$0xff] }
 0x4ba   : > { %7143 = vst.msk [vmem:[#allocation3 + $0x80] sm:$0xff] %vm3386_vm4, %v7103_v36  ;;  %v14540_v37 = vmax.f32 %v7032_v56, %v7033_v25  ;;  %v6852_v3 = vadd.f32 %v6851_v23, %v6467_v33  ;;  %v11140_v48 = vpack.i.bf16 %v14535_v46, %v14537_v21  ;;  %v11145_v45 = vpack.i.bf16 %v14193_v52, %v14537_v21  ;;  %v8219_v61 = vld [vmem:[%s14393_s13 + $0x90] sm:$0xff]  ;;  %v8220_v25 = vld [vmem:[%s14393_s13 + $0x98] sm:$0xff] }
 0x4bb   : > { %v7035_v18 = vmax.f32 %v6857_v58, 0.0  ;;  %v11155_v22 = vpack.i.bf16 %v14537_v21, %v14304_v2  ;;  %v8203_v33 = vld [vmem:[%s14393_s13 + $0x10] sm:$0xff]  ;;  %v6497_v36 = vadd.f32 %v14360_v8, %v14250_v15  ;;  %v10067_v2 = vpack.c.bf16 %v8220_v25, %v8219_v61  ;;  %v8204_v58 = vld [vmem:[%s14393_s13 + $0x18] sm:$0xff] }
 0x4bc   : > { %v7034_v17 = vmax.f32 %v6852_v3, 0.0  ;;  %v9860_v6 = vpop.f32.mrb[164].mxu1  ;;  %11136 = vrot.lane.b32.xlu0 %v11135_v57, %s11353_s28  ;;  %11141 = vrot.lane.b32.xlu1 %v11140_v48, %s11354_s29  ;;  %v10069_v57 = vpack.c.bf16 %v8204_v58, %v8203_v33  ;;  %v6512_v15 = vadd.f32 %v14360_v8, %v14274_v28  ;;  %v7814_v58 = vld [vmem:[%s14332_s22 + $0x100] sm:$0xff] }
 0x4bd   : > { %v6867_v51 = vadd.f32 %v9860_v6, %v6482_v12  ;;  %v6861_v31 = vpop.f32.mrb[165].mxu1  ;;  %v14558_v63 = vld [vmem:[#allocation3 + $0x78] sm:$0xff]  ;;  %10068 = vmatprep.subr.bf16.mxu0 %v10067_v2  ;;  %v6542_v2 = vadd.f32 %v14360_v8, %v14311_v60 }
 0x4be   : > { %v14552_v54 = vmax.f32 %v7034_v17, %v7035_v18  ;;  %v6862_v0 = vadd.f32 %v6861_v31, %v6477_v40  ;;  %v11160_v26 = vpack.i.bf16 %v14446_v9, %v14558_v63  ;;  %v11165_v12 = vpack.i.bf16 %v7189_v62, %v14558_v63  ;;  %10070 = vmatpush3.bf16.msra.mxu0 %v10069_v57 }
 0x4bf   : > { %v7037_v20 = vmax.f32 %v6867_v51, 0.0  ;;  %v6507_v17 = vadd.f32 %v14360_v8, %v14265_v44  ;;  %v6517_v44 = vadd.f32 %v14360_v8, %v14284_v32  ;;  %v6532_v32 = vadd.f32 %v14360_v8, %v14300_v13 }
 0x4c0   : > { %v7036_v42 = vmax.f32 %v6862_v0, 0.0  ;;  %v9863_v16 = vpop.f32.mrb[166].mxu1  ;;  %11146 = vrot.lane.b32.xlu1 %v11145_v45, %s11353_s28  ;;  %11151 = vrot.lane.b32.xlu0 %v11140_v48, %s11352_s27 }
 0x4c1   : > { %v6877_v19 = vadd.f32 %v9863_v16, %v6492_v41  ;;  %v6871_v52 = vpop.f32.mrb[167].mxu1  ;;  %v14585_v40 = vld [vmem:[#allocation3 + $0x80] sm:$0xff] }
 0x4c2   : > { %v14564_v34 = vmax.f32 %v7036_v42, %v7037_v20  ;;  %v6872_v24 = vadd.f32 %v6871_v52, %v6487_v29  ;;  %v11175_v28 = vpack.i.bf16 %v14466_v27, %v14585_v40  ;;  %v6522_v20 = vadd.f32 %v14360_v8, %v14290_v4  ;;  %v14595_v42 = vld [vmem:[#allocation3 + $0xb8] sm:$0xff] }
 0x4c3   : > { %v7039_v47 = vmax.f32 %v6877_v19, 0.0  ;;  %v11185_v62 = vpack.i.bf16 %v14585_v40, %v14595_v42 }
 0x4c4   : > { %v7038_v56 = vmax.f32 %v6872_v24, 0.0  ;;  %v9866_v39 = vpop.f32.mrb[168].mxu1  ;;  %11156 = vrot.lane.b32.xlu1 %v11155_v22, %s11353_s28  ;;  %11161 = vrot.lane.b32.xlu0 %v11160_v26, %s11354_s29 }
 0x4c5   : > { %v6887_v23 = vadd.f32 %v9866_v39, %v6502_v50  ;;  %v6881_v3 = vpop.f32.mrb[169].mxu1  ;;  %v6527_v50 = vadd.f32 %v14360_v8, %v14296_v7  ;;  %v6537_v7 = vadd.f32 %v14360_v8, %v14309_v10  ;;  %v6552_v10 = vadd.f32 %v14360_v8, %v14315_v14 }
 0x4c6   : > { %v14580_v48 = vmax.f32 %v7038_v56, %v7039_v47  ;;  %v6882_v35 = vadd.f32 %v6881_v3, %v6497_v36 }
 0x4c7   : > { %v7041_v18 = vmax.f32 %v6887_v23, 0.0  ;;  %v7815_v23 = vld [vmem:[%s14332_s22 + $0x108] sm:$0xff] }
 0x4c8   : > { %v7040_v6 = vmax.f32 %v6882_v35, 0.0  ;;  %v9869_v51 = vpop.f32.mrb[170].mxu1  ;;  %11171 = vrot.lane.b32.xlu1 %v11160_v26, %s11352_s27  ;;  %11166 = vrot.lane.b32.xlu0 %v11165_v12, %s11353_s28  ;;  %v14619_v35 = vpack.c.bf16 %v7815_v23, %v7814_v58 }
 0x4c9   : > { %v6897_v31 = vadd.f32 %v9869_v51, %v6512_v15  ;;  %v6891_v0 = vpop.f32.mrb[171].mxu1 }
 0x4ca   : > { %v7088_v45 = vmax.f32 %v7040_v6, %v7041_v18  ;;  %v6892_v41 = vadd.f32 %v6891_v0, %v6507_v17  ;;  %v11339_v6 = vld [vmem:[#allocation3 + $0x60] sm:$0xff]  ;;  %10056 = vmatprep.subr.bf16.mxu1 %v14619_v35 }
 0x4cb   : > { %v7043_v29 = vmax.f32 %v6897_v31, 0.0  ;;  %v6547_v31 = vadd.f32 %v14360_v8, %v14313_v38 }
 0x4cc   : > { %v7104_v16 = vmax.f32 %v14540_v37, %v7088_v45  ;;  %v7042_v19 = vmax.f32 %v6892_v41, 0.0  ;;  %v9872_v52 = vpop.f32.mrb[172].mxu1  ;;  %11176 = vrot.lane.b32.xlu1 %v11175_v28, %s11354_s29  ;;  %11181 = vrot.lane.b32.xlu0 %v11175_v28, %s11352_s27 }
 0x4cd   : > { %v6907_v24 = vadd.f32 %v9872_v52, %v6522_v20  ;;  %v6901_v22 = vpop.f32.mrb[173].mxu1  ;;  %v6557_v52 = vadd.f32 %v14360_v8, %v14317_v55 }
 0x4ce   : > { %7144 = vst.msk [vmem:[#allocation3 + $0x98] sm:$0xff] %vm3386_vm4, %v7104_v16  ;;  %v7089_v26 = vmax.f32 %v7042_v19, %v7043_v29  ;;  %v6902_v4 = vadd.f32 %v6901_v22, %v6517_v44 }
 0x4cf   : > { %v7045_v37 = vmax.f32 %v6907_v24, 0.0 }
 0x4d0   : > { %v7105_v47 = vmax.f32 %v14552_v54, %v7089_v26  ;;  %v7044_v61 = vmax.f32 %v6902_v4, 0.0  ;;  %v9875_v25 = vpop.f32.mrb[174].mxu1  ;;  %11186 = vrot.lane.b32.xlu1 %v11185_v62, %s11352_s27 }
 0x4d1   : > { %v6917_v33 = vadd.f32 %v9875_v25, %v6532_v32  ;;  %v6911_v36 = vpop.f32.mrb[175].mxu1  ;;  %v15095_v25 = vld [vmem:[#allocation14_spill] sm:$0xff] }
 0x4d2   : > { %7145 = vst.msk [vmem:[#allocation3 + $0xa0] sm:$0xff] %vm3386_vm4, %v7105_v47  ;;  %v7090_v56 = vmax.f32 %v7044_v61, %v7045_v37  ;;  %v6912_v39 = vadd.f32 %v6911_v36, %v6527_v50  ;;  %v15094_v50 = vld [vmem:[#allocation15_spill] sm:$0xff]  ;;  %v7264_v61 = vld [vmem:[#allocation3 + $0xf0] sm:$0xff] }
 0x4d3   : > { %v7047_v13 = vmax.f32 %v6917_v33, 0.0  ;;  %v6567_v33 = vadd.f32 %v14360_v8, %v15095_v25 }
 0x4d4   : > { %v7106_v54 = vmax.f32 %v14564_v34, %v7090_v56  ;;  %v7046_v3 = vmax.f32 %v6912_v39, 0.0  ;;  %v9878_v57 = vpop.f32.mrb[176].mxu1 }
 0x4d5   : > { %v6927_v12 = vadd.f32 %v9878_v57, %v6542_v2  ;;  %v6921_v15 = vpop.f32.mrb[177].mxu1  ;;  %v14621_v18 = vld [vmem:[#allocation3 + $0x98] sm:$0xff] }
 0x4d6   : > { %7146 = vst.msk [vmem:[#allocation3 + $0xa8] sm:$0xff] %vm3386_vm4, %v7106_v54  ;;  %v7091_v17 = vmax.f32 %v7046_v3, %v7047_v13  ;;  %v6922_v60 = vadd.f32 %v6921_v15, %v6537_v7  ;;  %v11190_v51 = vpack.i.bf16 %v11339_v6, %v14621_v18  ;;  %v11195_v38 = vpack.i.bf16 %v14466_v27, %v14621_v18  ;;  %v15096_v54 = vld [vmem:[#allocation17_spill] sm:$0xff] }
 0x4d7   : > { %v7049_v34 = vmax.f32 %v6927_v12, 0.0  ;;  %v6582_v3 = vadd.f32 %v14360_v8, %v15096_v54  ;;  %v15097_v12 = vld [vmem:[#allocation16_spill] sm:$0xff] }
 0x4d8   : > { %v7107_v0 = vmax.f32 %v14580_v48, %v7091_v17  ;;  %v7048_v45 = vmax.f32 %v6922_v60, 0.0  ;;  %v9881_v41 = vpop.f32.mrb[178].mxu1  ;;  %11191 = vrot.lane.b32.xlu0 %v11190_v51, %s11354_s29  ;;  %v6562_v48 = vadd.f32 %v14360_v8, %v14319_v53  ;;  %v6572_v53 = vadd.f32 %v14360_v8, %v15094_v50  ;;  %v15101_v50 = vld [vmem:[#allocation20_spill] sm:$0xff] }
 0x4d9   : > { %v6937_v28 = vadd.f32 %v9881_v41, %v6552_v10  ;;  %v6931_v20 = vpop.f32.mrb[179].mxu1  ;;  %v14632_v29 = vld [vmem:[#allocation3 + $0xa0] sm:$0xff]  ;;  %v6577_v15 = vadd.f32 %v14360_v8, %v15097_v12 }
 0x4da   : > { %7147 = vst.msk [vmem:[#allocation3 + $0xb0] sm:$0xff] %vm3386_vm4, %v7107_v0  ;;  %v14635_v44 = vmax.f32 %v7048_v45, %v7049_v34  ;;  %v6932_v16 = vadd.f32 %v6931_v20, %v6547_v31  ;;  %v11200_v14 = vpack.i.bf16 %v14524_v1, %v14632_v29  ;;  %v11205_v37 = vpack.i.bf16 %v14481_v49, %v14632_v29  ;;  %v11340_v31 = vld [vmem:[#allocation3 + $0x58] sm:$0xff] }
 0x4db   : > { %v7051_v19 = vmax.f32 %v6937_v28, 0.0  ;;  %v11215_v23 = vpack.i.bf16 %v14632_v29, %v7264_v61  ;;  %v15098_v45 = vld [vmem:[#allocation19_spill] sm:$0xff] }
 0x4dc   : > { %v7050_v24 = vmax.f32 %v6932_v16, 0.0  ;;  %v9884_v22 = vpop.f32.mrb[180].mxu1  ;;  %11201 = vrot.lane.b32.xlu1 %v11200_v14, %s11354_s29  ;;  %11196 = vrot.lane.b32.xlu0 %v11195_v38, %s11353_s28  ;;  %v6592_v41 = vadd.f32 %v14360_v8, %v15098_v45  ;;  %v15099_v16 = vld [vmem:[#allocation18_spill] sm:$0xff] }
 0x4dd   : > { %v6947_v26 = vadd.f32 %v9884_v22, %v6562_v48  ;;  %v6941_v4 = vpop.f32.mrb[181].mxu1  ;;  %v14653_v55 = vld [vmem:[#allocation3 + $0xa8] sm:$0xff] }
 0x4de   : > { %v14647_v62 = vmax.f32 %v7050_v24, %v7051_v19  ;;  %v6942_v32 = vadd.f32 %v6941_v4, %v6557_v52  ;;  %v11220_v7 = vpack.i.bf16 %v14537_v21, %v14653_v55  ;;  %v11225_v0 = vpack.i.bf16 %v11340_v31, %v14653_v55  ;;  %v15100_v4 = vld [vmem:[#allocation21_spill] sm:$0xff] }
 0x4df   : > { %v7053_v47 = vmax.f32 %v6947_v26, 0.0 }
 0x4e0   : > { %v7052_v36 = vmax.f32 %v6942_v32, 0.0  ;;  %v9887_v56 = vpop.f32.mrb[182].mxu1  ;;  %11206 = vrot.lane.b32.xlu1 %v11205_v37, %s11353_s28  ;;  %11211 = vrot.lane.b32.xlu0 %v11200_v14, %s11352_s27  ;;  %v6587_v14 = vadd.f32 %v14360_v8, %v15099_v16  ;;  %v6602_v32 = vadd.f32 %v14360_v8, %v15100_v4  ;;  %v14730_v4 = vld [vmem:[#allocation3 + $0x100] sm:$0xff] }
 0x4e1   : > { %v6957_v39 = vadd.f32 %v9887_v56, %v6572_v53  ;;  %v6951_v2 = vpop.f32.mrb[183].mxu1  ;;  %v14671_v20 = vld [vmem:[#allocation3 + $0xb0] sm:$0xff]  ;;  %v6597_v53 = vadd.f32 %v14360_v8, %v15101_v50 }
 0x4e2   : > { %v7078_v13 = vmax.f32 %v7052_v36, %v7053_v47  ;;  %v6952_v58 = vadd.f32 %v6951_v2, %v6567_v33  ;;  %v11235_v26 = vpack.i.bf16 %v14558_v63, %v14671_v20  ;;  %v15102_v2 = vld [vmem:[#allocation23_spill] sm:$0xff] }
 0x4e3   : > { %v7055_v57 = vmax.f32 %v6957_v39, 0.0 }
 0x4e4   : > { %v7054_v17 = vmax.f32 %v6952_v58, 0.0  ;;  %v9890_v60 = vpop.f32.mrb[184].mxu1  ;;  %11216 = vrot.lane.b32.xlu1 %v11215_v23, %s11353_s28  ;;  %11221 = vrot.lane.b32.xlu0 %v11220_v7, %s11354_s29  ;;  %v6612_v58 = vadd.f32 %v14360_v8, %v15102_v2 }
 0x4e5   : > { %v6967_v6 = vadd.f32 %v9890_v60, %v6582_v3  ;;  %v6961_v51 = vpop.f32.mrb[185].mxu1 }
 0x4e6   : > { %v7079_v10 = vmax.f32 %v7054_v17, %v7055_v57  ;;  %v6962_v34 = vadd.f32 %v6961_v51, %v6577_v15 }
 0x4e7   : > { %v7057_v28 = vmax.f32 %v6967_v6, 0.0 }
 0x4e8   : > { %v7056_v38 = vmax.f32 %v6962_v34, 0.0  ;;  %v9893_v48 = vpop.f32.mrb[186].mxu1  ;;  %11231 = vrot.lane.b32.xlu1 %v11220_v7, %s11352_s27  ;;  %11226 = vrot.lane.b32.xlu0 %v11225_v0, %s11353_s28  ;;  %v15103_v7 = vld [vmem:[#allocation22_spill] sm:$0xff] }
 0x4e9   : > { %v6977_v19 = vadd.f32 %v9893_v48, %v6592_v41  ;;  %v6971_v52 = vpop.f32.mrb[187].mxu1  ;;  %v6607_v54 = vadd.f32 %v14360_v8, %v15103_v7  ;;  %v8205_v48 = vld [vmem:[%s14393_s13 + $0x20] sm:$0xff] }
 0x4ea   : > { %v7092_v24 = vmax.f32 %v7056_v38, %v7057_v28  ;;  %v6972_v22 = vadd.f32 %v6971_v52, %v6587_v14  ;;  %v8221_v14 = vld [vmem:[%s14393_s13 + $0xa0] sm:$0xff]  ;;  %v8222_v38 = vld [vmem:[%s14393_s13 + $0xa8] sm:$0xff] }
 0x4eb   : > { %v7059_v37 = vmax.f32 %v6977_v19, 0.0 }
 0x4ec   : > { %v7108_v47 = vmax.f32 %v14635_v44, %v7092_v24  ;;  %v7058_v61 = vmax.f32 %v6972_v22, 0.0  ;;  %v9896_v25 = vpop.f32.mrb[188].mxu1  ;;  %11236 = vrot.lane.b32.xlu1 %v11235_v26, %s11354_s29  ;;  %11241 = vrot.lane.b32.xlu0 %v11235_v26, %s11352_s27  ;;  %v10071_v24 = vpack.c.bf16 %v8222_v38, %v8221_v14  ;;  %v8206_v22 = vld [vmem:[%s14393_s13 + $0x28] sm:$0xff] }
 0x4ed   : > { %v6987_v33 = vadd.f32 %v9896_v25, %v6602_v32  ;;  %v6981_v36 = vpop.f32.mrb[189].mxu1  ;;  %v10073_v26 = vpack.c.bf16 %v8206_v22, %v8205_v48 }
 0x4ee   : > { %7148 = vst.msk [vmem:[#allocation3 + $0xc8] sm:$0xff] %vm3386_vm4, %v7108_v47  ;;  %v7093_v56 = vmax.f32 %v7058_v61, %v7059_v37  ;;  %v6982_v39 = vadd.f32 %v6981_v36, %v6597_v53  ;;  %10072 = vmatprep.subr.bf16.mxu0 %v10071_v24  ;;  %v11341_v37 = vld [vmem:[#allocation3 + $0xf8] sm:$0xff]  ;;  %v14739_v53 = vld [vmem:[#allocation3 + $0xe8] sm:$0xff]  ;;  %v11092_v36 = vpop.permute.xlu1 %11091 }
 0x4ef   : > { %v7061_v23 = vmax.f32 %v6987_v33, 0.0  ;;  %v11280_v50 = vpack.i.bf16 %v14653_v55, %v11341_v37  ;;  %10074 = vmatpush3.bf16.msra.mxu0 %v10073_v26  ;;  %v14741_v47 = vld [vmem:[#allocation3 + $0x108] sm:$0xff]  ;;  %v11315_v61 = vpack.i.bf16 %v14671_v20, %v14739_v53  ;;  %v14749_v33 = vld [vmem:[#allocation3 + $0x110] sm:$0xff] }
 0x4f0   : > { %v7109_v44 = vmax.f32 %v14647_v62, %v7093_v56  ;;  %v7060_v3 = vmax.f32 %v6982_v39, 0.0  ;;  %v9899_v57 = vpop.f32.mrb[190].mxu1  ;;  %v11320_v56 = vpack.i.bf16 %v14595_v42, %v14741_v47  ;;  %v7152_v42 = vld [vmem:[#allocation3] sm:$0xff] }
 0x4f1   : > { %v6997_v12 = vadd.f32 %v9899_v57, %v6612_v58  ;;  %v6991_v15 = vpop.f32.mrb[191].mxu1  ;;  %v14761_v58 = vpop.permute.xlu0 %11101 }
 0x4f2   : > { %7149 = vst.msk [vmem:[#allocation3 + $0xd0] sm:$0xff] %vm3386_vm4, %v7109_v44  ;;  %v7094_v17 = vmax.f32 %v7060_v3, %v7061_v23  ;;  %v6992_v60 = vadd.f32 %v6991_v15, %v6607_v54  ;;  %v14759_v2 = vpop.permute.xlu1 %11096  ;;  %v11093_v15 = vunpack.i.l.bf16 %v11092_v36 }
 0x4f3   : > { %v7063_v6 = vmax.f32 %v6997_v12, 0.0  ;;  %v11094_v12 = vunpack.i.h.bf16 %v11092_v36 }
 0x4f4   : > { %v7110_v51 = vmax.f32 %v7078_v13, %v7094_v17  ;;  %v7062_v34 = vmax.f32 %v6992_v60, 0.0 }
 0x4f5   : > { %v14693_v31 = vld [vmem:[#allocation3 + $0xc8] sm:$0xff] }
 0x4f6   : > { %7150 = vst.msk [vmem:[#allocation3 + $0xd8] sm:$0xff] %vm3386_vm4, %v7110_v51  ;;  %v7095_v0 = vmax.f32 %v7062_v34, %v7063_v6  ;;  %v11245_v8 = vpack.i.bf16 %v14438_v43, %v14693_v31  ;;  %v11250_v41 = vpack.i.bf16 %v14558_v63, %v14693_v31  ;;  %v11295_v32 = vpack.i.bf16 %v14693_v31, %v14730_v4  ;;  %v7816_v34 = vld [vmem:[%s14332_s22 + $0x110] sm:$0xff] }
 0x4f8   : > { %v7111_v62 = vmax.f32 %v7079_v10, %v7095_v0  ;;  %11246 = vrot.lane.b32.xlu0 %v11245_v8, %s11354_s29  ;;  %v7817_v0 = vld [vmem:[%s14332_s22 + $0x118] sm:$0xff]  ;;  %s542_s22 = scalar_lea.vmem %s15056_s8, %s15107_s18 }
 0x4f9   : > { %v14699_v45 = vld [vmem:[#allocation3 + $0xd0] sm:$0xff]  ;;  %v10059_v48 = vpack.c.bf16 %v7817_v0, %v7816_v34 }
 0x4fa   : > { %7151 = vst.msk [vmem:[#allocation3 + $0xe0] sm:$0xff] %vm3386_vm4, %v7111_v62  ;;  %v11255_v13 = vpack.i.bf16 %v14621_v18, %v14699_v45  ;;  %v11260_v43 = vpack.i.bf16 %v14585_v40, %v14699_v45  ;;  %v11310_v25 = vpack.i.bf16 %v14699_v45, %v14741_v47 }
 0x4fc   : > { %11256 = vrot.lane.b32.xlu1 %v11255_v13, %s11354_s29  ;;  %11251 = vrot.lane.b32.xlu0 %v11250_v41, %s11353_s28 }
 0x4fd   : > { %v14710_v10 = vld [vmem:[#allocation3 + $0xd8] sm:$0xff] }
 0x4fe   : > { %v11285_v28 = vpack.i.bf16 %v14632_v29, %v14710_v10  ;;  %v11275_v52 = vpack.i.bf16 %v14476_v5, %v14710_v10  ;;  %v11300_v5 = vpack.i.bf16 %v14671_v20, %v14730_v4  ;;  %v11325_v39 = vpack.i.bf16 %v14710_v10, %v14749_v33 }
 0x500   : > { %11261 = vrot.lane.b32.xlu1 %v11260_v43, %s11353_s28  ;;  %11266 = vrot.lane.b32.xlu0 %v11255_v13, %s11352_s27 }
 0x501   : > { %v14716_v16 = vld [vmem:[#allocation3 + $0xe0] sm:$0xff] }
 0x502   : > { %v11290_v19 = vpack.i.bf16 %v14653_v55, %v14716_v16 }
 0x504   : > { %11286 = vrot.lane.b32.xlu1 %v11285_v28, %s11352_s27  ;;  %11271 = vrot.lane.b32.xlu0 %v11285_v28, %s11354_s29 }
 0x508   : > { %11291 = vrot.lane.b32.xlu1 %v11290_v19, %s11354_s29  ;;  %11276 = vrot.lane.b32.xlu0 %v11275_v52, %s11353_s28 }
 0x50c   : > { %11296 = vrot.lane.b32.xlu1 %v11295_v32, %s11354_s29  ;;  %11281 = vrot.lane.b32.xlu0 %v11280_v50, %s11353_s28 }
 0x50e   : > { %v14763_v23 = vpop.permute.xlu1 %11111  ;;  %v11107_v7 = vpop.permute.xlu0 %11106 }
 0x50f   : > { %v11109_v44 = vunpack.i.h.bf16 %v11107_v7  ;;  %v11108_v3 = vunpack.i.l.bf16 %v11107_v7  ;;  %v8208_v7 = vld [vmem:[%s14393_s13 + $0x38] sm:$0xff] }
 0x510   : > { %11301 = vrot.lane.b32.xlu1 %v11300_v5, %s11353_s28  ;;  %11306 = vrot.lane.b32.xlu0 %v11290_v19, %s11352_s27  ;;  %v8223_v5 = vld [vmem:[%s14393_s13 + $0xb0] sm:$0xff] }
 0x511   : > { %v7686_v17 = vsel %vm3386_vm4, %v7152_v42, %v11109_v44  ;;  %v7734_v60 = vsel %vm3386_vm4, %v14535_v46, %v11108_v3 }
 0x512   : > { %v11117_v54 = vpop.permute.xlu1 %11116  ;;  %v7750_v43 = vsel %vm5673_vm5, %v7734_v60, %v11093_v15  ;;  %v7702_v28 = vsel %vm5673_vm5, %v7686_v17, %v11094_v12  ;;  %v7154_v17 = vld [vmem:[#allocation3 + $0x10] sm:$0xff] }
 0x513   : > { %v11119_v13 = vunpack.i.h.bf16 %v11117_v54  ;;  %v11118_v41 = vunpack.i.l.bf16 %v11117_v54 }
 0x514   : > { %11316 = vrot.lane.b32.xlu1 %v11315_v61, %s11352_s27  ;;  %11311 = vrot.lane.b32.xlu0 %v11310_v25, %s11354_s29  ;;  %v8224_v61 = vld [vmem:[%s14393_s13 + $0xb8] sm:$0xff]  ;;  %v8207_v25 = vld [vmem:[%s14393_s13 + $0x30] sm:$0xff] }
 0x515   : > { %v7735_v37 = vsel %vm3386_vm4, %v14446_v9, %v11118_v41  ;;  %v7687_v50 = vsel %vm3386_vm4, %v14436_v59, %v11119_v13  ;;  %v10077_v42 = vpack.c.bf16 %v8208_v7, %v8207_v25 }
 0x516   : > { %v11122_v57 = vpop.permute.xlu0 %11121  ;;  %v14768_v6 = vpop.permute.xlu1 %11126 }
 0x517   : > { %v11124_v59 = vunpack.i.h.bf16 %v11122_v57  ;;  %v11123_v12 = vunpack.i.l.bf16 %v11122_v57 }
 0x518   : > { %11326 = vrot.lane.b32.xlu1 %v11325_v39, %s11354_s29  ;;  %11321 = vrot.lane.b32.xlu0 %v11320_v56, %s11353_s28  ;;  %v10075_v39 = vpack.c.bf16 %v8224_v61, %v8223_v5 }
 0x51a   : > { %10076 = vmatprep.subr.bf16.mxu0 %v10075_v39  ;;  %v11113_v39 = vunpack.i.l.bf16 %v14763_v23 }
 0x51b   : > { %10078 = vmatpush3.bf16.msra.mxu0 %v10077_v42 }
 0x52a   : > { %v11132_v51 = vpop.permute.xlu0 %11131 }
 0x52b   : > { %v11134_v8 = vunpack.i.h.bf16 %v11132_v51  ;;  %v11133_v62 = vunpack.i.l.bf16 %v11132_v51 }
 0x52d   : > { %v7766_v14 = vsel %vm5738_vm6, %v7750_v43, %v11133_v62  ;;  %v7718_v38 = vsel %vm5738_vm6, %v7702_v28, %v11134_v8  ;;  %v7736_v8 = vsel %vm3386_vm4, %v14466_v27, %v11123_v12  ;;  %v7688_v62 = vsel %vm3386_vm4, %v7154_v17, %v11124_v59 }
 0x52e   : > { %v11137_v19 = vpop.permute.xlu0 %11136  ;;  %7937 = vmatprep.mubr.f32.mxu1 %v7766_v14  ;;  %v11142_v52 = vpop.permute.xlu1 %11141 }
 0x52f   : > { %v11139_v24 = vunpack.i.h.bf16 %v11137_v19  ;;  %v11138_v22 = vunpack.i.l.bf16 %v11137_v19  ;;  %v11144_v26 = vunpack.i.h.bf16 %v11142_v52  ;;  %v11143_v32 = vunpack.i.l.bf16 %v11142_v52  ;;  %7938 = vmatmul.mubr.f32.vlgmr.msra.gmra.mrb[192].mxu1 %v7718_v38 }
 0x530   : > { %10058 = vmatpush3.bf16.msra.mxu1 %v14619_v35  ;;  %v11099_v38 = vunpack.i.h.bf16 %v14759_v2 }
 0x531   : > { %v7751_v36 = vsel %vm5673_vm5, %v7735_v37, %v11138_v22  ;;  %v7703_v56 = vsel %vm5673_vm5, %v7687_v50, %v11139_v24  ;;  %10060 = vmatprep.subr.bf16.mxu1 %v10059_v48 }
 0x532   : > { %v11147_v54 = vpop.permute.xlu1 %11146  ;;  %v11152_v44 = vpop.permute.xlu0 %11151  ;;  %v7767_v3 = vsel %vm5738_vm6, %v7751_v36, %v11143_v32  ;;  %v7719_v9 = vsel %vm5738_vm6, %v7703_v56, %v11144_v26  ;;  %v7689_v32 = vsel %vm3386_vm4, %v14474_v11, %v11099_v38  ;;  %v11114_v11 = vunpack.i.h.bf16 %v14763_v23 }
 0x533   : > { %7942 = vmatprep.mubr.f32.mxu1 %v7767_v3  ;;  %v11149_v35 = vunpack.i.h.bf16 %v11147_v54  ;;  %v11148_v15 = vunpack.i.l.bf16 %v11147_v54  ;;  %v11154_v61 = vunpack.i.h.bf16 %v11152_v44  ;;  %v11153_v25 = vunpack.i.l.bf16 %v11152_v44 }
 0x534   : > { %7943 = vmatmul.mubr.f32.gmra.mrb[194].mxu1 %v7719_v9 }
 0x535   : > { %10062 = vmatpush3.bf16.msra.mxu1 %v10059_v48  ;;  %v7752_v57 = vsel %vm5673_vm5, %v7736_v8, %v11148_v15  ;;  %v7704_v13 = vsel %vm5673_vm5, %v7688_v62, %v11149_v35  ;;  %v11098_v48 = vunpack.i.l.bf16 %v14759_v2  ;;  %v7738_v56 = vsel %vm3386_vm4, %v14524_v1, %v11153_v25 }
 0x536   : > { %v14789_v60 = vpop.permute.xlu1 %11156  ;;  %v11162_v51 = vpop.permute.xlu0 %11161  ;;  %v7754_v44 = vsel %vm5673_vm5, %v7738_v56, %v11113_v39  ;;  %v11129_v25 = vunpack.i.h.bf16 %v14768_v6 }
 0x537   : > { %v11164_v34 = vunpack.i.h.bf16 %v11162_v51  ;;  %v11163_v0 = vunpack.i.l.bf16 %v11162_v51  ;;  %v7737_v26 = vsel %vm3386_vm4, %v14481_v49, %v11098_v48  ;;  %v7690_v49 = vsel %vm3386_vm4, %v14519_v30, %v11154_v61 }
 0x538   : > { %v7706_v12 = vsel %vm5673_vm5, %v7690_v49, %v11114_v11  ;;  %v7159_v11 = vld [vmem:[#allocation3 + $0x48] sm:$0xff] }
 0x539   : > { %v7768_v41 = vsel %vm5738_vm6, %v7752_v57, %v11163_v0  ;;  %v7720_v43 = vsel %vm5738_vm6, %v7704_v13, %v11164_v34 }
 0x53a   : > { %v11172_v28 = vpop.permute.xlu1 %11171  ;;  %v11167_v14 = vpop.permute.xlu0 %11166  ;;  %7947 = vmatprep.mubr.f32.mxu1 %v7768_v41 }
 0x53b   : > { %7948 = vmatmul.mubr.f32.gmra.mrb[196].mxu1 %v7720_v43  ;;  %v11169_v19 = vunpack.i.h.bf16 %v11167_v14  ;;  %v11168_v27 = vunpack.i.l.bf16 %v11167_v14  ;;  %v11174_v42 = vunpack.i.h.bf16 %v11172_v28  ;;  %v11173_v59 = vunpack.i.l.bf16 %v11172_v28 }
 0x53d   : > { %v7753_v37 = vsel %vm5673_vm5, %v7737_v26, %v11168_v27  ;;  %v7705_v50 = vsel %vm5673_vm5, %v7689_v32, %v11169_v19  ;;  %v7739_v0 = vsel %vm3386_vm4, %v14537_v21, %v11173_v59  ;;  %v7691_v8 = vsel %vm3386_vm4, %v14535_v46, %v11174_v42  ;;  %v7158_v46 = vld [vmem:[#allocation3 + $0x40] sm:$0xff] }
 0x53e   : > { %v11177_v52 = vpop.permute.xlu1 %11176  ;;  %v11182_v36 = vpop.permute.xlu0 %11181 }
 0x53f   : > { %v11179_v24 = vunpack.i.h.bf16 %v11177_v52  ;;  %v11178_v22 = vunpack.i.l.bf16 %v11177_v52  ;;  %v11184_v14 = vunpack.i.h.bf16 %v11182_v36  ;;  %v11183_v38 = vunpack.i.l.bf16 %v11182_v36 }
 0x540   : > { %v11128_v36 = vunpack.i.l.bf16 %v14768_v6 }
 0x541   : > { %v7769_v5 = vsel %vm5738_vm6, %v7753_v37, %v11178_v22  ;;  %v7721_v2 = vsel %vm5738_vm6, %v7705_v50, %v11179_v24  ;;  %v7740_v22 = vsel %vm3386_vm4, %v14558_v63, %v11183_v38  ;;  %v7692_v26 = vsel %vm3386_vm4, %v7158_v46, %v11184_v14 }
 0x542   : > { %7952 = vmatprep.mubr.f32.mxu1 %v7769_v5  ;;  %v14814_v7 = vpop.permute.xlu1 %11186 }
 0x543   : > { %7953 = vmatmul.mubr.f32.gmra.mrb[198].mxu1 %v7721_v2 }
 0x54a   : > { %v11192_v54 = vpop.permute.xlu0 %11191 }
 0x54b   : > { %v11194_v3 = vunpack.i.h.bf16 %v11192_v54  ;;  %v11193_v9 = vunpack.i.l.bf16 %v11192_v54 }
 0x54d   : > { %v7770_v1 = vsel %vm5738_vm6, %v7754_v44, %v11193_v9  ;;  %v7722_v35 = vsel %vm5738_vm6, %v7706_v12, %v11194_v3  ;;  %v7741_v3 = vsel %vm3386_vm4, %v14585_v40, %v11128_v36  ;;  %v7693_v9 = vsel %vm3386_vm4, %v7159_v11, %v11129_v25 }
 0x54e   : > { %v11202_v30 = vpop.permute.xlu1 %11201  ;;  %v11197_v15 = vpop.permute.xlu0 %11196  ;;  %7957 = vmatprep.mubr.f32.mxu1 %v7770_v1 }
 0x54f   : > { %v11204_v17 = vunpack.i.h.bf16 %v11202_v30  ;;  %v11203_v23 = vunpack.i.l.bf16 %v11202_v30  ;;  %v11199_v51 = vunpack.i.h.bf16 %v11197_v15  ;;  %v11198_v34 = vunpack.i.l.bf16 %v11197_v15  ;;  %7958 = vmatmul.mubr.f32.gmra.mrb[200].mxu1 %v7722_v35  ;;  %v7160_v30 = vld [vmem:[#allocation3 + $0x60] sm:$0xff] }
 0x551   : > { %v7755_v62 = vsel %vm5673_vm5, %v7739_v0, %v11198_v34  ;;  %v7707_v57 = vsel %vm5673_vm5, %v7691_v8, %v11199_v51 }
 0x552   : > { %v11207_v13 = vpop.permute.xlu1 %11206  ;;  %v11212_v41 = vpop.permute.xlu0 %11211  ;;  %v7771_v43 = vsel %vm5738_vm6, %v7755_v62, %v11203_v23  ;;  %v7723_v28 = vsel %vm5738_vm6, %v7707_v57, %v11204_v17  ;;  %v11159_v17 = vunpack.i.h.bf16 %v14789_v60  ;;  %v11158_v23 = vunpack.i.l.bf16 %v14789_v60 }
 0x553   : > { %7962 = vmatprep.mubr.f32.mxu1 %v7771_v43  ;;  %v11209_v48 = vunpack.i.h.bf16 %v11207_v13  ;;  %v11208_v19 = vunpack.i.l.bf16 %v11207_v13  ;;  %v11214_v12 = vunpack.i.h.bf16 %v11212_v41  ;;  %v11213_v1 = vunpack.i.l.bf16 %v11212_v41 }
 0x554   : > { %7963 = vmatmul.mubr.f32.gmra.mrb[202].mxu1 %v7723_v28 }
 0x555   : > { %v7756_v32 = vsel %vm5673_vm5, %v7740_v22, %v11208_v19  ;;  %v7708_v37 = vsel %vm5673_vm5, %v7692_v26, %v11209_v48  ;;  %v7742_v15 = vsel %vm3386_vm4, %v14621_v18, %v11213_v1  ;;  %v7694_v40 = vsel %vm3386_vm4, %v7160_v30, %v11214_v12  ;;  %v7161_v19 = vld [vmem:[#allocation3 + $0x68] sm:$0xff]  ;;  %v7164_v12 = vld [vmem:[#allocation3 + $0x90] sm:$0xff] }
 0x556   : > { %v14828_v21 = vpop.permute.xlu1 %11216  ;;  %v11222_v27 = vpop.permute.xlu0 %11221  ;;  %v7758_v57 = vsel %vm5673_vm5, %v7742_v15, %v11158_v23  ;;  %v7710_v13 = vsel %vm5673_vm5, %v7694_v40, %v11159_v17 }
 0x557   : > { %v11224_v52 = vunpack.i.h.bf16 %v11222_v27  ;;  %v11223_v24 = vunpack.i.l.bf16 %v11222_v27  ;;  %v11218_v1 = vunpack.i.l.bf16 %v14828_v21 }
 0x559   : > { %v7772_v50 = vsel %vm5738_vm6, %v7756_v32, %v11223_v24  ;;  %v7724_v5 = vsel %vm5738_vm6, %v7708_v37, %v11224_v52 }
 0x55a   : > { %v11232_v2 = vpop.permute.xlu1 %11231  ;;  %v11227_v61 = vpop.permute.xlu0 %11226  ;;  %7967 = vmatprep.mubr.f32.mxu1 %v7772_v50 }
 0x55b   : > { %7968 = vmatmul.mubr.f32.gmra.mrb[204].mxu1 %v7724_v5  ;;  %v11229_v56 = vunpack.i.h.bf16 %v11227_v61  ;;  %v11228_v63 = vunpack.i.l.bf16 %v11227_v61  ;;  %v11234_v8 = vunpack.i.h.bf16 %v11232_v2  ;;  %v11233_v62 = vunpack.i.l.bf16 %v11232_v2 }
 0x55d   : > { %v7757_v42 = vsel %vm5673_vm5, %v7741_v3, %v11228_v63  ;;  %v7709_v59 = vsel %vm5673_vm5, %v7693_v9, %v11229_v56  ;;  %v7743_v27 = vsel %vm3386_vm4, %v14632_v29, %v11233_v62  ;;  %v7695_v46 = vsel %vm3386_vm4, %v7161_v19, %v11234_v8  ;;  %v14863_v63 = vld [vmem:[#allocation3 + $0x70] sm:$0xff] }
 0x55e   : > { %v11237_v49 = vpop.permute.xlu1 %11236  ;;  %v11242_v35 = vpop.permute.xlu0 %11241  ;;  %v11189_v29 = vunpack.i.h.bf16 %v14814_v7  ;;  %v11188_v3 = vunpack.i.l.bf16 %v14814_v7 }
 0x55f   : > { %v11239_v39 = vunpack.i.h.bf16 %v11237_v49  ;;  %v11238_v54 = vunpack.i.l.bf16 %v11237_v49  ;;  %v11244_v50 = vunpack.i.h.bf16 %v11242_v35  ;;  %v11243_v5 = vunpack.i.l.bf16 %v11242_v35 }
 0x561   : > { %v7773_v44 = vsel %vm5738_vm6, %v7757_v42, %v11238_v54  ;;  %v7725_v6 = vsel %vm5738_vm6, %v7709_v59, %v11239_v39  ;;  %v7744_v39 = vsel %vm3386_vm4, %v14653_v55, %v11243_v5  ;;  %v7696_v54 = vsel %vm3386_vm4, %v14863_v63, %v11244_v50 }
 0x562   : > { %7972 = vmatprep.mubr.f32.mxu1 %v7773_v44 }
 0x563   : > { %7973 = vmatmul.mubr.f32.gmra.mrb[206].mxu1 %v7725_v6 }
 0x56a   : > { %v11247_v51 = vpop.permute.xlu0 %11246 }
 0x56b   : > { %v11249_v34 = vunpack.i.h.bf16 %v11247_v51  ;;  %v11248_v0 = vunpack.i.l.bf16 %v11247_v51  ;;  %v14877_v51 = vld [vmem:[#allocation3 + $0x78] sm:$0xff] }
 0x56c   : > { %v7697_v8 = vsel %vm3386_vm4, %v14877_v51, %v11189_v29 }
 0x56d   : > { %v7774_v41 = vsel %vm5738_vm6, %v7758_v57, %v11248_v0  ;;  %v7726_v43 = vsel %vm5738_vm6, %v7710_v13, %v11249_v34  ;;  %v7745_v0 = vsel %vm3386_vm4, %v14671_v20, %v11188_v3  ;;  %v11219_v57 = vunpack.i.h.bf16 %v14828_v21  ;;  %v7166_v3 = vld [vmem:[#allocation3 + $0xa0] sm:$0xff] }
 0x56e   : > { %v11257_v18 = vpop.permute.xlu1 %11256  ;;  %v11252_v28 = vpop.permute.xlu0 %11251  ;;  %7977 = vmatprep.mubr.f32.mxu1 %v7774_v41 }
 0x56f   : > { %v11259_v14 = vunpack.i.h.bf16 %v11257_v18  ;;  %v11258_v38 = vunpack.i.l.bf16 %v11257_v18  ;;  %v11254_v48 = vunpack.i.h.bf16 %v11252_v28  ;;  %v11253_v60 = vunpack.i.l.bf16 %v11252_v28  ;;  %7978 = vmatmul.mubr.f32.gmra.mrb[208].mxu1 %v7726_v43 }
 0x570   : > { %v11103_v43 = vunpack.i.l.bf16 %v14761_v58 }
 0x571   : > { %v7759_v52 = vsel %vm5673_vm5, %v7743_v27, %v11253_v60  ;;  %v7711_v24 = vsel %vm5673_vm5, %v7695_v46, %v11254_v48  ;;  %v11104_v48 = vunpack.i.h.bf16 %v14761_v58 }
 0x572   : > { %v11262_v22 = vpop.permute.xlu1 %11261  ;;  %v11267_v26 = vpop.permute.xlu0 %11266  ;;  %v7775_v32 = vsel %vm5738_vm6, %v7759_v52, %v11258_v38  ;;  %v7727_v37 = vsel %vm5738_vm6, %v7711_v24, %v11259_v14 }
 0x573   : > { %7982 = vmatprep.mubr.f32.mxu1 %v7775_v32  ;;  %v11264_v2 = vunpack.i.h.bf16 %v11262_v22  ;;  %v11263_v61 = vunpack.i.l.bf16 %v11262_v22  ;;  %v11268_v25 = vunpack.i.l.bf16 %v11267_v26  ;;  %v11269_v9 = vunpack.i.h.bf16 %v11267_v26 }
 0x574   : > { %7983 = vmatmul.mubr.f32.gmra.mrb[210].mxu1 %v7727_v37  ;;  %v7165_v37 = vld [vmem:[#allocation3 + $0x98] sm:$0xff] }
 0x575   : > { %v7760_v42 = vsel %vm5673_vm5, %v7744_v39, %v11263_v61  ;;  %v7712_v59 = vsel %vm5673_vm5, %v7696_v54, %v11264_v2  ;;  %v7746_v15 = vsel %vm3386_vm4, %v14693_v31, %v11268_v25  ;;  %v7698_v62 = vsel %vm3386_vm4, %v7164_v12, %v11269_v9 }
 0x576   : > { %v11287_v36 = vpop.permute.xlu1 %11286  ;;  %v11272_v56 = vpop.permute.xlu0 %11271  ;;  %v7762_v41 = vsel %vm5673_vm5, %v7746_v15, %v11218_v1  ;;  %v7714_v21 = vsel %vm5673_vm5, %v7698_v62, %v11219_v57 }
 0x577   : > { %v11274_v49 = vunpack.i.h.bf16 %v11272_v56  ;;  %v11273_v11 = vunpack.i.l.bf16 %v11272_v56  ;;  %v11288_v34 = vunpack.i.l.bf16 %v11287_v36  ;;  %v11289_v60 = vunpack.i.h.bf16 %v11287_v36  ;;  %v8225_v56 = vld [vmem:[%s14393_s13 + $0xc0] sm:$0xff] }
 0x578   : > { %v7778_v52 = vsel %vm5738_vm6, %v7762_v41, %v11103_v43  ;;  %v7730_v32 = vsel %vm5738_vm6, %v7714_v21, %v11104_v48  ;;  %v7288_v48 = vld [vmem:[#allocation3 + $0x80] sm:$0xff] }
 0x579   : > { %v7776_v44 = vsel %vm5738_vm6, %v7760_v42, %v11273_v11  ;;  %v7728_v6 = vsel %vm5738_vm6, %v7712_v59, %v11274_v49  ;;  %v7747_v24 = vsel %vm3386_vm4, %v14699_v45, %v11288_v34  ;;  %v7699_v61 = vsel %vm3386_vm4, %v7165_v37, %v11289_v60  ;;  %v8226_v49 = vld [vmem:[%s14393_s13 + $0xc8] sm:$0xff]  ;;  %v8209_v11 = vld [vmem:[%s14393_s13 + $0x40] sm:$0xff] }
 0x57a   : > { %v11292_v35 = vpop.permute.xlu1 %11291  ;;  %v11277_v30 = vpop.permute.xlu0 %11276  ;;  %7987 = vmatprep.mubr.f32.mxu1 %v7776_v44  ;;  %v10079_v9 = vpack.c.bf16 %v8226_v49, %v8225_v56  ;;  %v8210_v42 = vld [vmem:[%s14393_s13 + $0x48] sm:$0xff]  ;;  %v15104_v49 = vmov 0.0|0.0  }
 0x57b   : > { %v11294_v40 = vunpack.i.h.bf16 %v11292_v35  ;;  %v11293_v7 = vunpack.i.l.bf16 %v11292_v35  ;;  %v11279_v17 = vunpack.i.h.bf16 %v11277_v30  ;;  %v11278_v23 = vunpack.i.l.bf16 %v11277_v30  ;;  %7988 = vmatmul.mubr.f32.gmra.mrb[212].mxu1 %v7728_v6  ;;  %v7289_v60 = vld [vmem:[#allocation3 + $0x88] sm:$0xff] }
 0x57c   : > { %v10081_v12 = vpack.c.bf16 %v8210_v42, %v8209_v11  ;;  %10080 = vmatprep.subr.bf16.mxu0 %v10079_v9 }
 0x57d   : > { %v7761_v31 = vsel %vm5673_vm5, %v7745_v0, %v11278_v23  ;;  %v7713_v13 = vsel %vm5673_vm5, %v7697_v8, %v11279_v17 }
 0x57e   : > { %v11297_v18 = vpop.permute.xlu1 %11296  ;;  %v11282_v28 = vpop.permute.xlu0 %11281  ;;  %v7777_v14 = vsel %vm5738_vm6, %v7761_v31, %v11293_v7  ;;  %v7729_v38 = vsel %vm5738_vm6, %v7713_v13, %v11294_v40  ;;  %10082 = vmatpush3.bf16.msra.mxu0 %v10081_v12 }
 0x57f   : > { %v11283_v19 = vunpack.i.l.bf16 %v11282_v28  ;;  %7992 = vmatprep.mubr.f32.mxu1 %v7777_v14  ;;  %v11298_v27 = vunpack.i.l.bf16 %v11297_v18  ;;  %v11284_v46 = vunpack.i.h.bf16 %v11282_v28  ;;  %v11299_v50 = vunpack.i.h.bf16 %v11297_v18 }
 0x580   : > { %7993 = vmatmul.mubr.f32.gmra.mrb[214].mxu1 %v7729_v38 }
 0x581   : > { %7997 = vmatprep.mubr.f32.mxu1 %v7778_v52  ;;  %v7763_v22 = vsel %vm5673_vm5, %v7747_v24, %v11283_v19  ;;  %v7715_v36 = vsel %vm5673_vm5, %v7699_v61, %v11284_v46  ;;  %v8229_v46 = vld [vmem:[%s14393_s13 + $0xe0] sm:$0xff]  ;;  %v8230_v52 = vld [vmem:[%s14393_s13 + $0xe8] sm:$0xff] }
 0x582   : > { %v11302_v58 = vpop.permute.xlu1 %11301  ;;  %v11307_v26 = vpop.permute.xlu0 %11306  ;;  %v7779_v25 = vsel %vm5738_vm6, %v7763_v22, %v11298_v27  ;;  %v7731_v30 = vsel %vm5738_vm6, %v7715_v36, %v11299_v50  ;;  %v8213_v24 = vld [vmem:[%s14393_s13 + $0x60] sm:$0xff]  ;;  %v8231_v50 = vld [vmem:[%s14393_s13 + $0xf0] sm:$0xff] }
 0x583   : > { %v11309_v5 = vunpack.i.h.bf16 %v11307_v26  ;;  %v11308_v2 = vunpack.i.l.bf16 %v11307_v26  ;;  %v11303_v29 = vunpack.i.l.bf16 %v11302_v58  ;;  %v11304_v39 = vunpack.i.h.bf16 %v11302_v58  ;;  %v8214_v26 = vld [vmem:[%s14393_s13 + $0x68] sm:$0xff] }
 0x584   : > { %7998 = vmatmul.mubr.f32.gmra.mrb[216].mxu1 %v7730_v32  ;;  %v10087_v58 = vpack.c.bf16 %v8230_v52, %v8229_v46  ;;  %v10089_v37 = vpack.c.bf16 %v8214_v26, %v8213_v24 }
 0x585   : > { %8002 = vmatprep.mubr.f32.mxu1 %v7779_v25  ;;  %v7748_v54 = vsel %vm3386_vm4, %v14710_v10, %v11308_v2  ;;  %v7700_v6 = vsel %vm3386_vm4, %v7166_v3, %v11309_v5  ;;  %v8232_v5 = vld [vmem:[%s14393_s13 + $0xf8] sm:$0xff]  ;;  %v8215_v2 = vld [vmem:[%s14393_s13 + $0x70] sm:$0xff] }
 0x586   : > { %v11317_v59 = vpop.permute.xlu1 %11316  ;;  %v11312_v44 = vpop.permute.xlu0 %11311  ;;  %v7764_v7 = vsel %vm5673_vm5, %v7748_v54, %v11303_v29  ;;  %v7716_v23 = vsel %vm5673_vm5, %v7700_v6, %v11304_v39  ;;  %v10091_v29 = vpack.c.bf16 %v8232_v5, %v8231_v50  ;;  %v8216_v25 = vld [vmem:[%s14393_s13 + $0x78] sm:$0xff] }
 0x587   : > { %v11314_v1 = vunpack.i.h.bf16 %v11312_v44  ;;  %v11313_v35 = vunpack.i.l.bf16 %v11312_v44  ;;  %v11319_v15 = vunpack.i.h.bf16 %v11317_v59  ;;  %v11318_v40 = vunpack.i.l.bf16 %v11317_v59 }
 0x588   : > { %8003 = vmatmul.mubr.f32.gmra.mrb[218].mxu1 %v7731_v30  ;;  %v10093_v36 = vpack.c.bf16 %v8216_v25, %v8215_v2 }
 0x589   : > { %v7780_v17 = vsel %vm5738_vm6, %v7764_v7, %v11313_v35  ;;  %v7732_v8 = vsel %vm5738_vm6, %v7716_v23, %v11314_v1  ;;  %v7749_v41 = vsel %vm3386_vm4, %v14716_v16, %v11318_v40  ;;  %v7701_v43 = vsel %vm3386_vm4, %v14653_v55, %v11319_v15 }
 0x58a   : > { %v11327_v34 = vpop.permute.xlu1 %11326  ;;  %v11322_v0 = vpop.permute.xlu0 %11321  ;;  %8007 = vmatprep.mubr.f32.mxu1 %v7780_v17 }
 0x58b   : > { %v11329_v62 = vunpack.i.h.bf16 %v11327_v34  ;;  %v11328_v57 = vunpack.i.l.bf16 %v11327_v34  ;;  %v11324_v31 = vunpack.i.h.bf16 %v11322_v0  ;;  %v11323_v13 = vunpack.i.l.bf16 %v11322_v0 }
 0x58c   : > { %8008 = vmatmul.mubr.f32.gmra.mrb[220].mxu1 %v7732_v8 }
 0x58d   : > { %v7765_v18 = vsel %vm5673_vm5, %v7749_v41, %v11323_v13  ;;  %v7717_v28 = vsel %vm5673_vm5, %v7701_v43, %v11324_v31 }
 0x58e   : > { %v7781_v14 = vsel %vm5738_vm6, %v7765_v18, %v11328_v57  ;;  %v7733_v38 = vsel %vm5738_vm6, %v7717_v28, %v11329_v62 }
 0x58f   : > { %8012 = vmatprep.mubr.f32.mxu1 %v7781_v14 }
 0x590   : > { %8013 = vmatmul.mubr.f32.gmra.mrb[222].mxu1 %v7733_v38 }
 0x591   : > { %9908 = vmatprep.mubr.msk.f32.mxu1 %vm3386_vm4, %v14863_v63  ;;  %v7293_v63 = vld [vmem:[#allocation3 + $0xb8] sm:$0xff] }
 0x594   : > { %9909 = vmatmul.mubr.msk.f32.vlgmr.msra.gmra.mrb[224].mxu1 %vm3386_vm4, %v14877_v51 }
 0x595   : > { %9911 = vmatprep.mubr.msk.f32.mxu1 %vm3386_vm4, %v7288_v48 }
 0x598   : > { %9912 = vmatmul.mubr.msk.f32.gmra.mrb[226].mxu1 %vm3386_vm4, %v7289_v60 }
 0x599   : > { %9914 = vmatprep.mubr.msk.f32.mxu1 %vm3386_vm4, %v7166_v3 }
 0x59c   : > { %9915 = vmatmul.mubr.msk.f32.gmra.mrb[228].mxu1 %vm3386_vm4, %v14653_v55  ;;  %v7301_v55 = vld [vmem:[#allocation3 + $0x118] sm:$0xff] }
 0x59d   : > { %9917 = vmatprep.mubr.msk.f32.mxu1 %vm3386_vm4, %v14671_v20  ;;  %v8227_v20 = vld [vmem:[%s14393_s13 + $0xd0] sm:$0xff] }
 0x5a0   : > { %9918 = vmatmul.mubr.msk.f32.gmra.mrb[230].mxu1 %vm3386_vm4, %v7293_v63 }
 0x5a1   : > { %9920 = vmatprep.mubr.msk.f32.mxu1 %vm3386_vm4, %v14699_v45  ;;  %v8228_v45 = vld [vmem:[%s14393_s13 + $0xd8] sm:$0xff] }
 0x5a4   : > { %9921 = vmatmul.mubr.msk.f32.gmra.mrb[232].mxu1 %vm3386_vm4, %v14710_v10  ;;  %v8211_v10 = vld [vmem:[%s14393_s13 + $0x50] sm:$0xff] }
 0x5a5   : > { %9923 = vmatprep.mubr.msk.f32.mxu1 %vm3386_vm4, %v14716_v16  ;;  %v10083_v16 = vpack.c.bf16 %v8228_v45, %v8227_v20 }
 0x5a7   : > { %10084 = vmatprep.subr.bf16.mxu0 %v10083_v16 }
 0x5a8   : > { %9924 = vmatmul.mubr.msk.f32.gmra.mrb[234].mxu1 %vm3386_vm4, %v14739_v53  ;;  %v8212_v53 = vld [vmem:[%s14393_s13 + $0x58] sm:$0xff]  ;;  %s554_s13 = scalar_lea.vmem %s15059_s11, %s8583_s26 }
 0x5a9   : > { %9926 = vmatprep.mubr.msk.f32.mxu1 %vm3386_vm4, %v14730_v4  ;;  %v10085_v51 = vpack.c.bf16 %v8212_v53, %v8211_v10  ;;  %v14975_v10 = vld [vmem:[%s534_s14] ss:$0 sm:$0xff] }
 0x5ab   : > { %10086 = vmatpush3.bf16.msra.mxu0 %v10085_v51 }
 0x5ac   : > { %9927 = vmatmul.mubr.msk.f32.gmra.mrb[236].mxu1 %vm3386_vm4, %v14741_v47  ;;  %10088 = vmatprep.subr.bf16.mxu0 %v10087_v58 }
 0x5ad   : > { %9929 = vmatprep.mubr.msk.f32.mxu1 %vm3386_vm4, %v14749_v33 }
 0x5af   : > { %10090 = vmatpush3.bf16.msra.mxu0 %v10089_v37 }
 0x5b0   : > { %9930 = vmatmul.mubr.msk.f32.gmra.mrb[238].mxu1 %vm3386_vm4, %v7301_v55  ;;  %10092 = vmatprep.subr.bf16.mxu0 %v10091_v29 }
 0x5b3   : > { %10094 = vmatpush3.bf16.msra.mxu0 %v10093_v36 }
 0x5b4   : > { %10095 = vmatprep.subr.bf16.mxu0 %v15104_v49 }
 0x602   : > { %v9291_v4 = vpop.f32.mrb[192].mxu1 }
 0x603   : > { %v9292_v47 = vpop.f32.mrb[193].mxu1 }
 0x604   : > { %v14952_v33 = vadd.f32 %v9292_v47, %v9291_v4 }
 0x606   : > { %v7940_v4 = vadd.f32 %v14952_v33, %v14975_v10 }
 0x607   : > { %v9294_v19 = vpop.f32.mrb[194].mxu1 }
 0x608   : > { %v9295_v21 = vpop.f32.mrb[195].mxu1 }
 0x609   : > { %v9296_v27 = vadd.f32 %v9295_v21, %v9294_v19 }
 0x60b   : > { %v7945_v53 = vadd.f32 %v9296_v27, %v14975_v10 }
 0x60e   : > { %v9297_v22 = vpop.f32.mrb[196].mxu1 }
 0x60f   : > { %v9298_v32 = vpop.f32.mrb[197].mxu1 }
 0x610   : > { %v9299_v61 = vadd.f32 %v9298_v32, %v9297_v22 }
 0x612   : > { %v7950_v58 = vadd.f32 %v9299_v61, %v14975_v10 }
 0x616   : > { %v9300_v56 = vpop.f32.mrb[198].mxu1 }
 0x617   : > { %v9301_v11 = vpop.f32.mrb[199].mxu1 }
 0x618   : > { %v9302_v39 = vadd.f32 %v9301_v11, %v9300_v56 }
 0x61a   : > { %v7955_v52 = vadd.f32 %v9302_v39, %v14975_v10 }
 0x622   : > { %v9303_v54 = vpop.f32.mrb[200].mxu1 }
 0x623   : > { %v9304_v3 = vpop.f32.mrb[201].mxu1 }
 0x624   : > { %v9305_v9 = vadd.f32 %v9304_v3, %v9303_v54 }
 0x626   : > { %v7960_v29 = vadd.f32 %v9305_v9, %v14975_v10 }
 0x627   : > { %v9306_v42 = vpop.f32.mrb[202].mxu1 }
 0x628   : > { %v9307_v59 = vpop.f32.mrb[203].mxu1 }
 0x629   : > { %v9308_v44 = vadd.f32 %v9307_v59, %v9306_v42 }
 0x62b   : > { %v7965_v5 = vadd.f32 %v9308_v44, %v14975_v10 }
 0x62e   : > { %v9309_v6 = vpop.f32.mrb[204].mxu1 }
 0x62f   : > { %v9310_v12 = vpop.f32.mrb[205].mxu1 }
 0x630   : > { %v9311_v1 = vadd.f32 %v9310_v12, %v9309_v6 }
 0x632   : > { %v7970_v42 = vadd.f32 %v9311_v1, %v14975_v10 }
 0x636   : > { %v9312_v35 = vpop.f32.mrb[206].mxu1 }
 0x637   : > { %v9313_v30 = vpop.f32.mrb[207].mxu1 }
 0x638   : > { %v9314_v15 = vadd.f32 %v9313_v30, %v9312_v35 }
 0x63a   : > { %v7975_v54 = vadd.f32 %v9314_v15, %v14975_v10 }
 0x642   : > { %v9315_v40 = vpop.f32.mrb[208].mxu1 }
 0x643   : > { %v9316_v7 = vpop.f32.mrb[209].mxu1 }
 0x644   : > { %v9317_v17 = vadd.f32 %v9316_v7, %v9315_v40 }
 0x647   : > { %v9318_v23 = vpop.f32.mrb[210].mxu1 }
 0x648   : > { %v9319_v34 = vpop.f32.mrb[211].mxu1 }
 0x649   : > { %v9320_v0 = vadd.f32 %v9319_v34, %v9318_v23  ;;  %v7980_v23 = vadd.f32 %v9317_v17, %v14975_v10 }
 0x64b   : > { %v7985_v30 = vadd.f32 %v9320_v0, %v14975_v10 }
 0x64e   : > { %v9321_v8 = vpop.f32.mrb[212].mxu1 }
 0x64f   : > { %v9322_v62 = vpop.f32.mrb[213].mxu1 }
 0x650   : > { %v14963_v57 = vadd.f32 %v9322_v62, %v9321_v8 }
 0x653   : > { %v9324_v31 = vpop.f32.mrb[214].mxu1 }
 0x654   : > { %v9325_v13 = vpop.f32.mrb[215].mxu1 }
 0x655   : > { %v9326_v41 = vadd.f32 %v9325_v13, %v9324_v31 }
 0x657   : > { %v9327_v43 = vpop.f32.mrb[216].mxu1  ;;  %v7995_v1 = vadd.f32 %v9326_v41, %v14975_v10 }
 0x658   : > { %v9328_v18 = vpop.f32.mrb[217].mxu1 }
 0x659   : > { %v14965_v28 = vadd.f32 %v9328_v18, %v9327_v43 }
 0x65b   : > { %v9330_v14 = vpop.f32.mrb[218].mxu1 }
 0x65c   : > { %v9331_v38 = vpop.f32.mrb[219].mxu1 }
 0x65d   : > { %v14967_v48 = vadd.f32 %v9331_v38, %v9330_v14  ;;  %v7990_v14 = vadd.f32 %v14963_v57, %v14975_v10 }
 0x65f   : > { %v9333_v60 = vpop.f32.mrb[220].mxu1  ;;  %v8005_v17 = vadd.f32 %v14967_v48, %v14975_v10 }
 0x660   : > { %v9334_v63 = vpop.f32.mrb[221].mxu1 }
 0x661   : > { %v14969_v55 = vadd.f32 %v9334_v63, %v9333_v60 }
 0x663   : > { %v9336_v20 = vpop.f32.mrb[222].mxu1 }
 0x664   : > { %v9337_v45 = vpop.f32.mrb[223].mxu1 }
 0x665   : > { %v14977_v16 = vadd.f32 %v9337_v45, %v9336_v20 }
 0x667   : > { %v9910_v51 = vpop.f32.mrb[224].mxu1  ;;  %v8015_v57 = vadd.f32 %v14977_v16, %v14975_v10 }
 0x668   : > { %v8090_v47 = vadd.f32 %v9910_v51, %v7945_v53  ;;  %v8084_v19 = vpop.f32.mrb[225].mxu1  ;;  %v8000_v51 = vadd.f32 %v14965_v28, %v14975_v10 }
 0x669   : > { %v8085_v21 = vadd.f32 %v8084_v19, %v7940_v4 }
 0x66a   : > { %v8164_v46 = vmax.f32 %v8090_v47, 0.0 }
 0x66b   : > { %v8163_v24 = vmax.f32 %v8085_v21, 0.0  ;;  %v9913_v22 = vpop.f32.mrb[226].mxu1 }
 0x66c   : > { %v8100_v26 = vadd.f32 %v9913_v22, %v7955_v52  ;;  %v8094_v32 = vpop.f32.mrb[227].mxu1 }
 0x66d   : > { %v14984_v37 = vmax.f32 %v8163_v24, %v8164_v46  ;;  %v8095_v50 = vadd.f32 %v8094_v32, %v7950_v58  ;;  %v8010_v24 = vadd.f32 %v14969_v55, %v14975_v10  ;;  %v8311_v55 = vld [vmem:[%s15009_s20] sm:$0xff]  ;;  %v8312_v10 = vld [vmem:[%s15009_s20 + $0x8] sm:$0xff] }
 0x66e   : > { %v8166_v27 = vmax.f32 %v8100_v26, 0.0 }
 0x66f   : > { %v8165_v2 = vmax.f32 %v8095_v50, 0.0  ;;  %v9916_v33 = vpop.f32.mrb[228].mxu1 }
 0x670   : > { %v8110_v25 = vadd.f32 %v9916_v33, %v7965_v5  ;;  %v8104_v36 = vpop.f32.mrb[229].mxu1 }
 0x671   : > { %v8180_v56 = vmax.f32 %v8165_v2, %v8166_v27  ;;  %v8105_v11 = vadd.f32 %v8104_v36, %v7960_v29  ;;  %v10096_v29 = vpack.c.bf16 %v8312_v10, %v8311_v55 }
 0x672   : > { %v8168_v39 = vmax.f32 %v8110_v25, 0.0 }
 0x673   : > { %v8167_v61 = vmax.f32 %v8105_v11, 0.0  ;;  %v9919_v3 = vpop.f32.mrb[230].mxu1  ;;  %v8314_v11 = vld [vmem:[%s15009_s20 + $0x18] sm:$0xff] }
 0x674   : > { %v8120_v59 = vadd.f32 %v9919_v3, %v7975_v54  ;;  %v8114_v6 = vpop.f32.mrb[231].mxu1  ;;  %v8315_v54 = vld [vmem:[%s15009_s20 + $0x20] sm:$0xff] }
 0x675   : > { %v8183_v12 = vmax.f32 %v8167_v61, %v8168_v39  ;;  %v8115_v35 = vadd.f32 %v8114_v6, %v7970_v42  ;;  %v8316_v61 = vld [vmem:[%s15009_s20 + $0x28] sm:$0xff]  ;;  %v8317_v42 = vld [vmem:[%s15009_s20 + $0x30] sm:$0xff] }
 0x676   : > { %v8170_v44 = vmax.f32 %v8120_v59, 0.0  ;;  %v10102_v3 = vpack.c.bf16 %v8316_v61, %v8315_v54  ;;  %v8318_v59 = vld [vmem:[%s15009_s20 + $0x38] sm:$0xff] }
 0x677   : > { %v8187_v9 = vmax.f32 %v14984_v37, %v8183_v12  ;;  %v8169_v40 = vmax.f32 %v8115_v35, 0.0  ;;  %v9922_v7 = vpop.f32.mrb[232].mxu1  ;;  %v10105_v6 = vpack.c.bf16 %v8318_v59, %v8317_v42  ;;  %v8319_v12 = vld [vmem:[%s15009_s20 + $0x40] sm:$0xff]  ;;  %v8320_v35 = vld [vmem:[%s15009_s20 + $0x48] sm:$0xff] }
 0x678   : > { %v8130_v34 = vadd.f32 %v9922_v7, %v7985_v30  ;;  %v8124_v8 = vpop.f32.mrb[233].mxu1  ;;  %v8321_v30 = vld [vmem:[%s15009_s20 + $0x50] sm:$0xff]  ;;  %v15105_v7 = vmov 0.0  }
 0x679   : > { %v8184_v15 = vmax.f32 %v8169_v40, %v8170_v44  ;;  %v8125_v62 = vadd.f32 %v8124_v8, %v7980_v23  ;;  %v10108_v44 = vpack.c.bf16 %v8320_v35, %v8319_v12  ;;  %v8323_v23 = vld [vmem:[%s15009_s20 + $0x60] sm:$0xf] }
 0x67a   : > { %v8172_v31 = vmax.f32 %v8130_v34, 0.0 }
 0x67b   : > { %v8188_v13 = vmax.f32 %v8180_v56, %v8184_v15  ;;  %v8171_v43 = vmax.f32 %v8125_v62, 0.0  ;;  %v9925_v18 = vpop.f32.mrb[234].mxu1  ;;  %v8313_v56 = vld [vmem:[%s15009_s20 + $0x10] sm:$0xff] }
 0x67c   : > { %v8140_v0 = vadd.f32 %v9925_v18, %v7995_v1  ;;  %v8134_v38 = vpop.f32.mrb[235].mxu1  ;;  %v10099_v39 = vpack.c.bf16 %v8314_v11, %v8313_v56  ;;  %v8925_v1 = vld [vmem:[%s550_s25] ss:$0 sm:$0xff] }
 0x67d   : > { %v8181_v60 = vmax.f32 %v8171_v43, %v8172_v31  ;;  %v8135_v63 = vadd.f32 %v8134_v38, %v7990_v14 }
 0x67e   : > { %v8174_v20 = vmax.f32 %v8140_v0, 0.0 }
 0x67f   : > { %v8173_v45 = vmax.f32 %v8135_v63, 0.0  ;;  %v9928_v53 = vpop.f32.mrb[236].mxu1 }
 0x680   : > { %v8150_v41 = vadd.f32 %v9928_v53, %v8005_v17  ;;  %v8144_v4 = vpop.f32.mrb[237].mxu1 }
 0x681   : > { %v8182_v47 = vmax.f32 %v8173_v45, %v8174_v20  ;;  %v8145_v19 = vadd.f32 %v8144_v4, %v8000_v51 }
 0x682   : > { %v8176_v21 = vmax.f32 %v8150_v41, 0.0 }
 0x683   : > { %v8175_v46 = vmax.f32 %v8145_v19, 0.0  ;;  %v9931_v52 = vpop.f32.mrb[238].mxu1 }
 0x684   : > { %v8160_v48 = vadd.f32 %v9931_v52, %v8015_v57  ;;  %v8154_v22 = vpop.f32.mrb[239].mxu1 }
 0x685   : > { %v8185_v58 = vmax.f32 %v8175_v46, %v8176_v21  ;;  %v8155_v26 = vadd.f32 %v8154_v22, %v8010_v24 }
 0x686   : > { %v8178_v32 = vmax.f32 %v8160_v48, 0.0 }
 0x687   : > { %v8189_v28 = vmax.f32 %v8181_v60, %v8185_v58  ;;  %v8177_v37 = vmax.f32 %v8155_v26, 0.0 }
 0x689   : > { %v8186_v50 = vmax.f32 %v8177_v37, %v8178_v32 }
 0x68b   : > { %v8190_v27 = vmax.f32 %v8182_v47, %v8186_v50 }
 0x68d   : > { %v11330_v5 = vpack.i.bf16 %v8188_v13, %v8190_v27 }
 0x68f   : > { %11331 = vrot.lane.b32.xlu0 %v11330_v5, %s11353_s28 }
 0x701   : > { %v11332_v16 = vpop.permute.xlu0 %11331 }
 0x702   : > { %v11334_v2 = vunpack.i.h.bf16 %v11332_v16  ;;  %v11333_v33 = vunpack.i.l.bf16 %v11332_v16 }
 0x704   : > { %v8199_v25 = vsel %vm5673_vm5, %v8187_v9, %v11334_v2  ;;  %v8200_v36 = vsel %vm5673_vm5, %v8189_v28, %v11333_v33  ;;  %v8322_v9 = vld [vmem:[%s15009_s20 + $0x58] sm:$0xff] }
 0x705   : > { %8304 = vmatprep.mubr.f32.mxu0 %v8200_v36  ;;  %v10111_v40 = vpack.c.bf16 %v8322_v9, %v8321_v30 }
 0x706   : > { %8305 = vmatmul.mubr.f32.vlgmr.msra.gmra.mrb[0].mxu0 %v8199_v25 }
 0x707   : > { %10097 = vmatpush3.bf16.msra.mxu0 %v10096_v29  ;;  %9958 = vmatprep.mubr.msk.f32.mxu0 %vm11356_vm7, %v15105_v7 }
 0x708   : > { %10098 = vmatprep.subr.bf16.mxu0 %v15104_v49 }
 0x70b   : > { %10100 = vmatpush3.bf16.msra.mxu0 %v10099_v39 }
 0x70c   : > { %10101 = vmatprep.subr.bf16.mxu0 %v15104_v49 }
 0x70f   : > { %10103 = vmatpush3.bf16.msra.mxu0 %v10102_v3 }
 0x710   : > { %10104 = vmatprep.subr.bf16.mxu0 %v15104_v49 }
 0x713   : > { %10106 = vmatpush3.bf16.msra.mxu0 %v10105_v6 }
 0x714   : > { %10107 = vmatprep.subr.bf16.mxu0 %v15104_v49 }
 0x717   : > { %10109 = vmatpush3.bf16.msra.mxu0 %v10108_v44 }
 0x718   : > { %10110 = vmatprep.subr.bf16.mxu0 %v15104_v49  ;;  %v8924_v49 = vld [vmem:[%s542_s22] ss:$0 sm:$0xff] }
 0x71b   : > { %10112 = vmatpush3.bf16.msra.mxu0 %v10111_v40 }
 0x71c   : > { %9956 = vmatprep.subr.mxu0 %v15105_v7 }
 0x71f   : > { %9957 = vmatpush3.msk.msra.mxu0 %vm8335_vm8, %v8323_v23 }
 0x7d9   : > { %v9391_v34 = vpop.f32.mrb[0].mxu0 }
 0x7da   : > { %v9392_v8 = vpop.f32.mrb[1].mxu0 }
 0x7db   : > { %v9393_v15 = vadd.f32 %v9392_v8, %v9391_v34 }
 0x7dd   : > { %v8307_v62 = vadd.f32 %v9393_v15, %v8924_v49 }
 0x7df   : > { %v8310_v31 = vmax.f32 %v8307_v62, 0.0 }
 0x7e1   : > { %9959 = vmatmul.mubr.msk.f32.vlgmr.msra.gmra.mrb[2].mxu0 %vm8331_vm9, %v8310_v31 }
 0x8b4   : > { %v8405_v13 = vpop.f32.mrb[2].mxu0 }
 0x8b5   : > { %v8406_v43 = vadd.f32 %v8925_v1, %v8405_v13  ;;  %v9960_v18 = vpop.f32.mrb[3].mxu0 }
 0x8b7   : > { %8410 = vst.msk [vmem:[%s554_s13] sm:$0xff] %vm8409_vm10, %v8406_v43 }
 0x8b8 PF: > { %s21_s17 = sadd.s32 1, %s11348_s17  }
 0x8b9   : > { %p18_p4 = scmp.ge.s32.totalorder %s21_s17, 4  }
 0x8bb   :  { %20 = sbr.rel (!%p18_p4) target bundleno = 1 (0x1), region = 144 }

</bundles_post_ra>
